<compile_context>
chip_gen: v7x
topology: tpu7x:2x2x1
jax: 0.10.0
libtpu: 0.0.40
codegen_flags: <defaults>
</compile_context>

<pallas_src>
import functools
import math

import jax
import jax.numpy as jnp
from jax.experimental import pallas as pl
from jax.experimental.pallas import tpu as pltpu


# ----------------------------------------------------------------------------
# helpers
# ----------------------------------------------------------------------------
def _round_up(x, m):
    return (x + m - 1) // m * m


def _pick_tn(cop, cap=512):
    """Largest multiple-of-128 divisor of `cop` (itself a 128-multiple) <= cap."""
    tn = min(cop, cap)
    while cop % tn:
        tn -= 128
    return tn


# ----------------------------------------------------------------------------
# Pallas kernels
# ----------------------------------------------------------------------------
def _spatial_conv_kernel(x_ref, w_ref, b_ref, o_ref, patch_ref, *,
                         kh, kw, stride, cin, cstore, ho, wo, k_valid,
                         apply_relu):
    """One image per grid step.  x_ref: (Hp, Wp/stride, stride*cstore) folded
    halo-padded image.  Builds the (Ho*Wo, kh*kw*cin) patch matrix in VMEM at
    co==0, then o = relu(patch @ w + b) for the current Cout tile."""
    co = pl.program_id(1)

    @pl.when(co == 0)
    def _build_patch():
        kp = patch_ref.shape[1]
        if k_valid < kp:                       # zero the padded K tail once
            patch_ref[:, k_valid:] = jnp.zeros(
                (patch_ref.shape[0], kp - k_valid), patch_ref.dtype)

        def build_row(r):
            base = r * wo
            for di in range(kh):
                row = x_ref[di + stride * r]           # (Wpf, stride*cstore)
                for dj in range(kw):
                    tap = di * kw + dj
                    slab = row[dj // stride: dj // stride + wo,
                               (dj % stride) * cstore:
                               (dj % stride) * cstore + cin]
                    patch_ref[pl.ds(base, wo),
                              tap * cin: tap * cin + cin] = slab

        if ho <= 8:                            # tiny maps: fully unrolled
            for r in range(ho):
                build_row(r)
        else:
            def body(r, carry):
                build_row(r)
                return carry
            jax.lax.fori_loop(0, ho, body, 0)

    acc = jnp.dot(patch_ref[...], w_ref[...],
                  preferred_element_type=jnp.float32)
    acc = acc + b_ref[...]
    if apply_relu:
        acc = jnp.maximum(acc, 0.0)
    o_ref[...] = acc.astype(o_ref.dtype)


def _pointwise_conv_kernel(x_ref, w_ref, b_ref, o_ref, *, apply_relu):
    """1x1 conv: o = relu(x @ w + b), x:(H*W, Cst), weight VMEM-resident."""
    acc = jnp.dot(x_ref[...], w_ref[...], preferred_element_type=jnp.float32)
    acc = acc + b_ref[...]
    if apply_relu:
        acc = jnp.maximum(acc, 0.0)
    o_ref[...] = acc.astype(o_ref.dtype)


def _adaptive_pool_kernel(x_ref, o_ref):
    """Mean over the pooling-window axis.  x:(tm, kh*kw, C) -> o:(tm, C)."""
    o_ref[...] = jnp.mean(x_ref[...].astype(jnp.float32),
                          axis=1).astype(o_ref.dtype)


# ----------------------------------------------------------------------------
# Pallas wrappers
# ----------------------------------------------------------------------------
def spatial_conv(x, cin_valid, w, b, *, kh, kw, stride, pad, relu):
    """NHWC conv.  x stored with Cst >= cin_valid channels (extra = zeros);
    w: (Cout, cin_valid, kh, kw) PyTorch layout.  Returns (y, Cout) where y is
    bf16 NHWC stored at round_up(Cout, 128) channels (padding = zeros)."""
    B, H, W, Cst = x.shape
    Cout = w.shape[0]
    assert w.shape[1] == cin_valid
    Ho = (H + 2 * pad - kh) // stride + 1
    Wo = (W + 2 * pad - kw) // stride + 1
    Hp = H + 2 * pad
    Wp = _round_up(W + 2 * pad, stride)
    Wpf = Wp // stride

    # halo pad only (no patch matrix in HBM); phase-fold W so every tap is a
    # contiguous slice (free reshape, row-major compatible).
    xp = jnp.pad(x, ((0, 0), (pad, pad),
                     (pad, pad + Wp - (W + 2 * pad)), (0, 0)))
    xf = xp.reshape(B, Hp, Wpf, stride * Cst)

    K = kh * kw * cin_valid
    Kp = _round_up(K, 128)
    Cop = _round_up(Cout, 128)
    tn = _pick_tn(Cop)

    wm = jnp.transpose(w, (2, 3, 1, 0)).reshape(K, Cout).astype(jnp.bfloat16)
    wm = jnp.pad(wm, ((0, Kp - K), (0, Cop - Cout)))      # zero K/N padding
    bb = jnp.pad(b.astype(jnp.float32), (0, Cop - Cout)).reshape(1, Cop)

    kernel = functools.partial(
        _spatial_conv_kernel, kh=kh, kw=kw, stride=stride, cin=cin_valid,
        cstore=Cst, ho=Ho, wo=Wo, k_valid=K, apply_relu=relu)

    y = pl.pallas_call(
        kernel,
        out_shape=jax.ShapeDtypeStruct((B, Ho * Wo, Cop), jnp.bfloat16),
        grid=(B, Cop // tn),
        in_specs=[
            pl.BlockSpec((None, Hp, Wpf, stride * Cst),
                         lambda bi, co: (bi, 0, 0, 0)),
            pl.BlockSpec((Kp, tn), lambda bi, co: (0, co)),
            pl.BlockSpec((1, tn), lambda bi, co: (0, co)),
        ],
        out_specs=pl.BlockSpec((None, Ho * Wo, tn),
                               lambda bi, co: (bi, 0, co)),
        scratch_shapes=[pltpu.VMEM((Ho * Wo, Kp), jnp.bfloat16)],
        compiler_params=pltpu.CompilerParams(
            dimension_semantics=("parallel", "arbitrary")),
    )(xf, wm, bb)
    return y.reshape(B, Ho, Wo, Cop), Cout


def pointwise_conv(x, cin_valid, w, b, *, relu=False):
    """1x1 conv on NHWC input stored with Cst channels (extra channels are
    exactly zero, so zero weight rows make them inert)."""
    B, H, W, Cst = x.shape
    Cout = w.shape[0]
    assert w.shape[1] == cin_valid and cin_valid <= Cst
    Cop = _round_up(Cout, 128)
    tn = _pick_tn(Cop)
    wm = w.reshape(Cout, cin_valid).T.astype(jnp.bfloat16)
    wm = jnp.pad(wm, ((0, Cst - cin_valid), (0, Cop - Cout)))
    bb = jnp.pad(b.astype(jnp.float32), (0, Cop - Cout)).reshape(1, Cop)
    xm = x.reshape(B, H * W, Cst)

    y = pl.pallas_call(
        functools.partial(_pointwise_conv_kernel, apply_relu=relu),
        out_shape=jax.ShapeDtypeStruct((B, H * W, Cop), jnp.bfloat16),
        grid=(B, Cop // tn),
        in_specs=[
            pl.BlockSpec((None, H * W, Cst), lambda bi, co: (bi, 0, 0)),
            pl.BlockSpec((Cst, tn), lambda bi, co: (0, co)),
            pl.BlockSpec((1, tn), lambda bi, co: (0, co)),
        ],
        out_specs=pl.BlockSpec((None, H * W, tn), lambda bi, co: (bi, 0, co)),
        compiler_params=pltpu.CompilerParams(
            dimension_semantics=("parallel", "parallel")),
    )(xm, wm, bb)
    return y.reshape(B, H, W, Cop), Cout


def adaptive_avg_pool_nhwc(x, out_size):
    """AdaptiveAvgPool2d((out,out)) on NHWC, evenly-divisible case only."""
    B, H, W, C = x.shape
    # TODO(synk): only the evenly-divisible case (canonical 224->14 path is
    # the 1x1 identity window).
    assert H % out_size == 0 and W % out_size == 0
    kh, kw = H // out_size, W // out_size
    if kh == 1 and kw == 1:
        return x.astype(jnp.float32)
    xr = x.reshape(B, out_size, kh, out_size, kw, C)
    xr = xr.transpose(0, 1, 3, 2, 4, 5).reshape(B * out_size * out_size,
                                                kh * kw, C)
    M = B * out_size * out_size
    tm = min(M, 512)
    Mp = _round_up(M, tm)
    if Mp != M:
        xr = jnp.pad(xr, ((0, Mp - M), (0, 0), (0, 0)))
    y = pl.pallas_call(
        _adaptive_pool_kernel,
        out_shape=jax.ShapeDtypeStruct((Mp, C), jnp.float32),
        grid=(Mp // tm,),
        in_specs=[pl.BlockSpec((tm, kh * kw, C), lambda i: (i, 0, 0))],
        out_specs=pl.BlockSpec((tm, C), lambda i: (i, 0)),
        compiler_params=pltpu.CompilerParams(dimension_semantics=("parallel",)),
    )(xr)
    return y[:M].reshape(B, out_size, out_size, C)


# ----------------------------------------------------------------------------
# XLA glue (tiny ops / TODO fusions)
# ----------------------------------------------------------------------------
def maxpool_3x3_s2_p1(x):
    # TODO(synk): fuse into the stem conv epilogue (whole image is resident).
    return jax.lax.reduce_window(
        x, jnp.array(-jnp.inf, x.dtype), jax.lax.max,
        window_dimensions=(1, 3, 3, 1), window_strides=(1, 2, 2, 1),
        padding=((0, 0), (1, 1), (1, 1), (0, 0)))


def nearest_up2(x):               # F.interpolate(scale_factor=2, 'nearest')
    return jnp.repeat(jnp.repeat(x, 2, axis=1), 2, axis=2)


# ----------------------------------------------------------------------------
# CNN_Encoder forward (ByPixel default; ByChannel branch not taken)
# ----------------------------------------------------------------------------
def cnn_encoder_forward(images, params, enc_size):
    # NCHW -> NHWC once at the boundary; bf16 activations, channels on lanes.
    x = images.transpose(0, 2, 3, 1).astype(jnp.bfloat16)

    # resnet_block1: conv7x7/2 + ReLU + maxpool3x3/2  (spatial /4)
    out1, v1 = spatial_conv(x, 3, params["w1"], params["b1"],
                            kh=7, kw=7, stride=2, pad=3, relu=True)
    out1 = maxpool_3x3_s2_p1(out1)
    # TODO(synk): ResNet50 bottleneck stacks replaced by strided conv proxies.
    out2, v2 = spatial_conv(out1, v1, params["w2"], params["b2"],
                            kh=3, kw=3, stride=2, pad=1, relu=True)
    out3, v3 = spatial_conv(out2, v2, params["w3"], params["b3"],
                            kh=3, kw=3, stride=2, pad=1, relu=True)
    out4, v4 = spatial_conv(out3, v3, params["w4"], params["b4"],
                            kh=3, kw=3, stride=2, pad=1, relu=True)

    p4, c4 = pointwise_conv(out4, v4, params["wc4"], params["bc4"])
    p3, c3 = pointwise_conv(out3, v3, params["wc3"], params["bc3"])
    # 1x1 conv is pointwise -> 0.5x nearest-downsample commutes with it;
    # downsampling first computes 4x fewer pixels.
    p2, c2 = pointwise_conv(out2[:, ::2, ::2, :], v2,
                            params["wc2"], params["bc2"])

    # TODO(synk): tail kept as tiny XLA glue (see header).
    cat = jnp.concatenate(
        [nearest_up2(p4)[..., :c4], p3[..., :c3], p2[..., :c2]], axis=-1)
    return adaptive_avg_pool_nhwc(cat, enc_size)   # [B, enc, enc, 8C] f32


# ----------------------------------------------------------------------------
# Pure-JAX (XLA) reference for numerical validation
# ----------------------------------------------------------------------------
def cnn_encoder_forward_reference(images, params, enc_size):
    x = images.transpose(0, 2, 3, 1).astype(jnp.bfloat16)

    def conv(x, w, b, stride, pad, relu):
        y = jax.lax.conv_general_dilated(
            x, jnp.transpose(w, (2, 3, 1, 0)).astype(jnp.bfloat16),
            window_strides=(stride, stride),
            padding=((pad, pad), (pad, pad)),
            dimension_numbers=("NHWC", "HWIO", "NHWC"),
            preferred_element_type=jnp.float32)
        y = y + b.astype(jnp.float32)[None, None, None, :]
        if relu:
            y = jnp.maximum(y, 0.0)
        return y.astype(jnp.bfloat16)

    out1 = conv(x, params["w1"], params["b1"], 2, 3, True)
    out1 = maxpool_3x3_s2_p1(out1)
    out2 = conv(out1, params["w2"], params["b2"], 2, 1, True)
    out3 = conv(out2, params["w3"], params["b3"], 2, 1, True)
    out4 = conv(out3, params["w4"], params["b4"], 2, 1, True)
    p4 = conv(out4, params["wc4"], params["bc4"], 1, 0, False)
    p3 = conv(out3, params["wc3"], params["bc3"], 1, 0, False)
    p2 = conv(out2, params["wc2"], params["bc2"], 1, 0, False)
    cat = jnp.concatenate(
        [jnp.repeat(jnp.repeat(p4, 2, axis=1), 2, axis=2),
         p3, p2[:, ::2, ::2, :]], axis=-1)
    B, Hc, Wc, Cc = cat.shape
    k = Hc // enc_size
    pooled = cat.astype(jnp.float32).reshape(
        B, enc_size, k, enc_size, k, Cc).mean(axis=(2, 4))
    return pooled


# ----------------------------------------------------------------------------
# Deterministic parameter init + demo
# ----------------------------------------------------------------------------
def _init_conv(key, cout, cin, kh, kw):
    kw_key, kb_key = jax.random.split(key)
    fan_in = cin * kh * kw
    w = jax.random.normal(kw_key, (cout, cin, kh, kw),
                          jnp.float32) / math.sqrt(fan_in)
    b = jax.random.normal(kb_key, (cout,), jnp.float32) * 0.01
    return w, b


if __name__ == "__main__":
    B, H, W = 2, 64, 64          # small image (real module expects 224x224)
    C = 32                       # base channels (scaled stand-in for 256)
    ENC = 2                      # encoded_image_size (stand-in for 14)

    key = jax.random.PRNGKey(0)
    ks = jax.random.split(key, 8)
    params = {}
    params["w1"], params["b1"] = _init_conv(ks[0], C, 3, 7, 7)           # stem
    params["w2"], params["b2"] = _init_conv(ks[1], 2 * C, C, 3, 3)       # block2 proxy
    params["w3"], params["b3"] = _init_conv(ks[2], 4 * C, 2 * C, 3, 3)
    params["w4"], params["b4"] = _init_conv(ks[3], 8 * C, 4 * C, 3, 3)
    params["wc4"], params["bc4"] = _init_conv(ks[4], 4 * C, 8 * C, 1, 1)  # conv4
    params["wc3"], params["bc3"] = _init_conv(ks[5], 2 * C, 4 * C, 1, 1)  # conv3
    params["wc2"], params["bc2"] = _init_conv(ks[6], 2 * C, 2 * C, 1, 1)  # conv2

    images = jax.random.normal(ks[7], (B, 3, H, W), jnp.float32)

    fwd = jax.jit(functools.partial(cnn_encoder_forward, enc_size=ENC))
    out = jax.block_until_ready(fwd(images, params))

    ref = jax.jit(functools.partial(cnn_encoder_forward_reference,
                                    enc_size=ENC))(images, params)
    ref = jax.block_until_ready(ref)

    assert out.shape == (B, ENC, ENC, 8 * C), out.shape
    assert out.dtype == jnp.float32
    assert bool(jnp.all(jnp.isfinite(out)))
    assert bool(jnp.allclose(out, ref, rtol=5e-2, atol=5e-2)), (
        float(jnp.max(jnp.abs(out - ref))))
    print("KERNEL_OK")
</pallas_src>

<mosaic_0001>
module attributes {stable_mosaic.version = 11 : i64} {
  func.func @_spatial_conv_kernel(%arg0: i32, %arg1: i32, %arg2: memref<1x70x35x6xbf16, #tpu.memory_space<vmem>>, %arg3: memref<256x128xbf16, #tpu.memory_space<vmem>>, %arg4: memref<1x128xf32, #tpu.memory_space<vmem>>, %arg5: memref<1x1024x128xbf16, #tpu.memory_space<vmem>>, %arg6: memref<1024x256xbf16, #tpu.memory_space<vmem>>) attributes {dimension_semantics = [#tpu.dimension_semantics<parallel>, #tpu.dimension_semantics<arbitrary>], iteration_bounds = array<i64: 2, 1>, scalar_prefetch = 0 : i64, scratch_operands = 1 : i64, tpu.core_type = #tpu.core_type<tc>, window_params = [{transform_indices = @transform_0, window_bounds = array<i64: 1, 70, 35, 6>}, {transform_indices = @transform_1, window_bounds = array<i64: 256, 128>}, {transform_indices = @transform_2, window_bounds = array<i64: 1, 128>}, {transform_indices = @transform_3, window_bounds = array<i64: 1, 1024, 128>}]} {
    %c0_i32 = arith.constant 0 : i32
    %0 = arith.cmpi eq, %arg1, %c0_i32 : i32
    %1 = arith.extui %0 : i1 to i32
    %c0_i32_0 = arith.constant 0 : i32
    %2 = arith.cmpi ne, %1, %c0_i32_0 : i32
    scf.if %2 {
      %cst_10 = arith.constant 0.000000e+00 : bf16
      %15 = vector.broadcast %cst_10 : bf16 to vector<1024x109xbf16>
      %c0_11 = arith.constant 0 : index
      %c147 = arith.constant 147 : index
      %16 = vector.load %arg6[%c0_11, %c147] : memref<1024x256xbf16, #tpu.memory_space<vmem>>, vector<1024x109xbf16>
      tpu.vector_store %arg6[%c0_11, %c147], %15 {strides = array<i32>} : memref<1024x256xbf16, #tpu.memory_space<vmem>>, vector<1024x109xbf16>,
      %c0_i32_12 = arith.constant 0 : i32
      %c32_i32 = arith.constant 32 : i32
      %17 = arith.addi %c0_i32_12, %c32_i32 : i32
      %c1_i32 = arith.constant 1 : i32
      scf.for %arg7 = %c0_i32_12 to %17 step %c1_i32  : i32 {
        %c32_i32_14 = arith.constant 32 : i32
        %18 = arith.muli %arg7, %c32_i32_14 : i32
        %c2_i32 = arith.constant 2 : i32
        %19 = arith.muli %c2_i32, %arg7 : i32
        %c0_i32_15 = arith.constant 0 : i32
        %20 = arith.addi %c0_i32_15, %19 : i32
        %c0_16 = arith.constant 0 : index
        %21 = arith.index_cast %20 : i32 to index
        %c0_17 = arith.constant 0 : index
        %c0_18 = arith.constant 0 : index
        %22 = vector.load %arg2[%c0_16, %21, %c0_17, %c0_18] : memref<1x70x35x6xbf16, #tpu.memory_space<vmem>>, vector<1x1x35x6xbf16>
        %23 = vector.shape_cast %22 : vector<1x1x35x6xbf16> to vector<35x6xbf16>
        %24 = vector.extract_strided_slice %23 {offsets = [0, 0], sizes = [32, 3], strides = [1, 1]} : vector<35x6xbf16> to vector<32x3xbf16>
        %25 = arith.index_cast %18 : i32 to index
        %c0_19 = arith.constant 0 : index
        %26 = vector.load %arg6[%25, %c0_19] : memref<1024x256xbf16, #tpu.memory_space<vmem>>, vector<32x3xbf16>
        tpu.vector_store %arg6[%25, %c0_19], %24 {strides = array<i32>} : memref<1024x256xbf16, #tpu.memory_space<vmem>>, vector<32x3xbf16>,
        %27 = vector.extract_strided_slice %23 {offsets = [0, 3], sizes = [32, 3], strides = [1, 1]} : vector<35x6xbf16> to vector<32x3xbf16>
        %28 = arith.index_cast %18 : i32 to index
        %c3 = arith.constant 3 : index
        %29 = vector.load %arg6[%28, %c3] : memref<1024x256xbf16, #tpu.memory_space<vmem>>, vector<32x3xbf16>
        tpu.vector_store %arg6[%28, %c3], %27 {strides = array<i32>} : memref<1024x256xbf16, #tpu.memory_space<vmem>>, vector<32x3xbf16>,
        %30 = vector.extract_strided_slice %23 {offsets = [1, 0], sizes = [32, 3], strides = [1, 1]} : vector<35x6xbf16> to vector<32x3xbf16>
        %31 = arith.index_cast %18 : i32 to index
        %c6 = arith.constant 6 : index
        %32 = vector.load %arg6[%31, %c6] : memref<1024x256xbf16, #tpu.memory_space<vmem>>, vector<32x3xbf16>
        tpu.vector_store %arg6[%31, %c6], %30 {strides = array<i32>} : memref<1024x256xbf16, #tpu.memory_space<vmem>>, vector<32x3xbf16>,
        %33 = vector.extract_strided_slice %23 {offsets = [1, 3], sizes = [32, 3], strides = [1, 1]} : vector<35x6xbf16> to vector<32x3xbf16>
        %34 = arith.index_cast %18 : i32 to index
        %c9 = arith.constant 9 : index
        %35 = vector.load %arg6[%34, %c9] : memref<1024x256xbf16, #tpu.memory_space<vmem>>, vector<32x3xbf16>
        tpu.vector_store %arg6[%34, %c9], %33 {strides = array<i32>} : memref<1024x256xbf16, #tpu.memory_space<vmem>>, vector<32x3xbf16>,
        %36 = vector.extract_strided_slice %23 {offsets = [2, 0], sizes = [32, 3], strides = [1, 1]} : vector<35x6xbf16> to vector<32x3xbf16>
        %37 = arith.index_cast %18 : i32 to index
        %c12 = arith.constant 12 : index
        %38 = vector.load %arg6[%37, %c12] : memref<1024x256xbf16, #tpu.memory_space<vmem>>, vector<32x3xbf16>
        tpu.vector_store %arg6[%37, %c12], %36 {strides = array<i32>} : memref<1024x256xbf16, #tpu.memory_space<vmem>>, vector<32x3xbf16>,
        %39 = vector.extract_strided_slice %23 {offsets = [2, 3], sizes = [32, 3], strides = [1, 1]} : vector<35x6xbf16> to vector<32x3xbf16>
        %40 = arith.index_cast %18 : i32 to index
        %c15 = arith.constant 15 : index
        %41 = vector.load %arg6[%40, %c15] : memref<1024x256xbf16, #tpu.memory_space<vmem>>, vector<32x3xbf16>
        tpu.vector_store %arg6[%40, %c15], %39 {strides = array<i32>} : memref<1024x256xbf16, #tpu.memory_space<vmem>>, vector<32x3xbf16>,
        %42 = vector.extract_strided_slice %23 {offsets = [3, 0], sizes = [32, 3], strides = [1, 1]} : vector<35x6xbf16> to vector<32x3xbf16>
        %43 = arith.index_cast %18 : i32 to index
        %c18 = arith.constant 18 : index
        %44 = vector.load %arg6[%43, %c18] : memref<1024x256xbf16, #tpu.memory_space<vmem>>, vector<32x3xbf16>
        tpu.vector_store %arg6[%43, %c18], %42 {strides = array<i32>} : memref<1024x256xbf16, #tpu.memory_space<vmem>>, vector<32x3xbf16>,
        %c2_i32_20 = arith.constant 2 : i32
        %45 = arith.muli %c2_i32_20, %arg7 : i32
        %c1_i32_21 = arith.constant 1 : i32
        %46 = arith.addi %c1_i32_21, %45 : i32
        %c0_22 = arith.constant 0 : index
        %47 = arith.index_cast %46 : i32 to index
        %c0_23 = arith.constant 0 : index
        %c0_24 = arith.constant 0 : index
        %48 = vector.load %arg2[%c0_22, %47, %c0_23, %c0_24] : memref<1x70x35x6xbf16, #tpu.memory_space<vmem>>, vector<1x1x35x6xbf16>
        %49 = vector.shape_cast %48 : vector<1x1x35x6xbf16> to vector<35x6xbf16>
        %50 = vector.extract_strided_slice %49 {offsets = [0, 0], sizes = [32, 3], strides = [1, 1]} : vector<35x6xbf16> to vector<32x3xbf16>
        %51 = arith.index_cast %18 : i32 to index
        %c21 = arith.constant 21 : index
        %52 = vector.load %arg6[%51, %c21] : memref<1024x256xbf16, #tpu.memory_space<vmem>>, vector<32x3xbf16>
        tpu.vector_store %arg6[%51, %c21], %50 {strides = array<i32>} : memref<1024x256xbf16, #tpu.memory_space<vmem>>, vector<32x3xbf16>,
        %53 = vector.extract_strided_slice %49 {offsets = [0, 3], sizes = [32, 3], strides = [1, 1]} : vector<35x6xbf16> to vector<32x3xbf16>
        %54 = arith.index_cast %18 : i32 to index
        %c24 = arith.constant 24 : index
        %55 = vector.load %arg6[%54, %c24] : memref<1024x256xbf16, #tpu.memory_space<vmem>>, vector<32x3xbf16>
        tpu.vector_store %arg6[%54, %c24], %53 {strides = array<i32>} : memref<1024x256xbf16, #tpu.memory_space<vmem>>, vector<32x3xbf16>,
        %56 = vector.extract_strided_slice %49 {offsets = [1, 0], sizes = [32, 3], strides = [1, 1]} : vector<35x6xbf16> to vector<32x3xbf16>
        %57 = arith.index_cast %18 : i32 to index
        %c27 = arith.constant 27 : index
        %58 = vector.load %arg6[%57, %c27] : memref<1024x256xbf16, #tpu.memory_space<vmem>>, vector<32x3xbf16>
        tpu.vector_store %arg6[%57, %c27], %56 {strides = array<i32>} : memref<1024x256xbf16, #tpu.memory_space<vmem>>, vector<32x3xbf16>,
        %59 = vector.extract_strided_slice %49 {offsets = [1, 3], sizes = [32, 3], strides = [1, 1]} : vector<35x6xbf16> to vector<32x3xbf16>
        %60 = arith.index_cast %18 : i32 to index
        %c30 = arith.constant 30 : index
        %61 = vector.load %arg6[%60, %c30] : memref<1024x256xbf16, #tpu.memory_space<vmem>>, vector<32x3xbf16>
        tpu.vector_store %arg6[%60, %c30], %59 {strides = array<i32>} : memref<1024x256xbf16, #tpu.memory_space<vmem>>, vector<32x3xbf16>,
        %62 = vector.extract_strided_slice %49 {offsets = [2, 0], sizes = [32, 3], strides = [1, 1]} : vector<35x6xbf16> to vector<32x3xbf16>
        %63 = arith.index_cast %18 : i32 to index
        %c33 = arith.constant 33 : index
        %64 = vector.load %arg6[%63, %c33] : memref<1024x256xbf16, #tpu.memory_space<vmem>>, vector<32x3xbf16>
        tpu.vector_store %arg6[%63, %c33], %62 {strides = array<i32>} : memref<1024x256xbf16, #tpu.memory_space<vmem>>, vector<32x3xbf16>,
        %65 = vector.extract_strided_slice %49 {offsets = [2, 3], sizes = [32, 3], strides = [1, 1]} : vector<35x6xbf16> to vector<32x3xbf16>
        %66 = arith.index_cast %18 : i32 to index
        %c36 = arith.constant 36 : index
        %67 = vector.load %arg6[%66, %c36] : memref<1024x256xbf16, #tpu.memory_space<vmem>>, vector<32x3xbf16>
        tpu.vector_store %arg6[%66, %c36], %65 {strides = array<i32>} : memref<1024x256xbf16, #tpu.memory_space<vmem>>, vector<32x3xbf16>,
        %68 = vector.extract_strided_slice %49 {offsets = [3, 0], sizes = [32, 3], strides = [1, 1]} : vector<35x6xbf16> to vector<32x3xbf16>
        %69 = arith.index_cast %18 : i32 to index
        %c39 = arith.constant 39 : index
        %70 = vector.load %arg6[%69, %c39] : memref<1024x256xbf16, #tpu.memory_space<vmem>>, vector<32x3xbf16>
        tpu.vector_store %arg6[%69, %c39], %68 {strides = array<i32>} : memref<1024x256xbf16, #tpu.memory_space<vmem>>, vector<32x3xbf16>,
        %c2_i32_25 = arith.constant 2 : i32
        %71 = arith.muli %c2_i32_25, %arg7 : i32
        %c2_i32_26 = arith.constant 2 : i32
        %72 = arith.addi %c2_i32_26, %71 : i32
        %c0_27 = arith.constant 0 : index
        %73 = arith.index_cast %72 : i32 to index
        %c0_28 = arith.constant 0 : index
        %c0_29 = arith.constant 0 : index
        %74 = vector.load %arg2[%c0_27, %73, %c0_28, %c0_29] : memref<1x70x35x6xbf16, #tpu.memory_space<vmem>>, vector<1x1x35x6xbf16>
        %75 = vector.shape_cast %74 : vector<1x1x35x6xbf16> to vector<35x6xbf16>
        %76 = vector.extract_strided_slice %75 {offsets = [0, 0], sizes = [32, 3], strides = [1, 1]} : vector<35x6xbf16> to vector<32x3xbf16>
        %77 = arith.index_cast %18 : i32 to index
        %c42 = arith.constant 42 : index
        %78 = vector.load %arg6[%77, %c42] : memref<1024x256xbf16, #tpu.memory_space<vmem>>, vector<32x3xbf16>
        tpu.vector_store %arg6[%77, %c42], %76 {strides = array<i32>} : memref<1024x256xbf16, #tpu.memory_space<vmem>>, vector<32x3xbf16>,
        %79 = vector.extract_strided_slice %75 {offsets = [0, 3], sizes = [32, 3], strides = [1, 1]} : vector<35x6xbf16> to vector<32x3xbf16>
        %80 = arith.index_cast %18 : i32 to index
        %c45 = arith.constant 45 : index
        %81 = vector.load %arg6[%80, %c45] : memref<1024x256xbf16, #tpu.memory_space<vmem>>, vector<32x3xbf16>
        tpu.vector_store %arg6[%80, %c45], %79 {strides = array<i32>} : memref<1024x256xbf16, #tpu.memory_space<vmem>>, vector<32x3xbf16>,
        %82 = vector.extract_strided_slice %75 {offsets = [1, 0], sizes = [32, 3], strides = [1, 1]} : vector<35x6xbf16> to vector<32x3xbf16>
        %83 = arith.index_cast %18 : i32 to index
        %c48 = arith.constant 48 : index
        %84 = vector.load %arg6[%83, %c48] : memref<1024x256xbf16, #tpu.memory_space<vmem>>, vector<32x3xbf16>
        tpu.vector_store %arg6[%83, %c48], %82 {strides = array<i32>} : memref<1024x256xbf16, #tpu.memory_space<vmem>>, vector<32x3xbf16>,
        %85 = vector.extract_strided_slice %75 {offsets = [1, 3], sizes = [32, 3], strides = [1, 1]} : vector<35x6xbf16> to vector<32x3xbf16>
        %86 = arith.index_cast %18 : i32 to index
        %c51 = arith.constant 51 : index
        %87 = vector.load %arg6[%86, %c51] : memref<1024x256xbf16, #tpu.memory_space<vmem>>, vector<32x3xbf16>
        tpu.vector_store %arg6[%86, %c51], %85 {strides = array<i32>} : memref<1024x256xbf16, #tpu.memory_space<vmem>>, vector<32x3xbf16>,
        %88 = vector.extract_strided_slice %75 {offsets = [2, 0], sizes = [32, 3], strides = [1, 1]} : vector<35x6xbf16> to vector<32x3xbf16>
        %89 = arith.index_cast %18 : i32 to index
        %c54 = arith.constant 54 : index
        %90 = vector.load %arg6[%89, %c54] : memref<1024x256xbf16, #tpu.memory_space<vmem>>, vector<32x3xbf16>
        tpu.vector_store %arg6[%89, %c54], %88 {strides = array<i32>} : memref<1024x256xbf16, #tpu.memory_space<vmem>>, vector<32x3xbf16>,
        %91 = vector.extract_strided_slice %75 {offsets = [2, 3], sizes = [32, 3], strides = [1, 1]} : vector<35x6xbf16> to vector<32x3xbf16>
        %92 = arith.index_cast %18 : i32 to index
        %c57 = arith.constant 57 : index
        %93 = vector.load %arg6[%92, %c57] : memref<1024x256xbf16, #tpu.memory_space<vmem>>, vector<32x3xbf16>
        tpu.vector_store %arg6[%92, %c57], %91 {strides = array<i32>} : memref<1024x256xbf16, #tpu.memory_space<vmem>>, vector<32x3xbf16>,
        %94 = vector.extract_strided_slice %75 {offsets = [3, 0], sizes = [32, 3], strides = [1, 1]} : vector<35x6xbf16> to vector<32x3xbf16>
        %95 = arith.index_cast %18 : i32 to index
        %c60 = arith.constant 60 : index
        %96 = vector.load %arg6[%95, %c60] : memref<1024x256xbf16, #tpu.memory_space<vmem>>, vector<32x3xbf16>
        tpu.vector_store %arg6[%95, %c60], %94 {strides = array<i32>} : memref<1024x256xbf16, #tpu.memory_space<vmem>>, vector<32x3xbf16>,
        %c2_i32_30 = arith.constant 2 : i32
        %97 = arith.muli %c2_i32_30, %arg7 : i32
        %c3_i32 = arith.constant 3 : i32
        %98 = arith.addi %c3_i32, %97 : i32
        %c0_31 = arith.constant 0 : index
        %99 = arith.index_cast %98 : i32 to index
        %c0_32 = arith.constant 0 : index
        %c0_33 = arith.constant 0 : index
        %100 = vector.load %arg2[%c0_31, %99, %c0_32, %c0_33] : memref<1x70x35x6xbf16, #tpu.memory_space<vmem>>, vector<1x1x35x6xbf16>
        %101 = vector.shape_cast %100 : vector<1x1x35x6xbf16> to vector<35x6xbf16>
        %102 = vector.extract_strided_slice %101 {offsets = [0, 0], sizes = [32, 3], strides = [1, 1]} : vector<35x6xbf16> to vector<32x3xbf16>
        %103 = arith.index_cast %18 : i32 to index
        %c63 = arith.constant 63 : index
        %104 = vector.load %arg6[%103, %c63] : memref<1024x256xbf16, #tpu.memory_space<vmem>>, vector<32x3xbf16>
        tpu.vector_store %arg6[%103, %c63], %102 {strides = array<i32>} : memref<1024x256xbf16, #tpu.memory_space<vmem>>, vector<32x3xbf16>,
        %105 = vector.extract_strided_slice %101 {offsets = [0, 3], sizes = [32, 3], strides = [1, 1]} : vector<35x6xbf16> to vector<32x3xbf16>
        %106 = arith.index_cast %18 : i32 to index
        %c66 = arith.constant 66 : index
        %107 = vector.load %arg6[%106, %c66] : memref<1024x256xbf16, #tpu.memory_space<vmem>>, vector<32x3xbf16>
        tpu.vector_store %arg6[%106, %c66], %105 {strides = array<i32>} : memref<1024x256xbf16, #tpu.memory_space<vmem>>, vector<32x3xbf16>,
        %108 = vector.extract_strided_slice %101 {offsets = [1, 0], sizes = [32, 3], strides = [1, 1]} : vector<35x6xbf16> to vector<32x3xbf16>
        %109 = arith.index_cast %18 : i32 to index
        %c69 = arith.constant 69 : index
        %110 = vector.load %arg6[%109, %c69] : memref<1024x256xbf16, #tpu.memory_space<vmem>>, vector<32x3xbf16>
        tpu.vector_store %arg6[%109, %c69], %108 {strides = array<i32>} : memref<1024x256xbf16, #tpu.memory_space<vmem>>, vector<32x3xbf16>,
        %111 = vector.extract_strided_slice %101 {offsets = [1, 3], sizes = [32, 3], strides = [1, 1]} : vector<35x6xbf16> to vector<32x3xbf16>
        %112 = arith.index_cast %18 : i32 to index
        %c72 = arith.constant 72 : index
        %113 = vector.load %arg6[%112, %c72] : memref<1024x256xbf16, #tpu.memory_space<vmem>>, vector<32x3xbf16>
        tpu.vector_store %arg6[%112, %c72], %111 {strides = array<i32>} : memref<1024x256xbf16, #tpu.memory_space<vmem>>, vector<32x3xbf16>,
        %114 = vector.extract_strided_slice %101 {offsets = [2, 0], sizes = [32, 3], strides = [1, 1]} : vector<35x6xbf16> to vector<32x3xbf16>
        %115 = arith.index_cast %18 : i32 to index
        %c75 = arith.constant 75 : index
        %116 = vector.load %arg6[%115, %c75] : memref<1024x256xbf16, #tpu.memory_space<vmem>>, vector<32x3xbf16>
        tpu.vector_store %arg6[%115, %c75], %114 {strides = array<i32>} : memref<1024x256xbf16, #tpu.memory_space<vmem>>, vector<32x3xbf16>,
        %117 = vector.extract_strided_slice %101 {offsets = [2, 3], sizes = [32, 3], strides = [1, 1]} : vector<35x6xbf16> to vector<32x3xbf16>
        %118 = arith.index_cast %18 : i32 to index
        %c78 = arith.constant 78 : index
        %119 = vector.load %arg6[%118, %c78] : memref<1024x256xbf16, #tpu.memory_space<vmem>>, vector<32x3xbf16>
        tpu.vector_store %arg6[%118, %c78], %117 {strides = array<i32>} : memref<1024x256xbf16, #tpu.memory_space<vmem>>, vector<32x3xbf16>,
        %120 = vector.extract_strided_slice %101 {offsets = [3, 0], sizes = [32, 3], strides = [1, 1]} : vector<35x6xbf16> to vector<32x3xbf16>
        %121 = arith.index_cast %18 : i32 to index
        %c81 = arith.constant 81 : index
        %122 = vector.load %arg6[%121, %c81] : memref<1024x256xbf16, #tpu.memory_space<vmem>>, vector<32x3xbf16>
        tpu.vector_store %arg6[%121, %c81], %120 {strides = array<i32>} : memref<1024x256xbf16, #tpu.memory_space<vmem>>, vector<32x3xbf16>,
        %c2_i32_34 = arith.constant 2 : i32
        %123 = arith.muli %c2_i32_34, %arg7 : i32
        %c4_i32 = arith.constant 4 : i32
        %124 = arith.addi %c4_i32, %123 : i32
        %c0_35 = arith.constant 0 : index
        %125 = arith.index_cast %124 : i32 to index
        %c0_36 = arith.constant 0 : index
        %c0_37 = arith.constant 0 : index
        %126 = vector.load %arg2[%c0_35, %125, %c0_36, %c0_37] : memref<1x70x35x6xbf16, #tpu.memory_space<vmem>>, vector<1x1x35x6xbf16>
        %127 = vector.shape_cast %126 : vector<1x1x35x6xbf16> to vector<35x6xbf16>
        %128 = vector.extract_strided_slice %127 {offsets = [0, 0], sizes = [32, 3], strides = [1, 1]} : vector<35x6xbf16> to vector<32x3xbf16>
        %129 = arith.index_cast %18 : i32 to index
        %c84 = arith.constant 84 : index
        %130 = vector.load %arg6[%129, %c84] : memref<1024x256xbf16, #tpu.memory_space<vmem>>, vector<32x3xbf16>
        tpu.vector_store %arg6[%129, %c84], %128 {strides = array<i32>} : memref<1024x256xbf16, #tpu.memory_space<vmem>>, vector<32x3xbf16>,
        %131 = vector.extract_strided_slice %127 {offsets = [0, 3], sizes = [32, 3], strides = [1, 1]} : vector<35x6xbf16> to vector<32x3xbf16>
        %132 = arith.index_cast %18 : i32 to index
        %c87 = arith.constant 87 : index
        %133 = vector.load %arg6[%132, %c87] : memref<1024x256xbf16, #tpu.memory_space<vmem>>, vector<32x3xbf16>
        tpu.vector_store %arg6[%132, %c87], %131 {strides = array<i32>} : memref<1024x256xbf16, #tpu.memory_space<vmem>>, vector<32x3xbf16>,
        %134 = vector.extract_strided_slice %127 {offsets = [1, 0], sizes = [32, 3], strides = [1, 1]} : vector<35x6xbf16> to vector<32x3xbf16>
        %135 = arith.index_cast %18 : i32 to index
        %c90 = arith.constant 90 : index
        %136 = vector.load %arg6[%135, %c90] : memref<1024x256xbf16, #tpu.memory_space<vmem>>, vector<32x3xbf16>
        tpu.vector_store %arg6[%135, %c90], %134 {strides = array<i32>} : memref<1024x256xbf16, #tpu.memory_space<vmem>>, vector<32x3xbf16>,
        %137 = vector.extract_strided_slice %127 {offsets = [1, 3], sizes = [32, 3], strides = [1, 1]} : vector<35x6xbf16> to vector<32x3xbf16>
        %138 = arith.index_cast %18 : i32 to index
        %c93 = arith.constant 93 : index
        %139 = vector.load %arg6[%138, %c93] : memref<1024x256xbf16, #tpu.memory_space<vmem>>, vector<32x3xbf16>
        tpu.vector_store %arg6[%138, %c93], %137 {strides = array<i32>} : memref<1024x256xbf16, #tpu.memory_space<vmem>>, vector<32x3xbf16>,
        %140 = vector.extract_strided_slice %127 {offsets = [2, 0], sizes = [32, 3], strides = [1, 1]} : vector<35x6xbf16> to vector<32x3xbf16>
        %141 = arith.index_cast %18 : i32 to index
        %c96 = arith.constant 96 : index
        %142 = vector.load %arg6[%141, %c96] : memref<1024x256xbf16, #tpu.memory_space<vmem>>, vector<32x3xbf16>
        tpu.vector_store %arg6[%141, %c96], %140 {strides = array<i32>} : memref<1024x256xbf16, #tpu.memory_space<vmem>>, vector<32x3xbf16>,
        %143 = vector.extract_strided_slice %127 {offsets = [2, 3], sizes = [32, 3], strides = [1, 1]} : vector<35x6xbf16> to vector<32x3xbf16>
        %144 = arith.index_cast %18 : i32 to index
        %c99 = arith.constant 99 : index
        %145 = vector.load %arg6[%144, %c99] : memref<1024x256xbf16, #tpu.memory_space<vmem>>, vector<32x3xbf16>
        tpu.vector_store %arg6[%144, %c99], %143 {strides = array<i32>} : memref<1024x256xbf16, #tpu.memory_space<vmem>>, vector<32x3xbf16>,
        %146 = vector.extract_strided_slice %127 {offsets = [3, 0], sizes = [32, 3], strides = [1, 1]} : vector<35x6xbf16> to vector<32x3xbf16>
        %147 = arith.index_cast %18 : i32 to index
        %c102 = arith.constant 102 : index
        %148 = vector.load %arg6[%147, %c102] : memref<1024x256xbf16, #tpu.memory_space<vmem>>, vector<32x3xbf16>
        tpu.vector_store %arg6[%147, %c102], %146 {strides = array<i32>} : memref<1024x256xbf16, #tpu.memory_space<vmem>>, vector<32x3xbf16>,
        %c2_i32_38 = arith.constant 2 : i32
        %149 = arith.muli %c2_i32_38, %arg7 : i32
        %c5_i32 = arith.constant 5 : i32
        %150 = arith.addi %c5_i32, %149 : i32
        %c0_39 = arith.constant 0 : index
        %151 = arith.index_cast %150 : i32 to index
        %c0_40 = arith.constant 0 : index
        %c0_41 = arith.constant 0 : index
        %152 = vector.load %arg2[%c0_39, %151, %c0_40, %c0_41] : memref<1x70x35x6xbf16, #tpu.memory_space<vmem>>, vector<1x1x35x6xbf16>
        %153 = vector.shape_cast %152 : vector<1x1x35x6xbf16> to vector<35x6xbf16>
        %154 = vector.extract_strided_slice %153 {offsets = [0, 0], sizes = [32, 3], strides = [1, 1]} : vector<35x6xbf16> to vector<32x3xbf16>
        %155 = arith.index_cast %18 : i32 to index
        %c105 = arith.constant 105 : index
        %156 = vector.load %arg6[%155, %c105] : memref<1024x256xbf16, #tpu.memory_space<vmem>>, vector<32x3xbf16>
        tpu.vector_store %arg6[%155, %c105], %154 {strides = array<i32>} : memref<1024x256xbf16, #tpu.memory_space<vmem>>, vector<32x3xbf16>,
        %157 = vector.extract_strided_slice %153 {offsets = [0, 3], sizes = [32, 3], strides = [1, 1]} : vector<35x6xbf16> to vector<32x3xbf16>
        %158 = arith.index_cast %18 : i32 to index
        %c108 = arith.constant 108 : index
        %159 = vector.load %arg6[%158, %c108] : memref<1024x256xbf16, #tpu.memory_space<vmem>>, vector<32x3xbf16>
        tpu.vector_store %arg6[%158, %c108], %157 {strides = array<i32>} : memref<1024x256xbf16, #tpu.memory_space<vmem>>, vector<32x3xbf16>,
        %160 = vector.extract_strided_slice %153 {offsets = [1, 0], sizes = [32, 3], strides = [1, 1]} : vector<35x6xbf16> to vector<32x3xbf16>
        %161 = arith.index_cast %18 : i32 to index
        %c111 = arith.constant 111 : index
        %162 = vector.load %arg6[%161, %c111] : memref<1024x256xbf16, #tpu.memory_space<vmem>>, vector<32x3xbf16>
        tpu.vector_store %arg6[%161, %c111], %160 {strides = array<i32>} : memref<1024x256xbf16, #tpu.memory_space<vmem>>, vector<32x3xbf16>,
        %163 = vector.extract_strided_slice %153 {offsets = [1, 3], sizes = [32, 3], strides = [1, 1]} : vector<35x6xbf16> to vector<32x3xbf16>
        %164 = arith.index_cast %18 : i32 to index
        %c114 = arith.constant 114 : index
        %165 = vector.load %arg6[%164, %c114] : memref<1024x256xbf16, #tpu.memory_space<vmem>>, vector<32x3xbf16>
        tpu.vector_store %arg6[%164, %c114], %163 {strides = array<i32>} : memref<1024x256xbf16, #tpu.memory_space<vmem>>, vector<32x3xbf16>,
        %166 = vector.extract_strided_slice %153 {offsets = [2, 0], sizes = [32, 3], strides = [1, 1]} : vector<35x6xbf16> to vector<32x3xbf16>
        %167 = arith.index_cast %18 : i32 to index
        %c117 = arith.constant 117 : index
        %168 = vector.load %arg6[%167, %c117] : memref<1024x256xbf16, #tpu.memory_space<vmem>>, vector<32x3xbf16>
        tpu.vector_store %arg6[%167, %c117], %166 {strides = array<i32>} : memref<1024x256xbf16, #tpu.memory_space<vmem>>, vector<32x3xbf16>,
        %169 = vector.extract_strided_slice %153 {offsets = [2, 3], sizes = [32, 3], strides = [1, 1]} : vector<35x6xbf16> to vector<32x3xbf16>
        %170 = arith.index_cast %18 : i32 to index
        %c120 = arith.constant 120 : index
        %171 = vector.load %arg6[%170, %c120] : memref<1024x256xbf16, #tpu.memory_space<vmem>>, vector<32x3xbf16>
        tpu.vector_store %arg6[%170, %c120], %169 {strides = array<i32>} : memref<1024x256xbf16, #tpu.memory_space<vmem>>, vector<32x3xbf16>,
        %172 = vector.extract_strided_slice %153 {offsets = [3, 0], sizes = [32, 3], strides = [1, 1]} : vector<35x6xbf16> to vector<32x3xbf16>
        %173 = arith.index_cast %18 : i32 to index
        %c123 = arith.constant 123 : index
        %174 = vector.load %arg6[%173, %c123] : memref<1024x256xbf16, #tpu.memory_space<vmem>>, vector<32x3xbf16>
        tpu.vector_store %arg6[%173, %c123], %172 {strides = array<i32>} : memref<1024x256xbf16, #tpu.memory_space<vmem>>, vector<32x3xbf16>,
        %c2_i32_42 = arith.constant 2 : i32
        %175 = arith.muli %c2_i32_42, %arg7 : i32
        %c6_i32 = arith.constant 6 : i32
        %176 = arith.addi %c6_i32, %175 : i32
        %c0_43 = arith.constant 0 : index
        %177 = arith.index_cast %176 : i32 to index
        %c0_44 = arith.constant 0 : index
        %c0_45 = arith.constant 0 : index
        %178 = vector.load %arg2[%c0_43, %177, %c0_44, %c0_45] : memref<1x70x35x6xbf16, #tpu.memory_space<vmem>>, vector<1x1x35x6xbf16>
        %179 = vector.shape_cast %178 : vector<1x1x35x6xbf16> to vector<35x6xbf16>
        %180 = vector.extract_strided_slice %179 {offsets = [0, 0], sizes = [32, 3], strides = [1, 1]} : vector<35x6xbf16> to vector<32x3xbf16>
        %181 = arith.index_cast %18 : i32 to index
        %c126 = arith.constant 126 : index
        %182 = vector.load %arg6[%181, %c126] : memref<1024x256xbf16, #tpu.memory_space<vmem>>, vector<32x3xbf16>
        tpu.vector_store %arg6[%181, %c126], %180 {strides = array<i32>} : memref<1024x256xbf16, #tpu.memory_space<vmem>>, vector<32x3xbf16>,
        %183 = vector.extract_strided_slice %179 {offsets = [0, 3], sizes = [32, 3], strides = [1, 1]} : vector<35x6xbf16> to vector<32x3xbf16>
        %184 = arith.index_cast %18 : i32 to index
        %c129 = arith.constant 129 : index
        %185 = vector.load %arg6[%184, %c129] : memref<1024x256xbf16, #tpu.memory_space<vmem>>, vector<32x3xbf16>
        tpu.vector_store %arg6[%184, %c129], %183 {strides = array<i32>} : memref<1024x256xbf16, #tpu.memory_space<vmem>>, vector<32x3xbf16>,
        %186 = vector.extract_strided_slice %179 {offsets = [1, 0], sizes = [32, 3], strides = [1, 1]} : vector<35x6xbf16> to vector<32x3xbf16>
        %187 = arith.index_cast %18 : i32 to index
        %c132 = arith.constant 132 : index
        %188 = vector.load %arg6[%187, %c132] : memref<1024x256xbf16, #tpu.memory_space<vmem>>, vector<32x3xbf16>
        tpu.vector_store %arg6[%187, %c132], %186 {strides = array<i32>} : memref<1024x256xbf16, #tpu.memory_space<vmem>>, vector<32x3xbf16>,
        %189 = vector.extract_strided_slice %179 {offsets = [1, 3], sizes = [32, 3], strides = [1, 1]} : vector<35x6xbf16> to vector<32x3xbf16>
        %190 = arith.index_cast %18 : i32 to index
        %c135 = arith.constant 135 : index
        %191 = vector.load %arg6[%190, %c135] : memref<1024x256xbf16, #tpu.memory_space<vmem>>, vector<32x3xbf16>
        tpu.vector_store %arg6[%190, %c135], %189 {strides = array<i32>} : memref<1024x256xbf16, #tpu.memory_space<vmem>>, vector<32x3xbf16>,
        %192 = vector.extract_strided_slice %179 {offsets = [2, 0], sizes = [32, 3], strides = [1, 1]} : vector<35x6xbf16> to vector<32x3xbf16>
        %193 = arith.index_cast %18 : i32 to index
        %c138 = arith.constant 138 : index
        %194 = vector.load %arg6[%193, %c138] : memref<1024x256xbf16, #tpu.memory_space<vmem>>, vector<32x3xbf16>
        tpu.vector_store %arg6[%193, %c138], %192 {strides = array<i32>} : memref<1024x256xbf16, #tpu.memory_space<vmem>>, vector<32x3xbf16>,
        %195 = vector.extract_strided_slice %179 {offsets = [2, 3], sizes = [32, 3], strides = [1, 1]} : vector<35x6xbf16> to vector<32x3xbf16>
        %196 = arith.index_cast %18 : i32 to index
        %c141 = arith.constant 141 : index
        %197 = vector.load %arg6[%196, %c141] : memref<1024x256xbf16, #tpu.memory_space<vmem>>, vector<32x3xbf16>
        tpu.vector_store %arg6[%196, %c141], %195 {strides = array<i32>} : memref<1024x256xbf16, #tpu.memory_space<vmem>>, vector<32x3xbf16>,
        %198 = vector.extract_strided_slice %179 {offsets = [3, 0], sizes = [32, 3], strides = [1, 1]} : vector<35x6xbf16> to vector<32x3xbf16>
        %199 = arith.index_cast %18 : i32 to index
        %c144 = arith.constant 144 : index
        %200 = vector.load %arg6[%199, %c144] : memref<1024x256xbf16, #tpu.memory_space<vmem>>, vector<32x3xbf16>
        tpu.vector_store %arg6[%199, %c144], %198 {strides = array<i32>} : memref<1024x256xbf16, #tpu.memory_space<vmem>>, vector<32x3xbf16>,
      }
      %c32_i32_13 = arith.constant 32 : i32
    } else {
    }
    %c0 = arith.constant 0 : index
    %c0_1 = arith.constant 0 : index
    %3 = vector.load %arg6[%c0, %c0_1] : memref<1024x256xbf16, #tpu.memory_space<vmem>>, vector<1024x256xbf16>
    %c0_2 = arith.constant 0 : index
    %c0_3 = arith.constant 0 : index
    %4 = vector.load %arg3[%c0_2, %c0_3] : memref<256x128xbf16, #tpu.memory_space<vmem>>, vector<256x128xbf16>
    %cst = arith.constant dense<0.000000e+00> : vector<1024x128xf32>
    %5 = tpu.matmul %3, %4, %cst {dimension_numbers = #tpu.dot_dimension_numbers<[1], [0], [0], [1], [0, 0, 1, 1], [], []>} : vector<1024x256xbf16>, vector<256x128xbf16>, vector<1024x128xf32> -> vector<1024x128xf32>
    %c0_4 = arith.constant 0 : index
    %c0_5 = arith.constant 0 : index
    %6 = vector.load %arg4[%c0_4, %c0_5] : memref<1x128xf32, #tpu.memory_space<vmem>>, vector<1x128xf32>
    %7 = vector.broadcast %6 : vector<1x128xf32> to vector<1024x128xf32>
    %8 = arith.addf %5, %7 : vector<1024x128xf32>
    %cst_6 = arith.constant 0.000000e+00 : f32
    %9 = vector.broadcast %cst_6 : f32 to vector<1024x128xf32>
    %10 = arith.maximumf %8, %9 : vector<1024x128xf32>
    %11 = arith.truncf %10 : vector<1024x128xf32> to vector<1024x128xbf16>
    %c0_7 = arith.constant 0 : index
    %c0_8 = arith.constant 0 : index
    %c0_9 = arith.constant 0 : index
    %12 = vector.load %arg5[%c0_7, %c0_8, %c0_9] : memref<1x1024x128xbf16, #tpu.memory_space<vmem>>, vector<1x1024x128xbf16>
    %13 = vector.shape_cast %12 : vector<1x1024x128xbf16> to vector<1024x128xbf16>
    %14 = vector.shape_cast %11 : vector<1024x128xbf16> to vector<1x1024x128xbf16>
    tpu.vector_store %arg5[%c0_7, %c0_8, %c0_9], %14 {strides = array<i32>} : memref<1x1024x128xbf16, #tpu.memory_space<vmem>>, vector<1x1024x128xbf16>,
    return
  }
  func.func @transform_0(%arg0: i32, %arg1: i32) -> (i32, i32, i32, i32) {
    %c0_i32 = arith.constant 0 : i32
    %c0_i32_0 = arith.constant 0 : i32
    %c0_i32_1 = arith.constant 0 : i32
    %c0_i32_2 = arith.constant 0 : i32
    return %arg0, %c0_i32, %c0_i32_0, %c0_i32_1 : i32, i32, i32, i32
  }
  func.func @transform_1(%arg0: i32, %arg1: i32) -> (i32, i32) {
    %c0_i32 = arith.constant 0 : i32
    %c0_i32_0 = arith.constant 0 : i32
    return %c0_i32, %arg1 : i32, i32
  }
  func.func @transform_2(%arg0: i32, %arg1: i32) -> (i32, i32) {
    %c0_i32 = arith.constant 0 : i32
    %c0_i32_0 = arith.constant 0 : i32
    return %c0_i32, %arg1 : i32, i32
  }
  func.func @transform_3(%arg0: i32, %arg1: i32) -> (i32, i32, i32) {
    %c0_i32 = arith.constant 0 : i32
    %c0_i32_0 = arith.constant 0 : i32
    return %arg0, %c0_i32, %arg1 : i32, i32, i32
  }
}

module attributes {stable_mosaic.version = 11 : i64} {
  func.func @_spatial_conv_kernel(%arg0: i32, %arg1: i32, %arg2: memref<1x18x9x256xbf16, #tpu.memory_space<vmem>>, %arg3: memref<384x128xbf16, #tpu.memory_space<vmem>>, %arg4: memref<1x128xf32, #tpu.memory_space<vmem>>, %arg5: memref<1x64x128xbf16, #tpu.memory_space<vmem>>, %arg6: memref<64x384xbf16, #tpu.memory_space<vmem>>) attributes {dimension_semantics = [#tpu.dimension_semantics<parallel>, #tpu.dimension_semantics<arbitrary>], iteration_bounds = array<i64: 2, 1>, scalar_prefetch = 0 : i64, scratch_operands = 1 : i64, tpu.core_type = #tpu.core_type<tc>, window_params = [{transform_indices = @transform_0, window_bounds = array<i64: 1, 18, 9, 256>}, {transform_indices = @transform_1, window_bounds = array<i64: 384, 128>}, {transform_indices = @transform_2, window_bounds = array<i64: 1, 128>}, {transform_indices = @transform_3, window_bounds = array<i64: 1, 64, 128>}]} {
    %c0_i32 = arith.constant 0 : i32
    %0 = arith.cmpi eq, %arg1, %c0_i32 : i32
    %1 = arith.extui %0 : i1 to i32
    %c0_i32_0 = arith.constant 0 : i32
    %2 = arith.cmpi ne, %1, %c0_i32_0 : i32
    scf.if %2 {
      %cst_10 = arith.constant 0.000000e+00 : bf16
      %15 = vector.broadcast %cst_10 : bf16 to vector<64x96xbf16>
      %c0_11 = arith.constant 0 : index
      %c288 = arith.constant 288 : index
      %16 = vector.load %arg6[%c0_11, %c288] : memref<64x384xbf16, #tpu.memory_space<vmem>>, vector<64x96xbf16>
      tpu.vector_store %arg6[%c0_11, %c288], %15 {strides = array<i32>} : memref<64x384xbf16, #tpu.memory_space<vmem>>, vector<64x96xbf16>,
      %c0_12 = arith.constant 0 : index
      %c0_13 = arith.constant 0 : index
      %c0_14 = arith.constant 0 : index
      %c0_15 = arith.constant 0 : index
      %17 = vector.load %arg2[%c0_12, %c0_13, %c0_14, %c0_15] : memref<1x18x9x256xbf16, #tpu.memory_space<vmem>>, vector<1x1x9x256xbf16>
      %18 = vector.shape_cast %17 : vector<1x1x9x256xbf16> to vector<9x256xbf16>
      %19 = vector.extract_strided_slice %18 {offsets = [0, 0], sizes = [8, 32], strides = [1, 1]} : vector<9x256xbf16> to vector<8x32xbf16>
      %c0_16 = arith.constant 0 : index
      %c0_17 = arith.constant 0 : index
      %20 = vector.load %arg6[%c0_16, %c0_17] : memref<64x384xbf16, #tpu.memory_space<vmem>>, vector<8x32xbf16>
      tpu.vector_store %arg6[%c0_16, %c0_17], %19 {strides = array<i32>} : memref<64x384xbf16, #tpu.memory_space<vmem>>, vector<8x32xbf16>,
      %21 = vector.extract_strided_slice %18 {offsets = [0, 128], sizes = [8, 32], strides = [1, 1]} : vector<9x256xbf16> to vector<8x32xbf16>
      %c0_18 = arith.constant 0 : index
      %c32 = arith.constant 32 : index
      %22 = vector.load %arg6[%c0_18, %c32] : memref<64x384xbf16, #tpu.memory_space<vmem>>, vector<8x32xbf16>
      tpu.vector_store %arg6[%c0_18, %c32], %21 {strides = array<i32>} : memref<64x384xbf16, #tpu.memory_space<vmem>>, vector<8x32xbf16>,
      %23 = vector.extract_strided_slice %18 {offsets = [1, 0], sizes = [8, 32], strides = [1, 1]} : vector<9x256xbf16> to vector<8x32xbf16>
      %c0_19 = arith.constant 0 : index
      %c64 = arith.constant 64 : index
      %24 = vector.load %arg6[%c0_19, %c64] : memref<64x384xbf16, #tpu.memory_space<vmem>>, vector<8x32xbf16>
      tpu.vector_store %arg6[%c0_19, %c64], %23 {strides = array<i32>} : memref<64x384xbf16, #tpu.memory_space<vmem>>, vector<8x32xbf16>,
      %c0_20 = arith.constant 0 : index
      %c1 = arith.constant 1 : index
      %c0_21 = arith.constant 0 : index
      %c0_22 = arith.constant 0 : index
      %25 = vector.load %arg2[%c0_20, %c1, %c0_21, %c0_22] : memref<1x18x9x256xbf16, #tpu.memory_space<vmem>>, vector<1x1x9x256xbf16>
      %26 = vector.shape_cast %25 : vector<1x1x9x256xbf16> to vector<9x256xbf16>
      %27 = vector.extract_strided_slice %26 {offsets = [0, 0], sizes = [8, 32], strides = [1, 1]} : vector<9x256xbf16> to vector<8x32xbf16>
      %c0_23 = arith.constant 0 : index
      %c96 = arith.constant 96 : index
      %28 = vector.load %arg6[%c0_23, %c96] : memref<64x384xbf16, #tpu.memory_space<vmem>>, vector<8x32xbf16>
      tpu.vector_store %arg6[%c0_23, %c96], %27 {strides = array<i32>} : memref<64x384xbf16, #tpu.memory_space<vmem>>, vector<8x32xbf16>,
      %29 = vector.extract_strided_slice %26 {offsets = [0, 128], sizes = [8, 32], strides = [1, 1]} : vector<9x256xbf16> to vector<8x32xbf16>
      %c0_24 = arith.constant 0 : index
      %c128 = arith.constant 128 : index
      %30 = vector.load %arg6[%c0_24, %c128] : memref<64x384xbf16, #tpu.memory_space<vmem>>, vector<8x32xbf16>
      tpu.vector_store %arg6[%c0_24, %c128], %29 {strides = array<i32>} : memref<64x384xbf16, #tpu.memory_space<vmem>>, vector<8x32xbf16>,
      %31 = vector.extract_strided_slice %26 {offsets = [1, 0], sizes = [8, 32], strides = [1, 1]} : vector<9x256xbf16> to vector<8x32xbf16>
      %c0_25 = arith.constant 0 : index
      %c160 = arith.constant 160 : index
      %32 = vector.load %arg6[%c0_25, %c160] : memref<64x384xbf16, #tpu.memory_space<vmem>>, vector<8x32xbf16>
      tpu.vector_store %arg6[%c0_25, %c160], %31 {strides = array<i32>} : memref<64x384xbf16, #tpu.memory_space<vmem>>, vector<8x32xbf16>,
      %c0_26 = arith.constant 0 : index
      %c2 = arith.constant 2 : index
      %c0_27 = arith.constant 0 : index
      %c0_28 = arith.constant 0 : index
      %33 = vector.load %arg2[%c0_26, %c2, %c0_27, %c0_28] : memref<1x18x9x256xbf16, #tpu.memory_space<vmem>>, vector<1x1x9x256xbf16>
      %34 = vector.shape_cast %33 : vector<1x1x9x256xbf16> to vector<9x256xbf16>
      %35 = vector.extract_strided_slice %34 {offsets = [0, 0], sizes = [8, 32], strides = [1, 1]} : vector<9x256xbf16> to vector<8x32xbf16>
      %c0_29 = arith.constant 0 : index
      %c192 = arith.constant 192 : index
      %36 = vector.load %arg6[%c0_29, %c192] : memref<64x384xbf16, #tpu.memory_space<vmem>>, vector<8x32xbf16>
      tpu.vector_store %arg6[%c0_29, %c192], %35 {strides = array<i32>} : memref<64x384xbf16, #tpu.memory_space<vmem>>, vector<8x32xbf16>,
      %37 = vector.extract_strided_slice %34 {offsets = [0, 128], sizes = [8, 32], strides = [1, 1]} : vector<9x256xbf16> to vector<8x32xbf16>
      %c0_30 = arith.constant 0 : index
      %c224 = arith.constant 224 : index
      %38 = vector.load %arg6[%c0_30, %c224] : memref<64x384xbf16, #tpu.memory_space<vmem>>, vector<8x32xbf16>
      tpu.vector_store %arg6[%c0_30, %c224], %37 {strides = array<i32>} : memref<64x384xbf16, #tpu.memory_space<vmem>>, vector<8x32xbf16>,
      %39 = vector.extract_strided_slice %34 {offsets = [1, 0], sizes = [8, 32], strides = [1, 1]} : vector<9x256xbf16> to vector<8x32xbf16>
      %c0_31 = arith.constant 0 : index
      %c256 = arith.constant 256 : index
      %40 = vector.load %arg6[%c0_31, %c256] : memref<64x384xbf16, #tpu.memory_space<vmem>>, vector<8x32xbf16>
      tpu.vector_store %arg6[%c0_31, %c256], %39 {strides = array<i32>} : memref<64x384xbf16, #tpu.memory_space<vmem>>, vector<8x32xbf16>,
      %c0_32 = arith.constant 0 : index
      %c2_33 = arith.constant 2 : index
      %c0_34 = arith.constant 0 : index
      %c0_35 = arith.constant 0 : index
      %41 = vector.load %arg2[%c0_32, %c2_33, %c0_34, %c0_35] : memref<1x18x9x256xbf16, #tpu.memory_space<vmem>>, vector<1x1x9x256xbf16>
      %42 = vector.shape_cast %41 : vector<1x1x9x256xbf16> to vector<9x256xbf16>
      %43 = vector.extract_strided_slice %42 {offsets = [0, 0], sizes = [8, 32], strides = [1, 1]} : vector<9x256xbf16> to vector<8x32xbf16>
      %c8 = arith.constant 8 : index
      %c0_36 = arith.constant 0 : index
      %44 = vector.load %arg6[%c8, %c0_36] : memref<64x384xbf16, #tpu.memory_space<vmem>>, vector<8x32xbf16>
      tpu.vector_store %arg6[%c8, %c0_36], %43 {strides = array<i32>} : memref<64x384xbf16, #tpu.memory_space<vmem>>, vector<8x32xbf16>,
      %45 = vector.extract_strided_slice %42 {offsets = [0, 128], sizes = [8, 32], strides = [1, 1]} : vector<9x256xbf16> to vector<8x32xbf16>
      %c8_37 = arith.constant 8 : index
      %c32_38 = arith.constant 32 : index
      %46 = vector.load %arg6[%c8_37, %c32_38] : memref<64x384xbf16, #tpu.memory_space<vmem>>, vector<8x32xbf16>
      tpu.vector_store %arg6[%c8_37, %c32_38], %45 {strides = array<i32>} : memref<64x384xbf16, #tpu.memory_space<vmem>>, vector<8x32xbf16>,
      %47 = vector.extract_strided_slice %42 {offsets = [1, 0], sizes = [8, 32], strides = [1, 1]} : vector<9x256xbf16> to vector<8x32xbf16>
      %c8_39 = arith.constant 8 : index
      %c64_40 = arith.constant 64 : index
      %48 = vector.load %arg6[%c8_39, %c64_40] : memref<64x384xbf16, #tpu.memory_space<vmem>>, vector<8x32xbf16>
      tpu.vector_store %arg6[%c8_39, %c64_40], %47 {strides = array<i32>} : memref<64x384xbf16, #tpu.memory_space<vmem>>, vector<8x32xbf16>,
      %c0_41 = arith.constant 0 : index
      %c3 = arith.constant 3 : index
      %c0_42 = arith.constant 0 : index
      %c0_43 = arith.constant 0 : index
      %49 = vector.load %arg2[%c0_41, %c3, %c0_42, %c0_43] : memref<1x18x9x256xbf16, #tpu.memory_space<vmem>>, vector<1x1x9x256xbf16>
      %50 = vector.shape_cast %49 : vector<1x1x9x256xbf16> to vector<9x256xbf16>
      %51 = vector.extract_strided_slice %50 {offsets = [0, 0], sizes = [8, 32], strides = [1, 1]} : vector<9x256xbf16> to vector<8x32xbf16>
      %c8_44 = arith.constant 8 : index
      %c96_45 = arith.constant 96 : index
      %52 = vector.load %arg6[%c8_44, %c96_45] : memref<64x384xbf16, #tpu.memory_space<vmem>>, vector<8x32xbf16>
      tpu.vector_store %arg6[%c8_44, %c96_45], %51 {strides = array<i32>} : memref<64x384xbf16, #tpu.memory_space<vmem>>, vector<8x32xbf16>,
      %53 = vector.extract_strided_slice %50 {offsets = [0, 128], sizes = [8, 32], strides = [1, 1]} : vector<9x256xbf16> to vector<8x32xbf16>
      %c8_46 = arith.constant 8 : index
      %c128_47 = arith.constant 128 : index
      %54 = vector.load %arg6[%c8_46, %c128_47] : memref<64x384xbf16, #tpu.memory_space<vmem>>, vector<8x32xbf16>
      tpu.vector_store %arg6[%c8_46, %c128_47], %53 {strides = array<i32>} : memref<64x384xbf16, #tpu.memory_space<vmem>>, vector<8x32xbf16>,
      %55 = vector.extract_strided_slice %50 {offsets = [1, 0], sizes = [8, 32], strides = [1, 1]} : vector<9x256xbf16> to vector<8x32xbf16>
      %c8_48 = arith.constant 8 : index
      %c160_49 = arith.constant 160 : index
      %56 = vector.load %arg6[%c8_48, %c160_49] : memref<64x384xbf16, #tpu.memory_space<vmem>>, vector<8x32xbf16>
      tpu.vector_store %arg6[%c8_48, %c160_49], %55 {strides = array<i32>} : memref<64x384xbf16, #tpu.memory_space<vmem>>, vector<8x32xbf16>,
      %c0_50 = arith.constant 0 : index
      %c4 = arith.constant 4 : index
      %c0_51 = arith.constant 0 : index
      %c0_52 = arith.constant 0 : index
      %57 = vector.load %arg2[%c0_50, %c4, %c0_51, %c0_52] : memref<1x18x9x256xbf16, #tpu.memory_space<vmem>>, vector<1x1x9x256xbf16>
      %58 = vector.shape_cast %57 : vector<1x1x9x256xbf16> to vector<9x256xbf16>
      %59 = vector.extract_strided_slice %58 {offsets = [0, 0], sizes = [8, 32], strides = [1, 1]} : vector<9x256xbf16> to vector<8x32xbf16>
      %c8_53 = arith.constant 8 : index
      %c192_54 = arith.constant 192 : index
      %60 = vector.load %arg6[%c8_53, %c192_54] : memref<64x384xbf16, #tpu.memory_space<vmem>>, vector<8x32xbf16>
      tpu.vector_store %arg6[%c8_53, %c192_54], %59 {strides = array<i32>} : memref<64x384xbf16, #tpu.memory_space<vmem>>, vector<8x32xbf16>,
      %61 = vector.extract_strided_slice %58 {offsets = [0, 128], sizes = [8, 32], strides = [1, 1]} : vector<9x256xbf16> to vector<8x32xbf16>
      %c8_55 = arith.constant 8 : index
      %c224_56 = arith.constant 224 : index
      %62 = vector.load %arg6[%c8_55, %c224_56] : memref<64x384xbf16, #tpu.memory_space<vmem>>, vector<8x32xbf16>
      tpu.vector_store %arg6[%c8_55, %c224_56], %61 {strides = array<i32>} : memref<64x384xbf16, #tpu.memory_space<vmem>>, vector<8x32xbf16>,
      %63 = vector.extract_strided_slice %58 {offsets = [1, 0], sizes = [8, 32], strides = [1, 1]} : vector<9x256xbf16> to vector<8x32xbf16>
      %c8_57 = arith.constant 8 : index
      %c256_58 = arith.constant 256 : index
      %64 = vector.load %arg6[%c8_57, %c256_58] : memref<64x384xbf16, #tpu.memory_space<vmem>>, vector<8x32xbf16>
      tpu.vector_store %arg6[%c8_57, %c256_58], %63 {strides = array<i32>} : memref<64x384xbf16, #tpu.memory_space<vmem>>, vector<8x32xbf16>,
      %c0_59 = arith.constant 0 : index
      %c4_60 = arith.constant 4 : index
      %c0_61 = arith.constant 0 : index
      %c0_62 = arith.constant 0 : index
      %65 = vector.load %arg2[%c0_59, %c4_60, %c0_61, %c0_62] : memref<1x18x9x256xbf16, #tpu.memory_space<vmem>>, vector<1x1x9x256xbf16>
      %66 = vector.shape_cast %65 : vector<1x1x9x256xbf16> to vector<9x256xbf16>
      %67 = vector.extract_strided_slice %66 {offsets = [0, 0], sizes = [8, 32], strides = [1, 1]} : vector<9x256xbf16> to vector<8x32xbf16>
      %c16 = arith.constant 16 : index
      %c0_63 = arith.constant 0 : index
      %68 = vector.load %arg6[%c16, %c0_63] : memref<64x384xbf16, #tpu.memory_space<vmem>>, vector<8x32xbf16>
      tpu.vector_store %arg6[%c16, %c0_63], %67 {strides = array<i32>} : memref<64x384xbf16, #tpu.memory_space<vmem>>, vector<8x32xbf16>,
      %69 = vector.extract_strided_slice %66 {offsets = [0, 128], sizes = [8, 32], strides = [1, 1]} : vector<9x256xbf16> to vector<8x32xbf16>
      %c16_64 = arith.constant 16 : index
      %c32_65 = arith.constant 32 : index
      %70 = vector.load %arg6[%c16_64, %c32_65] : memref<64x384xbf16, #tpu.memory_space<vmem>>, vector<8x32xbf16>
      tpu.vector_store %arg6[%c16_64, %c32_65], %69 {strides = array<i32>} : memref<64x384xbf16, #tpu.memory_space<vmem>>, vector<8x32xbf16>,
      %71 = vector.extract_strided_slice %66 {offsets = [1, 0], sizes = [8, 32], strides = [1, 1]} : vector<9x256xbf16> to vector<8x32xbf16>
      %c16_66 = arith.constant 16 : index
      %c64_67 = arith.constant 64 : index
      %72 = vector.load %arg6[%c16_66, %c64_67] : memref<64x384xbf16, #tpu.memory_space<vmem>>, vector<8x32xbf16>
      tpu.vector_store %arg6[%c16_66, %c64_67], %71 {strides = array<i32>} : memref<64x384xbf16, #tpu.memory_space<vmem>>, vector<8x32xbf16>,
      %c0_68 = arith.constant 0 : index
      %c5 = arith.constant 5 : index
      %c0_69 = arith.constant 0 : index
      %c0_70 = arith.constant 0 : index
      %73 = vector.load %arg2[%c0_68, %c5, %c0_69, %c0_70] : memref<1x18x9x256xbf16, #tpu.memory_space<vmem>>, vector<1x1x9x256xbf16>
      %74 = vector.shape_cast %73 : vector<1x1x9x256xbf16> to vector<9x256xbf16>
      %75 = vector.extract_strided_slice %74 {offsets = [0, 0], sizes = [8, 32], strides = [1, 1]} : vector<9x256xbf16> to vector<8x32xbf16>
      %c16_71 = arith.constant 16 : index
      %c96_72 = arith.constant 96 : index
      %76 = vector.load %arg6[%c16_71, %c96_72] : memref<64x384xbf16, #tpu.memory_space<vmem>>, vector<8x32xbf16>
      tpu.vector_store %arg6[%c16_71, %c96_72], %75 {strides = array<i32>} : memref<64x384xbf16, #tpu.memory_space<vmem>>, vector<8x32xbf16>,
      %77 = vector.extract_strided_slice %74 {offsets = [0, 128], sizes = [8, 32], strides = [1, 1]} : vector<9x256xbf16> to vector<8x32xbf16>
      %c16_73 = arith.constant 16 : index
      %c128_74 = arith.constant 128 : index
      %78 = vector.load %arg6[%c16_73, %c128_74] : memref<64x384xbf16, #tpu.memory_space<vmem>>, vector<8x32xbf16>
      tpu.vector_store %arg6[%c16_73, %c128_74], %77 {strides = array<i32>} : memref<64x384xbf16, #tpu.memory_space<vmem>>, vector<8x32xbf16>,
      %79 = vector.extract_strided_slice %74 {offsets = [1, 0], sizes = [8, 32], strides = [1, 1]} : vector<9x256xbf16> to vector<8x32xbf16>
      %c16_75 = arith.constant 16 : index
      %c160_76 = arith.constant 160 : index
      %80 = vector.load %arg6[%c16_75, %c160_76] : memref<64x384xbf16, #tpu.memory_space<vmem>>, vector<8x32xbf16>
      tpu.vector_store %arg6[%c16_75, %c160_76], %79 {strides = array<i32>} : memref<64x384xbf16, #tpu.memory_space<vmem>>, vector<8x32xbf16>,
      %c0_77 = arith.constant 0 : index
      %c6 = arith.constant 6 : index
      %c0_78 = arith.constant 0 : index
      %c0_79 = arith.constant 0 : index
      %81 = vector.load %arg2[%c0_77, %c6, %c0_78, %c0_79] : memref<1x18x9x256xbf16, #tpu.memory_space<vmem>>, vector<1x1x9x256xbf16>
      %82 = vector.shape_cast %81 : vector<1x1x9x256xbf16> to vector<9x256xbf16>
      %83 = vector.extract_strided_slice %82 {offsets = [0, 0], sizes = [8, 32], strides = [1, 1]} : vector<9x256xbf16> to vector<8x32xbf16>
      %c16_80 = arith.constant 16 : index
      %c192_81 = arith.constant 192 : index
      %84 = vector.load %arg6[%c16_80, %c192_81] : memref<64x384xbf16, #tpu.memory_space<vmem>>, vector<8x32xbf16>
      tpu.vector_store %arg6[%c16_80, %c192_81], %83 {strides = array<i32>} : memref<64x384xbf16, #tpu.memory_space<vmem>>, vector<8x32xbf16>,
      %85 = vector.extract_strided_slice %82 {offsets = [0, 128], sizes = [8, 32], strides = [1, 1]} : vector<9x256xbf16> to vector<8x32xbf16>
      %c16_82 = arith.constant 16 : index
      %c224_83 = arith.constant 224 : index
      %86 = vector.load %arg6[%c16_82, %c224_83] : memref<64x384xbf16, #tpu.memory_space<vmem>>, vector<8x32xbf16>
      tpu.vector_store %arg6[%c16_82, %c224_83], %85 {strides = array<i32>} : memref<64x384xbf16, #tpu.memory_space<vmem>>, vector<8x32xbf16>,
      %87 = vector.extract_strided_slice %82 {offsets = [1, 0], sizes = [8, 32], strides = [1, 1]} : vector<9x256xbf16> to vector<8x32xbf16>
      %c16_84 = arith.constant 16 : index
      %c256_85 = arith.constant 256 : index
      %88 = vector.load %arg6[%c16_84, %c256_85] : memref<64x384xbf16, #tpu.memory_space<vmem>>, vector<8x32xbf16>
      tpu.vector_store %arg6[%c16_84, %c256_85], %87 {strides = array<i32>} : memref<64x384xbf16, #tpu.memory_space<vmem>>, vector<8x32xbf16>,
      %c0_86 = arith.constant 0 : index
      %c6_87 = arith.constant 6 : index
      %c0_88 = arith.constant 0 : index
      %c0_89 = arith.constant 0 : index
      %89 = vector.load %arg2[%c0_86, %c6_87, %c0_88, %c0_89] : memref<1x18x9x256xbf16, #tpu.memory_space<vmem>>, vector<1x1x9x256xbf16>
      %90 = vector.shape_cast %89 : vector<1x1x9x256xbf16> to vector<9x256xbf16>
      %91 = vector.extract_strided_slice %90 {offsets = [0, 0], sizes = [8, 32], strides = [1, 1]} : vector<9x256xbf16> to vector<8x32xbf16>
      %c24 = arith.constant 24 : index
      %c0_90 = arith.constant 0 : index
      %92 = vector.load %arg6[%c24, %c0_90] : memref<64x384xbf16, #tpu.memory_space<vmem>>, vector<8x32xbf16>
      tpu.vector_store %arg6[%c24, %c0_90], %91 {strides = array<i32>} : memref<64x384xbf16, #tpu.memory_space<vmem>>, vector<8x32xbf16>,
      %93 = vector.extract_strided_slice %90 {offsets = [0, 128], sizes = [8, 32], strides = [1, 1]} : vector<9x256xbf16> to vector<8x32xbf16>
      %c24_91 = arith.constant 24 : index
      %c32_92 = arith.constant 32 : index
      %94 = vector.load %arg6[%c24_91, %c32_92] : memref<64x384xbf16, #tpu.memory_space<vmem>>, vector<8x32xbf16>
      tpu.vector_store %arg6[%c24_91, %c32_92], %93 {strides = array<i32>} : memref<64x384xbf16, #tpu.memory_space<vmem>>, vector<8x32xbf16>,
      %95 = vector.extract_strided_slice %90 {offsets = [1, 0], sizes = [8, 32], strides = [1, 1]} : vector<9x256xbf16> to vector<8x32xbf16>
      %c24_93 = arith.constant 24 : index
      %c64_94 = arith.constant 64 : index
      %96 = vector.load %arg6[%c24_93, %c64_94] : memref<64x384xbf16, #tpu.memory_space<vmem>>, vector<8x32xbf16>
      tpu.vector_store %arg6[%c24_93, %c64_94], %95 {strides = array<i32>} : memref<64x384xbf16, #tpu.memory_space<vmem>>, vector<8x32xbf16>,
      %c0_95 = arith.constant 0 : index
      %c7 = arith.constant 7 : index
      %c0_96 = arith.constant 0 : index
      %c0_97 = arith.constant 0 : index
      %97 = vector.load %arg2[%c0_95, %c7, %c0_96, %c0_97] : memref<1x18x9x256xbf16, #tpu.memory_space<vmem>>, vector<1x1x9x256xbf16>
      %98 = vector.shape_cast %97 : vector<1x1x9x256xbf16> to vector<9x256xbf16>
      %99 = vector.extract_strided_slice %98 {offsets = [0, 0], sizes = [8, 32], strides = [1, 1]} : vector<9x256xbf16> to vector<8x32xbf16>
      %c24_98 = arith.constant 24 : index
      %c96_99 = arith.constant 96 : index
      %100 = vector.load %arg6[%c24_98, %c96_99] : memref<64x384xbf16, #tpu.memory_space<vmem>>, vector<8x32xbf16>
      tpu.vector_store %arg6[%c24_98, %c96_99], %99 {strides = array<i32>} : memref<64x384xbf16, #tpu.memory_space<vmem>>, vector<8x32xbf16>,
      %101 = vector.extract_strided_slice %98 {offsets = [0, 128], sizes = [8, 32], strides = [1, 1]} : vector<9x256xbf16> to vector<8x32xbf16>
      %c24_100 = arith.constant 24 : index
      %c128_101 = arith.constant 128 : index
      %102 = vector.load %arg6[%c24_100, %c128_101] : memref<64x384xbf16, #tpu.memory_space<vmem>>, vector<8x32xbf16>
      tpu.vector_store %arg6[%c24_100, %c128_101], %101 {strides = array<i32>} : memref<64x384xbf16, #tpu.memory_space<vmem>>, vector<8x32xbf16>,
      %103 = vector.extract_strided_slice %98 {offsets = [1, 0], sizes = [8, 32], strides = [1, 1]} : vector<9x256xbf16> to vector<8x32xbf16>
      %c24_102 = arith.constant 24 : index
      %c160_103 = arith.constant 160 : index
      %104 = vector.load %arg6[%c24_102, %c160_103] : memref<64x384xbf16, #tpu.memory_space<vmem>>, vector<8x32xbf16>
      tpu.vector_store %arg6[%c24_102, %c160_103], %103 {strides = array<i32>} : memref<64x384xbf16, #tpu.memory_space<vmem>>, vector<8x32xbf16>,
      %c0_104 = arith.constant 0 : index
      %c8_105 = arith.constant 8 : index
      %c0_106 = arith.constant 0 : index
      %c0_107 = arith.constant 0 : index
      %105 = vector.load %arg2[%c0_104, %c8_105, %c0_106, %c0_107] : memref<1x18x9x256xbf16, #tpu.memory_space<vmem>>, vector<1x1x9x256xbf16>
      %106 = vector.shape_cast %105 : vector<1x1x9x256xbf16> to vector<9x256xbf16>
      %107 = vector.extract_strided_slice %106 {offsets = [0, 0], sizes = [8, 32], strides = [1, 1]} : vector<9x256xbf16> to vector<8x32xbf16>
      %c24_108 = arith.constant 24 : index
      %c192_109 = arith.constant 192 : index
      %108 = vector.load %arg6[%c24_108, %c192_109] : memref<64x384xbf16, #tpu.memory_space<vmem>>, vector<8x32xbf16>
      tpu.vector_store %arg6[%c24_108, %c192_109], %107 {strides = array<i32>} : memref<64x384xbf16, #tpu.memory_space<vmem>>, vector<8x32xbf16>,
      %109 = vector.extract_strided_slice %106 {offsets = [0, 128], sizes = [8, 32], strides = [1, 1]} : vector<9x256xbf16> to vector<8x32xbf16>
      %c24_110 = arith.constant 24 : index
      %c224_111 = arith.constant 224 : index
      %110 = vector.load %arg6[%c24_110, %c224_111] : memref<64x384xbf16, #tpu.memory_space<vmem>>, vector<8x32xbf16>
      tpu.vector_store %arg6[%c24_110, %c224_111], %109 {strides = array<i32>} : memref<64x384xbf16, #tpu.memory_space<vmem>>, vector<8x32xbf16>,
      %111 = vector.extract_strided_slice %106 {offsets = [1, 0], sizes = [8, 32], strides = [1, 1]} : vector<9x256xbf16> to vector<8x32xbf16>
      %c24_112 = arith.constant 24 : index
      %c256_113 = arith.constant 256 : index
      %112 = vector.load %arg6[%c24_112, %c256_113] : memref<64x384xbf16, #tpu.memory_space<vmem>>, vector<8x32xbf16>
      tpu.vector_store %arg6[%c24_112, %c256_113], %111 {strides = array<i32>} : memref<64x384xbf16, #tpu.memory_space<vmem>>, vector<8x32xbf16>,
      %c0_114 = arith.constant 0 : index
      %c8_115 = arith.constant 8 : index
      %c0_116 = arith.constant 0 : index
      %c0_117 = arith.constant 0 : index
      %113 = vector.load %arg2[%c0_114, %c8_115, %c0_116, %c0_117] : memref<1x18x9x256xbf16, #tpu.memory_space<vmem>>, vector<1x1x9x256xbf16>
      %114 = vector.shape_cast %113 : vector<1x1x9x256xbf16> to vector<9x256xbf16>
      %115 = vector.extract_strided_slice %114 {offsets = [0, 0], sizes = [8, 32], strides = [1, 1]} : vector<9x256xbf16> to vector<8x32xbf16>
      %c32_118 = arith.constant 32 : index
      %c0_119 = arith.constant 0 : index
      %116 = vector.load %arg6[%c32_118, %c0_119] : memref<64x384xbf16, #tpu.memory_space<vmem>>, vector<8x32xbf16>
      tpu.vector_store %arg6[%c32_118, %c0_119], %115 {strides = array<i32>} : memref<64x384xbf16, #tpu.memory_space<vmem>>, vector<8x32xbf16>,
      %117 = vector.extract_strided_slice %114 {offsets = [0, 128], sizes = [8, 32], strides = [1, 1]} : vector<9x256xbf16> to vector<8x32xbf16>
      %c32_120 = arith.constant 32 : index
      %c32_121 = arith.constant 32 : index
      %118 = vector.load %arg6[%c32_120, %c32_121] : memref<64x384xbf16, #tpu.memory_space<vmem>>, vector<8x32xbf16>
      tpu.vector_store %arg6[%c32_120, %c32_121], %117 {strides = array<i32>} : memref<64x384xbf16, #tpu.memory_space<vmem>>, vector<8x32xbf16>,
      %119 = vector.extract_strided_slice %114 {offsets = [1, 0], sizes = [8, 32], strides = [1, 1]} : vector<9x256xbf16> to vector<8x32xbf16>
      %c32_122 = arith.constant 32 : index
      %c64_123 = arith.constant 64 : index
      %120 = vector.load %arg6[%c32_122, %c64_123] : memref<64x384xbf16, #tpu.memory_space<vmem>>, vector<8x32xbf16>
      tpu.vector_store %arg6[%c32_122, %c64_123], %119 {strides = array<i32>} : memref<64x384xbf16, #tpu.memory_space<vmem>>, vector<8x32xbf16>,
      %c0_124 = arith.constant 0 : index
      %c9 = arith.constant 9 : index
      %c0_125 = arith.constant 0 : index
      %c0_126 = arith.constant 0 : index
      %121 = vector.load %arg2[%c0_124, %c9, %c0_125, %c0_126] : memref<1x18x9x256xbf16, #tpu.memory_space<vmem>>, vector<1x1x9x256xbf16>
      %122 = vector.shape_cast %121 : vector<1x1x9x256xbf16> to vector<9x256xbf16>
      %123 = vector.extract_strided_slice %122 {offsets = [0, 0], sizes = [8, 32], strides = [1, 1]} : vector<9x256xbf16> to vector<8x32xbf16>
      %c32_127 = arith.constant 32 : index
      %c96_128 = arith.constant 96 : index
      %124 = vector.load %arg6[%c32_127, %c96_128] : memref<64x384xbf16, #tpu.memory_space<vmem>>, vector<8x32xbf16>
      tpu.vector_store %arg6[%c32_127, %c96_128], %123 {strides = array<i32>} : memref<64x384xbf16, #tpu.memory_space<vmem>>, vector<8x32xbf16>,
      %125 = vector.extract_strided_slice %122 {offsets = [0, 128], sizes = [8, 32], strides = [1, 1]} : vector<9x256xbf16> to vector<8x32xbf16>
      %c32_129 = arith.constant 32 : index
      %c128_130 = arith.constant 128 : index
      %126 = vector.load %arg6[%c32_129, %c128_130] : memref<64x384xbf16, #tpu.memory_space<vmem>>, vector<8x32xbf16>
      tpu.vector_store %arg6[%c32_129, %c128_130], %125 {strides = array<i32>} : memref<64x384xbf16, #tpu.memory_space<vmem>>, vector<8x32xbf16>,
      %127 = vector.extract_strided_slice %122 {offsets = [1, 0], sizes = [8, 32], strides = [1, 1]} : vector<9x256xbf16> to vector<8x32xbf16>
      %c32_131 = arith.constant 32 : index
      %c160_132 = arith.constant 160 : index
      %128 = vector.load %arg6[%c32_131, %c160_132] : memref<64x384xbf16, #tpu.memory_space<vmem>>, vector<8x32xbf16>
      tpu.vector_store %arg6[%c32_131, %c160_132], %127 {strides = array<i32>} : memref<64x384xbf16, #tpu.memory_space<vmem>>, vector<8x32xbf16>,
      %c0_133 = arith.constant 0 : index
      %c10 = arith.constant 10 : index
      %c0_134 = arith.constant 0 : index
      %c0_135 = arith.constant 0 : index
      %129 = vector.load %arg2[%c0_133, %c10, %c0_134, %c0_135] : memref<1x18x9x256xbf16, #tpu.memory_space<vmem>>, vector<1x1x9x256xbf16>
      %130 = vector.shape_cast %129 : vector<1x1x9x256xbf16> to vector<9x256xbf16>
      %131 = vector.extract_strided_slice %130 {offsets = [0, 0], sizes = [8, 32], strides = [1, 1]} : vector<9x256xbf16> to vector<8x32xbf16>
      %c32_136 = arith.constant 32 : index
      %c192_137 = arith.constant 192 : index
      %132 = vector.load %arg6[%c32_136, %c192_137] : memref<64x384xbf16, #tpu.memory_space<vmem>>, vector<8x32xbf16>
      tpu.vector_store %arg6[%c32_136, %c192_137], %131 {strides = array<i32>} : memref<64x384xbf16, #tpu.memory_space<vmem>>, vector<8x32xbf16>,
      %133 = vector.extract_strided_slice %130 {offsets = [0, 128], sizes = [8, 32], strides = [1, 1]} : vector<9x256xbf16> to vector<8x32xbf16>
      %c32_138 = arith.constant 32 : index
      %c224_139 = arith.constant 224 : index
      %134 = vector.load %arg6[%c32_138, %c224_139] : memref<64x384xbf16, #tpu.memory_space<vmem>>, vector<8x32xbf16>
      tpu.vector_store %arg6[%c32_138, %c224_139], %133 {strides = array<i32>} : memref<64x384xbf16, #tpu.memory_space<vmem>>, vector<8x32xbf16>,
      %135 = vector.extract_strided_slice %130 {offsets = [1, 0], sizes = [8, 32], strides = [1, 1]} : vector<9x256xbf16> to vector<8x32xbf16>
      %c32_140 = arith.constant 32 : index
      %c256_141 = arith.constant 256 : index
      %136 = vector.load %arg6[%c32_140, %c256_141] : memref<64x384xbf16, #tpu.memory_space<vmem>>, vector<8x32xbf16>
      tpu.vector_store %arg6[%c32_140, %c256_141], %135 {strides = array<i32>} : memref<64x384xbf16, #tpu.memory_space<vmem>>, vector<8x32xbf16>,
      %c0_142 = arith.constant 0 : index
      %c10_143 = arith.constant 10 : index
      %c0_144 = arith.constant 0 : index
      %c0_145 = arith.constant 0 : index
      %137 = vector.load %arg2[%c0_142, %c10_143, %c0_144, %c0_145] : memref<1x18x9x256xbf16, #tpu.memory_space<vmem>>, vector<1x1x9x256xbf16>
      %138 = vector.shape_cast %137 : vector<1x1x9x256xbf16> to vector<9x256xbf16>
      %139 = vector.extract_strided_slice %138 {offsets = [0, 0], sizes = [8, 32], strides = [1, 1]} : vector<9x256xbf16> to vector<8x32xbf16>
      %c40 = arith.constant 40 : index
      %c0_146 = arith.constant 0 : index
      %140 = vector.load %arg6[%c40, %c0_146] : memref<64x384xbf16, #tpu.memory_space<vmem>>, vector<8x32xbf16>
      tpu.vector_store %arg6[%c40, %c0_146], %139 {strides = array<i32>} : memref<64x384xbf16, #tpu.memory_space<vmem>>, vector<8x32xbf16>,
      %141 = vector.extract_strided_slice %138 {offsets = [0, 128], sizes = [8, 32], strides = [1, 1]} : vector<9x256xbf16> to vector<8x32xbf16>
      %c40_147 = arith.constant 40 : index
      %c32_148 = arith.constant 32 : index
      %142 = vector.load %arg6[%c40_147, %c32_148] : memref<64x384xbf16, #tpu.memory_space<vmem>>, vector<8x32xbf16>
      tpu.vector_store %arg6[%c40_147, %c32_148], %141 {strides = array<i32>} : memref<64x384xbf16, #tpu.memory_space<vmem>>, vector<8x32xbf16>,
      %143 = vector.extract_strided_slice %138 {offsets = [1, 0], sizes = [8, 32], strides = [1, 1]} : vector<9x256xbf16> to vector<8x32xbf16>
      %c40_149 = arith.constant 40 : index
      %c64_150 = arith.constant 64 : index
      %144 = vector.load %arg6[%c40_149, %c64_150] : memref<64x384xbf16, #tpu.memory_space<vmem>>, vector<8x32xbf16>
      tpu.vector_store %arg6[%c40_149, %c64_150], %143 {strides = array<i32>} : memref<64x384xbf16, #tpu.memory_space<vmem>>, vector<8x32xbf16>,
      %c0_151 = arith.constant 0 : index
      %c11 = arith.constant 11 : index
      %c0_152 = arith.constant 0 : index
      %c0_153 = arith.constant 0 : index
      %145 = vector.load %arg2[%c0_151, %c11, %c0_152, %c0_153] : memref<1x18x9x256xbf16, #tpu.memory_space<vmem>>, vector<1x1x9x256xbf16>
      %146 = vector.shape_cast %145 : vector<1x1x9x256xbf16> to vector<9x256xbf16>
      %147 = vector.extract_strided_slice %146 {offsets = [0, 0], sizes = [8, 32], strides = [1, 1]} : vector<9x256xbf16> to vector<8x32xbf16>
      %c40_154 = arith.constant 40 : index
      %c96_155 = arith.constant 96 : index
      %148 = vector.load %arg6[%c40_154, %c96_155] : memref<64x384xbf16, #tpu.memory_space<vmem>>, vector<8x32xbf16>
      tpu.vector_store %arg6[%c40_154, %c96_155], %147 {strides = array<i32>} : memref<64x384xbf16, #tpu.memory_space<vmem>>, vector<8x32xbf16>,
      %149 = vector.extract_strided_slice %146 {offsets = [0, 128], sizes = [8, 32], strides = [1, 1]} : vector<9x256xbf16> to vector<8x32xbf16>
      %c40_156 = arith.constant 40 : index
      %c128_157 = arith.constant 128 : index
      %150 = vector.load %arg6[%c40_156, %c128_157] : memref<64x384xbf16, #tpu.memory_space<vmem>>, vector<8x32xbf16>
      tpu.vector_store %arg6[%c40_156, %c128_157], %149 {strides = array<i32>} : memref<64x384xbf16, #tpu.memory_space<vmem>>, vector<8x32xbf16>,
      %151 = vector.extract_strided_slice %146 {offsets = [1, 0], sizes = [8, 32], strides = [1, 1]} : vector<9x256xbf16> to vector<8x32xbf16>
      %c40_158 = arith.constant 40 : index
      %c160_159 = arith.constant 160 : index
      %152 = vector.load %arg6[%c40_158, %c160_159] : memref<64x384xbf16, #tpu.memory_space<vmem>>, vector<8x32xbf16>
      tpu.vector_store %arg6[%c40_158, %c160_159], %151 {strides = array<i32>} : memref<64x384xbf16, #tpu.memory_space<vmem>>, vector<8x32xbf16>,
      %c0_160 = arith.constant 0 : index
      %c12 = arith.constant 12 : index
      %c0_161 = arith.constant 0 : index
      %c0_162 = arith.constant 0 : index
      %153 = vector.load %arg2[%c0_160, %c12, %c0_161, %c0_162] : memref<1x18x9x256xbf16, #tpu.memory_space<vmem>>, vector<1x1x9x256xbf16>
      %154 = vector.shape_cast %153 : vector<1x1x9x256xbf16> to vector<9x256xbf16>
      %155 = vector.extract_strided_slice %154 {offsets = [0, 0], sizes = [8, 32], strides = [1, 1]} : vector<9x256xbf16> to vector<8x32xbf16>
      %c40_163 = arith.constant 40 : index
      %c192_164 = arith.constant 192 : index
      %156 = vector.load %arg6[%c40_163, %c192_164] : memref<64x384xbf16, #tpu.memory_space<vmem>>, vector<8x32xbf16>
      tpu.vector_store %arg6[%c40_163, %c192_164], %155 {strides = array<i32>} : memref<64x384xbf16, #tpu.memory_space<vmem>>, vector<8x32xbf16>,
      %157 = vector.extract_strided_slice %154 {offsets = [0, 128], sizes = [8, 32], strides = [1, 1]} : vector<9x256xbf16> to vector<8x32xbf16>
      %c40_165 = arith.constant 40 : index
      %c224_166 = arith.constant 224 : index
      %158 = vector.load %arg6[%c40_165, %c224_166] : memref<64x384xbf16, #tpu.memory_space<vmem>>, vector<8x32xbf16>
      tpu.vector_store %arg6[%c40_165, %c224_166], %157 {strides = array<i32>} : memref<64x384xbf16, #tpu.memory_space<vmem>>, vector<8x32xbf16>,
      %159 = vector.extract_strided_slice %154 {offsets = [1, 0], sizes = [8, 32], strides = [1, 1]} : vector<9x256xbf16> to vector<8x32xbf16>
      %c40_167 = arith.constant 40 : index
      %c256_168 = arith.constant 256 : index
      %160 = vector.load %arg6[%c40_167, %c256_168] : memref<64x384xbf16, #tpu.memory_space<vmem>>, vector<8x32xbf16>
      tpu.vector_store %arg6[%c40_167, %c256_168], %159 {strides = array<i32>} : memref<64x384xbf16, #tpu.memory_space<vmem>>, vector<8x32xbf16>,
      %c0_169 = arith.constant 0 : index
      %c12_170 = arith.constant 12 : index
      %c0_171 = arith.constant 0 : index
      %c0_172 = arith.constant 0 : index
      %161 = vector.load %arg2[%c0_169, %c12_170, %c0_171, %c0_172] : memref<1x18x9x256xbf16, #tpu.memory_space<vmem>>, vector<1x1x9x256xbf16>
      %162 = vector.shape_cast %161 : vector<1x1x9x256xbf16> to vector<9x256xbf16>
      %163 = vector.extract_strided_slice %162 {offsets = [0, 0], sizes = [8, 32], strides = [1, 1]} : vector<9x256xbf16> to vector<8x32xbf16>
      %c48 = arith.constant 48 : index
      %c0_173 = arith.constant 0 : index
      %164 = vector.load %arg6[%c48, %c0_173] : memref<64x384xbf16, #tpu.memory_space<vmem>>, vector<8x32xbf16>
      tpu.vector_store %arg6[%c48, %c0_173], %163 {strides = array<i32>} : memref<64x384xbf16, #tpu.memory_space<vmem>>, vector<8x32xbf16>,
      %165 = vector.extract_strided_slice %162 {offsets = [0, 128], sizes = [8, 32], strides = [1, 1]} : vector<9x256xbf16> to vector<8x32xbf16>
      %c48_174 = arith.constant 48 : index
      %c32_175 = arith.constant 32 : index
      %166 = vector.load %arg6[%c48_174, %c32_175] : memref<64x384xbf16, #tpu.memory_space<vmem>>, vector<8x32xbf16>
      tpu.vector_store %arg6[%c48_174, %c32_175], %165 {strides = array<i32>} : memref<64x384xbf16, #tpu.memory_space<vmem>>, vector<8x32xbf16>,
      %167 = vector.extract_strided_slice %162 {offsets = [1, 0], sizes = [8, 32], strides = [1, 1]} : vector<9x256xbf16> to vector<8x32xbf16>
      %c48_176 = arith.constant 48 : index
      %c64_177 = arith.constant 64 : index
      %168 = vector.load %arg6[%c48_176, %c64_177] : memref<64x384xbf16, #tpu.memory_space<vmem>>, vector<8x32xbf16>
      tpu.vector_store %arg6[%c48_176, %c64_177], %167 {strides = array<i32>} : memref<64x384xbf16, #tpu.memory_space<vmem>>, vector<8x32xbf16>,
      %c0_178 = arith.constant 0 : index
      %c13 = arith.constant 13 : index
      %c0_179 = arith.constant 0 : index
      %c0_180 = arith.constant 0 : index
      %169 = vector.load %arg2[%c0_178, %c13, %c0_179, %c0_180] : memref<1x18x9x256xbf16, #tpu.memory_space<vmem>>, vector<1x1x9x256xbf16>
      %170 = vector.shape_cast %169 : vector<1x1x9x256xbf16> to vector<9x256xbf16>
      %171 = vector.extract_strided_slice %170 {offsets = [0, 0], sizes = [8, 32], strides = [1, 1]} : vector<9x256xbf16> to vector<8x32xbf16>
      %c48_181 = arith.constant 48 : index
      %c96_182 = arith.constant 96 : index
      %172 = vector.load %arg6[%c48_181, %c96_182] : memref<64x384xbf16, #tpu.memory_space<vmem>>, vector<8x32xbf16>
      tpu.vector_store %arg6[%c48_181, %c96_182], %171 {strides = array<i32>} : memref<64x384xbf16, #tpu.memory_space<vmem>>, vector<8x32xbf16>,
      %173 = vector.extract_strided_slice %170 {offsets = [0, 128], sizes = [8, 32], strides = [1, 1]} : vector<9x256xbf16> to vector<8x32xbf16>
      %c48_183 = arith.constant 48 : index
      %c128_184 = arith.constant 128 : index
      %174 = vector.load %arg6[%c48_183, %c128_184] : memref<64x384xbf16, #tpu.memory_space<vmem>>, vector<8x32xbf16>
      tpu.vector_store %arg6[%c48_183, %c128_184], %173 {strides = array<i32>} : memref<64x384xbf16, #tpu.memory_space<vmem>>, vector<8x32xbf16>,
      %175 = vector.extract_strided_slice %170 {offsets = [1, 0], sizes = [8, 32], strides = [1, 1]} : vector<9x256xbf16> to vector<8x32xbf16>
      %c48_185 = arith.constant 48 : index
      %c160_186 = arith.constant 160 : index
      %176 = vector.load %arg6[%c48_185, %c160_186] : memref<64x384xbf16, #tpu.memory_space<vmem>>, vector<8x32xbf16>
      tpu.vector_store %arg6[%c48_185, %c160_186], %175 {strides = array<i32>} : memref<64x384xbf16, #tpu.memory_space<vmem>>, vector<8x32xbf16>,
      %c0_187 = arith.constant 0 : index
      %c14 = arith.constant 14 : index
      %c0_188 = arith.constant 0 : index
      %c0_189 = arith.constant 0 : index
      %177 = vector.load %arg2[%c0_187, %c14, %c0_188, %c0_189] : memref<1x18x9x256xbf16, #tpu.memory_space<vmem>>, vector<1x1x9x256xbf16>
      %178 = vector.shape_cast %177 : vector<1x1x9x256xbf16> to vector<9x256xbf16>
      %179 = vector.extract_strided_slice %178 {offsets = [0, 0], sizes = [8, 32], strides = [1, 1]} : vector<9x256xbf16> to vector<8x32xbf16>
      %c48_190 = arith.constant 48 : index
      %c192_191 = arith.constant 192 : index
      %180 = vector.load %arg6[%c48_190, %c192_191] : memref<64x384xbf16, #tpu.memory_space<vmem>>, vector<8x32xbf16>
      tpu.vector_store %arg6[%c48_190, %c192_191], %179 {strides = array<i32>} : memref<64x384xbf16, #tpu.memory_space<vmem>>, vector<8x32xbf16>,
      %181 = vector.extract_strided_slice %178 {offsets = [0, 128], sizes = [8, 32], strides = [1, 1]} : vector<9x256xbf16> to vector<8x32xbf16>
      %c48_192 = arith.constant 48 : index
      %c224_193 = arith.constant 224 : index
      %182 = vector.load %arg6[%c48_192, %c224_193] : memref<64x384xbf16, #tpu.memory_space<vmem>>, vector<8x32xbf16>
      tpu.vector_store %arg6[%c48_192, %c224_193], %181 {strides = array<i32>} : memref<64x384xbf16, #tpu.memory_space<vmem>>, vector<8x32xbf16>,
      %183 = vector.extract_strided_slice %178 {offsets = [1, 0], sizes = [8, 32], strides = [1, 1]} : vector<9x256xbf16> to vector<8x32xbf16>
      %c48_194 = arith.constant 48 : index
      %c256_195 = arith.constant 256 : index
      %184 = vector.load %arg6[%c48_194, %c256_195] : memref<64x384xbf16, #tpu.memory_space<vmem>>, vector<8x32xbf16>
      tpu.vector_store %arg6[%c48_194, %c256_195], %183 {strides = array<i32>} : memref<64x384xbf16, #tpu.memory_space<vmem>>, vector<8x32xbf16>,
      %c0_196 = arith.constant 0 : index
      %c14_197 = arith.constant 14 : index
      %c0_198 = arith.constant 0 : index
      %c0_199 = arith.constant 0 : index
      %185 = vector.load %arg2[%c0_196, %c14_197, %c0_198, %c0_199] : memref<1x18x9x256xbf16, #tpu.memory_space<vmem>>, vector<1x1x9x256xbf16>
      %186 = vector.shape_cast %185 : vector<1x1x9x256xbf16> to vector<9x256xbf16>
      %187 = vector.extract_strided_slice %186 {offsets = [0, 0], sizes = [8, 32], strides = [1, 1]} : vector<9x256xbf16> to vector<8x32xbf16>
      %c56 = arith.constant 56 : index
      %c0_200 = arith.constant 0 : index
      %188 = vector.load %arg6[%c56, %c0_200] : memref<64x384xbf16, #tpu.memory_space<vmem>>, vector<8x32xbf16>
      tpu.vector_store %arg6[%c56, %c0_200], %187 {strides = array<i32>} : memref<64x384xbf16, #tpu.memory_space<vmem>>, vector<8x32xbf16>,
      %189 = vector.extract_strided_slice %186 {offsets = [0, 128], sizes = [8, 32], strides = [1, 1]} : vector<9x256xbf16> to vector<8x32xbf16>
      %c56_201 = arith.constant 56 : index
      %c32_202 = arith.constant 32 : index
      %190 = vector.load %arg6[%c56_201, %c32_202] : memref<64x384xbf16, #tpu.memory_space<vmem>>, vector<8x32xbf16>
      tpu.vector_store %arg6[%c56_201, %c32_202], %189 {strides = array<i32>} : memref<64x384xbf16, #tpu.memory_space<vmem>>, vector<8x32xbf16>,
      %191 = vector.extract_strided_slice %186 {offsets = [1, 0], sizes = [8, 32], strides = [1, 1]} : vector<9x256xbf16> to vector<8x32xbf16>
      %c56_203 = arith.constant 56 : index
      %c64_204 = arith.constant 64 : index
      %192 = vector.load %arg6[%c56_203, %c64_204] : memref<64x384xbf16, #tpu.memory_space<vmem>>, vector<8x32xbf16>
      tpu.vector_store %arg6[%c56_203, %c64_204], %191 {strides = array<i32>} : memref<64x384xbf16, #tpu.memory_space<vmem>>, vector<8x32xbf16>,
      %c0_205 = arith.constant 0 : index
      %c15 = arith.constant 15 : index
      %c0_206 = arith.constant 0 : index
      %c0_207 = arith.constant 0 : index
      %193 = vector.load %arg2[%c0_205, %c15, %c0_206, %c0_207] : memref<1x18x9x256xbf16, #tpu.memory_space<vmem>>, vector<1x1x9x256xbf16>
      %194 = vector.shape_cast %193 : vector<1x1x9x256xbf16> to vector<9x256xbf16>
      %195 = vector.extract_strided_slice %194 {offsets = [0, 0], sizes = [8, 32], strides = [1, 1]} : vector<9x256xbf16> to vector<8x32xbf16>
      %c56_208 = arith.constant 56 : index
      %c96_209 = arith.constant 96 : index
      %196 = vector.load %arg6[%c56_208, %c96_209] : memref<64x384xbf16, #tpu.memory_space<vmem>>, vector<8x32xbf16>
      tpu.vector_store %arg6[%c56_208, %c96_209], %195 {strides = array<i32>} : memref<64x384xbf16, #tpu.memory_space<vmem>>, vector<8x32xbf16>,
      %197 = vector.extract_strided_slice %194 {offsets = [0, 128], sizes = [8, 32], strides = [1, 1]} : vector<9x256xbf16> to vector<8x32xbf16>
      %c56_210 = arith.constant 56 : index
      %c128_211 = arith.constant 128 : index
      %198 = vector.load %arg6[%c56_210, %c128_211] : memref<64x384xbf16, #tpu.memory_space<vmem>>, vector<8x32xbf16>
      tpu.vector_store %arg6[%c56_210, %c128_211], %197 {strides = array<i32>} : memref<64x384xbf16, #tpu.memory_space<vmem>>, vector<8x32xbf16>,
      %199 = vector.extract_strided_slice %194 {offsets = [1, 0], sizes = [8, 32], strides = [1, 1]} : vector<9x256xbf16> to vector<8x32xbf16>
      %c56_212 = arith.constant 56 : index
      %c160_213 = arith.constant 160 : index
      %200 = vector.load %arg6[%c56_212, %c160_213] : memref<64x384xbf16, #tpu.memory_space<vmem>>, vector<8x32xbf16>
      tpu.vector_store %arg6[%c56_212, %c160_213], %199 {strides = array<i32>} : memref<64x384xbf16, #tpu.memory_space<vmem>>, vector<8x32xbf16>,
      %c0_214 = arith.constant 0 : index
      %c16_215 = arith.constant 16 : index
      %c0_216 = arith.constant 0 : index
      %c0_217 = arith.constant 0 : index
      %201 = vector.load %arg2[%c0_214, %c16_215, %c0_216, %c0_217] : memref<1x18x9x256xbf16, #tpu.memory_space<vmem>>, vector<1x1x9x256xbf16>
      %202 = vector.shape_cast %201 : vector<1x1x9x256xbf16> to vector<9x256xbf16>
      %203 = vector.extract_strided_slice %202 {offsets = [0, 0], sizes = [8, 32], strides = [1, 1]} : vector<9x256xbf16> to vector<8x32xbf16>
      %c56_218 = arith.constant 56 : index
      %c192_219 = arith.constant 192 : index
      %204 = vector.load %arg6[%c56_218, %c192_219] : memref<64x384xbf16, #tpu.memory_space<vmem>>, vector<8x32xbf16>
      tpu.vector_store %arg6[%c56_218, %c192_219], %203 {strides = array<i32>} : memref<64x384xbf16, #tpu.memory_space<vmem>>, vector<8x32xbf16>,
      %205 = vector.extract_strided_slice %202 {offsets = [0, 128], sizes = [8, 32], strides = [1, 1]} : vector<9x256xbf16> to vector<8x32xbf16>
      %c56_220 = arith.constant 56 : index
      %c224_221 = arith.constant 224 : index
      %206 = vector.load %arg6[%c56_220, %c224_221] : memref<64x384xbf16, #tpu.memory_space<vmem>>, vector<8x32xbf16>
      tpu.vector_store %arg6[%c56_220, %c224_221], %205 {strides = array<i32>} : memref<64x384xbf16, #tpu.memory_space<vmem>>, vector<8x32xbf16>,
      %207 = vector.extract_strided_slice %202 {offsets = [1, 0], sizes = [8, 32], strides = [1, 1]} : vector<9x256xbf16> to vector<8x32xbf16>
      %c56_222 = arith.constant 56 : index
      %c256_223 = arith.constant 256 : index
      %208 = vector.load %arg6[%c56_222, %c256_223] : memref<64x384xbf16, #tpu.memory_space<vmem>>, vector<8x32xbf16>
      tpu.vector_store %arg6[%c56_222, %c256_223], %207 {strides = array<i32>} : memref<64x384xbf16, #tpu.memory_space<vmem>>, vector<8x32xbf16>,
    } else {
    }
    %c0 = arith.constant 0 : index
    %c0_1 = arith.constant 0 : index
    %3 = vector.load %arg6[%c0, %c0_1] : memref<64x384xbf16, #tpu.memory_space<vmem>>, vector<64x384xbf16>
    %c0_2 = arith.constant 0 : index
    %c0_3 = arith.constant 0 : index
    %4 = vector.load %arg3[%c0_2, %c0_3] : memref<384x128xbf16, #tpu.memory_space<vmem>>, vector<384x128xbf16>
    %cst = arith.constant dense<0.000000e+00> : vector<64x128xf32>
    %5 = tpu.matmul %3, %4, %cst {dimension_numbers = #tpu.dot_dimension_numbers<[1], [0], [0], [1], [0, 0, 1, 1], [], []>} : vector<64x384xbf16>, vector<384x128xbf16>, vector<64x128xf32> -> vector<64x128xf32>
    %c0_4 = arith.constant 0 : index
    %c0_5 = arith.constant 0 : index
    %6 = vector.load %arg4[%c0_4, %c0_5] : memref<1x128xf32, #tpu.memory_space<vmem>>, vector<1x128xf32>
    %7 = vector.broadcast %6 : vector<1x128xf32> to vector<64x128xf32>
    %8 = arith.addf %5, %7 : vector<64x128xf32>
    %cst_6 = arith.constant 0.000000e+00 : f32
    %9 = vector.broadcast %cst_6 : f32 to vector<64x128xf32>
    %10 = arith.maximumf %8, %9 : vector<64x128xf32>
    %11 = arith.truncf %10 : vector<64x128xf32> to vector<64x128xbf16>
    %c0_7 = arith.constant 0 : index
    %c0_8 = arith.constant 0 : index
    %c0_9 = arith.constant 0 : index
    %12 = vector.load %arg5[%c0_7, %c0_8, %c0_9] : memref<1x64x128xbf16, #tpu.memory_space<vmem>>, vector<1x64x128xbf16>
    %13 = vector.shape_cast %12 : vector<1x64x128xbf16> to vector<64x128xbf16>
    %14 = vector.shape_cast %11 : vector<64x128xbf16> to vector<1x64x128xbf16>
    tpu.vector_store %arg5[%c0_7, %c0_8, %c0_9], %14 {strides = array<i32>} : memref<1x64x128xbf16, #tpu.memory_space<vmem>>, vector<1x64x128xbf16>,
    return
  }
  func.func @transform_0(%arg0: i32, %arg1: i32) -> (i32, i32, i32, i32) {
    %c0_i32 = arith.constant 0 : i32
    %c0_i32_0 = arith.constant 0 : i32
    %c0_i32_1 = arith.constant 0 : i32
    %c0_i32_2 = arith.constant 0 : i32
    return %arg0, %c0_i32, %c0_i32_0, %c0_i32_1 : i32, i32, i32, i32
  }
  func.func @transform_1(%arg0: i32, %arg1: i32) -> (i32, i32) {
    %c0_i32 = arith.constant 0 : i32
    %c0_i32_0 = arith.constant 0 : i32
    return %c0_i32, %arg1 : i32, i32
  }
  func.func @transform_2(%arg0: i32, %arg1: i32) -> (i32, i32) {
    %c0_i32 = arith.constant 0 : i32
    %c0_i32_0 = arith.constant 0 : i32
    return %c0_i32, %arg1 : i32, i32
  }
  func.func @transform_3(%arg0: i32, %arg1: i32) -> (i32, i32, i32) {
    %c0_i32 = arith.constant 0 : i32
    %c0_i32_0 = arith.constant 0 : i32
    return %arg0, %c0_i32, %arg1 : i32, i32, i32
  }
}

module attributes {stable_mosaic.version = 11 : i64} {
  func.func @_spatial_conv_kernel(%arg0: i32, %arg1: i32, %arg2: memref<1x10x5x256xbf16, #tpu.memory_space<vmem>>, %arg3: memref<640x128xbf16, #tpu.memory_space<vmem>>, %arg4: memref<1x128xf32, #tpu.memory_space<vmem>>, %arg5: memref<1x16x128xbf16, #tpu.memory_space<vmem>>, %arg6: memref<16x640xbf16, #tpu.memory_space<vmem>>) attributes {dimension_semantics = [#tpu.dimension_semantics<parallel>, #tpu.dimension_semantics<arbitrary>], iteration_bounds = array<i64: 2, 1>, scalar_prefetch = 0 : i64, scratch_operands = 1 : i64, tpu.core_type = #tpu.core_type<tc>, window_params = [{transform_indices = @transform_0, window_bounds = array<i64: 1, 10, 5, 256>}, {transform_indices = @transform_1, window_bounds = array<i64: 640, 128>}, {transform_indices = @transform_2, window_bounds = array<i64: 1, 128>}, {transform_indices = @transform_3, window_bounds = array<i64: 1, 16, 128>}]} {
    %c0_i32 = arith.constant 0 : i32
    %0 = arith.cmpi eq, %arg1, %c0_i32 : i32
    %1 = arith.extui %0 : i1 to i32
    %c0_i32_0 = arith.constant 0 : i32
    %2 = arith.cmpi ne, %1, %c0_i32_0 : i32
    scf.if %2 {
      %cst_10 = arith.constant 0.000000e+00 : bf16
      %15 = vector.broadcast %cst_10 : bf16 to vector<16x64xbf16>
      %c0_11 = arith.constant 0 : index
      %c576 = arith.constant 576 : index
      %16 = vector.load %arg6[%c0_11, %c576] : memref<16x640xbf16, #tpu.memory_space<vmem>>, vector<16x64xbf16>
      tpu.vector_store %arg6[%c0_11, %c576], %15 {strides = array<i32>} : memref<16x640xbf16, #tpu.memory_space<vmem>>, vector<16x64xbf16>,
      %c0_12 = arith.constant 0 : index
      %c0_13 = arith.constant 0 : index
      %c0_14 = arith.constant 0 : index
      %c0_15 = arith.constant 0 : index
      %17 = vector.load %arg2[%c0_12, %c0_13, %c0_14, %c0_15] : memref<1x10x5x256xbf16, #tpu.memory_space<vmem>>, vector<1x1x5x256xbf16>
      %18 = vector.shape_cast %17 : vector<1x1x5x256xbf16> to vector<5x256xbf16>
      %19 = vector.extract_strided_slice %18 {offsets = [0, 0], sizes = [4, 64], strides = [1, 1]} : vector<5x256xbf16> to vector<4x64xbf16>
      %c0_16 = arith.constant 0 : index
      %c0_17 = arith.constant 0 : index
      %20 = vector.load %arg6[%c0_16, %c0_17] : memref<16x640xbf16, #tpu.memory_space<vmem>>, vector<4x64xbf16>
      tpu.vector_store %arg6[%c0_16, %c0_17], %19 {strides = array<i32>} : memref<16x640xbf16, #tpu.memory_space<vmem>>, vector<4x64xbf16>,
      %21 = vector.extract_strided_slice %18 {offsets = [0, 128], sizes = [4, 64], strides = [1, 1]} : vector<5x256xbf16> to vector<4x64xbf16>
      %c0_18 = arith.constant 0 : index
      %c64 = arith.constant 64 : index
      %22 = vector.load %arg6[%c0_18, %c64] : memref<16x640xbf16, #tpu.memory_space<vmem>>, vector<4x64xbf16>
      tpu.vector_store %arg6[%c0_18, %c64], %21 {strides = array<i32>} : memref<16x640xbf16, #tpu.memory_space<vmem>>, vector<4x64xbf16>,
      %23 = vector.extract_strided_slice %18 {offsets = [1, 0], sizes = [4, 64], strides = [1, 1]} : vector<5x256xbf16> to vector<4x64xbf16>
      %c0_19 = arith.constant 0 : index
      %c128 = arith.constant 128 : index
      %24 = vector.load %arg6[%c0_19, %c128] : memref<16x640xbf16, #tpu.memory_space<vmem>>, vector<4x64xbf16>
      tpu.vector_store %arg6[%c0_19, %c128], %23 {strides = array<i32>} : memref<16x640xbf16, #tpu.memory_space<vmem>>, vector<4x64xbf16>,
      %c0_20 = arith.constant 0 : index
      %c1 = arith.constant 1 : index
      %c0_21 = arith.constant 0 : index
      %c0_22 = arith.constant 0 : index
      %25 = vector.load %arg2[%c0_20, %c1, %c0_21, %c0_22] : memref<1x10x5x256xbf16, #tpu.memory_space<vmem>>, vector<1x1x5x256xbf16>
      %26 = vector.shape_cast %25 : vector<1x1x5x256xbf16> to vector<5x256xbf16>
      %27 = vector.extract_strided_slice %26 {offsets = [0, 0], sizes = [4, 64], strides = [1, 1]} : vector<5x256xbf16> to vector<4x64xbf16>
      %c0_23 = arith.constant 0 : index
      %c192 = arith.constant 192 : index
      %28 = vector.load %arg6[%c0_23, %c192] : memref<16x640xbf16, #tpu.memory_space<vmem>>, vector<4x64xbf16>
      tpu.vector_store %arg6[%c0_23, %c192], %27 {strides = array<i32>} : memref<16x640xbf16, #tpu.memory_space<vmem>>, vector<4x64xbf16>,
      %29 = vector.extract_strided_slice %26 {offsets = [0, 128], sizes = [4, 64], strides = [1, 1]} : vector<5x256xbf16> to vector<4x64xbf16>
      %c0_24 = arith.constant 0 : index
      %c256 = arith.constant 256 : index
      %30 = vector.load %arg6[%c0_24, %c256] : memref<16x640xbf16, #tpu.memory_space<vmem>>, vector<4x64xbf16>
      tpu.vector_store %arg6[%c0_24, %c256], %29 {strides = array<i32>} : memref<16x640xbf16, #tpu.memory_space<vmem>>, vector<4x64xbf16>,
      %31 = vector.extract_strided_slice %26 {offsets = [1, 0], sizes = [4, 64], strides = [1, 1]} : vector<5x256xbf16> to vector<4x64xbf16>
      %c0_25 = arith.constant 0 : index
      %c320 = arith.constant 320 : index
      %32 = vector.load %arg6[%c0_25, %c320] : memref<16x640xbf16, #tpu.memory_space<vmem>>, vector<4x64xbf16>
      tpu.vector_store %arg6[%c0_25, %c320], %31 {strides = array<i32>} : memref<16x640xbf16, #tpu.memory_space<vmem>>, vector<4x64xbf16>,
      %c0_26 = arith.constant 0 : index
      %c2 = arith.constant 2 : index
      %c0_27 = arith.constant 0 : index
      %c0_28 = arith.constant 0 : index
      %33 = vector.load %arg2[%c0_26, %c2, %c0_27, %c0_28] : memref<1x10x5x256xbf16, #tpu.memory_space<vmem>>, vector<1x1x5x256xbf16>
      %34 = vector.shape_cast %33 : vector<1x1x5x256xbf16> to vector<5x256xbf16>
      %35 = vector.extract_strided_slice %34 {offsets = [0, 0], sizes = [4, 64], strides = [1, 1]} : vector<5x256xbf16> to vector<4x64xbf16>
      %c0_29 = arith.constant 0 : index
      %c384 = arith.constant 384 : index
      %36 = vector.load %arg6[%c0_29, %c384] : memref<16x640xbf16, #tpu.memory_space<vmem>>, vector<4x64xbf16>
      tpu.vector_store %arg6[%c0_29, %c384], %35 {strides = array<i32>} : memref<16x640xbf16, #tpu.memory_space<vmem>>, vector<4x64xbf16>,
      %37 = vector.extract_strided_slice %34 {offsets = [0, 128], sizes = [4, 64], strides = [1, 1]} : vector<5x256xbf16> to vector<4x64xbf16>
      %c0_30 = arith.constant 0 : index
      %c448 = arith.constant 448 : index
      %38 = vector.load %arg6[%c0_30, %c448] : memref<16x640xbf16, #tpu.memory_space<vmem>>, vector<4x64xbf16>
      tpu.vector_store %arg6[%c0_30, %c448], %37 {strides = array<i32>} : memref<16x640xbf16, #tpu.memory_space<vmem>>, vector<4x64xbf16>,
      %39 = vector.extract_strided_slice %34 {offsets = [1, 0], sizes = [4, 64], strides = [1, 1]} : vector<5x256xbf16> to vector<4x64xbf16>
      %c0_31 = arith.constant 0 : index
      %c512 = arith.constant 512 : index
      %40 = vector.load %arg6[%c0_31, %c512] : memref<16x640xbf16, #tpu.memory_space<vmem>>, vector<4x64xbf16>
      tpu.vector_store %arg6[%c0_31, %c512], %39 {strides = array<i32>} : memref<16x640xbf16, #tpu.memory_space<vmem>>, vector<4x64xbf16>,
      %c0_32 = arith.constant 0 : index
      %c2_33 = arith.constant 2 : index
      %c0_34 = arith.constant 0 : index
      %c0_35 = arith.constant 0 : index
      %41 = vector.load %arg2[%c0_32, %c2_33, %c0_34, %c0_35] : memref<1x10x5x256xbf16, #tpu.memory_space<vmem>>, vector<1x1x5x256xbf16>
      %42 = vector.shape_cast %41 : vector<1x1x5x256xbf16> to vector<5x256xbf16>
      %43 = vector.extract_strided_slice %42 {offsets = [0, 0], sizes = [4, 64], strides = [1, 1]} : vector<5x256xbf16> to vector<4x64xbf16>
      %c4 = arith.constant 4 : index
      %c0_36 = arith.constant 0 : index
      %44 = vector.load %arg6[%c4, %c0_36] : memref<16x640xbf16, #tpu.memory_space<vmem>>, vector<4x64xbf16>
      tpu.vector_store %arg6[%c4, %c0_36], %43 {strides = array<i32>} : memref<16x640xbf16, #tpu.memory_space<vmem>>, vector<4x64xbf16>,
      %45 = vector.extract_strided_slice %42 {offsets = [0, 128], sizes = [4, 64], strides = [1, 1]} : vector<5x256xbf16> to vector<4x64xbf16>
      %c4_37 = arith.constant 4 : index
      %c64_38 = arith.constant 64 : index
      %46 = vector.load %arg6[%c4_37, %c64_38] : memref<16x640xbf16, #tpu.memory_space<vmem>>, vector<4x64xbf16>
      tpu.vector_store %arg6[%c4_37, %c64_38], %45 {strides = array<i32>} : memref<16x640xbf16, #tpu.memory_space<vmem>>, vector<4x64xbf16>,
      %47 = vector.extract_strided_slice %42 {offsets = [1, 0], sizes = [4, 64], strides = [1, 1]} : vector<5x256xbf16> to vector<4x64xbf16>
      %c4_39 = arith.constant 4 : index
      %c128_40 = arith.constant 128 : index
      %48 = vector.load %arg6[%c4_39, %c128_40] : memref<16x640xbf16, #tpu.memory_space<vmem>>, vector<4x64xbf16>
      tpu.vector_store %arg6[%c4_39, %c128_40], %47 {strides = array<i32>} : memref<16x640xbf16, #tpu.memory_space<vmem>>, vector<4x64xbf16>,
      %c0_41 = arith.constant 0 : index
      %c3 = arith.constant 3 : index
      %c0_42 = arith.constant 0 : index
      %c0_43 = arith.constant 0 : index
      %49 = vector.load %arg2[%c0_41, %c3, %c0_42, %c0_43] : memref<1x10x5x256xbf16, #tpu.memory_space<vmem>>, vector<1x1x5x256xbf16>
      %50 = vector.shape_cast %49 : vector<1x1x5x256xbf16> to vector<5x256xbf16>
      %51 = vector.extract_strided_slice %50 {offsets = [0, 0], sizes = [4, 64], strides = [1, 1]} : vector<5x256xbf16> to vector<4x64xbf16>
      %c4_44 = arith.constant 4 : index
      %c192_45 = arith.constant 192 : index
      %52 = vector.load %arg6[%c4_44, %c192_45] : memref<16x640xbf16, #tpu.memory_space<vmem>>, vector<4x64xbf16>
      tpu.vector_store %arg6[%c4_44, %c192_45], %51 {strides = array<i32>} : memref<16x640xbf16, #tpu.memory_space<vmem>>, vector<4x64xbf16>,
      %53 = vector.extract_strided_slice %50 {offsets = [0, 128], sizes = [4, 64], strides = [1, 1]} : vector<5x256xbf16> to vector<4x64xbf16>
      %c4_46 = arith.constant 4 : index
      %c256_47 = arith.constant 256 : index
      %54 = vector.load %arg6[%c4_46, %c256_47] : memref<16x640xbf16, #tpu.memory_space<vmem>>, vector<4x64xbf16>
      tpu.vector_store %arg6[%c4_46, %c256_47], %53 {strides = array<i32>} : memref<16x640xbf16, #tpu.memory_space<vmem>>, vector<4x64xbf16>,
      %55 = vector.extract_strided_slice %50 {offsets = [1, 0], sizes = [4, 64], strides = [1, 1]} : vector<5x256xbf16> to vector<4x64xbf16>
      %c4_48 = arith.constant 4 : index
      %c320_49 = arith.constant 320 : index
      %56 = vector.load %arg6[%c4_48, %c320_49] : memref<16x640xbf16, #tpu.memory_space<vmem>>, vector<4x64xbf16>
      tpu.vector_store %arg6[%c4_48, %c320_49], %55 {strides = array<i32>} : memref<16x640xbf16, #tpu.memory_space<vmem>>, vector<4x64xbf16>,
      %c0_50 = arith.constant 0 : index
      %c4_51 = arith.constant 4 : index
      %c0_52 = arith.constant 0 : index
      %c0_53 = arith.constant 0 : index
      %57 = vector.load %arg2[%c0_50, %c4_51, %c0_52, %c0_53] : memref<1x10x5x256xbf16, #tpu.memory_space<vmem>>, vector<1x1x5x256xbf16>
      %58 = vector.shape_cast %57 : vector<1x1x5x256xbf16> to vector<5x256xbf16>
      %59 = vector.extract_strided_slice %58 {offsets = [0, 0], sizes = [4, 64], strides = [1, 1]} : vector<5x256xbf16> to vector<4x64xbf16>
      %c4_54 = arith.constant 4 : index
      %c384_55 = arith.constant 384 : index
      %60 = vector.load %arg6[%c4_54, %c384_55] : memref<16x640xbf16, #tpu.memory_space<vmem>>, vector<4x64xbf16>
      tpu.vector_store %arg6[%c4_54, %c384_55], %59 {strides = array<i32>} : memref<16x640xbf16, #tpu.memory_space<vmem>>, vector<4x64xbf16>,
      %61 = vector.extract_strided_slice %58 {offsets = [0, 128], sizes = [4, 64], strides = [1, 1]} : vector<5x256xbf16> to vector<4x64xbf16>
      %c4_56 = arith.constant 4 : index
      %c448_57 = arith.constant 448 : index
      %62 = vector.load %arg6[%c4_56, %c448_57] : memref<16x640xbf16, #tpu.memory_space<vmem>>, vector<4x64xbf16>
      tpu.vector_store %arg6[%c4_56, %c448_57], %61 {strides = array<i32>} : memref<16x640xbf16, #tpu.memory_space<vmem>>, vector<4x64xbf16>,
      %63 = vector.extract_strided_slice %58 {offsets = [1, 0], sizes = [4, 64], strides = [1, 1]} : vector<5x256xbf16> to vector<4x64xbf16>
      %c4_58 = arith.constant 4 : index
      %c512_59 = arith.constant 512 : index
      %64 = vector.load %arg6[%c4_58, %c512_59] : memref<16x640xbf16, #tpu.memory_space<vmem>>, vector<4x64xbf16>
      tpu.vector_store %arg6[%c4_58, %c512_59], %63 {strides = array<i32>} : memref<16x640xbf16, #tpu.memory_space<vmem>>, vector<4x64xbf16>,
      %c0_60 = arith.constant 0 : index
      %c4_61 = arith.constant 4 : index
      %c0_62 = arith.constant 0 : index
      %c0_63 = arith.constant 0 : index
      %65 = vector.load %arg2[%c0_60, %c4_61, %c0_62, %c0_63] : memref<1x10x5x256xbf16, #tpu.memory_space<vmem>>, vector<1x1x5x256xbf16>
      %66 = vector.shape_cast %65 : vector<1x1x5x256xbf16> to vector<5x256xbf16>
      %67 = vector.extract_strided_slice %66 {offsets = [0, 0], sizes = [4, 64], strides = [1, 1]} : vector<5x256xbf16> to vector<4x64xbf16>
      %c8 = arith.constant 8 : index
      %c0_64 = arith.constant 0 : index
      %68 = vector.load %arg6[%c8, %c0_64] : memref<16x640xbf16, #tpu.memory_space<vmem>>, vector<4x64xbf16>
      tpu.vector_store %arg6[%c8, %c0_64], %67 {strides = array<i32>} : memref<16x640xbf16, #tpu.memory_space<vmem>>, vector<4x64xbf16>,
      %69 = vector.extract_strided_slice %66 {offsets = [0, 128], sizes = [4, 64], strides = [1, 1]} : vector<5x256xbf16> to vector<4x64xbf16>
      %c8_65 = arith.constant 8 : index
      %c64_66 = arith.constant 64 : index
      %70 = vector.load %arg6[%c8_65, %c64_66] : memref<16x640xbf16, #tpu.memory_space<vmem>>, vector<4x64xbf16>
      tpu.vector_store %arg6[%c8_65, %c64_66], %69 {strides = array<i32>} : memref<16x640xbf16, #tpu.memory_space<vmem>>, vector<4x64xbf16>,
      %71 = vector.extract_strided_slice %66 {offsets = [1, 0], sizes = [4, 64], strides = [1, 1]} : vector<5x256xbf16> to vector<4x64xbf16>
      %c8_67 = arith.constant 8 : index
      %c128_68 = arith.constant 128 : index
      %72 = vector.load %arg6[%c8_67, %c128_68] : memref<16x640xbf16, #tpu.memory_space<vmem>>, vector<4x64xbf16>
      tpu.vector_store %arg6[%c8_67, %c128_68], %71 {strides = array<i32>} : memref<16x640xbf16, #tpu.memory_space<vmem>>, vector<4x64xbf16>,
      %c0_69 = arith.constant 0 : index
      %c5 = arith.constant 5 : index
      %c0_70 = arith.constant 0 : index
      %c0_71 = arith.constant 0 : index
      %73 = vector.load %arg2[%c0_69, %c5, %c0_70, %c0_71] : memref<1x10x5x256xbf16, #tpu.memory_space<vmem>>, vector<1x1x5x256xbf16>
      %74 = vector.shape_cast %73 : vector<1x1x5x256xbf16> to vector<5x256xbf16>
      %75 = vector.extract_strided_slice %74 {offsets = [0, 0], sizes = [4, 64], strides = [1, 1]} : vector<5x256xbf16> to vector<4x64xbf16>
      %c8_72 = arith.constant 8 : index
      %c192_73 = arith.constant 192 : index
      %76 = vector.load %arg6[%c8_72, %c192_73] : memref<16x640xbf16, #tpu.memory_space<vmem>>, vector<4x64xbf16>
      tpu.vector_store %arg6[%c8_72, %c192_73], %75 {strides = array<i32>} : memref<16x640xbf16, #tpu.memory_space<vmem>>, vector<4x64xbf16>,
      %77 = vector.extract_strided_slice %74 {offsets = [0, 128], sizes = [4, 64], strides = [1, 1]} : vector<5x256xbf16> to vector<4x64xbf16>
      %c8_74 = arith.constant 8 : index
      %c256_75 = arith.constant 256 : index
      %78 = vector.load %arg6[%c8_74, %c256_75] : memref<16x640xbf16, #tpu.memory_space<vmem>>, vector<4x64xbf16>
      tpu.vector_store %arg6[%c8_74, %c256_75], %77 {strides = array<i32>} : memref<16x640xbf16, #tpu.memory_space<vmem>>, vector<4x64xbf16>,
      %79 = vector.extract_strided_slice %74 {offsets = [1, 0], sizes = [4, 64], strides = [1, 1]} : vector<5x256xbf16> to vector<4x64xbf16>
      %c8_76 = arith.constant 8 : index
      %c320_77 = arith.constant 320 : index
      %80 = vector.load %arg6[%c8_76, %c320_77] : memref<16x640xbf16, #tpu.memory_space<vmem>>, vector<4x64xbf16>
      tpu.vector_store %arg6[%c8_76, %c320_77], %79 {strides = array<i32>} : memref<16x640xbf16, #tpu.memory_space<vmem>>, vector<4x64xbf16>,
      %c0_78 = arith.constant 0 : index
      %c6 = arith.constant 6 : index
      %c0_79 = arith.constant 0 : index
      %c0_80 = arith.constant 0 : index
      %81 = vector.load %arg2[%c0_78, %c6, %c0_79, %c0_80] : memref<1x10x5x256xbf16, #tpu.memory_space<vmem>>, vector<1x1x5x256xbf16>
      %82 = vector.shape_cast %81 : vector<1x1x5x256xbf16> to vector<5x256xbf16>
      %83 = vector.extract_strided_slice %82 {offsets = [0, 0], sizes = [4, 64], strides = [1, 1]} : vector<5x256xbf16> to vector<4x64xbf16>
      %c8_81 = arith.constant 8 : index
      %c384_82 = arith.constant 384 : index
      %84 = vector.load %arg6[%c8_81, %c384_82] : memref<16x640xbf16, #tpu.memory_space<vmem>>, vector<4x64xbf16>
      tpu.vector_store %arg6[%c8_81, %c384_82], %83 {strides = array<i32>} : memref<16x640xbf16, #tpu.memory_space<vmem>>, vector<4x64xbf16>,
      %85 = vector.extract_strided_slice %82 {offsets = [0, 128], sizes = [4, 64], strides = [1, 1]} : vector<5x256xbf16> to vector<4x64xbf16>
      %c8_83 = arith.constant 8 : index
      %c448_84 = arith.constant 448 : index
      %86 = vector.load %arg6[%c8_83, %c448_84] : memref<16x640xbf16, #tpu.memory_space<vmem>>, vector<4x64xbf16>
      tpu.vector_store %arg6[%c8_83, %c448_84], %85 {strides = array<i32>} : memref<16x640xbf16, #tpu.memory_space<vmem>>, vector<4x64xbf16>,
      %87 = vector.extract_strided_slice %82 {offsets = [1, 0], sizes = [4, 64], strides = [1, 1]} : vector<5x256xbf16> to vector<4x64xbf16>
      %c8_85 = arith.constant 8 : index
      %c512_86 = arith.constant 512 : index
      %88 = vector.load %arg6[%c8_85, %c512_86] : memref<16x640xbf16, #tpu.memory_space<vmem>>, vector<4x64xbf16>
      tpu.vector_store %arg6[%c8_85, %c512_86], %87 {strides = array<i32>} : memref<16x640xbf16, #tpu.memory_space<vmem>>, vector<4x64xbf16>,
      %c0_87 = arith.constant 0 : index
      %c6_88 = arith.constant 6 : index
      %c0_89 = arith.constant 0 : index
      %c0_90 = arith.constant 0 : index
      %89 = vector.load %arg2[%c0_87, %c6_88, %c0_89, %c0_90] : memref<1x10x5x256xbf16, #tpu.memory_space<vmem>>, vector<1x1x5x256xbf16>
      %90 = vector.shape_cast %89 : vector<1x1x5x256xbf16> to vector<5x256xbf16>
      %91 = vector.extract_strided_slice %90 {offsets = [0, 0], sizes = [4, 64], strides = [1, 1]} : vector<5x256xbf16> to vector<4x64xbf16>
      %c12 = arith.constant 12 : index
      %c0_91 = arith.constant 0 : index
      %92 = vector.load %arg6[%c12, %c0_91] : memref<16x640xbf16, #tpu.memory_space<vmem>>, vector<4x64xbf16>
      tpu.vector_store %arg6[%c12, %c0_91], %91 {strides = array<i32>} : memref<16x640xbf16, #tpu.memory_space<vmem>>, vector<4x64xbf16>,
      %93 = vector.extract_strided_slice %90 {offsets = [0, 128], sizes = [4, 64], strides = [1, 1]} : vector<5x256xbf16> to vector<4x64xbf16>
      %c12_92 = arith.constant 12 : index
      %c64_93 = arith.constant 64 : index
      %94 = vector.load %arg6[%c12_92, %c64_93] : memref<16x640xbf16, #tpu.memory_space<vmem>>, vector<4x64xbf16>
      tpu.vector_store %arg6[%c12_92, %c64_93], %93 {strides = array<i32>} : memref<16x640xbf16, #tpu.memory_space<vmem>>, vector<4x64xbf16>,
      %95 = vector.extract_strided_slice %90 {offsets = [1, 0], sizes = [4, 64], strides = [1, 1]} : vector<5x256xbf16> to vector<4x64xbf16>
      %c12_94 = arith.constant 12 : index
      %c128_95 = arith.constant 128 : index
      %96 = vector.load %arg6[%c12_94, %c128_95] : memref<16x640xbf16, #tpu.memory_space<vmem>>, vector<4x64xbf16>
      tpu.vector_store %arg6[%c12_94, %c128_95], %95 {strides = array<i32>} : memref<16x640xbf16, #tpu.memory_space<vmem>>, vector<4x64xbf16>,
      %c0_96 = arith.constant 0 : index
      %c7 = arith.constant 7 : index
      %c0_97 = arith.constant 0 : index
      %c0_98 = arith.constant 0 : index
      %97 = vector.load %arg2[%c0_96, %c7, %c0_97, %c0_98] : memref<1x10x5x256xbf16, #tpu.memory_space<vmem>>, vector<1x1x5x256xbf16>
      %98 = vector.shape_cast %97 : vector<1x1x5x256xbf16> to vector<5x256xbf16>
      %99 = vector.extract_strided_slice %98 {offsets = [0, 0], sizes = [4, 64], strides = [1, 1]} : vector<5x256xbf16> to vector<4x64xbf16>
      %c12_99 = arith.constant 12 : index
      %c192_100 = arith.constant 192 : index
      %100 = vector.load %arg6[%c12_99, %c192_100] : memref<16x640xbf16, #tpu.memory_space<vmem>>, vector<4x64xbf16>
      tpu.vector_store %arg6[%c12_99, %c192_100], %99 {strides = array<i32>} : memref<16x640xbf16, #tpu.memory_space<vmem>>, vector<4x64xbf16>,
      %101 = vector.extract_strided_slice %98 {offsets = [0, 128], sizes = [4, 64], strides = [1, 1]} : vector<5x256xbf16> to vector<4x64xbf16>
      %c12_101 = arith.constant 12 : index
      %c256_102 = arith.constant 256 : index
      %102 = vector.load %arg6[%c12_101, %c256_102] : memref<16x640xbf16, #tpu.memory_space<vmem>>, vector<4x64xbf16>
      tpu.vector_store %arg6[%c12_101, %c256_102], %101 {strides = array<i32>} : memref<16x640xbf16, #tpu.memory_space<vmem>>, vector<4x64xbf16>,
      %103 = vector.extract_strided_slice %98 {offsets = [1, 0], sizes = [4, 64], strides = [1, 1]} : vector<5x256xbf16> to vector<4x64xbf16>
      %c12_103 = arith.constant 12 : index
      %c320_104 = arith.constant 320 : index
      %104 = vector.load %arg6[%c12_103, %c320_104] : memref<16x640xbf16, #tpu.memory_space<vmem>>, vector<4x64xbf16>
      tpu.vector_store %arg6[%c12_103, %c320_104], %103 {strides = array<i32>} : memref<16x640xbf16, #tpu.memory_space<vmem>>, vector<4x64xbf16>,
      %c0_105 = arith.constant 0 : index
      %c8_106 = arith.constant 8 : index
      %c0_107 = arith.constant 0 : index
      %c0_108 = arith.constant 0 : index
      %105 = vector.load %arg2[%c0_105, %c8_106, %c0_107, %c0_108] : memref<1x10x5x256xbf16, #tpu.memory_space<vmem>>, vector<1x1x5x256xbf16>
      %106 = vector.shape_cast %105 : vector<1x1x5x256xbf16> to vector<5x256xbf16>
      %107 = vector.extract_strided_slice %106 {offsets = [0, 0], sizes = [4, 64], strides = [1, 1]} : vector<5x256xbf16> to vector<4x64xbf16>
      %c12_109 = arith.constant 12 : index
      %c384_110 = arith.constant 384 : index
      %108 = vector.load %arg6[%c12_109, %c384_110] : memref<16x640xbf16, #tpu.memory_space<vmem>>, vector<4x64xbf16>
      tpu.vector_store %arg6[%c12_109, %c384_110], %107 {strides = array<i32>} : memref<16x640xbf16, #tpu.memory_space<vmem>>, vector<4x64xbf16>,
      %109 = vector.extract_strided_slice %106 {offsets = [0, 128], sizes = [4, 64], strides = [1, 1]} : vector<5x256xbf16> to vector<4x64xbf16>
      %c12_111 = arith.constant 12 : index
      %c448_112 = arith.constant 448 : index
      %110 = vector.load %arg6[%c12_111, %c448_112] : memref<16x640xbf16, #tpu.memory_space<vmem>>, vector<4x64xbf16>
      tpu.vector_store %arg6[%c12_111, %c448_112], %109 {strides = array<i32>} : memref<16x640xbf16, #tpu.memory_space<vmem>>, vector<4x64xbf16>,
      %111 = vector.extract_strided_slice %106 {offsets = [1, 0], sizes = [4, 64], strides = [1, 1]} : vector<5x256xbf16> to vector<4x64xbf16>
      %c12_113 = arith.constant 12 : index
      %c512_114 = arith.constant 512 : index
      %112 = vector.load %arg6[%c12_113, %c512_114] : memref<16x640xbf16, #tpu.memory_space<vmem>>, vector<4x64xbf16>
      tpu.vector_store %arg6[%c12_113, %c512_114], %111 {strides = array<i32>} : memref<16x640xbf16, #tpu.memory_space<vmem>>, vector<4x64xbf16>,
    } else {
    }
    %c0 = arith.constant 0 : index
    %c0_1 = arith.constant 0 : index
    %3 = vector.load %arg6[%c0, %c0_1] : memref<16x640xbf16, #tpu.memory_space<vmem>>, vector<16x640xbf16>
    %c0_2 = arith.constant 0 : index
    %c0_3 = arith.constant 0 : index
    %4 = vector.load %arg3[%c0_2, %c0_3] : memref<640x128xbf16, #tpu.memory_space<vmem>>, vector<640x128xbf16>
    %cst = arith.constant dense<0.000000e+00> : vector<16x128xf32>
    %5 = tpu.matmul %3, %4, %cst {dimension_numbers = #tpu.dot_dimension_numbers<[1], [0], [0], [1], [0, 0, 1, 1], [], []>} : vector<16x640xbf16>, vector<640x128xbf16>, vector<16x128xf32> -> vector<16x128xf32>
    %c0_4 = arith.constant 0 : index
    %c0_5 = arith.constant 0 : index
    %6 = vector.load %arg4[%c0_4, %c0_5] : memref<1x128xf32, #tpu.memory_space<vmem>>, vector<1x128xf32>
    %7 = vector.broadcast %6 : vector<1x128xf32> to vector<16x128xf32>
    %8 = arith.addf %5, %7 : vector<16x128xf32>
    %cst_6 = arith.constant 0.000000e+00 : f32
    %9 = vector.broadcast %cst_6 : f32 to vector<16x128xf32>
    %10 = arith.maximumf %8, %9 : vector<16x128xf32>
    %11 = arith.truncf %10 : vector<16x128xf32> to vector<16x128xbf16>
    %c0_7 = arith.constant 0 : index
    %c0_8 = arith.constant 0 : index
    %c0_9 = arith.constant 0 : index
    %12 = vector.load %arg5[%c0_7, %c0_8, %c0_9] : memref<1x16x128xbf16, #tpu.memory_space<vmem>>, vector<1x16x128xbf16>
    %13 = vector.shape_cast %12 : vector<1x16x128xbf16> to vector<16x128xbf16>
    %14 = vector.shape_cast %11 : vector<16x128xbf16> to vector<1x16x128xbf16>
    tpu.vector_store %arg5[%c0_7, %c0_8, %c0_9], %14 {strides = array<i32>} : memref<1x16x128xbf16, #tpu.memory_space<vmem>>, vector<1x16x128xbf16>,
    return
  }
  func.func @transform_0(%arg0: i32, %arg1: i32) -> (i32, i32, i32, i32) {
    %c0_i32 = arith.constant 0 : i32
    %c0_i32_0 = arith.constant 0 : i32
    %c0_i32_1 = arith.constant 0 : i32
    %c0_i32_2 = arith.constant 0 : i32
    return %arg0, %c0_i32, %c0_i32_0, %c0_i32_1 : i32, i32, i32, i32
  }
  func.func @transform_1(%arg0: i32, %arg1: i32) -> (i32, i32) {
    %c0_i32 = arith.constant 0 : i32
    %c0_i32_0 = arith.constant 0 : i32
    return %c0_i32, %arg1 : i32, i32
  }
  func.func @transform_2(%arg0: i32, %arg1: i32) -> (i32, i32) {
    %c0_i32 = arith.constant 0 : i32
    %c0_i32_0 = arith.constant 0 : i32
    return %c0_i32, %arg1 : i32, i32
  }
  func.func @transform_3(%arg0: i32, %arg1: i32) -> (i32, i32, i32) {
    %c0_i32 = arith.constant 0 : i32
    %c0_i32_0 = arith.constant 0 : i32
    return %arg0, %c0_i32, %arg1 : i32, i32, i32
  }
}

module attributes {stable_mosaic.version = 11 : i64} {
  func.func @_spatial_conv_kernel(%arg0: i32, %arg1: i32, %arg2: memref<1x6x3x256xbf16, #tpu.memory_space<vmem>>, %arg3: memref<1152x256xbf16, #tpu.memory_space<vmem>>, %arg4: memref<1x256xf32, #tpu.memory_space<vmem>>, %arg5: memref<1x4x256xbf16, #tpu.memory_space<vmem>>, %arg6: memref<4x1152xbf16, #tpu.memory_space<vmem>>) attributes {dimension_semantics = [#tpu.dimension_semantics<parallel>, #tpu.dimension_semantics<arbitrary>], iteration_bounds = array<i64: 2, 1>, scalar_prefetch = 0 : i64, scratch_operands = 1 : i64, tpu.core_type = #tpu.core_type<tc>, window_params = [{transform_indices = @transform_0, window_bounds = array<i64: 1, 6, 3, 256>}, {transform_indices = @transform_1, window_bounds = array<i64: 1152, 256>}, {transform_indices = @transform_2, window_bounds = array<i64: 1, 256>}, {transform_indices = @transform_3, window_bounds = array<i64: 1, 4, 256>}]} {
    %c0_i32 = arith.constant 0 : i32
    %0 = arith.cmpi eq, %arg1, %c0_i32 : i32
    %1 = arith.extui %0 : i1 to i32
    %c0_i32_0 = arith.constant 0 : i32
    %2 = arith.cmpi ne, %1, %c0_i32_0 : i32
    scf.if %2 {
      %c0_10 = arith.constant 0 : index
      %c0_11 = arith.constant 0 : index
      %c0_12 = arith.constant 0 : index
      %c0_13 = arith.constant 0 : index
      %15 = vector.load %arg2[%c0_10, %c0_11, %c0_12, %c0_13] : memref<1x6x3x256xbf16, #tpu.memory_space<vmem>>, vector<1x1x3x256xbf16>
      %16 = vector.shape_cast %15 : vector<1x1x3x256xbf16> to vector<3x256xbf16>
      %17 = vector.extract_strided_slice %16 {offsets = [0, 0], sizes = [2, 128], strides = [1, 1]} : vector<3x256xbf16> to vector<2x128xbf16>
      %c0_14 = arith.constant 0 : index
      %c0_15 = arith.constant 0 : index
      %18 = vector.load %arg6[%c0_14, %c0_15] : memref<4x1152xbf16, #tpu.memory_space<vmem>>, vector<2x128xbf16>
      tpu.vector_store %arg6[%c0_14, %c0_15], %17 {strides = array<i32>} : memref<4x1152xbf16, #tpu.memory_space<vmem>>, vector<2x128xbf16>,
      %19 = vector.extract_strided_slice %16 {offsets = [0, 128], sizes = [2, 128], strides = [1, 1]} : vector<3x256xbf16> to vector<2x128xbf16>
      %c0_16 = arith.constant 0 : index
      %c128 = arith.constant 128 : index
      %20 = vector.load %arg6[%c0_16, %c128] : memref<4x1152xbf16, #tpu.memory_space<vmem>>, vector<2x128xbf16>
      tpu.vector_store %arg6[%c0_16, %c128], %19 {strides = array<i32>} : memref<4x1152xbf16, #tpu.memory_space<vmem>>, vector<2x128xbf16>,
      %21 = vector.extract_strided_slice %16 {offsets = [1, 0], sizes = [2, 128], strides = [1, 1]} : vector<3x256xbf16> to vector<2x128xbf16>
      %c0_17 = arith.constant 0 : index
      %c256 = arith.constant 256 : index
      %22 = vector.load %arg6[%c0_17, %c256] : memref<4x1152xbf16, #tpu.memory_space<vmem>>, vector<2x128xbf16>
      tpu.vector_store %arg6[%c0_17, %c256], %21 {strides = array<i32>} : memref<4x1152xbf16, #tpu.memory_space<vmem>>, vector<2x128xbf16>,
      %c0_18 = arith.constant 0 : index
      %c1 = arith.constant 1 : index
      %c0_19 = arith.constant 0 : index
      %c0_20 = arith.constant 0 : index
      %23 = vector.load %arg2[%c0_18, %c1, %c0_19, %c0_20] : memref<1x6x3x256xbf16, #tpu.memory_space<vmem>>, vector<1x1x3x256xbf16>
      %24 = vector.shape_cast %23 : vector<1x1x3x256xbf16> to vector<3x256xbf16>
      %25 = vector.extract_strided_slice %24 {offsets = [0, 0], sizes = [2, 128], strides = [1, 1]} : vector<3x256xbf16> to vector<2x128xbf16>
      %c0_21 = arith.constant 0 : index
      %c384 = arith.constant 384 : index
      %26 = vector.load %arg6[%c0_21, %c384] : memref<4x1152xbf16, #tpu.memory_space<vmem>>, vector<2x128xbf16>
      tpu.vector_store %arg6[%c0_21, %c384], %25 {strides = array<i32>} : memref<4x1152xbf16, #tpu.memory_space<vmem>>, vector<2x128xbf16>,
      %27 = vector.extract_strided_slice %24 {offsets = [0, 128], sizes = [2, 128], strides = [1, 1]} : vector<3x256xbf16> to vector<2x128xbf16>
      %c0_22 = arith.constant 0 : index
      %c512 = arith.constant 512 : index
      %28 = vector.load %arg6[%c0_22, %c512] : memref<4x1152xbf16, #tpu.memory_space<vmem>>, vector<2x128xbf16>
      tpu.vector_store %arg6[%c0_22, %c512], %27 {strides = array<i32>} : memref<4x1152xbf16, #tpu.memory_space<vmem>>, vector<2x128xbf16>,
      %29 = vector.extract_strided_slice %24 {offsets = [1, 0], sizes = [2, 128], strides = [1, 1]} : vector<3x256xbf16> to vector<2x128xbf16>
      %c0_23 = arith.constant 0 : index
      %c640 = arith.constant 640 : index
      %30 = vector.load %arg6[%c0_23, %c640] : memref<4x1152xbf16, #tpu.memory_space<vmem>>, vector<2x128xbf16>
      tpu.vector_store %arg6[%c0_23, %c640], %29 {strides = array<i32>} : memref<4x1152xbf16, #tpu.memory_space<vmem>>, vector<2x128xbf16>,
      %c0_24 = arith.constant 0 : index
      %c2 = arith.constant 2 : index
      %c0_25 = arith.constant 0 : index
      %c0_26 = arith.constant 0 : index
      %31 = vector.load %arg2[%c0_24, %c2, %c0_25, %c0_26] : memref<1x6x3x256xbf16, #tpu.memory_space<vmem>>, vector<1x1x3x256xbf16>
      %32 = vector.shape_cast %31 : vector<1x1x3x256xbf16> to vector<3x256xbf16>
      %33 = vector.extract_strided_slice %32 {offsets = [0, 0], sizes = [2, 128], strides = [1, 1]} : vector<3x256xbf16> to vector<2x128xbf16>
      %c0_27 = arith.constant 0 : index
      %c768 = arith.constant 768 : index
      %34 = vector.load %arg6[%c0_27, %c768] : memref<4x1152xbf16, #tpu.memory_space<vmem>>, vector<2x128xbf16>
      tpu.vector_store %arg6[%c0_27, %c768], %33 {strides = array<i32>} : memref<4x1152xbf16, #tpu.memory_space<vmem>>, vector<2x128xbf16>,
      %35 = vector.extract_strided_slice %32 {offsets = [0, 128], sizes = [2, 128], strides = [1, 1]} : vector<3x256xbf16> to vector<2x128xbf16>
      %c0_28 = arith.constant 0 : index
      %c896 = arith.constant 896 : index
      %36 = vector.load %arg6[%c0_28, %c896] : memref<4x1152xbf16, #tpu.memory_space<vmem>>, vector<2x128xbf16>
      tpu.vector_store %arg6[%c0_28, %c896], %35 {strides = array<i32>} : memref<4x1152xbf16, #tpu.memory_space<vmem>>, vector<2x128xbf16>,
      %37 = vector.extract_strided_slice %32 {offsets = [1, 0], sizes = [2, 128], strides = [1, 1]} : vector<3x256xbf16> to vector<2x128xbf16>
      %c0_29 = arith.constant 0 : index
      %c1024 = arith.constant 1024 : index
      %38 = vector.load %arg6[%c0_29, %c1024] : memref<4x1152xbf16, #tpu.memory_space<vmem>>, vector<2x128xbf16>
      tpu.vector_store %arg6[%c0_29, %c1024], %37 {strides = array<i32>} : memref<4x1152xbf16, #tpu.memory_space<vmem>>, vector<2x128xbf16>,
      %c0_30 = arith.constant 0 : index
      %c2_31 = arith.constant 2 : index
      %c0_32 = arith.constant 0 : index
      %c0_33 = arith.constant 0 : index
      %39 = vector.load %arg2[%c0_30, %c2_31, %c0_32, %c0_33] : memref<1x6x3x256xbf16, #tpu.memory_space<vmem>>, vector<1x1x3x256xbf16>
      %40 = vector.shape_cast %39 : vector<1x1x3x256xbf16> to vector<3x256xbf16>
      %41 = vector.extract_strided_slice %40 {offsets = [0, 0], sizes = [2, 128], strides = [1, 1]} : vector<3x256xbf16> to vector<2x128xbf16>
      %c2_34 = arith.constant 2 : index
      %c0_35 = arith.constant 0 : index
      %42 = vector.load %arg6[%c2_34, %c0_35] : memref<4x1152xbf16, #tpu.memory_space<vmem>>, vector<2x128xbf16>
      tpu.vector_store %arg6[%c2_34, %c0_35], %41 {strides = array<i32>} : memref<4x1152xbf16, #tpu.memory_space<vmem>>, vector<2x128xbf16>,
      %43 = vector.extract_strided_slice %40 {offsets = [0, 128], sizes = [2, 128], strides = [1, 1]} : vector<3x256xbf16> to vector<2x128xbf16>
      %c2_36 = arith.constant 2 : index
      %c128_37 = arith.constant 128 : index
      %44 = vector.load %arg6[%c2_36, %c128_37] : memref<4x1152xbf16, #tpu.memory_space<vmem>>, vector<2x128xbf16>
      tpu.vector_store %arg6[%c2_36, %c128_37], %43 {strides = array<i32>} : memref<4x1152xbf16, #tpu.memory_space<vmem>>, vector<2x128xbf16>,
      %45 = vector.extract_strided_slice %40 {offsets = [1, 0], sizes = [2, 128], strides = [1, 1]} : vector<3x256xbf16> to vector<2x128xbf16>
      %c2_38 = arith.constant 2 : index
      %c256_39 = arith.constant 256 : index
      %46 = vector.load %arg6[%c2_38, %c256_39] : memref<4x1152xbf16, #tpu.memory_space<vmem>>, vector<2x128xbf16>
      tpu.vector_store %arg6[%c2_38, %c256_39], %45 {strides = array<i32>} : memref<4x1152xbf16, #tpu.memory_space<vmem>>, vector<2x128xbf16>,
      %c0_40 = arith.constant 0 : index
      %c3 = arith.constant 3 : index
      %c0_41 = arith.constant 0 : index
      %c0_42 = arith.constant 0 : index
      %47 = vector.load %arg2[%c0_40, %c3, %c0_41, %c0_42] : memref<1x6x3x256xbf16, #tpu.memory_space<vmem>>, vector<1x1x3x256xbf16>
      %48 = vector.shape_cast %47 : vector<1x1x3x256xbf16> to vector<3x256xbf16>
      %49 = vector.extract_strided_slice %48 {offsets = [0, 0], sizes = [2, 128], strides = [1, 1]} : vector<3x256xbf16> to vector<2x128xbf16>
      %c2_43 = arith.constant 2 : index
      %c384_44 = arith.constant 384 : index
      %50 = vector.load %arg6[%c2_43, %c384_44] : memref<4x1152xbf16, #tpu.memory_space<vmem>>, vector<2x128xbf16>
      tpu.vector_store %arg6[%c2_43, %c384_44], %49 {strides = array<i32>} : memref<4x1152xbf16, #tpu.memory_space<vmem>>, vector<2x128xbf16>,
      %51 = vector.extract_strided_slice %48 {offsets = [0, 128], sizes = [2, 128], strides = [1, 1]} : vector<3x256xbf16> to vector<2x128xbf16>
      %c2_45 = arith.constant 2 : index
      %c512_46 = arith.constant 512 : index
      %52 = vector.load %arg6[%c2_45, %c512_46] : memref<4x1152xbf16, #tpu.memory_space<vmem>>, vector<2x128xbf16>
      tpu.vector_store %arg6[%c2_45, %c512_46], %51 {strides = array<i32>} : memref<4x1152xbf16, #tpu.memory_space<vmem>>, vector<2x128xbf16>,
      %53 = vector.extract_strided_slice %48 {offsets = [1, 0], sizes = [2, 128], strides = [1, 1]} : vector<3x256xbf16> to vector<2x128xbf16>
      %c2_47 = arith.constant 2 : index
      %c640_48 = arith.constant 640 : index
      %54 = vector.load %arg6[%c2_47, %c640_48] : memref<4x1152xbf16, #tpu.memory_space<vmem>>, vector<2x128xbf16>
      tpu.vector_store %arg6[%c2_47, %c640_48], %53 {strides = array<i32>} : memref<4x1152xbf16, #tpu.memory_space<vmem>>, vector<2x128xbf16>,
      %c0_49 = arith.constant 0 : index
      %c4 = arith.constant 4 : index
      %c0_50 = arith.constant 0 : index
      %c0_51 = arith.constant 0 : index
      %55 = vector.load %arg2[%c0_49, %c4, %c0_50, %c0_51] : memref<1x6x3x256xbf16, #tpu.memory_space<vmem>>, vector<1x1x3x256xbf16>
      %56 = vector.shape_cast %55 : vector<1x1x3x256xbf16> to vector<3x256xbf16>
      %57 = vector.extract_strided_slice %56 {offsets = [0, 0], sizes = [2, 128], strides = [1, 1]} : vector<3x256xbf16> to vector<2x128xbf16>
      %c2_52 = arith.constant 2 : index
      %c768_53 = arith.constant 768 : index
      %58 = vector.load %arg6[%c2_52, %c768_53] : memref<4x1152xbf16, #tpu.memory_space<vmem>>, vector<2x128xbf16>
      tpu.vector_store %arg6[%c2_52, %c768_53], %57 {strides = array<i32>} : memref<4x1152xbf16, #tpu.memory_space<vmem>>, vector<2x128xbf16>,
      %59 = vector.extract_strided_slice %56 {offsets = [0, 128], sizes = [2, 128], strides = [1, 1]} : vector<3x256xbf16> to vector<2x128xbf16>
      %c2_54 = arith.constant 2 : index
      %c896_55 = arith.constant 896 : index
      %60 = vector.load %arg6[%c2_54, %c896_55] : memref<4x1152xbf16, #tpu.memory_space<vmem>>, vector<2x128xbf16>
      tpu.vector_store %arg6[%c2_54, %c896_55], %59 {strides = array<i32>} : memref<4x1152xbf16, #tpu.memory_space<vmem>>, vector<2x128xbf16>,
      %61 = vector.extract_strided_slice %56 {offsets = [1, 0], sizes = [2, 128], strides = [1, 1]} : vector<3x256xbf16> to vector<2x128xbf16>
      %c2_56 = arith.constant 2 : index
      %c1024_57 = arith.constant 1024 : index
      %62 = vector.load %arg6[%c2_56, %c1024_57] : memref<4x1152xbf16, #tpu.memory_space<vmem>>, vector<2x128xbf16>
      tpu.vector_store %arg6[%c2_56, %c1024_57], %61 {strides = array<i32>} : memref<4x1152xbf16, #tpu.memory_space<vmem>>, vector<2x128xbf16>,
    } else {
    }
    %c0 = arith.constant 0 : index
    %c0_1 = arith.constant 0 : index
    %3 = vector.load %arg6[%c0, %c0_1] : memref<4x1152xbf16, #tpu.memory_space<vmem>>, vector<4x1152xbf16>
    %c0_2 = arith.constant 0 : index
    %c0_3 = arith.constant 0 : index
    %4 = vector.load %arg3[%c0_2, %c0_3] : memref<1152x256xbf16, #tpu.memory_space<vmem>>, vector<1152x256xbf16>
    %cst = arith.constant dense<0.000000e+00> : vector<4x256xf32>
    %5 = tpu.matmul %3, %4, %cst {dimension_numbers = #tpu.dot_dimension_numbers<[1], [0], [0], [1], [0, 0, 1, 1], [], []>} : vector<4x1152xbf16>, vector<1152x256xbf16>, vector<4x256xf32> -> vector<4x256xf32>
    %c0_4 = arith.constant 0 : index
    %c0_5 = arith.constant 0 : index
    %6 = vector.load %arg4[%c0_4, %c0_5] : memref<1x256xf32, #tpu.memory_space<vmem>>, vector<1x256xf32>
    %7 = vector.broadcast %6 : vector<1x256xf32> to vector<4x256xf32>
    %8 = arith.addf %5, %7 : vector<4x256xf32>
    %cst_6 = arith.constant 0.000000e+00 : f32
    %9 = vector.broadcast %cst_6 : f32 to vector<4x256xf32>
    %10 = arith.maximumf %8, %9 : vector<4x256xf32>
    %11 = arith.truncf %10 : vector<4x256xf32> to vector<4x256xbf16>
    %c0_7 = arith.constant 0 : index
    %c0_8 = arith.constant 0 : index
    %c0_9 = arith.constant 0 : index
    %12 = vector.load %arg5[%c0_7, %c0_8, %c0_9] : memref<1x4x256xbf16, #tpu.memory_space<vmem>>, vector<1x4x256xbf16>
    %13 = vector.shape_cast %12 : vector<1x4x256xbf16> to vector<4x256xbf16>
    %14 = vector.shape_cast %11 : vector<4x256xbf16> to vector<1x4x256xbf16>
    tpu.vector_store %arg5[%c0_7, %c0_8, %c0_9], %14 {strides = array<i32>} : memref<1x4x256xbf16, #tpu.memory_space<vmem>>, vector<1x4x256xbf16>,
    return
  }
  func.func @transform_0(%arg0: i32, %arg1: i32) -> (i32, i32, i32, i32) {
    %c0_i32 = arith.constant 0 : i32
    %c0_i32_0 = arith.constant 0 : i32
    %c0_i32_1 = arith.constant 0 : i32
    %c0_i32_2 = arith.constant 0 : i32
    return %arg0, %c0_i32, %c0_i32_0, %c0_i32_1 : i32, i32, i32, i32
  }
  func.func @transform_1(%arg0: i32, %arg1: i32) -> (i32, i32) {
    %c0_i32 = arith.constant 0 : i32
    %c0_i32_0 = arith.constant 0 : i32
    return %c0_i32, %arg1 : i32, i32
  }
  func.func @transform_2(%arg0: i32, %arg1: i32) -> (i32, i32) {
    %c0_i32 = arith.constant 0 : i32
    %c0_i32_0 = arith.constant 0 : i32
    return %c0_i32, %arg1 : i32, i32
  }
  func.func @transform_3(%arg0: i32, %arg1: i32) -> (i32, i32, i32) {
    %c0_i32 = arith.constant 0 : i32
    %c0_i32_0 = arith.constant 0 : i32
    return %arg0, %c0_i32, %arg1 : i32, i32, i32
  }
}

module attributes {stable_mosaic.version = 11 : i64} {
  func.func @_pointwise_conv_kernel(%arg0: i32, %arg1: i32, %arg2: memref<1x4x256xbf16, #tpu.memory_space<vmem>>, %arg3: memref<256x128xbf16, #tpu.memory_space<vmem>>, %arg4: memref<1x128xf32, #tpu.memory_space<vmem>>, %arg5: memref<1x4x128xbf16, #tpu.memory_space<vmem>>) attributes {dimension_semantics = [#tpu.dimension_semantics<parallel>, #tpu.dimension_semantics<parallel>], iteration_bounds = array<i64: 2, 1>, scalar_prefetch = 0 : i64, scratch_operands = 0 : i64, tpu.core_type = #tpu.core_type<tc>, window_params = [{transform_indices = @transform_0, window_bounds = array<i64: 1, 4, 256>}, {transform_indices = @transform_1, window_bounds = array<i64: 256, 128>}, {transform_indices = @transform_2, window_bounds = array<i64: 1, 128>}, {transform_indices = @transform_3, window_bounds = array<i64: 1, 4, 128>}]} {
    %c0 = arith.constant 0 : index
    %c0_0 = arith.constant 0 : index
    %c0_1 = arith.constant 0 : index
    %0 = vector.load %arg2[%c0, %c0_0, %c0_1] : memref<1x4x256xbf16, #tpu.memory_space<vmem>>, vector<1x4x256xbf16>
    %1 = vector.shape_cast %0 : vector<1x4x256xbf16> to vector<4x256xbf16>
    %c0_2 = arith.constant 0 : index
    %c0_3 = arith.constant 0 : index
    %2 = vector.load %arg3[%c0_2, %c0_3] : memref<256x128xbf16, #tpu.memory_space<vmem>>, vector<256x128xbf16>
    %cst = arith.constant dense<0.000000e+00> : vector<4x128xf32>
    %3 = tpu.matmul %1, %2, %cst {dimension_numbers = #tpu.dot_dimension_numbers<[1], [0], [0], [1], [0, 0, 1, 1], [], []>} : vector<4x256xbf16>, vector<256x128xbf16>, vector<4x128xf32> -> vector<4x128xf32>
    %c0_4 = arith.constant 0 : index
    %c0_5 = arith.constant 0 : index
    %4 = vector.load %arg4[%c0_4, %c0_5] : memref<1x128xf32, #tpu.memory_space<vmem>>, vector<1x128xf32>
    %5 = vector.broadcast %4 : vector<1x128xf32> to vector<4x128xf32>
    %6 = arith.addf %3, %5 : vector<4x128xf32>
    %7 = arith.truncf %6 : vector<4x128xf32> to vector<4x128xbf16>
    %c0_6 = arith.constant 0 : index
    %c0_7 = arith.constant 0 : index
    %c0_8 = arith.constant 0 : index
    %8 = vector.load %arg5[%c0_6, %c0_7, %c0_8] : memref<1x4x128xbf16, #tpu.memory_space<vmem>>, vector<1x4x128xbf16>
    %9 = vector.shape_cast %8 : vector<1x4x128xbf16> to vector<4x128xbf16>
    %10 = vector.shape_cast %7 : vector<4x128xbf16> to vector<1x4x128xbf16>
    tpu.vector_store %arg5[%c0_6, %c0_7, %c0_8], %10 {strides = array<i32>} : memref<1x4x128xbf16, #tpu.memory_space<vmem>>, vector<1x4x128xbf16>,
    return
  }
  func.func @transform_0(%arg0: i32, %arg1: i32) -> (i32, i32, i32) {
    %c0_i32 = arith.constant 0 : i32
    %c0_i32_0 = arith.constant 0 : i32
    %c0_i32_1 = arith.constant 0 : i32
    return %arg0, %c0_i32, %c0_i32_0 : i32, i32, i32
  }
  func.func @transform_1(%arg0: i32, %arg1: i32) -> (i32, i32) {
    %c0_i32 = arith.constant 0 : i32
    %c0_i32_0 = arith.constant 0 : i32
    return %c0_i32, %arg1 : i32, i32
  }
  func.func @transform_2(%arg0: i32, %arg1: i32) -> (i32, i32) {
    %c0_i32 = arith.constant 0 : i32
    %c0_i32_0 = arith.constant 0 : i32
    return %c0_i32, %arg1 : i32, i32
  }
  func.func @transform_3(%arg0: i32, %arg1: i32) -> (i32, i32, i32) {
    %c0_i32 = arith.constant 0 : i32
    %c0_i32_0 = arith.constant 0 : i32
    return %arg0, %c0_i32, %arg1 : i32, i32, i32
  }
}

module attributes {stable_mosaic.version = 11 : i64} {
  func.func @_pointwise_conv_kernel(%arg0: i32, %arg1: i32, %arg2: memref<1x16x128xbf16, #tpu.memory_space<vmem>>, %arg3: memref<128x128xbf16, #tpu.memory_space<vmem>>, %arg4: memref<1x128xf32, #tpu.memory_space<vmem>>, %arg5: memref<1x16x128xbf16, #tpu.memory_space<vmem>>) attributes {dimension_semantics = [#tpu.dimension_semantics<parallel>, #tpu.dimension_semantics<parallel>], iteration_bounds = array<i64: 2, 1>, scalar_prefetch = 0 : i64, scratch_operands = 0 : i64, tpu.core_type = #tpu.core_type<tc>, window_params = [{transform_indices = @transform_0, window_bounds = array<i64: 1, 16, 128>}, {transform_indices = @transform_1, window_bounds = array<i64: 128, 128>}, {transform_indices = @transform_2, window_bounds = array<i64: 1, 128>}, {transform_indices = @transform_3, window_bounds = array<i64: 1, 16, 128>}]} {
    %c0 = arith.constant 0 : index
    %c0_0 = arith.constant 0 : index
    %c0_1 = arith.constant 0 : index
    %0 = vector.load %arg2[%c0, %c0_0, %c0_1] : memref<1x16x128xbf16, #tpu.memory_space<vmem>>, vector<1x16x128xbf16>
    %1 = vector.shape_cast %0 : vector<1x16x128xbf16> to vector<16x128xbf16>
    %c0_2 = arith.constant 0 : index
    %c0_3 = arith.constant 0 : index
    %2 = vector.load %arg3[%c0_2, %c0_3] : memref<128x128xbf16, #tpu.memory_space<vmem>>, vector<128x128xbf16>
    %cst = arith.constant dense<0.000000e+00> : vector<16x128xf32>
    %3 = tpu.matmul %1, %2, %cst {dimension_numbers = #tpu.dot_dimension_numbers<[1], [0], [0], [1], [0, 0, 1, 1], [], []>} : vector<16x128xbf16>, vector<128x128xbf16>, vector<16x128xf32> -> vector<16x128xf32>
    %c0_4 = arith.constant 0 : index
    %c0_5 = arith.constant 0 : index
    %4 = vector.load %arg4[%c0_4, %c0_5] : memref<1x128xf32, #tpu.memory_space<vmem>>, vector<1x128xf32>
    %5 = vector.broadcast %4 : vector<1x128xf32> to vector<16x128xf32>
    %6 = arith.addf %3, %5 : vector<16x128xf32>
    %7 = arith.truncf %6 : vector<16x128xf32> to vector<16x128xbf16>
    %c0_6 = arith.constant 0 : index
    %c0_7 = arith.constant 0 : index
    %c0_8 = arith.constant 0 : index
    %8 = vector.load %arg5[%c0_6, %c0_7, %c0_8] : memref<1x16x128xbf16, #tpu.memory_space<vmem>>, vector<1x16x128xbf16>
    %9 = vector.shape_cast %8 : vector<1x16x128xbf16> to vector<16x128xbf16>
    %10 = vector.shape_cast %7 : vector<16x128xbf16> to vector<1x16x128xbf16>
    tpu.vector_store %arg5[%c0_6, %c0_7, %c0_8], %10 {strides = array<i32>} : memref<1x16x128xbf16, #tpu.memory_space<vmem>>, vector<1x16x128xbf16>,
    return
  }
  func.func @transform_0(%arg0: i32, %arg1: i32) -> (i32, i32, i32) {
    %c0_i32 = arith.constant 0 : i32
    %c0_i32_0 = arith.constant 0 : i32
    %c0_i32_1 = arith.constant 0 : i32
    return %arg0, %c0_i32, %c0_i32_0 : i32, i32, i32
  }
  func.func @transform_1(%arg0: i32, %arg1: i32) -> (i32, i32) {
    %c0_i32 = arith.constant 0 : i32
    %c0_i32_0 = arith.constant 0 : i32
    return %c0_i32, %arg1 : i32, i32
  }
  func.func @transform_2(%arg0: i32, %arg1: i32) -> (i32, i32) {
    %c0_i32 = arith.constant 0 : i32
    %c0_i32_0 = arith.constant 0 : i32
    return %c0_i32, %arg1 : i32, i32
  }
  func.func @transform_3(%arg0: i32, %arg1: i32) -> (i32, i32, i32) {
    %c0_i32 = arith.constant 0 : i32
    %c0_i32_0 = arith.constant 0 : i32
    return %arg0, %c0_i32, %arg1 : i32, i32, i32
  }
}

module attributes {stable_mosaic.version = 11 : i64} {
  func.func @_adaptive_pool_kernel(%arg0: i32, %arg1: memref<8x4x256xbf16, #tpu.memory_space<vmem>>, %arg2: memref<8x256xf32, #tpu.memory_space<vmem>>) attributes {dimension_semantics = [#tpu.dimension_semantics<parallel>], iteration_bounds = array<i64: 1>, scalar_prefetch = 0 : i64, scratch_operands = 0 : i64, tpu.core_type = #tpu.core_type<tc>, window_params = [{transform_indices = @transform_0, window_bounds = array<i64: 8, 4, 256>}, {transform_indices = @transform_1, window_bounds = array<i64: 8, 256>}]} {
    %c0 = arith.constant 0 : index
    %c0_0 = arith.constant 0 : index
    %c0_1 = arith.constant 0 : index
    %0 = vector.load %arg1[%c0, %c0_0, %c0_1] : memref<8x4x256xbf16, #tpu.memory_space<vmem>>, vector<8x4x256xbf16>
    %1 = arith.extf %0 : vector<8x4x256xbf16> to vector<8x4x256xf32>
    %cst = arith.constant dense<0.000000e+00> : vector<8x256xf32>
    %2 = vector.multi_reduction <add>, %1, %cst [1] : vector<8x4x256xf32> to vector<8x256xf32>
    %cst_2 = arith.constant 4.000000e+00 : f32
    %3 = vector.broadcast %cst_2 : f32 to vector<8x256xf32>
    %4 = arith.divf %2, %3 : vector<8x256xf32>
    %c0_3 = arith.constant 0 : index
    %c0_4 = arith.constant 0 : index
    %5 = vector.load %arg2[%c0_3, %c0_4] : memref<8x256xf32, #tpu.memory_space<vmem>>, vector<8x256xf32>
    tpu.vector_store %arg2[%c0_3, %c0_4], %4 {strides = array<i32>} : memref<8x256xf32, #tpu.memory_space<vmem>>, vector<8x256xf32>,
    return
  }
  func.func @transform_0(%arg0: i32) -> (i32, i32, i32) {
    %c0_i32 = arith.constant 0 : i32
    %c0_i32_0 = arith.constant 0 : i32
    %c0_i32_1 = arith.constant 0 : i32
    return %arg0, %c0_i32, %c0_i32_0 : i32, i32, i32
  }
  func.func @transform_1(%arg0: i32) -> (i32, i32) {
    %c0_i32 = arith.constant 0 : i32
    %c0_i32_0 = arith.constant 0 : i32
    return %arg0, %c0_i32 : i32, i32
  }
}

</mosaic_0001>

<bundles_post_ra>
// kernel: cnn_encoder_forward.8
= control target key start
LH: loop header
LB: loop body
LE: loop exit
PB: predicated region body
PF: predicated region fallthrough
CT: control target
= control target key end

     0   :  { %s3706_s12 = smov 0   ;;  %s3708_s13 = smov 0   ;;  %s4500_s0 = inlined_call_operand.vmem [shape: bf16[2,70,35,6], index: 0, kind: input, shape index: {}]   ;;  %s4501_s1 = inlined_call_operand.vmem [shape: bf16[256,128], index: 1, kind: input, shape index: {}]   ;;  %s4502_s2 = inlined_call_operand.vmem [shape: f32[1,128], index: 2, kind: input, shape index: {}]   ;;  %s4503_s3 = inlined_call_operand.vmem [shape: bf16[2,1024,128], index: 3, kind: output, shape index: {}]  }
   0x1   :  { %s3710_s14 = smov 0  }
   0x2 LB: > { %s25_s15 = sadd.s32 1, %s3648_s13  ;;  %p2761_p0 = scmp.ge.s32.totalorder %s3652_s14, 1  ;;  %s3652_s14 = sphi %s3710_s14, %s13_s14   ;;  %s3648_s13 = sphi %s3708_s13, %s4505_s13   ;;  %s3644_s12 = sphi %s3706_s12, %s4504_s12  }
   0x3   : > { %p27_p1 = scmp.ge.s32.totalorder %s25_s15, 2  ;;  %p168_p2 = scmp.lt.s32.totalorder %s3652_s14, 3 }
   0x5   : > { %s4507_s15 = smov (%p27_p1, %s25_s15), 0  ;;  %p169_p3 = pnand %p2761_p0, %p168_p2 }
   0x6   : > { %p202_p4 = scmp.lt.s32.totalorder (!%p169_p3), %s3644_s12, 1  ;;  %vm227_vm0 = vcmask (!%p169_p3), 1047704   ;;  %v3658_v0 = vmov (!%p169_p3), 0   ;;  %s3868_s24 = smov (!%p169_p3), 0  }
   0x7   : > { %172 = sbr.rel (%p169_p3) target bundleno = 745 (0x2e9), region = 32  ;;  %228 = vst.msk [vmem:[#allocation2 + $0x8] sm:$0xff] (!%p169_p3), %vm227_vm0, %v3658_v0  ;;  %229 = vst.msk [vmem:[#allocation2 + $0x18] sm:$0xff] (!%p169_p3), %vm227_vm0, %v3658_v0 }
   0x8   : > { %230 = vst.msk [vmem:[#allocation2 + $0x28] sm:$0xff] (!%p169_p3), %vm227_vm0, %v3658_v0  ;;  %231 = vst.msk [vmem:[#allocation2 + $0x38] sm:$0xff] (!%p169_p3), %vm227_vm0, %v3658_v0 }
   0x9   : > { %232 = vst.msk [vmem:[#allocation2 + $0x48] sm:$0xff] (!%p169_p3), %vm227_vm0, %v3658_v0  ;;  %233 = vst.msk [vmem:[#allocation2 + $0x58] sm:$0xff] (!%p169_p3), %vm227_vm0, %v3658_v0 }
   0xa   : > { %234 = vst.msk [vmem:[#allocation2 + $0x68] sm:$0xff] (!%p169_p3), %vm227_vm0, %v3658_v0  ;;  %235 = vst.msk [vmem:[#allocation2 + $0x78] sm:$0xff] (!%p169_p3), %vm227_vm0, %v3658_v0 }
   0xb   : > { %236 = vst.msk [vmem:[#allocation2 + $0x88] sm:$0xff] (!%p169_p3), %vm227_vm0, %v3658_v0  ;;  %237 = vst.msk [vmem:[#allocation2 + $0x98] sm:$0xff] (!%p169_p3), %vm227_vm0, %v3658_v0 }
   0xc   : > { %238 = vst.msk [vmem:[#allocation2 + $0xa8] sm:$0xff] (!%p169_p3), %vm227_vm0, %v3658_v0  ;;  %239 = vst.msk [vmem:[#allocation2 + $0xb8] sm:$0xff] (!%p169_p3), %vm227_vm0, %v3658_v0 }
   0xd   : > { %240 = vst.msk [vmem:[#allocation2 + $0xc8] sm:$0xff] (!%p169_p3), %vm227_vm0, %v3658_v0  ;;  %241 = vst.msk [vmem:[#allocation2 + $0xd8] sm:$0xff] (!%p169_p3), %vm227_vm0, %v3658_v0 }
   0xe   : > { %242 = vst.msk [vmem:[#allocation2 + $0xe8] sm:$0xff] %vm227_vm0, %v3658_v0  ;;  %243 = vst.msk [vmem:[#allocation2 + $0xf8] sm:$0xff] %vm227_vm0, %v3658_v0  ;;  %s4509_s12 = smov (!%p202_p4, %s3644_s12), 1 }
   0xf   : > { %244 = vst.msk [vmem:[#allocation2 + $0x108] sm:$0xff] %vm227_vm0, %v3658_v0  ;;  %245 = vst.msk [vmem:[#allocation2 + $0x118] sm:$0xff] %vm227_vm0, %v3658_v0  ;;  %s3527_s16 = smul.u32 1400, %s4509_s12  ;;  %s2981_s17 = sshll.u32 %s4509_s12, 9 }
  0x10   : > { %246 = vst.msk [vmem:[#allocation2 + $0x128] sm:$0xff] %vm227_vm0, %v3658_v0  ;;  %247 = vst.msk [vmem:[#allocation2 + $0x138] sm:$0xff] %vm227_vm0, %v3658_v0  ;;  %s3861_s20 = scalar_lea.vmem %s4503_s3, %s2981_s17 }
  0x11   : > { %248 = vst.msk [vmem:[#allocation2 + $0x148] sm:$0xff] %vm227_vm0, %v3658_v0  ;;  %249 = vst.msk [vmem:[#allocation2 + $0x158] sm:$0xff] %vm227_vm0, %v3658_v0  ;;  %s3866_s23 = scalar_lea.vmem %s4500_s0, %s3527_s16 }
  0x12   : > { %250 = vst.msk [vmem:[#allocation2 + $0x168] sm:$0xff] %vm227_vm0, %v3658_v0  ;;  %251 = vst.msk [vmem:[#allocation2 + $0x178] sm:$0xff] %vm227_vm0, %v3658_v0 }
  0x13   : > { %252 = vst.msk [vmem:[#allocation2 + $0x188] sm:$0xff] %vm227_vm0, %v3658_v0  ;;  %253 = vst.msk [vmem:[#allocation2 + $0x198] sm:$0xff] %vm227_vm0, %v3658_v0 }
  0x14   : > { %254 = vst.msk [vmem:[#allocation2 + $0x1a8] sm:$0xff] %vm227_vm0, %v3658_v0  ;;  %255 = vst.msk [vmem:[#allocation2 + $0x1b8] sm:$0xff] %vm227_vm0, %v3658_v0 }
  0x15   : > { %256 = vst.msk [vmem:[#allocation2 + $0x1c8] sm:$0xff] %vm227_vm0, %v3658_v0  ;;  %257 = vst.msk [vmem:[#allocation2 + $0x1d8] sm:$0xff] %vm227_vm0, %v3658_v0 }
  0x16   : > { %258 = vst.msk [vmem:[#allocation2 + $0x1e8] sm:$0xff] %vm227_vm0, %v3658_v0  ;;  %259 = vst.msk [vmem:[#allocation2 + $0x1f8] sm:$0xff] %vm227_vm0, %v3658_v0 }
  0x17   : > { %260 = vst.msk [vmem:[#allocation2 + $0x208] sm:$0xff] %vm227_vm0, %v3658_v0  ;;  %261 = vst.msk [vmem:[#allocation2 + $0x218] sm:$0xff] %vm227_vm0, %v3658_v0 }
  0x18   : > { %262 = vst.msk [vmem:[#allocation2 + $0x228] sm:$0xff] %vm227_vm0, %v3658_v0  ;;  %263 = vst.msk [vmem:[#allocation2 + $0x238] sm:$0xff] %vm227_vm0, %v3658_v0 }
  0x19   : > { %264 = vst.msk [vmem:[#allocation2 + $0x248] sm:$0xff] %vm227_vm0, %v3658_v0  ;;  %265 = vst.msk [vmem:[#allocation2 + $0x258] sm:$0xff] %vm227_vm0, %v3658_v0 }
  0x1a   : > { %266 = vst.msk [vmem:[#allocation2 + $0x268] sm:$0xff] %vm227_vm0, %v3658_v0  ;;  %267 = vst.msk [vmem:[#allocation2 + $0x278] sm:$0xff] %vm227_vm0, %v3658_v0 }
  0x1b   : > { %268 = vst.msk [vmem:[#allocation2 + $0x288] sm:$0xff] %vm227_vm0, %v3658_v0  ;;  %269 = vst.msk [vmem:[#allocation2 + $0x298] sm:$0xff] %vm227_vm0, %v3658_v0 }
  0x1c   : > { %270 = vst.msk [vmem:[#allocation2 + $0x2a8] sm:$0xff] %vm227_vm0, %v3658_v0  ;;  %271 = vst.msk [vmem:[#allocation2 + $0x2b8] sm:$0xff] %vm227_vm0, %v3658_v0 }
  0x1d   : > { %272 = vst.msk [vmem:[#allocation2 + $0x2c8] sm:$0xff] %vm227_vm0, %v3658_v0  ;;  %273 = vst.msk [vmem:[#allocation2 + $0x2d8] sm:$0xff] %vm227_vm0, %v3658_v0 }
  0x1e   : > { %274 = vst.msk [vmem:[#allocation2 + $0x2e8] sm:$0xff] %vm227_vm0, %v3658_v0  ;;  %275 = vst.msk [vmem:[#allocation2 + $0x2f8] sm:$0xff] %vm227_vm0, %v3658_v0 }
  0x1f   : > { %276 = vst.msk [vmem:[#allocation2 + $0x308] sm:$0xff] %vm227_vm0, %v3658_v0  ;;  %277 = vst.msk [vmem:[#allocation2 + $0x318] sm:$0xff] %vm227_vm0, %v3658_v0 }
  0x20   : > { %278 = vst.msk [vmem:[#allocation2 + $0x328] sm:$0xff] %vm227_vm0, %v3658_v0  ;;  %279 = vst.msk [vmem:[#allocation2 + $0x338] sm:$0xff] %vm227_vm0, %v3658_v0 }
  0x21   : > { %280 = vst.msk [vmem:[#allocation2 + $0x348] sm:$0xff] %vm227_vm0, %v3658_v0  ;;  %281 = vst.msk [vmem:[#allocation2 + $0x358] sm:$0xff] %vm227_vm0, %v3658_v0 }
  0x22   : > { %282 = vst.msk [vmem:[#allocation2 + $0x368] sm:$0xff] %vm227_vm0, %v3658_v0  ;;  %283 = vst.msk [vmem:[#allocation2 + $0x378] sm:$0xff] %vm227_vm0, %v3658_v0 }
  0x23   : > { %284 = vst.msk [vmem:[#allocation2 + $0x388] sm:$0xff] %vm227_vm0, %v3658_v0  ;;  %285 = vst.msk [vmem:[#allocation2 + $0x398] sm:$0xff] %vm227_vm0, %v3658_v0 }
  0x24   : > { %286 = vst.msk [vmem:[#allocation2 + $0x3a8] sm:$0xff] %vm227_vm0, %v3658_v0  ;;  %287 = vst.msk [vmem:[#allocation2 + $0x3b8] sm:$0xff] %vm227_vm0, %v3658_v0 }
  0x25   : > { %288 = vst.msk [vmem:[#allocation2 + $0x3c8] sm:$0xff] %vm227_vm0, %v3658_v0  ;;  %289 = vst.msk [vmem:[#allocation2 + $0x3d8] sm:$0xff] %vm227_vm0, %v3658_v0 }
  0x26   : > { %290 = vst.msk [vmem:[#allocation2 + $0x3e8] sm:$0xff] %vm227_vm0, %v3658_v0  ;;  %291 = vst.msk [vmem:[#allocation2 + $0x3f8] sm:$0xff] %vm227_vm0, %v3658_v0 }
  0x27 LB: >> { %s2982_s25 = smul.u32 40, %s3656_s24  ;;  %s2765_s26 = sshll.u32 %s3656_s24, 5  ;;  %vm367_vm1 = vcmask 1046528   ;;  %vm334_vm2 = vsmask.f32 7424  ;;  %vm325_vm3 = vcmask 23552   ;;  %s3656_s24 = sphi %s3868_s24, %s297_s24  }
  0x28   : >> { %s3659_s28 = smov 21   ;;  %vm385_vm4 = vsmask.f32 6400  ;;  %vm328_vm5 = vcmask 48152   ;;  %s3891_s29 = scalar_lea.vmem [#allocation2], %s2765_s26  ;;  %vm361_vm6 = vcmask 72752  }
  0x29   : >> { %s3876_s27 = scalar_lea.vmem %s3866_s23, %s2982_s25  ;;  %s3660_s30 = smov 12   ;;  %vm364_vm7 = vcmask 97352   ;;  %vm379_vm8 = vcmask 121952   ;;  %vm382_vm9 = vcmask 146552   ;;  %vm405_vm10 = vcmask 171152  }
  0x2a   : >> { %v3879_v1 = vld [vmem:[%s3876_s27 + $0x1c] sm:$0xff]   ;;  %v3882_v2 = vld [vmem:[%s3876_s27 + $0x14] sm:$0xff]   ;;  %v3591_v4 = vld [vmem:[%s3876_s27 + $0x8] sm:$0xff]   ;;  %s3661_s4 = smov 6   ;;  %s3662_s5 = smov 18   ;;  %vm433_vm11 = vcmask 195752  }
  0x2b   : >> { %429 = vrot.lane.b32.xlu1 %v3879_v1, %s3659_s28  ;;  %427 = vrot.lane.b32.xlu0 %v3882_v2, %s3659_s28  ;;  %v3590_v3 = vld [vmem:[%s3876_s27] sm:$0xff]   ;;  %v450_v5 = vshll.u32 %v3879_v1, 16  ;;  %v3592_v6 = vld [vmem:[%s3876_s27 + $0x10] ss:$0 sps:$4 sm:$0x33]   ;;  %v454_v7 = vshrl.u32 %v3879_v1, 16 }
  0x2c   : >> { %v368_v8 = vrot.slane %v3590_v3, 1  ;;  %v369_v9 = vrot.slane %v3591_v4, 1  ;;  %v336_v10 = vshrl.u32 %v3590_v3, 16  ;;  %v338_v11 = vshll.u32 %v3590_v3, 16  ;;  %326 = vst.msk [vmem:[%s3891_s29] sm:$0xff] %vm325_vm3, %v3590_v3  ;;  %327 = vst.msk [vmem:[%s3891_s29 + $0x10] sm:$0xff] %vm325_vm3, %v3591_v4 }
  0x2d   : >> { %v343_v12 = vshll.u32 %v3591_v4, 16  ;;  %v371_v13 = vrot.slane %v3592_v6, 1  ;;  %v347_v14 = vshrl.u32 %v3591_v4, 16  ;;  %v351_v15 = vshll.u32 %v3592_v6, 16  ;;  %329 = vst.msk [vmem:[%s3891_s29] sm:$0xff] %vm328_vm5, %v3590_v3  ;;  %330 = vst.msk [vmem:[%s3891_s29 + $0x10] sm:$0xff] %vm328_vm5, %v3591_v4 }
  0x2e   : >> { %v370_v16 = vsel %vm367_vm1, %v368_v8, %v369_v9  ;;  %v340_v17 = vrot.slane %v338_v11, 1  ;;  %v393_v18 = vshrl.u32 %v3592_v6, 16  ;;  %v386_v19 = vrot.slane %v336_v10, 1  ;;  %v3593_v20 = vld [vmem:[%s3876_s27 + $0x24] ss:$0 sps:$4 sm:$0x33]  }
  0x2f   : >> { %373 = vrot.lane.b32.xlu1 %v370_v16, %s3660_s30  ;;  %v345_v21 = vrot.slane %v343_v12, 1  ;;  %v372_v22 = vsel %vm367_vm1, %v369_v9, %v371_v13  ;;  %v353_v23 = vrot.slane %v351_v15, 1  ;;  %v389_v24 = vrot.slane %v347_v14, 1  ;;  %v3911_v50 = vld [vmem:[%s3876_s27 + $0x30] sm:$0xff]   ;;  %v3914_v55 = vld [vmem:[%s3876_s27 + $0x28] sm:$0xff]   ;;  %s3663_s6 = smov 27  }
  0x30   : >> { %v341_v25 = vor.u32 %v340_v17, %v336_v10  ;;  %v390_v26 = vrot.slane %v343_v12, 2  ;;  %v395_v27 = vrot.slane %v393_v18, 1  ;;  %v396_v28 = vrot.slane %v351_v15, 2  ;;  %v3917_v56 = vld [vmem:[%s3876_s27 + $0x38] ss:$0 sps:$4 sm:$0x33]  }
  0x31   : >> { %v349_v29 = vor.u32 %v347_v14, %v345_v21  ;;  %v387_v30 = vrot.slane %v338_v11, 2  ;;  %v452_v31 = vrot.slane %v450_v5, 1  ;;  %v458_v32 = vshll.u32 %v3593_v20, 16  ;;  %v3924_v3 = vld [vmem:[%s3876_s27 + $0x44] sm:$0xff]   ;;  %s3664_s7 = smov 33   ;;  %v3937_v13 = vld [vmem:[%s3876_s27 + $0x3c] sm:$0xff]  }
  0x32   : >> { %v346_v33 = vsel %vm334_vm2, %v341_v25, %v345_v21  ;;  %v391_v34 = vor.u32 %v390_v26, %v389_v24  ;;  %v397_v35 = vor.u32 %v396_v28, %v395_v27  ;;  %v445_v36 = vshll.u32 %v3882_v2, 16  ;;  %v3933_v11 = vld [vmem:[%s3876_s27 + $0x4c] ss:$0 sps:$4 sm:$0x33]   ;;  %s3665_s8 = smov 39   ;;  %s3666_s9 = smov 42  }
  0x33   : >> { %355 = vrot.lane.b32.xlu0 %v346_v33, %s3661_s4  ;;  %375 = vrot.lane.b32.xlu1 %v372_v22, %s3660_s30  ;;  %v388_v37 = vor.u32 %v387_v30, %v386_v19  ;;  %v456_v38 = vor.u32 %v454_v7, %v452_v31  ;;  %v460_v39 = vrot.slane %v458_v32, 1  ;;  %v354_v40 = vsel %vm334_vm2, %v349_v29, %v353_v23  ;;  %s3667_s10 = smov 48   ;;  %s3668_s11 = smov 54  }
  0x34   : >> { %v398_v41 = vsel %vm385_vm4, %v391_v34, %v397_v35  ;;  %v443_v42 = vshrl.u32 %v3882_v2, 16  ;;  %v447_v43 = vrot.slane %v445_v36, 1  ;;  %v475_v44 = vrot.slane %v3879_v1, 1  ;;  %s3669_s12 = smov 60   ;;  %s3670_s16 = smov 63  }
  0x35   : >> { %v498_v45 = vshrl.u32 %v3593_v20, 16  ;;  %v392_v46 = vsel %vm385_vm4, %v388_v37, %v391_v34  ;;  %v461_v47 = vsel %vm334_vm2, %v456_v38, %v460_v39  ;;  %v477_v48 = vrot.slane %v3593_v20, 1  ;;  %s3671_s17 = smov 69   ;;  %s3672_s18 = smov 75  }
  0x36   : >> { %v494_v49 = vrot.slane %v454_v7, 1  ;;  %v448_v51 = vor.u32 %v447_v43, %v443_v42  ;;  %v495_v52 = vrot.slane %v450_v5, 2  ;;  %v501_v54 = vrot.slane %v458_v32, 2  ;;  %s3673_s19 = smov 81   ;;  %s3674_s21 = smov 84  }
  0x37   : >> { %357 = vrot.lane.b32.xlu0 %v354_v40, %s3661_s4  ;;  %401 = vrot.lane.b32.xlu1 %v398_v41, %s3662_s5  ;;  %v500_v53 = vrot.slane %v498_v45, 1  ;;  %v474_v57 = vrot.slane %v3882_v2, 1  ;;  %v491_v58 = vrot.slane %v443_v42, 1  ;;  %v492_v59 = vrot.slane %v445_v36, 2  ;;  %v3956_v45 = vld [vmem:[%s3876_s27 + $0x6c] sm:$0xff]   ;;  %s3675_s22 = smov 90  }
  0x38   : >> { %v555_v60 = vshll.u32 %v3911_v50, 16  ;;  %v453_v61 = vsel %vm334_vm2, %v448_v51, %v452_v31  ;;  %v478_v62 = vsel %vm367_vm1, %v475_v44, %v477_v48  ;;  %v496_v63 = vor.u32 %v495_v52, %v494_v49  ;;  %v3962_v48 = vld [vmem:[%s3876_s27 + $0x64] sm:$0xff]   ;;  %v3965_v49 = vld [vmem:[%s3876_s27 + $0x74] ss:$0 sps:$4 sm:$0x33]   ;;  %s3676_s25 = smov 96  }
  0x39   : >> { %v502_v1 = vor.u32 %v501_v54, %v500_v53  ;;  %v563_v4 = vshll.u32 %v3917_v56, 16  ;;  %v550_v5 = vshll.u32 %v3914_v55, 16  ;;  %v493_v2 = vor.u32 %v492_v59, %v491_v58  ;;  %v3972_v54 = vld [vmem:[%s3876_s27 + $0x80] sm:$0xff]   ;;  %v3986_v59 = vld [vmem:[%s3876_s27 + $0x58] sm:$0xff]   ;;  %s3677_s26 = smov 102   ;;  %s3679_s28 = smov 126  }
  0x3a   : >> { %v557_v6 = vrot.slane %v555_v60, 1  ;;  %v559_v7 = vshrl.u32 %v3911_v50, 16  ;;  %v476_v8 = vsel %vm367_vm1, %v474_v57, %v475_v44  ;;  %v603_v10 = vshrl.u32 %v3917_v56, 16  ;;  %s3680_s30 = smov 111   ;;  %s3681_s4 = smov 4  }
  0x3b   : >> { %399 = vrot.lane.b32.xlu0 %v392_v46, %s3662_s5  ;;  %464 = vrot.lane.b32.xlu1 %v461_v47, %s3663_s6  ;;  %v503_v9 = vsel %vm385_vm4, %v496_v63, %v502_v1  ;;  %v548_v12 = vshrl.u32 %v3914_v55, 16  ;;  %v660_v14 = vshll.u32 %v3924_v3, 16  ;;  %v565_v15 = vrot.slane %v563_v4, 1  ;;  %s3682_s5 = smov 117   ;;  %s297_s24 = sadd.s32 1, %s3656_s24  }
  0x3c   : >> { %v552_v16 = vrot.slane %v550_v5, 1  ;;  %v599_v17 = vrot.slane %v559_v7, 1  ;;  %v600_v18 = vrot.slane %v555_v60, 2  ;;  %v497_v19 = vsel %vm385_vm4, %v493_v2, %v496_v63  ;;  %v3989_v60 = vld [vmem:[%s3876_s27 + $0x88] ss:$0 sps:$4 sm:$0x33]  }
  0x3d   : >> { %v561_v20 = vor.u32 %v559_v7, %v557_v6  ;;  %v606_v21 = vrot.slane %v563_v4, 2  ;;  %v596_v22 = vrot.slane %v548_v12, 1  ;;  %v605_v23 = vrot.slane %v603_v10, 1  ;;  %p294_p5 = scmp.ge.s32.totalorder %s297_s24, 32  }
  0x3e   : >> { %v597_v24 = vrot.slane %v550_v5, 2  ;;  %v664_v25 = vshrl.u32 %v3924_v3, 16  ;;  %v668_v26 = vshll.u32 %v3933_v11, 16  ;;  %v3943_v27 = vrot.slane %v660_v14, 1  ;;  %v4000_v5 = vld [vmem:[%s3876_s27 + $0x78] sm:$0xff]   ;;  %1304 = vmatprep.subr.bf16.mxu0 (%p294_p5), %v3658_v0  ;;  %3495 = vmatprep.subr.bf16.mxu1 (%p294_p5), %v3658_v0 }
  0x3f   : >> { %462 = vrot.lane.b32.xlu0 %v453_v61, %s3663_s6  ;;  %481 = vrot.lane.b32.xlu1 %v478_v62, %s3664_s7  ;;  %v655_v28 = vshll.u32 %v3937_v13, 16  ;;  %v580_v29 = vrot.slane %v3911_v50, 1  ;;  %v582_v30 = vrot.slane %v3917_v56, 1  ;;  %v566_v31 = vsel %vm334_vm2, %v561_v20, %v565_v15  ;;  %s3683_s6 = smov 10  }
  0x40   : >> { %v553_v32 = vor.u32 %v552_v16, %v548_v12  ;;  %v579_v33 = vrot.slane %v3914_v55, 1  ;;  %v601_v34 = vor.u32 %v600_v18, %v599_v17  ;;  %v607_v35 = vor.u32 %v606_v21, %v605_v23 }
  0x41   : >> { %v598_v36 = vor.u32 %v597_v24, %v596_v22  ;;  %v670_v37 = vrot.slane %v668_v26, 1  ;;  %v653_v38 = vshrl.u32 %v3937_v13, 16  ;;  %v666_v39 = vor.u32 %v664_v25, %v3943_v27 }
  0x42   : >> { %v657_v40 = vrot.slane %v655_v28, 1  ;;  %v685_v41 = vrot.slane %v3924_v3, 1  ;;  %v687_v42 = vrot.slane %v3933_v11, 1  ;;  %v704_v43 = vrot.slane %v664_v25, 1 }
  0x43   : >> { %479 = vrot.lane.b32.xlu0 %v476_v8, %s3664_s7  ;;  %506 = vrot.lane.b32.xlu1 %v503_v9, %s3665_s8  ;;  %v705_v44 = vrot.slane %v660_v14, 2  ;;  %v583_v46 = vsel %vm367_vm1, %v580_v29, %v582_v30  ;;  %v581_v47 = vsel %vm367_vm1, %v579_v33, %v580_v29  ;;  %v608_v51 = vsel %vm385_vm4, %v601_v34, %v607_v35  ;;  %s3684_s7 = smov 123  }
  0x44   : >> { %v602_v52 = vsel %vm385_vm4, %v598_v36, %v601_v34  ;;  %v684_v53 = vrot.slane %v3937_v13, 1  ;;  %v3977_v56 = vor.u32 %v657_v40, %v653_v38  ;;  %v3982_v57 = vsel %vm367_vm1, %v685_v41, %v687_v42 }
  0x45   : >> { %v708_v58 = vshrl.u32 %v3933_v11, 16  ;;  %v3991_v61 = vor.u32 %v705_v44, %v704_v43  ;;  %v3993_v62 = vrot.slane %v668_v26, 2  ;;  %v870_v63 = vshll.u32 %v3956_v45, 16 }
  0x46   : >> { %v874_v1 = vshrl.u32 %v3956_v45, 16  ;;  %v3997_v4 = vrot.slane %v653_v38, 1  ;;  %v878_v2 = vshll.u32 %v3965_v49, 16  ;;  %v865_v7 = vshll.u32 %v3962_v48, 16 }
  0x47   : >> { %504 = vrot.lane.b32.xlu0 %v497_v19, %s3665_s8  ;;  %534 = vrot.lane.b32.xlu1 %v3911_v50, %s3666_s9  ;;  %v558_v50 = vsel %vm334_vm2, %v553_v32, %v557_v6  ;;  %v863_v6 = vshrl.u32 %v3962_v48, 16  ;;  %v4005_v8 = vrot.slane %v655_v28, 2  ;;  %v872_v9 = vrot.slane %v870_v63, 1  ;;  %s3685_s8 = smov 16  }
  0x48   : >> { %v978_v10 = vshll.u32 %v3972_v54, 16  ;;  %v982_v11 = vshrl.u32 %v3972_v54, 16  ;;  %v765_v12 = vshll.u32 %v3986_v59, 16  ;;  %v880_v14 = vrot.slane %v878_v2, 1 }
  0x49   : >> { %v867_v15 = vrot.slane %v865_v7, 1  ;;  %v986_v16 = vshll.u32 %v3989_v60, 16  ;;  %v4011_v17 = vrot.slane %v708_v58, 1  ;;  %v876_v18 = vor.u32 %v874_v1, %v872_v9 }
  0x4a   : >> { %v980_v19 = vrot.slane %v978_v10, 1  ;;  %v971_v20 = vshrl.u32 %v4000_v5, 16  ;;  %v973_v23 = vshll.u32 %v4000_v5, 16  ;;  %v895_v24 = vrot.slane %v3956_v45, 1 }
  0x4b   : >> { %532 = vrot.lane.b32.xlu0 %v3914_v55, %s3666_s9  ;;  %569 = vrot.lane.b32.xlu1 %v566_v31, %s3667_s10  ;;  %v3975_v55 = vsel %vm334_vm2, %v666_v39, %v670_v37  ;;  %v868_v21 = vor.u32 %v867_v15, %v863_v6  ;;  %v988_v22 = vrot.slane %v986_v16, 1  ;;  %v4017_v25 = vsel %vm334_vm2, %v876_v18, %v880_v14 }
  0x4c   : >> { %v984_v26 = vor.u32 %v982_v11, %v980_v19  ;;  %v897_v28 = vrot.slane %v3965_v49, 1  ;;  %v894_v29 = vrot.slane %v3962_v48, 1  ;;  %v975_v31 = vrot.slane %v973_v23, 1 }
  0x4d   : >> { %v4022_v30 = vsel %vm334_vm2, %v868_v21, %v872_v9  ;;  %v1003_v32 = vrot.slane %v3972_v54, 1  ;;  %v1005_v33 = vrot.slane %v3989_v60, 1  ;;  %v1002_v37 = vrot.slane %v4000_v5, 1 }
  0x4e   : >> { %v4027_v34 = vsel %vm334_vm2, %v984_v26, %v988_v22  ;;  %v4030_v35 = vsel %vm367_vm1, %v895_v24, %v897_v28  ;;  %v4033_v36 = vsel %vm367_vm1, %v894_v29, %v895_v24  ;;  %v976_v38 = vor.u32 %v975_v31, %v971_v20 }
  0x4f   : >> { %567 = vrot.lane.b32.xlu0 %v558_v50, %s3667_s10  ;;  %586 = vrot.lane.b32.xlu1 %v583_v46, %s3668_s11  ;;  %v4038_v39 = vsel %vm367_vm1, %v1003_v32, %v1005_v33  ;;  %v914_v40 = vrot.slane %v874_v1, 1  ;;  %v915_v42 = vrot.slane %v870_v63, 2  ;;  %v4041_v43 = vsel %vm367_vm1, %v1002_v37, %v1003_v32 }
  0x50   : >> { %v918_v44 = vshrl.u32 %v3965_v49, 16  ;;  %v921_v46 = vrot.slane %v878_v2, 2  ;;  %v4045_v50 = vsel %vm334_vm2, %v976_v38, %v980_v19  ;;  %v1022_v58 = vrot.slane %v982_v11, 1  ;;  %v3602_v2 = vld [vmem:[%s3876_s27 + $0x60] ss:$0 sps:$4 sm:$0x33]  }
  0x51   : >> { %v1023_v14 = vrot.slane %v978_v10, 2  ;;  %v1026_v1 = vshrl.u32 %v3989_v60, 16  ;;  %v1029_v63 = vrot.slane %v986_v16, 2  ;;  %v663_v49 = vsel %vm334_vm2, %v3977_v56, %v3943_v27  ;;  %v3601_v10 = vld [vmem:[%s3876_s27 + $0x50] sm:$0xff]   ;;  %s3678_s27 = smov 105  }
  0x52   : >> { %v920_v9 = vrot.slane %v918_v44, 1  ;;  %v1019_v15 = vrot.slane %v971_v20, 1  ;;  %v1020_v18 = vrot.slane %v973_v23, 2  ;;  %v686_v27 = vsel %vm367_vm1, %v684_v53, %v685_v41 }
  0x53   : >> { %584 = vrot.lane.b32.xlu0 %v581_v47, %s3668_s11  ;;  %611 = vrot.lane.b32.xlu1 %v608_v51, %s3669_s12  ;;  %v911_v47 = vrot.slane %v863_v6, 1  ;;  %v916_v51 = vor.u32 %v915_v42, %v914_v40  ;;  %v1024_v60 = vor.u32 %v1023_v14, %v1022_v58  ;;  %v1028_v16 = vrot.slane %v1026_v1, 1 }
  0x54   : >> { %v922_v11 = vor.u32 %v921_v46, %v920_v9  ;;  %v1021_v21 = vor.u32 %v1020_v18, %v1019_v15  ;;  %v773_v20 = vshll.u32 %v3602_v2, 16  ;;  %v767_v41 = vrot.slane %v765_v12, 1 }
  0x55   : >> { %v1030_v56 = vor.u32 %v1029_v63, %v1028_v16  ;;  %v760_v53 = vshll.u32 %v3601_v10, 16  ;;  %v813_v26 = vshrl.u32 %v3602_v2, 16  ;;  %v790_v28 = vrot.slane %v3986_v59, 1 }
  0x56   : >> { %v792_v29 = vrot.slane %v3602_v2, 1  ;;  %v810_v32 = vrot.slane %v765_v12, 2  ;;  %v816_v40 = vrot.slane %v773_v20, 2  ;;  %v789_v42 = vrot.slane %v3601_v10, 1 }
  0x57   : >> { %609 = vrot.lane.b32.xlu0 %v602_v52, %s3669_s12  ;;  %639 = vrot.lane.b32.xlu1 %v3924_v3, %s3670_s16  ;;  %v912_v52 = vrot.slane %v865_v7, 2  ;;  %v712_v7 = vor.u32 %v3993_v62, %v4011_v17  ;;  %v703_v62 = vor.u32 %v4005_v8, %v3997_v4  ;;  %v769_v17 = vshrl.u32 %v3986_v59, 16 }
  0x58   : >> { %v4073_v3 = vsel %vm385_vm4, %v1021_v21, %v1024_v60  ;;  %v4080_v22 = vsel %vm385_vm4, %v1024_v60, %v1030_v56  ;;  %v758_v4 = vshrl.u32 %v3601_v10, 16  ;;  %v762_v24 = vrot.slane %v760_v53, 1 }
  0x59   : >> { %v913_v6 = vor.u32 %v912_v52, %v911_v47  ;;  %v707_v8 = vsel %vm385_vm4, %v703_v62, %v3991_v61  ;;  %v771_v23 = vor.u32 %v769_v17, %v767_v41  ;;  %v809_v31 = vrot.slane %v769_v17, 1 }
  0x5a   : >> { %v763_v37 = vor.u32 %v762_v24, %v758_v4  ;;  %v815_v38 = vrot.slane %v813_v26, 1  ;;  %v807_v52 = vrot.slane %v760_v53, 2  ;;  %vm436_vm12 = vcmask 220352  }
  0x5b   : >> { %637 = vrot.lane.b32.xlu0 %v3937_v13, %s3670_s16  ;;  %674 = vrot.lane.b32.xlu1 %v3975_v55, %s3671_s17  ;;  %v4058_v19 = vsel %vm385_vm4, %v913_v6, %v916_v51  ;;  %v4066_v55 = vsel %vm385_vm4, %v916_v51, %v922_v11  ;;  %v713_v13 = vsel %vm385_vm4, %v3991_v61, %v712_v7  ;;  %v806_v51 = vrot.slane %v758_v4, 1 }
  0x5c   : >> { %v793_v61 = vsel %vm367_vm1, %v790_v28, %v792_v29  ;;  %v811_v44 = vor.u32 %v810_v32, %v809_v31  ;;  %v768_v46 = vsel %vm334_vm2, %v763_v37, %v767_v41  ;;  %v817_v47 = vor.u32 %v816_v40, %v815_v38 }
  0x5d   : >> { %v808_v58 = vor.u32 %v807_v52, %v806_v51  ;;  %vm468_vm13 = vcmask 244952   ;;  %vm471_vm14 = vcmask 269552   ;;  %vm485_vm15 = vcmask 294152   ;;  %v3612_v51 = vld [vmem:[%s4501_s1 + $0x18] sm:$0xff] (%p294_p5)   ;;  %v3613_v52 = vld [vmem:[%s4501_s1 + $0x20] sm:$0xff] (%p294_p5)  }
  0x5e   : >> { %v818_v12 = vsel %vm385_vm4, %v811_v44, %v817_v47  ;;  %vm488_vm0 = vcmask 318752   ;;  %vm541_vm3 = vcmask 392552   ;;  %vm576_vm5 = vcmask 441752   ;;  %v3611_v47 = vld [vmem:[%s4501_s1 + $0x10] sm:$0xff] (%p294_p5)  }
  0x5f   : >> { %672 = vrot.lane.b32.xlu0 %v663_v49, %s3671_s17  ;;  %691 = vrot.lane.b32.xlu1 %v3982_v57, %s3672_s18  ;;  %v775_v57 = vrot.slane %v773_v20, 1  ;;  %v812_v9 = vsel %vm385_vm4, %v808_v58, %v811_v44  ;;  %vm573_vm4 = vcmask 417152   ;;  %v3609_v44 = vld [vmem:[%s4501_s1] sm:$0xff] (%p294_p5)   ;;  %v3614_v58 = vld [vmem:[%s4501_s1 + $0x28] sm:$0xff] (%p294_p5)  }
  0x60   : > { %1305 = vmatpush1.bf16.msra.mxu0 (%p294_p5), %v3609_v44  ;;  %3511 = vmatpush1.bf16.msra.mxu1 (%p294_p5), %v3609_v44 }
  0x61   : >> { %v776_v33 = vsel %vm334_vm2, %v771_v23, %v775_v57  ;;  %vm538_vm2 = vcmask 367952   ;;  %1306 = vmatprep.subr.bf16.mxu0 (%p294_p5), %v3658_v0  ;;  %3496 = vmatprep.subr.bf16.mxu1 (%p294_p5), %v3658_v0 }
  0x63   : >> { %689 = vrot.lane.b32.xlu0 %v686_v27, %s3672_s18  ;;  %716 = vrot.lane.b32.xlu1 %v713_v13, %s3673_s19 }
  0x67   : >> { %714 = vrot.lane.b32.xlu0 %v707_v8, %s3673_s19  ;;  %744 = vrot.lane.b32.xlu1 %v3986_v59, %s3674_s21  ;;  %v791_v59 = vsel %vm367_vm1, %v789_v42, %v790_v28  ;;  %vm510_vm1 = vcmask 343352  }
  0x6b   : >> { %742 = vrot.lane.b32.xlu0 %v3601_v10, %s3674_s21  ;;  %779 = vrot.lane.b32.xlu1 %v776_v33, %s3675_s22 }
  0x6f   : >> { %777 = vrot.lane.b32.xlu0 %v768_v46, %s3675_s22  ;;  %796 = vrot.lane.b32.xlu1 %v793_v61, %s3676_s25  ;;  %v3610_v46 = vld [vmem:[%s4501_s1 + $0x8] sm:$0xff] (%p294_p5)  }
  0x70   : > { %1307 = vmatpush1.bf16.msra.mxu0 (%p294_p5), %v3610_v46  ;;  %3512 = vmatpush1.bf16.msra.mxu1 (%p294_p5), %v3610_v46 }
  0x71   : > { %1308 = vmatprep.subr.bf16.mxu0 (%p294_p5), %v3658_v0  ;;  %3497 = vmatprep.subr.bf16.mxu1 (%p294_p5), %v3658_v0 }
  0x73   : >> { %794 = vrot.lane.b32.xlu0 %v791_v59, %s3676_s25  ;;  %821 = vrot.lane.b32.xlu1 %v818_v12, %s3677_s26 }
  0x74   : > { %1309 = vmatpush1.bf16.msra.mxu0 (%p294_p5), %v3611_v47  ;;  %3513 = vmatpush1.bf16.msra.mxu1 (%p294_p5), %v3611_v47 }
  0x75   : > { %1310 = vmatprep.subr.bf16.mxu0 (%p294_p5), %v3658_v0  ;;  %3498 = vmatprep.subr.bf16.mxu1 (%p294_p5), %v3658_v0 }
  0x77   : >> { %819 = vrot.lane.b32.xlu0 %v812_v9, %s3677_s26  ;;  %849 = vrot.lane.b32.xlu1 %v3956_v45, %s3678_s27  ;;  %v3615_v9 = vld [vmem:[%s4501_s1 + $0x30] sm:$0xff] (%p294_p5)  }
  0x78   : > { %1311 = vmatpush1.bf16.msra.mxu0 (%p294_p5), %v3612_v51  ;;  %3514 = vmatpush1.bf16.msra.mxu1 (%p294_p5), %v3612_v51 }
  0x79   : > { %1312 = vmatprep.subr.bf16.mxu0 (%p294_p5), %v3658_v0  ;;  %3499 = vmatprep.subr.bf16.mxu1 (%p294_p5), %v3658_v0 }
  0x7b   : >> { %847 = vrot.lane.b32.xlu0 %v3962_v48, %s3678_s27  ;;  %954 = vrot.lane.b32.xlu1 %v3972_v54, %s3679_s28 }
  0x7c   : > { %1313 = vmatpush1.bf16.msra.mxu0 (%p294_p5), %v3613_v52  ;;  %3515 = vmatpush1.bf16.msra.mxu1 (%p294_p5), %v3613_v52 }
  0x7d   : > { %1314 = vmatprep.subr.bf16.mxu0 (%p294_p5), %v3658_v0  ;;  %3500 = vmatprep.subr.bf16.mxu1 (%p294_p5), %v3658_v0 }
  0x7f   : >> { %952 = vrot.lane.b32.xlu0 %v4000_v5, %s3679_s28  ;;  %884 = vrot.lane.b32.xlu1 %v4017_v25, %s3680_s30 }
  0x80   : > { %1315 = vmatpush1.bf16.msra.mxu0 (%p294_p5), %v3614_v58  ;;  %3516 = vmatpush1.bf16.msra.mxu1 (%p294_p5), %v3614_v58 }
  0x81   : > { %1316 = vmatprep.subr.bf16.mxu0 (%p294_p5), %v3658_v0  ;;  %3501 = vmatprep.subr.bf16.mxu1 (%p294_p5), %v3658_v0 }
  0x83   : >> { %882 = vrot.lane.b32.xlu0 %v4022_v30, %s3680_s30  ;;  %992 = vrot.lane.b32.xlu1 %v4027_v34, %s3681_s4 }
  0x84   : > { %1317 = vmatpush1.bf16.msra.mxu0 (%p294_p5), %v3615_v9  ;;  %3517 = vmatpush1.bf16.msra.mxu1 (%p294_p5), %v3615_v9 }
  0x85   : > { %1318 = vmatprep.subr.bf16.mxu0 (%p294_p5), %v3658_v0  ;;  %3502 = vmatprep.subr.bf16.mxu1 (%p294_p5), %v3658_v0 }
  0x87   : >> { %990 = vrot.lane.b32.xlu0 %v4045_v50, %s3681_s4  ;;  %901 = vrot.lane.b32.xlu1 %v4030_v35, %s3682_s5 }
  0x8b   : >> { %899 = vrot.lane.b32.xlu0 %v4033_v36, %s3682_s5  ;;  %1009 = vrot.lane.b32.xlu1 %v4038_v39, %s3683_s6 }
  0x8f   : >> { %1007 = vrot.lane.b32.xlu0 %v4041_v43, %s3683_s6  ;;  %926 = vrot.lane.b32.xlu1 %v4066_v55, %s3684_s7 }
  0x93   : >> { %924 = vrot.lane.b32.xlu0 %v4058_v19, %s3684_s7  ;;  %1034 = vrot.lane.b32.xlu1 %v4080_v22, %s3685_s8 }
  0x97   : >> { %1032 = vrot.lane.b32.xlu0 %v4073_v3, %s3685_s8 }
  0x9d   : >> { %v430_v45 = vpop.permute.xlu1 %429  ;;  %v428_v48 = vpop.permute.xlu0 %427 }
  0xa1   : >> { %v374_v54 = vpop.permute.xlu1 %373 }
  0xa5   : >> { %v356_v5 = vpop.permute.xlu0 %355  ;;  %v376_v25 = vpop.permute.xlu1 %375 }
  0xa6   : >> { %362 = vst.msk [vmem:[%s3891_s29] sm:$0xff] %vm361_vm6, %v356_v5 }
  0xa7   : >> { %365 = vst.msk [vmem:[%s3891_s29] sm:$0xff] %vm364_vm7, %v356_v5  ;;  %v3619_v5 = vld [vmem:[%s4501_s1 + $0x50] sm:$0xff] (%p294_p5)  }
  0xa8   : >> { %380 = vst.msk [vmem:[%s3891_s29] sm:$0xff] %vm379_vm8, %v374_v54 }
  0xa9   : >> { %383 = vst.msk [vmem:[%s3891_s29] sm:$0xff] %vm382_vm9, %v374_v54  ;;  %v358_v30 = vpop.permute.xlu0 %357  ;;  %v402_v34 = vpop.permute.xlu1 %401  ;;  %v3618_v54 = vld [vmem:[%s4501_s1 + $0x48] sm:$0xff] (%p294_p5)  }
  0xaa   : >> { %363 = vst.msk [vmem:[%s3891_s29 + $0x10] sm:$0xff] %vm361_vm6, %v358_v30  ;;  %vm590_vm6 = vcmask 466352  }
  0xab   : >> { %366 = vst.msk [vmem:[%s3891_s29 + $0x10] sm:$0xff] %vm364_vm7, %v358_v30  ;;  %vm593_vm7 = vcmask 490952   ;;  %v3621_v30 = vld [vmem:[%s4501_s1 + $0x60] sm:$0xff] (%p294_p5)  }
  0xac   : >> { %381 = vst.msk [vmem:[%s3891_s29 + $0x10] sm:$0xff] %vm379_vm8, %v376_v25  ;;  %vm615_vm8 = vcmask 515552  }
  0xad   : >> { %384 = vst.msk [vmem:[%s3891_s29 + $0x10] sm:$0xff] %vm382_vm9, %v376_v25  ;;  %v400_v35 = vpop.permute.xlu0 %399  ;;  %v465_v36 = vpop.permute.xlu1 %464  ;;  %vm643_vm9 = vcmask 540152   ;;  %v3620_v25 = vld [vmem:[%s4501_s1 + $0x58] sm:$0xff] (%p294_p5)  }
  0xae   : >> { %407 = vst.msk [vmem:[%s3891_s29 + $0x10] sm:$0xff] %vm405_vm10, %v402_v34  ;;  %406 = vst.msk [vmem:[%s3891_s29] sm:$0xff] %vm405_vm10, %v400_v35  ;;  %vm646_vm10 = vcmask 564752   ;;  %v3622_v34 = vld [vmem:[%s4501_s1 + $0x68] sm:$0xff] (%p294_p5)   ;;  %v3623_v35 = vld [vmem:[%s4501_s1 + $0x70] sm:$0xff] (%p294_p5)  }
  0xaf   : >> { %435 = vst.msk [vmem:[%s3891_s29 + $0x10] sm:$0xff] %vm433_vm11, %v430_v45  ;;  %434 = vst.msk [vmem:[%s3891_s29] sm:$0xff] %vm433_vm11, %v428_v48  ;;  %vm678_vm11 = vcmask 589352  }
  0xb0   : >> { %438 = vst.msk [vmem:[%s3891_s29 + $0x10] sm:$0xff] %vm436_vm12, %v430_v45  ;;  %437 = vst.msk [vmem:[%s3891_s29] sm:$0xff] %vm436_vm12, %v428_v48  ;;  %vm681_vm12 = vcmask 613952   ;;  %v3616_v45 = vld [vmem:[%s4501_s1 + $0x38] sm:$0xff] (%p294_p5)   ;;  %v3617_v48 = vld [vmem:[%s4501_s1 + $0x40] sm:$0xff] (%p294_p5)  }
  0xb1   : >> { %470 = vst.msk [vmem:[%s3891_s29 + $0x10] sm:$0xff] %vm468_vm13, %v465_v36  ;;  %v463_v39 = vpop.permute.xlu0 %462  ;;  %v482_v43 = vpop.permute.xlu1 %481  ;;  %1319 = vmatpush1.bf16.msra.mxu0 (%p294_p5), %v3616_v45  ;;  %3518 = vmatpush1.bf16.msra.mxu1 (%p294_p5), %v3616_v45 }
  0xb2   : >> { %473 = vst.msk [vmem:[%s3891_s29 + $0x10] sm:$0xff] %vm471_vm14, %v465_v36  ;;  %1320 = vmatprep.subr.bf16.mxu0 (%p294_p5), %v3658_v0  ;;  %3503 = vmatprep.subr.bf16.mxu1 (%p294_p5), %v3658_v0  ;;  %v3624_v36 = vld [vmem:[%s4501_s1 + $0x78] sm:$0xff] (%p294_p5)  }
  0xb3   : >> { %469 = vst.msk [vmem:[%s3891_s29] sm:$0xff] %vm468_vm13, %v463_v39  ;;  %vm695_vm13 = vcmask 638552  }
  0xb4   : >> { %472 = vst.msk [vmem:[%s3891_s29] sm:$0xff] %vm471_vm14, %v463_v39  ;;  %vm698_vm14 = vcmask 663152  }
  0xb5   : >> { %487 = vst.msk [vmem:[%s3891_s29 + $0x10] sm:$0xff] %vm485_vm15, %v482_v43  ;;  %v480_v50 = vpop.permute.xlu0 %479  ;;  %v507_v14 = vpop.permute.xlu1 %506  ;;  %1321 = vmatpush1.bf16.msra.mxu0 (%p294_p5), %v3617_v48  ;;  %3519 = vmatpush1.bf16.msra.mxu1 (%p294_p5), %v3617_v48 }
  0xb6   : >> { %490 = vst.msk [vmem:[%s3891_s29 + $0x10] sm:$0xff] %vm488_vm0, %v482_v43  ;;  %1322 = vmatprep.subr.bf16.mxu0 (%p294_p5), %v3658_v0  ;;  %3504 = vmatprep.subr.bf16.mxu1 (%p294_p5), %v3658_v0 }
  0xb7   : >> { %486 = vst.msk [vmem:[%s3891_s29] sm:$0xff] %vm485_vm15, %v480_v50  ;;  %vm720_vm15 = vcmask 687752  }
  0xb8   : >> { %512 = vst.msk [vmem:[%s3891_s29 + $0x10] sm:$0xff] %vm510_vm1, %v507_v14 }
  0xb9   : >> { %489 = vst.msk [vmem:[%s3891_s29] sm:$0xff] %vm488_vm0, %v480_v50  ;;  %v505_v1 = vpop.permute.xlu0 %504  ;;  %v535_v63 = vpop.permute.xlu1 %534  ;;  %vm748_vm0 = vcmask 712352   ;;  %1323 = vmatpush1.bf16.msra.mxu0 (%p294_p5), %v3618_v54  ;;  %3520 = vmatpush1.bf16.msra.mxu1 (%p294_p5), %v3618_v54 }
  0xba   : >> { %511 = vst.msk [vmem:[%s3891_s29] sm:$0xff] %vm510_vm1, %v505_v1  ;;  %vm751_vm1 = vcmask 736952   ;;  %1324 = vmatprep.subr.bf16.mxu0 (%p294_p5), %v3658_v0  ;;  %3505 = vmatprep.subr.bf16.mxu1 (%p294_p5), %v3658_v0 }
  0xbb   : >> { %540 = vst.msk [vmem:[%s3891_s29 + $0x10] sm:$0xff] %vm538_vm2, %v535_v63 }
  0xbc   : >> { %543 = vst.msk [vmem:[%s3891_s29 + $0x10] sm:$0xff] %vm541_vm3, %v535_v63 }
  0xbd   : >> { %v533_v49 = vpop.permute.xlu0 %532  ;;  %v570_v2 = vpop.permute.xlu1 %569  ;;  %1325 = vmatpush1.bf16.msra.mxu0 (%p294_p5), %v3619_v5  ;;  %3521 = vmatpush1.bf16.msra.mxu1 (%p294_p5), %v3619_v5 }
  0xbe   : >> { %539 = vst.msk [vmem:[%s3891_s29] sm:$0xff] %vm538_vm2, %v533_v49  ;;  %vm783_vm2 = vcmask 761552   ;;  %1326 = vmatprep.subr.bf16.mxu0 (%p294_p5), %v3658_v0  ;;  %3506 = vmatprep.subr.bf16.mxu1 (%p294_p5), %v3658_v0 }
  0xbf   : >> { %575 = vst.msk [vmem:[%s3891_s29 + $0x10] sm:$0xff] %vm573_vm4, %v570_v2 }
  0xc0   : >> { %542 = vst.msk [vmem:[%s3891_s29] sm:$0xff] %vm541_vm3, %v533_v49  ;;  %vm786_vm3 = vcmask 786152  }
  0xc1   : >> { %578 = vst.msk [vmem:[%s3891_s29 + $0x10] sm:$0xff] %vm576_vm5, %v570_v2  ;;  %v568_v6 = vpop.permute.xlu0 %567  ;;  %v587_v15 = vpop.permute.xlu1 %586  ;;  %1327 = vmatpush1.bf16.msra.mxu0 (%p294_p5), %v3620_v25  ;;  %3522 = vmatpush1.bf16.msra.mxu1 (%p294_p5), %v3620_v25 }
  0xc2   : >> { %574 = vst.msk [vmem:[%s3891_s29] sm:$0xff] %vm573_vm4, %v568_v6  ;;  %vm800_vm4 = vcmask 810752   ;;  %1328 = vmatprep.subr.bf16.mxu0 (%p294_p5), %v3658_v0  ;;  %3507 = vmatprep.subr.bf16.mxu1 (%p294_p5), %v3658_v0 }
  0xc3   : >> { %592 = vst.msk [vmem:[%s3891_s29 + $0x10] sm:$0xff] %vm590_vm6, %v587_v15 }
  0xc4   : >> { %577 = vst.msk [vmem:[%s3891_s29] sm:$0xff] %vm576_vm5, %v568_v6  ;;  %vm803_vm5 = vcmask 835352  }
  0xc5   : >> { %595 = vst.msk [vmem:[%s3891_s29 + $0x10] sm:$0xff] %vm593_vm7, %v587_v15  ;;  %v585_v18 = vpop.permute.xlu0 %584  ;;  %v612_v7 = vpop.permute.xlu1 %611  ;;  %1329 = vmatpush1.bf16.msra.mxu0 (%p294_p5), %v3621_v30  ;;  %3523 = vmatpush1.bf16.msra.mxu1 (%p294_p5), %v3621_v30 }
  0xc6   : >> { %591 = vst.msk [vmem:[%s3891_s29] sm:$0xff] %vm590_vm6, %v585_v18  ;;  %vm825_vm6 = vcmask 859952   ;;  %1330 = vmatprep.subr.bf16.mxu0 (%p294_p5), %v3658_v0  ;;  %3508 = vmatprep.subr.bf16.mxu1 (%p294_p5), %v3658_v0 }
  0xc7   : >> { %617 = vst.msk [vmem:[%s3891_s29 + $0x10] sm:$0xff] %vm615_vm8, %v612_v7 }
  0xc8   : >> { %594 = vst.msk [vmem:[%s3891_s29] sm:$0xff] %vm593_vm7, %v585_v18  ;;  %vm853_vm7 = vcmask 884552  }
  0xc9   : >> { %v610_v10 = vpop.permute.xlu0 %609  ;;  %v640_v11 = vpop.permute.xlu1 %639  ;;  %1331 = vmatpush1.bf16.msra.mxu0 (%p294_p5), %v3622_v34  ;;  %3524 = vmatpush1.bf16.msra.mxu1 (%p294_p5), %v3622_v34 }
  0xca   : >> { %616 = vst.msk [vmem:[%s3891_s29] sm:$0xff] %vm615_vm8, %v610_v10  ;;  %vm856_vm8 = vcmask 909152   ;;  %1332 = vmatprep.subr.bf16.mxu0 (%p294_p5), %v3658_v0  ;;  %3509 = vmatprep.subr.bf16.mxu1 (%p294_p5), %v3658_v0 }
  0xcb   : >> { %645 = vst.msk [vmem:[%s3891_s29 + $0x10] sm:$0xff] %vm643_vm9, %v640_v11 }
  0xcc   : >> { %648 = vst.msk [vmem:[%s3891_s29 + $0x10] sm:$0xff] %vm646_vm10, %v640_v11 }
  0xcd   : >> { %v638_v60 = vpop.permute.xlu0 %637  ;;  %v675_v16 = vpop.permute.xlu1 %674  ;;  %1333 = vmatpush1.bf16.msra.mxu0 (%p294_p5), %v3623_v35  ;;  %3525 = vmatpush1.bf16.msra.mxu1 (%p294_p5), %v3623_v35 }
  0xce   : >> { %644 = vst.msk [vmem:[%s3891_s29] sm:$0xff] %vm643_vm9, %v638_v60  ;;  %vm960_vm9 = vcmask 7168   ;;  %1334 = vmatprep.subr.bf16.mxu0 (%p294_p5), %v3658_v0  ;;  %3510 = vmatprep.subr.bf16.mxu1 (%p294_p5), %v3658_v0 }
  0xcf   : >> { %680 = vst.msk [vmem:[%s3891_s29 + $0x10] sm:$0xff] %vm678_vm11, %v675_v16 }
  0xd0   : >> { %647 = vst.msk [vmem:[%s3891_s29] sm:$0xff] %vm646_vm10, %v638_v60  ;;  %vm964_vm10 = vcmask 31752  }
  0xd1   : >> { %683 = vst.msk [vmem:[%s3891_s29 + $0x10] sm:$0xff] %vm681_vm12, %v675_v16  ;;  %v673_v19 = vpop.permute.xlu0 %672  ;;  %v692_v21 = vpop.permute.xlu1 %691  ;;  %1335 = vmatpush1.bf16.msra.mxu0 (%p294_p5), %v3624_v36  ;;  %3526 = vmatpush1.bf16.msra.mxu1 (%p294_p5), %v3624_v36 }
  0xd2   : >> { %679 = vst.msk [vmem:[%s3891_s29] sm:$0xff] %vm678_vm11, %v673_v19  ;;  %vm888_vm11 = vcmask 933752  }
  0xd3   : >> { %697 = vst.msk [vmem:[%s3891_s29 + $0x10] sm:$0xff] %vm695_vm13, %v692_v21 }
  0xd4   : >> { %682 = vst.msk [vmem:[%s3891_s29] sm:$0xff] %vm681_vm12, %v673_v19  ;;  %vm891_vm12 = vcmask 958352  }
  0xd5   : >> { %700 = vst.msk [vmem:[%s3891_s29 + $0x10] sm:$0xff] %vm698_vm14, %v692_v21  ;;  %v690_v27 = vpop.permute.xlu0 %689  ;;  %v717_v55 = vpop.permute.xlu1 %716 }
  0xd6   : >> { %696 = vst.msk [vmem:[%s3891_s29] sm:$0xff] %vm695_vm13, %v690_v27  ;;  %vm996_vm13 = vcmask 56352  }
  0xd7   : >> { %722 = vst.msk [vmem:[%s3891_s29 + $0x10] sm:$0xff] %vm720_vm15, %v717_v55 }
  0xd8   : >> { %699 = vst.msk [vmem:[%s3891_s29] sm:$0xff] %vm698_vm14, %v690_v27  ;;  %vm999_vm14 = vcmask 80952  }
  0xd9   : >> { %v715_v56 = vpop.permute.xlu0 %714  ;;  %v745_v62 = vpop.permute.xlu1 %744 }
  0xda   : >> { %721 = vst.msk [vmem:[%s3891_s29] sm:$0xff] %vm720_vm15, %v715_v56  ;;  %vm905_vm15 = vcmask 982952  }
  0xdb   : >> { %750 = vst.msk [vmem:[%s3891_s29 + $0x10] sm:$0xff] %vm748_vm0, %v745_v62 }
  0xdc   : >> { %753 = vst.msk [vmem:[%s3891_s29 + $0x10] sm:$0xff] %vm751_vm1, %v745_v62 }
  0xdd   : >> { %v743_v17 = vpop.permute.xlu0 %742  ;;  %v780_v20 = vpop.permute.xlu1 %779 }
  0xde   : >> { %749 = vst.msk [vmem:[%s3891_s29] sm:$0xff] %vm748_vm0, %v743_v17  ;;  %vm908_vm0 = vcmask 1007552  }
  0xdf   : >> { %785 = vst.msk [vmem:[%s3891_s29 + $0x10] sm:$0xff] %vm783_vm2, %v780_v20 }
  0xe0   : >> { %752 = vst.msk [vmem:[%s3891_s29] sm:$0xff] %vm751_vm1, %v743_v17  ;;  %vm1013_vm1 = vcmask 105552  }
  0xe1   : >> { %788 = vst.msk [vmem:[%s3891_s29 + $0x10] sm:$0xff] %vm786_vm3, %v780_v20  ;;  %v778_v3 = vpop.permute.xlu0 %777  ;;  %v797_v13 = vpop.permute.xlu1 %796 }
  0xe2   : >> { %784 = vst.msk [vmem:[%s3891_s29] sm:$0xff] %vm783_vm2, %v778_v3  ;;  %vm1016_vm2 = vcmask 130152  }
  0xe3   : >> { %802 = vst.msk [vmem:[%s3891_s29 + $0x10] sm:$0xff] %vm800_vm4, %v797_v13 }
  0xe4   : >> { %787 = vst.msk [vmem:[%s3891_s29] sm:$0xff] %vm786_vm3, %v778_v3  ;;  %vm930_vm3 = vcmask 1032152  }
  0xe5   : >> { %805 = vst.msk [vmem:[%s3891_s29 + $0x10] sm:$0xff] %vm803_vm5, %v797_v13  ;;  %v795_v41 = vpop.permute.xlu0 %794  ;;  %v822_v53 = vpop.permute.xlu1 %821 }
  0xe6   : >> { %801 = vst.msk [vmem:[%s3891_s29] sm:$0xff] %vm800_vm4, %v795_v41  ;;  %vm958_vm4 = vcmask 1048560  }
  0xe7   : >> { %827 = vst.msk [vmem:[%s3891_s29 + $0x10] sm:$0xff] %vm825_vm6, %v822_v53 }
  0xe8   : >> { %804 = vst.msk [vmem:[%s3891_s29] sm:$0xff] %vm803_vm5, %v795_v41  ;;  %vm1038_vm5 = vcmask 154752  }
  0xe9   : >> { %v820_v22 = vpop.permute.xlu0 %819  ;;  %v850_v57 = vpop.permute.xlu1 %849 }
  0xea   : >> { %826 = vst.msk [vmem:[%s3891_s29] sm:$0xff] %vm825_vm6, %v820_v22 }
  0xeb   : >> { %855 = vst.msk [vmem:[%s3891_s29 + $0x10] sm:$0xff] %vm853_vm7, %v850_v57 }
  0xec   : >> { %858 = vst.msk [vmem:[%s3891_s29 + $0x10] sm:$0xff] %vm856_vm8, %v850_v57 }
  0xed   : >> { %v848_v4 = vpop.permute.xlu0 %847  ;;  %v955_v8 = vpop.permute.xlu1 %954 }
  0xee   : >> { %854 = vst.msk [vmem:[%s3891_s29] sm:$0xff] %vm853_vm7, %v848_v4 }
  0xef   : >> { %963 = vst.msk [vmem:[%s3891_s29 + $0x18] sm:$0xff] %vm960_vm9, %v955_v8 }
  0xf0   : >> { %857 = vst.msk [vmem:[%s3891_s29] sm:$0xff] %vm856_vm8, %v848_v4 }
  0xf1   : >> { %966 = vst.msk [vmem:[%s3891_s29 + $0x18] sm:$0xff] %vm964_vm10, %v955_v8  ;;  %v953_v23 = vpop.permute.xlu0 %952  ;;  %v885_v24 = vpop.permute.xlu1 %884 }
  0xf2   : >> { %961 = vst.msk [vmem:[%s3891_s29 + $0x8] sm:$0xff] %vm960_vm9, %v953_v23 }
  0xf3   : >> { %890 = vst.msk [vmem:[%s3891_s29 + $0x10] sm:$0xff] %vm888_vm11, %v885_v24 }
  0xf4   : >> { %965 = vst.msk [vmem:[%s3891_s29 + $0x8] sm:$0xff] %vm964_vm10, %v953_v23 }
  0xf5   : >> { %893 = vst.msk [vmem:[%s3891_s29 + $0x10] sm:$0xff] %vm891_vm12, %v885_v24  ;;  %v883_v26 = vpop.permute.xlu0 %882  ;;  %v993_v28 = vpop.permute.xlu1 %992 }
  0xf6   : >> { %889 = vst.msk [vmem:[%s3891_s29] sm:$0xff] %vm888_vm11, %v883_v26 }
  0xf7   : >> { %998 = vst.msk [vmem:[%s3891_s29 + $0x18] sm:$0xff] %vm996_vm13, %v993_v28 }
  0xf8   : >> { %892 = vst.msk [vmem:[%s3891_s29] sm:$0xff] %vm891_vm12, %v883_v26 }
  0xf9   : >> { %1001 = vst.msk [vmem:[%s3891_s29 + $0x18] sm:$0xff] %vm999_vm14, %v993_v28  ;;  %v991_v29 = vpop.permute.xlu0 %990  ;;  %v902_v31 = vpop.permute.xlu1 %901 }
  0xfa   : >> { %997 = vst.msk [vmem:[%s3891_s29 + $0x8] sm:$0xff] %vm996_vm13, %v991_v29 }
  0xfb   : >> { %907 = vst.msk [vmem:[%s3891_s29 + $0x10] sm:$0xff] %vm905_vm15, %v902_v31 }
  0xfc   : >> { %1000 = vst.msk [vmem:[%s3891_s29 + $0x8] sm:$0xff] %vm999_vm14, %v991_v29 }
  0xfd   : >> { %910 = vst.msk [vmem:[%s3891_s29 + $0x10] sm:$0xff] %vm908_vm0, %v902_v31  ;;  %v900_v32 = vpop.permute.xlu0 %899  ;;  %v1010_v33 = vpop.permute.xlu1 %1009 }
  0xfe   : >> { %906 = vst.msk [vmem:[%s3891_s29] sm:$0xff] %vm905_vm15, %v900_v32 }
  0xff   : >> { %1015 = vst.msk [vmem:[%s3891_s29 + $0x18] sm:$0xff] %vm1013_vm1, %v1010_v33 }
 0x100   : >> { %909 = vst.msk [vmem:[%s3891_s29] sm:$0xff] %vm908_vm0, %v900_v32 }
 0x101   : >> { %1018 = vst.msk [vmem:[%s3891_s29 + $0x18] sm:$0xff] %vm1016_vm2, %v1010_v33  ;;  %v1008_v37 = vpop.permute.xlu0 %1007  ;;  %v927_v38 = vpop.permute.xlu1 %926 }
 0x102   : >> { %1014 = vst.msk [vmem:[%s3891_s29 + $0x8] sm:$0xff] %vm1013_vm1, %v1008_v37 }
 0x103   : >> { %932 = vst.msk [vmem:[%s3891_s29 + $0x10] sm:$0xff] %vm930_vm3, %v927_v38 }
 0x104   : >> { %1017 = vst.msk [vmem:[%s3891_s29 + $0x8] sm:$0xff] %vm1016_vm2, %v1008_v37  ;;  %296 = sbr.rel (!%p294_p5) target bundleno = 39 (0x27), region = 87 }
 0x105   : >> { %962 = vst.msk [vmem:[%s3891_s29 + $0x10] sm:$0xff] %vm958_vm4, %v955_v8  ;;  %v925_v40 = vpop.permute.xlu0 %924  ;;  %v1035_v61 = vpop.permute.xlu1 %1034 }
 0x106   : >> { %931 = vst.msk [vmem:[%s3891_s29] sm:$0xff] %vm930_vm3, %v925_v40 }
 0x107   : >> { %1040 = vst.msk [vmem:[%s3891_s29 + $0x18] sm:$0xff] %vm1038_vm5, %v1035_v61 }
 0x108   : >> { %959 = vst.msk [vmem:[%s3891_s29] sm:$0xff] %vm958_vm4, %v953_v23 }
 0x109   : >> { %v1033_v42 = vpop.permute.xlu0 %1032 }
 0x10a   : >> { %1039 = vst.msk [vmem:[%s3891_s29 + $0x8] sm:$0xff] %vm1038_vm5, %v1033_v42 }
 0x111   : > { %v1042_v59 = vld [vmem:[#allocation2 + $0x8] sm:$0xff]  ;;  %v1041_v39 = vld [vmem:[#allocation2] sm:$0xff]  ;;  %v1044_v50 = vld [vmem:[#allocation2 + $0x18] sm:$0xff] }
 0x112   : > { %v1106_v12 = vld [vmem:[#allocation2 + $0x208] sm:$0xff]  ;;  %1336 = vmatprep.mubr.bf16.mxu0 %v1042_v59  ;;  %v1105_v43 = vld [vmem:[#allocation2 + $0x200] sm:$0xff]  ;;  %v1108_v14 = vld [vmem:[#allocation2 + $0x218] sm:$0xff] }
 0x113   : > { %1592 = vmatprep.mubr.bf16.mxu1 %v1106_v12  ;;  %1337 = vmatmul.mubr.bf16.vlgmr.msra.gmra.mrb[0].mxu0 %v1041_v39  ;;  %v1043_v1 = vld [vmem:[#allocation2 + $0x10] sm:$0xff]  ;;  %v1046_v49 = vld [vmem:[#allocation2 + $0x28] sm:$0xff]  ;;  %v1045_v6 = vld [vmem:[#allocation2 + $0x20] sm:$0xff] }
 0x114   : > { %1593 = vmatmul.mubr.bf16.vlgmr.msra.gmra.mrb[0].mxu1 %v1105_v43  ;;  %1344 = vmatprep.mubr.bf16.mxu0 %v1044_v50  ;;  %v1107_v63 = vld [vmem:[#allocation2 + $0x210] sm:$0xff]  ;;  %v1110_v2 = vld [vmem:[#allocation2 + $0x228] sm:$0xff]  ;;  %v1109_v0 = vld [vmem:[#allocation2 + $0x220] sm:$0xff] }
 0x115   : > { %1600 = vmatprep.mubr.bf16.mxu1 %v1108_v14  ;;  %v1048_v15 = vld [vmem:[#allocation2 + $0x38] sm:$0xff]  ;;  %v1047_v7 = vld [vmem:[#allocation2 + $0x30] sm:$0xff]  ;;  %v1050_v11 = vld [vmem:[#allocation2 + $0x48] sm:$0xff] }
 0x116   : > { %v1112_v18 = vld [vmem:[#allocation2 + $0x238] sm:$0xff]  ;;  %v1111_v10 = vld [vmem:[#allocation2 + $0x230] sm:$0xff]  ;;  %v1114_v60 = vld [vmem:[#allocation2 + $0x248] sm:$0xff] }
 0x117   : > { %v1049_v16 = vld [vmem:[#allocation2 + $0x40] sm:$0xff]  ;;  %v1052_v21 = vld [vmem:[#allocation2 + $0x58] sm:$0xff]  ;;  %v1051_v55 = vld [vmem:[#allocation2 + $0x50] sm:$0xff] }
 0x118   : > { %v1113_v19 = vld [vmem:[#allocation2 + $0x240] sm:$0xff]  ;;  %v1116_v27 = vld [vmem:[#allocation2 + $0x258] sm:$0xff]  ;;  %v1115_v56 = vld [vmem:[#allocation2 + $0x250] sm:$0xff] }
 0x119   : > { %v1054_v62 = vld [vmem:[#allocation2 + $0x68] sm:$0xff]  ;;  %v1053_v20 = vld [vmem:[#allocation2 + $0x60] sm:$0xff]  ;;  %v1056_v13 = vld [vmem:[#allocation2 + $0x78] sm:$0xff] }
 0x11a   : > { %v1118_v17 = vld [vmem:[#allocation2 + $0x268] sm:$0xff]  ;;  %v1117_v3 = vld [vmem:[#allocation2 + $0x260] sm:$0xff]  ;;  %v1120_v41 = vld [vmem:[#allocation2 + $0x278] sm:$0xff] }
 0x11b   : > { %1345 = vmatmul.mubr.bf16.gmra.mrb[4].mxu0 %v1043_v1  ;;  %v1055_v53 = vld [vmem:[#allocation2 + $0x70] sm:$0xff]  ;;  %v1058_v57 = vld [vmem:[#allocation2 + $0x88] sm:$0xff]  ;;  %v1057_v8 = vld [vmem:[#allocation2 + $0x80] sm:$0xff] }
 0x11c   : > { %1601 = vmatmul.mubr.bf16.gmra.mrb[4].mxu1 %v1107_v63  ;;  %1352 = vmatprep.mubr.bf16.mxu0 %v1046_v49  ;;  %v1119_v22 = vld [vmem:[#allocation2 + $0x270] sm:$0xff]  ;;  %v1122_v4 = vld [vmem:[#allocation2 + $0x288] sm:$0xff]  ;;  %v1121_v23 = vld [vmem:[#allocation2 + $0x280] sm:$0xff] }
 0x11d   : > { %1608 = vmatprep.mubr.bf16.mxu1 %v1110_v2  ;;  %v1060_v24 = vld [vmem:[#allocation2 + $0x98] sm:$0xff]  ;;  %v1059_v28 = vld [vmem:[#allocation2 + $0x90] sm:$0xff]  ;;  %v1062_v31 = vld [vmem:[#allocation2 + $0xa8] sm:$0xff] }
 0x11e   : > { %v1124_v26 = vld [vmem:[#allocation2 + $0x298] sm:$0xff]  ;;  %v1123_v29 = vld [vmem:[#allocation2 + $0x290] sm:$0xff]  ;;  %v1126_v32 = vld [vmem:[#allocation2 + $0x2a8] sm:$0xff] }
 0x11f   : > { %v1061_v33 = vld [vmem:[#allocation2 + $0xa0] sm:$0xff]  ;;  %v1064_v38 = vld [vmem:[#allocation2 + $0xb8] sm:$0xff]  ;;  %v1063_v61 = vld [vmem:[#allocation2 + $0xb0] sm:$0xff] }
 0x120   : > { %v1125_v37 = vld [vmem:[#allocation2 + $0x2a0] sm:$0xff]  ;;  %v1128_v40 = vld [vmem:[#allocation2 + $0x2b8] sm:$0xff]  ;;  %v1127_v42 = vld [vmem:[#allocation2 + $0x2b0] sm:$0xff] }
 0x121   : > { %v1066_v44 = vld [vmem:[#allocation2 + $0xc8] sm:$0xff]  ;;  %v1065_v47 = vld [vmem:[#allocation2 + $0xc0] sm:$0xff]  ;;  %v1068_v52 = vld [vmem:[#allocation2 + $0xd8] sm:$0xff] }
 0x122   : > { %v1130_v46 = vld [vmem:[#allocation2 + $0x2c8] sm:$0xff]  ;;  %v1129_v51 = vld [vmem:[#allocation2 + $0x2c0] sm:$0xff]  ;;  %v1132_v59 = vld [vmem:[#allocation2 + $0x2d8] sm:$0xff] }
 0x123   : > { %1353 = vmatmul.mubr.bf16.gmra.mrb[8].mxu0 %v1045_v6  ;;  %v1067_v12 = vld [vmem:[#allocation2 + $0xd0] sm:$0xff]  ;;  %v1070_v9 = vld [vmem:[#allocation2 + $0xe8] sm:$0xff]  ;;  %v1069_v48 = vld [vmem:[#allocation2 + $0xe0] sm:$0xff] }
 0x124   : > { %1609 = vmatmul.mubr.bf16.gmra.mrb[8].mxu1 %v1109_v0  ;;  %1360 = vmatprep.mubr.bf16.mxu0 %v1048_v15  ;;  %v1131_v58 = vld [vmem:[#allocation2 + $0x2d0] sm:$0xff]  ;;  %v1134_v45 = vld [vmem:[#allocation2 + $0x2e8] sm:$0xff]  ;;  %v1133_v54 = vld [vmem:[#allocation2 + $0x2e0] sm:$0xff] }
 0x125   : > { %1616 = vmatprep.mubr.bf16.mxu1 %v1112_v18  ;;  %v1072_v5 = vld [vmem:[#allocation2 + $0xf8] sm:$0xff]  ;;  %v1071_v30 = vld [vmem:[#allocation2 + $0xf0] sm:$0xff]  ;;  %v1074_v35 = vld [vmem:[#allocation2 + $0x108] sm:$0xff] }
 0x126   : > { %v1136_v25 = vld [vmem:[#allocation2 + $0x2f8] sm:$0xff]  ;;  %v1135_v34 = vld [vmem:[#allocation2 + $0x2f0] sm:$0xff]  ;;  %v1138_v36 = vld [vmem:[#allocation2 + $0x308] sm:$0xff] }
 0x127   : > { %v1073_v39 = vld [vmem:[#allocation2 + $0x100] sm:$0xff]  ;;  %v1076_v50 = vld [vmem:[#allocation2 + $0x118] sm:$0xff]  ;;  %v1075_v1 = vld [vmem:[#allocation2 + $0x110] sm:$0xff] }
 0x128   : > { %v1137_v43 = vld [vmem:[#allocation2 + $0x300] sm:$0xff]  ;;  %v1140_v14 = vld [vmem:[#allocation2 + $0x318] sm:$0xff]  ;;  %v1139_v63 = vld [vmem:[#allocation2 + $0x310] sm:$0xff] }
 0x129   : > { %v1078_v49 = vld [vmem:[#allocation2 + $0x128] sm:$0xff]  ;;  %v1077_v6 = vld [vmem:[#allocation2 + $0x120] sm:$0xff]  ;;  %v1080_v15 = vld [vmem:[#allocation2 + $0x138] sm:$0xff] }
 0x12a   : > { %v1142_v2 = vld [vmem:[#allocation2 + $0x328] sm:$0xff]  ;;  %v1141_v0 = vld [vmem:[#allocation2 + $0x320] sm:$0xff]  ;;  %v1144_v18 = vld [vmem:[#allocation2 + $0x338] sm:$0xff] }
 0x12b   : > { %1361 = vmatmul.mubr.bf16.gmra.mrb[12].mxu0 %v1047_v7  ;;  %v1079_v7 = vld [vmem:[#allocation2 + $0x130] sm:$0xff] }
 0x12c   : > { %1617 = vmatmul.mubr.bf16.gmra.mrb[12].mxu1 %v1111_v10  ;;  %1368 = vmatprep.mubr.bf16.mxu0 %v1050_v11  ;;  %v1143_v10 = vld [vmem:[#allocation2 + $0x330] sm:$0xff]  ;;  %v1082_v11 = vld [vmem:[#allocation2 + $0x148] sm:$0xff] }
 0x12d   : > { %1624 = vmatprep.mubr.bf16.mxu1 %v1114_v60  ;;  %v1146_v60 = vld [vmem:[#allocation2 + $0x348] sm:$0xff] }
 0x133   : > { %1369 = vmatmul.mubr.bf16.gmra.mrb[16].mxu0 %v1049_v16  ;;  %v1081_v16 = vld [vmem:[#allocation2 + $0x140] sm:$0xff] }
 0x134   : > { %1625 = vmatmul.mubr.bf16.gmra.mrb[16].mxu1 %v1113_v19  ;;  %1376 = vmatprep.mubr.bf16.mxu0 %v1052_v21  ;;  %v1145_v19 = vld [vmem:[#allocation2 + $0x340] sm:$0xff]  ;;  %v1084_v21 = vld [vmem:[#allocation2 + $0x158] sm:$0xff] }
 0x135   : > { %1632 = vmatprep.mubr.bf16.mxu1 %v1116_v27  ;;  %v1148_v27 = vld [vmem:[#allocation2 + $0x358] sm:$0xff] }
 0x13b   : > { %1377 = vmatmul.mubr.bf16.gmra.mrb[20].mxu0 %v1051_v55  ;;  %v1083_v55 = vld [vmem:[#allocation2 + $0x150] sm:$0xff] }
 0x13c   : > { %1633 = vmatmul.mubr.bf16.gmra.mrb[20].mxu1 %v1115_v56  ;;  %1384 = vmatprep.mubr.bf16.mxu0 %v1054_v62  ;;  %v1147_v56 = vld [vmem:[#allocation2 + $0x350] sm:$0xff]  ;;  %v1086_v62 = vld [vmem:[#allocation2 + $0x168] sm:$0xff] }
 0x13d   : > { %1640 = vmatprep.mubr.bf16.mxu1 %v1118_v17  ;;  %v1150_v17 = vld [vmem:[#allocation2 + $0x368] sm:$0xff] }
 0x143   : > { %1385 = vmatmul.mubr.bf16.gmra.mrb[24].mxu0 %v1053_v20  ;;  %v1085_v20 = vld [vmem:[#allocation2 + $0x160] sm:$0xff] }
 0x144   : > { %1641 = vmatmul.mubr.bf16.gmra.mrb[24].mxu1 %v1117_v3  ;;  %1392 = vmatprep.mubr.bf16.mxu0 %v1056_v13  ;;  %v1149_v3 = vld [vmem:[#allocation2 + $0x360] sm:$0xff]  ;;  %v1088_v13 = vld [vmem:[#allocation2 + $0x178] sm:$0xff] }
 0x145   : > { %1648 = vmatprep.mubr.bf16.mxu1 %v1120_v41  ;;  %v1152_v41 = vld [vmem:[#allocation2 + $0x378] sm:$0xff] }
 0x14b   : > { %1393 = vmatmul.mubr.bf16.gmra.mrb[28].mxu0 %v1055_v53  ;;  %v1087_v53 = vld [vmem:[#allocation2 + $0x170] sm:$0xff] }
 0x14c   : > { %1649 = vmatmul.mubr.bf16.gmra.mrb[28].mxu1 %v1119_v22  ;;  %1400 = vmatprep.mubr.bf16.mxu0 %v1058_v57  ;;  %v1151_v22 = vld [vmem:[#allocation2 + $0x370] sm:$0xff]  ;;  %v1090_v57 = vld [vmem:[#allocation2 + $0x188] sm:$0xff] }
 0x14d   : > { %1656 = vmatprep.mubr.bf16.mxu1 %v1122_v4  ;;  %v1154_v4 = vld [vmem:[#allocation2 + $0x388] sm:$0xff] }
 0x153   : > { %1401 = vmatmul.mubr.bf16.gmra.mrb[32].mxu0 %v1057_v8  ;;  %v1089_v8 = vld [vmem:[#allocation2 + $0x180] sm:$0xff] }
 0x154   : > { %1657 = vmatmul.mubr.bf16.gmra.mrb[32].mxu1 %v1121_v23  ;;  %1408 = vmatprep.mubr.bf16.mxu0 %v1060_v24  ;;  %v1153_v23 = vld [vmem:[#allocation2 + $0x380] sm:$0xff]  ;;  %v1092_v24 = vld [vmem:[#allocation2 + $0x198] sm:$0xff] }
 0x155   : > { %1664 = vmatprep.mubr.bf16.mxu1 %v1124_v26  ;;  %v1156_v26 = vld [vmem:[#allocation2 + $0x398] sm:$0xff] }
 0x15b   : > { %1409 = vmatmul.mubr.bf16.gmra.mrb[36].mxu0 %v1059_v28  ;;  %v1091_v28 = vld [vmem:[#allocation2 + $0x190] sm:$0xff] }
 0x15c   : > { %1665 = vmatmul.mubr.bf16.gmra.mrb[36].mxu1 %v1123_v29  ;;  %1416 = vmatprep.mubr.bf16.mxu0 %v1062_v31  ;;  %v1155_v29 = vld [vmem:[#allocation2 + $0x390] sm:$0xff]  ;;  %v1094_v31 = vld [vmem:[#allocation2 + $0x1a8] sm:$0xff] }
 0x15d   : > { %1672 = vmatprep.mubr.bf16.mxu1 %v1126_v32  ;;  %v1158_v32 = vld [vmem:[#allocation2 + $0x3a8] sm:$0xff] }
 0x163   : > { %1417 = vmatmul.mubr.bf16.gmra.mrb[40].mxu0 %v1061_v33  ;;  %v1093_v33 = vld [vmem:[#allocation2 + $0x1a0] sm:$0xff] }
 0x164   : > { %1673 = vmatmul.mubr.bf16.gmra.mrb[40].mxu1 %v1125_v37  ;;  %1424 = vmatprep.mubr.bf16.mxu0 %v1064_v38  ;;  %v1157_v37 = vld [vmem:[#allocation2 + $0x3a0] sm:$0xff]  ;;  %v1096_v38 = vld [vmem:[#allocation2 + $0x1b8] sm:$0xff] }
 0x165   : > { %1680 = vmatprep.mubr.bf16.mxu1 %v1128_v40  ;;  %v1160_v40 = vld [vmem:[#allocation2 + $0x3b8] sm:$0xff] }
 0x16b   : > { %1425 = vmatmul.mubr.bf16.gmra.mrb[44].mxu0 %v1063_v61  ;;  %v4292_v61 = vld [vmem:[%s4502_s2] ss:$0 sm:$0xff] }
 0x16c   : > { %1681 = vmatmul.mubr.bf16.gmra.mrb[44].mxu1 %v1127_v42  ;;  %1432 = vmatprep.mubr.bf16.mxu0 %v1066_v44 }
 0x16d   : > { %1688 = vmatprep.mubr.bf16.mxu1 %v1130_v46 }
 0x173   : > { %1433 = vmatmul.mubr.bf16.gmra.mrb[48].mxu0 %v1065_v47 }
 0x174   : > { %1689 = vmatmul.mubr.bf16.gmra.mrb[48].mxu1 %v1129_v51  ;;  %1440 = vmatprep.mubr.bf16.mxu0 %v1068_v52 }
 0x175   : > { %1696 = vmatprep.mubr.bf16.mxu1 %v1132_v59 }
 0x17b   : > { %1441 = vmatmul.mubr.bf16.gmra.mrb[52].mxu0 %v1067_v12 }
 0x17c   : > { %1697 = vmatmul.mubr.bf16.gmra.mrb[52].mxu1 %v1131_v58  ;;  %1448 = vmatprep.mubr.bf16.mxu0 %v1070_v9  ;;  %v1095_v58 = vld [vmem:[#allocation2 + $0x1b0] sm:$0xff] }
 0x17d   : > { %1704 = vmatprep.mubr.bf16.mxu1 %v1134_v45  ;;  %v1159_v9 = vld [vmem:[#allocation2 + $0x3b0] sm:$0xff] }
 0x183   : > { %1449 = vmatmul.mubr.bf16.gmra.mrb[56].mxu0 %v1069_v48 }
 0x184   : > { %1705 = vmatmul.mubr.bf16.gmra.mrb[56].mxu1 %v1133_v54  ;;  %1456 = vmatprep.mubr.bf16.mxu0 %v1072_v5 }
 0x185   : > { %1712 = vmatprep.mubr.bf16.mxu1 %v1136_v25  ;;  %v1098_v25 = vld [vmem:[#allocation2 + $0x1c8] sm:$0xff] }
 0x18b   : > { %1457 = vmatmul.mubr.bf16.gmra.mrb[60].mxu0 %v1071_v30  ;;  %v1162_v30 = vld [vmem:[#allocation2 + $0x3c8] sm:$0xff] }
 0x18c   : > { %1713 = vmatmul.mubr.bf16.gmra.mrb[60].mxu1 %v1135_v34  ;;  %1464 = vmatprep.mubr.bf16.mxu0 %v1074_v35 }
 0x18d   : > { %1720 = vmatprep.mubr.bf16.mxu1 %v1138_v36 }
 0x193   : > { %1465 = vmatmul.mubr.bf16.gmra.mrb[64].mxu0 %v1073_v39 }
 0x194   : > { %1721 = vmatmul.mubr.bf16.gmra.mrb[64].mxu1 %v1137_v43  ;;  %1472 = vmatprep.mubr.bf16.mxu0 %v1076_v50 }
 0x195   : > { %1728 = vmatprep.mubr.bf16.mxu1 %v1140_v14 }
 0x19b   : > { %1473 = vmatmul.mubr.bf16.gmra.mrb[68].mxu0 %v1075_v1 }
 0x19c   : > { %1729 = vmatmul.mubr.bf16.gmra.mrb[68].mxu1 %v1139_v63  ;;  %1480 = vmatprep.mubr.bf16.mxu0 %v1078_v49 }
 0x19d   : > { %1736 = vmatprep.mubr.bf16.mxu1 %v1142_v2 }
 0x1a3   : > { %1481 = vmatmul.mubr.bf16.gmra.mrb[72].mxu0 %v1077_v6 }
 0x1a4   : > { %1737 = vmatmul.mubr.bf16.gmra.mrb[72].mxu1 %v1141_v0  ;;  %1488 = vmatprep.mubr.bf16.mxu0 %v1080_v15 }
 0x1a5   : > { %1744 = vmatprep.mubr.bf16.mxu1 %v1144_v18  ;;  %v1097_v18 = vld [vmem:[#allocation2 + $0x1c0] sm:$0xff] }
 0x1ab   : > { %1489 = vmatmul.mubr.bf16.gmra.mrb[76].mxu0 %v1079_v7  ;;  %v1161_v7 = vld [vmem:[#allocation2 + $0x3c0] sm:$0xff] }
 0x1ac   : > { %1745 = vmatmul.mubr.bf16.gmra.mrb[76].mxu1 %v1143_v10  ;;  %1496 = vmatprep.mubr.bf16.mxu0 %v1082_v11 }
 0x1ad   : > { %1752 = vmatprep.mubr.bf16.mxu1 %v1146_v60 }
 0x1b3   : > { %1497 = vmatmul.mubr.bf16.gmra.mrb[80].mxu0 %v1081_v16 }
 0x1b4   : > { %1753 = vmatmul.mubr.bf16.gmra.mrb[80].mxu1 %v1145_v19  ;;  %1504 = vmatprep.mubr.bf16.mxu0 %v1084_v21  ;;  %v1100_v19 = vld [vmem:[#allocation2 + $0x1d8] sm:$0xff] }
 0x1b5   : > { %1760 = vmatprep.mubr.bf16.mxu1 %v1148_v27  ;;  %v1164_v21 = vld [vmem:[#allocation2 + $0x3d8] sm:$0xff] }
 0x1bb   : > { %1505 = vmatmul.mubr.bf16.gmra.mrb[84].mxu0 %v1083_v55 }
 0x1bc   : > { %1761 = vmatmul.mubr.bf16.gmra.mrb[84].mxu1 %v1147_v56  ;;  %1512 = vmatprep.mubr.bf16.mxu0 %v1086_v62 }
 0x1bd   : > { %1768 = vmatprep.mubr.bf16.mxu1 %v1150_v17 }
 0x1c3   : > { %1513 = vmatmul.mubr.bf16.gmra.mrb[88].mxu0 %v1085_v20 }
 0x1c4   : > { %1769 = vmatmul.mubr.bf16.gmra.mrb[88].mxu1 %v1149_v3  ;;  %1520 = vmatprep.mubr.bf16.mxu0 %v1088_v13 }
 0x1c5   : > { %1776 = vmatprep.mubr.bf16.mxu1 %v1152_v41 }
 0x1cb   : > { %1521 = vmatmul.mubr.bf16.gmra.mrb[92].mxu0 %v1087_v53 }
 0x1cc   : > { %1777 = vmatmul.mubr.bf16.gmra.mrb[92].mxu1 %v1151_v22  ;;  %1528 = vmatprep.mubr.bf16.mxu0 %v1090_v57 }
 0x1cd   : > { %1784 = vmatprep.mubr.bf16.mxu1 %v1154_v4 }
 0x1d3   : > { %1529 = vmatmul.mubr.bf16.gmra.mrb[96].mxu0 %v1089_v8 }
 0x1d4   : > { %1785 = vmatmul.mubr.bf16.gmra.mrb[96].mxu1 %v1153_v23  ;;  %1536 = vmatprep.mubr.bf16.mxu0 %v1092_v24  ;;  %v1099_v23 = vld [vmem:[#allocation2 + $0x1d0] sm:$0xff] }
 0x1d5   : > { %1792 = vmatprep.mubr.bf16.mxu1 %v1156_v26  ;;  %v1163_v24 = vld [vmem:[#allocation2 + $0x3d0] sm:$0xff] }
 0x1db   : > { %1537 = vmatmul.mubr.bf16.gmra.mrb[100].mxu0 %v1091_v28 }
 0x1dc   : > { %1793 = vmatmul.mubr.bf16.gmra.mrb[100].mxu1 %v1155_v29  ;;  %1544 = vmatprep.mubr.bf16.mxu0 %v1094_v31 }
 0x1dd   : > { %1800 = vmatprep.mubr.bf16.mxu1 %v1158_v32  ;;  %v1102_v32 = vld [vmem:[#allocation2 + $0x1e8] sm:$0xff] }
 0x1e3   : > { %1545 = vmatmul.mubr.bf16.gmra.mrb[104].mxu0 %v1093_v33  ;;  %v1166_v33 = vld [vmem:[#allocation2 + $0x3e8] sm:$0xff] }
 0x1e4   : > { %1801 = vmatmul.mubr.bf16.gmra.mrb[104].mxu1 %v1157_v37  ;;  %1552 = vmatprep.mubr.bf16.mxu0 %v1096_v38 }
 0x1e5   : > { %1808 = vmatprep.mubr.bf16.mxu1 %v1160_v40 }
 0x1e6   : > { %v1338_v42 = vpop.f32.mrb[0].mxu0 }
 0x1e7   : > { %v1594_v44 = vpop.f32.mrb[0].mxu1  ;;  %v1339_v46 = vadd.f32 %v4292_v61, %v1338_v42  ;;  %v1340_v51 = vpop.f32.mrb[1].mxu0 }
 0x1e8   : > { %v1595_v47 = vadd.f32 %v4292_v61, %v1594_v44  ;;  %v1596_v52 = vpop.f32.mrb[1].mxu1  ;;  %v1341_v59 = vpop.f32.mrb[2].mxu0 }
 0x1e9   : > { %v1597_v12 = vpop.f32.mrb[2].mxu1  ;;  %v1342_v45 = vadd.f32 %v4292_v61, %v1341_v59  ;;  %v1343_v54 = vpop.f32.mrb[3].mxu0  ;;  %v1849_v34 = vmax.f32 %v1339_v46, 0.0 }
 0x1ea   : > { %v1598_v48 = vadd.f32 %v4292_v61, %v1597_v12  ;;  %v1599_v5 = vpop.f32.mrb[3].mxu1  ;;  %v1913_v35 = vmax.f32 %v1595_v47, 0.0  ;;  %v1165_v54 = vld [vmem:[#allocation2 + $0x3e0] sm:$0xff] }
 0x1eb   : > { %v1850_v36 = vmax.f32 %v1342_v45, 0.0  ;;  %1553 = vmatmul.mubr.bf16.gmra.mrb[108].mxu0 %v1095_v58 }
 0x1ec   : > { %v1914_v39 = vmax.f32 %v1598_v48, 0.0  ;;  %1809 = vmatmul.mubr.bf16.gmra.mrb[108].mxu1 %v1159_v9  ;;  %1560 = vmatprep.mubr.bf16.mxu0 %v1098_v25  ;;  %v1101_v48 = vld [vmem:[#allocation2 + $0x1e0] sm:$0xff] }
 0x1ed   : > { %1816 = vmatprep.mubr.bf16.mxu1 %v1162_v30  ;;  %v3115_v43 = vpack.c.bf16 %v1850_v36, %v1849_v34  ;;  %v1168_v36 = vld [vmem:[#allocation2 + $0x3f8] sm:$0xff] }
 0x1ee   : > { %v3275_v50 = vpack.c.bf16 %v1914_v39, %v1913_v35  ;;  %v1346_v14 = vpop.f32.mrb[4].mxu0  ;;  %v1104_v35 = vld [vmem:[#allocation2 + $0x1f8] sm:$0xff] }
 0x1ef   : > { %v1602_v1 = vpop.f32.mrb[4].mxu1  ;;  %3116 = vst [vmem:[%s3861_s20] sm:$0xff] %v3115_v43   ;;  %v1347_v63 = vadd.f32 %v4292_v61, %v1346_v14  ;;  %v1348_v2 = vpop.f32.mrb[5].mxu0 }
 0x1f0   : > { %3463 = vst [vmem:[%s3861_s20 + $0x100] sm:$0xff] %v3275_v50   ;;  %v1603_v49 = vadd.f32 %v4292_v61, %v1602_v1  ;;  %v1604_v6 = vpop.f32.mrb[5].mxu1  ;;  %v1349_v0 = vpop.f32.mrb[6].mxu0 }
 0x1f1   : > { %v1605_v15 = vpop.f32.mrb[6].mxu1  ;;  %v1350_v10 = vadd.f32 %v4292_v61, %v1349_v0  ;;  %v1351_v60 = vpop.f32.mrb[7].mxu0  ;;  %v1851_v27 = vmax.f32 %v1347_v63, 0.0 }
 0x1f2   : > { %v1606_v11 = vadd.f32 %v4292_v61, %v1605_v15  ;;  %v1607_v16 = vpop.f32.mrb[7].mxu1  ;;  %v1915_v55 = vmax.f32 %v1603_v49, 0.0  ;;  %v1167_v60 = vld [vmem:[#allocation2 + $0x3f0] sm:$0xff] }
 0x1f3   : > { %v1852_v56 = vmax.f32 %v1350_v10, 0.0  ;;  %1561 = vmatmul.mubr.bf16.gmra.mrb[112].mxu0 %v1097_v18 }
 0x1f4   : > { %v1916_v62 = vmax.f32 %v1606_v11, 0.0  ;;  %1817 = vmatmul.mubr.bf16.gmra.mrb[112].mxu1 %v1161_v7  ;;  %1568 = vmatprep.mubr.bf16.mxu0 %v1100_v19  ;;  %v1103_v11 = vld [vmem:[#allocation2 + $0x1f0] sm:$0xff] }
 0x1f5   : > { %1824 = vmatprep.mubr.bf16.mxu1 %v1164_v21  ;;  %v3120_v17 = vpack.c.bf16 %v1852_v56, %v1851_v27 }
 0x1f6   : > { %v3280_v20 = vpack.c.bf16 %v1916_v62, %v1915_v55  ;;  %v1354_v3 = vpop.f32.mrb[8].mxu0 }
 0x1f7   : > { %v1610_v13 = vpop.f32.mrb[8].mxu1  ;;  %3432 = vst [vmem:[%s3861_s20 + $0x8] sm:$0xff] %v3120_v17   ;;  %v1355_v41 = vadd.f32 %v4292_v61, %v1354_v3  ;;  %v1356_v22 = vpop.f32.mrb[9].mxu0 }
 0x1f8   : > { %3464 = vst [vmem:[%s3861_s20 + $0x108] sm:$0xff] %v3280_v20   ;;  %v1611_v53 = vadd.f32 %v4292_v61, %v1610_v13  ;;  %v1612_v57 = vpop.f32.mrb[9].mxu1  ;;  %v1357_v4 = vpop.f32.mrb[10].mxu0 }
 0x1f9   : > { %v1613_v8 = vpop.f32.mrb[10].mxu1  ;;  %v1358_v26 = vadd.f32 %v4292_v61, %v1357_v4  ;;  %v1359_v29 = vpop.f32.mrb[11].mxu0  ;;  %v1853_v37 = vmax.f32 %v1355_v41, 0.0 }
 0x1fa   : > { %v1614_v28 = vadd.f32 %v4292_v61, %v1613_v8  ;;  %v1615_v31 = vpop.f32.mrb[11].mxu1  ;;  %v1917_v38 = vmax.f32 %v1611_v53, 0.0 }
 0x1fb   : > { %v1854_v40 = vmax.f32 %v1358_v26, 0.0  ;;  %1569 = vmatmul.mubr.bf16.gmra.mrb[116].mxu0 %v1099_v23 }
 0x1fc   : > { %v1918_v42 = vmax.f32 %v1614_v28, 0.0  ;;  %1825 = vmatmul.mubr.bf16.gmra.mrb[116].mxu1 %v1163_v24  ;;  %1576 = vmatprep.mubr.bf16.mxu0 %v1102_v32 }
 0x1fd   : > { %1832 = vmatprep.mubr.bf16.mxu1 %v1166_v33  ;;  %v3125_v44 = vpack.c.bf16 %v1854_v40, %v1853_v37 }
 0x1fe   : > { %v3285_v46 = vpack.c.bf16 %v1918_v42, %v1917_v38  ;;  %v1362_v47 = vpop.f32.mrb[12].mxu0 }
 0x1ff   : > { %v1618_v51 = vpop.f32.mrb[12].mxu1  ;;  %3433 = vst [vmem:[%s3861_s20 + $0x10] sm:$0xff] %v3125_v44   ;;  %v1363_v52 = vadd.f32 %v4292_v61, %v1362_v47  ;;  %v1364_v12 = vpop.f32.mrb[13].mxu0 }
 0x200   : > { %3465 = vst [vmem:[%s3861_s20 + $0x110] sm:$0xff] %v3285_v46   ;;  %v1619_v59 = vadd.f32 %v4292_v61, %v1618_v51  ;;  %v1620_v58 = vpop.f32.mrb[13].mxu1  ;;  %v1365_v9 = vpop.f32.mrb[14].mxu0 }
 0x201   : > { %v1621_v45 = vpop.f32.mrb[14].mxu1  ;;  %v1366_v5 = vadd.f32 %v4292_v61, %v1365_v9  ;;  %v1367_v30 = vpop.f32.mrb[15].mxu0  ;;  %v1855_v39 = vmax.f32 %v1363_v52, 0.0 }
 0x202   : > { %v1622_v25 = vadd.f32 %v4292_v61, %v1621_v45  ;;  %v1623_v34 = vpop.f32.mrb[15].mxu1  ;;  %v1919_v43 = vmax.f32 %v1619_v59, 0.0 }
 0x203   : > { %v1856_v50 = vmax.f32 %v1366_v5, 0.0  ;;  %1577 = vmatmul.mubr.bf16.gmra.mrb[120].mxu0 %v1101_v48 }
 0x204   : > { %v1920_v14 = vmax.f32 %v1622_v25, 0.0  ;;  %1833 = vmatmul.mubr.bf16.gmra.mrb[120].mxu1 %v1165_v54  ;;  %1584 = vmatprep.mubr.bf16.mxu0 %v1104_v35 }
 0x205   : > { %1840 = vmatprep.mubr.bf16.mxu1 %v1168_v36  ;;  %v3130_v1 = vpack.c.bf16 %v1856_v50, %v1855_v39 }
 0x206   : > { %v3290_v63 = vpack.c.bf16 %v1920_v14, %v1919_v43  ;;  %v1370_v49 = vpop.f32.mrb[16].mxu0 }
 0x207   : > { %v1626_v2 = vpop.f32.mrb[16].mxu1  ;;  %3434 = vst [vmem:[%s3861_s20 + $0x18] sm:$0xff] %v3130_v1   ;;  %v1371_v6 = vadd.f32 %v4292_v61, %v1370_v49  ;;  %v1372_v15 = vpop.f32.mrb[17].mxu0 }
 0x208   : > { %3466 = vst [vmem:[%s3861_s20 + $0x118] sm:$0xff] %v3290_v63   ;;  %v1627_v0 = vadd.f32 %v4292_v61, %v1626_v2  ;;  %v1628_v18 = vpop.f32.mrb[17].mxu1  ;;  %v1373_v7 = vpop.f32.mrb[18].mxu0 }
 0x209   : > { %v1629_v10 = vpop.f32.mrb[18].mxu1  ;;  %v1374_v16 = vadd.f32 %v4292_v61, %v1373_v7  ;;  %v1375_v21 = vpop.f32.mrb[19].mxu0  ;;  %v1857_v55 = vmax.f32 %v1371_v6, 0.0 }
 0x20a   : > { %v1630_v19 = vadd.f32 %v4292_v61, %v1629_v10  ;;  %v1631_v27 = vpop.f32.mrb[19].mxu1  ;;  %v1921_v56 = vmax.f32 %v1627_v0, 0.0 }
 0x20b   : > { %v1858_v62 = vmax.f32 %v1374_v16, 0.0  ;;  %1585 = vmatmul.mubr.bf16.gmra.mrb[124].mxu0 %v1103_v11 }
 0x20c   : > { %v1922_v17 = vmax.f32 %v1630_v19, 0.0  ;;  %1841 = vmatmul.mubr.bf16.gmra.mrb[124].mxu1 %v1167_v60 }
 0x20d   : > { %v3135_v20 = vpack.c.bf16 %v1858_v62, %v1857_v55 }
 0x20e   : > { %v3295_v3 = vpack.c.bf16 %v1922_v17, %v1921_v56  ;;  %v1378_v13 = vpop.f32.mrb[20].mxu0 }
 0x20f   : > { %v1634_v41 = vpop.f32.mrb[20].mxu1  ;;  %3435 = vst [vmem:[%s3861_s20 + $0x20] sm:$0xff] %v3135_v20   ;;  %v1379_v53 = vadd.f32 %v4292_v61, %v1378_v13  ;;  %v1380_v57 = vpop.f32.mrb[21].mxu0 }
 0x210   : > { %3467 = vst [vmem:[%s3861_s20 + $0x120] sm:$0xff] %v3295_v3   ;;  %v1635_v22 = vadd.f32 %v4292_v61, %v1634_v41  ;;  %v1636_v4 = vpop.f32.mrb[21].mxu1  ;;  %v1381_v8 = vpop.f32.mrb[22].mxu0 }
 0x211   : > { %v1637_v23 = vpop.f32.mrb[22].mxu1  ;;  %v1382_v24 = vadd.f32 %v4292_v61, %v1381_v8  ;;  %v1383_v28 = vpop.f32.mrb[23].mxu0  ;;  %v1859_v31 = vmax.f32 %v1379_v53, 0.0 }
 0x212   : > { %v1638_v26 = vadd.f32 %v4292_v61, %v1637_v23  ;;  %v1639_v29 = vpop.f32.mrb[23].mxu1  ;;  %v1923_v32 = vmax.f32 %v1635_v22, 0.0 }
 0x213   : > { %v1860_v33 = vmax.f32 %v1382_v24, 0.0 }
 0x214   : > { %v1924_v37 = vmax.f32 %v1638_v26, 0.0 }
 0x215   : > { %v3140_v38 = vpack.c.bf16 %v1860_v33, %v1859_v31 }
 0x216   : > { %v3300_v40 = vpack.c.bf16 %v1924_v37, %v1923_v32  ;;  %v1386_v42 = vpop.f32.mrb[24].mxu0 }
 0x217   : > { %v1642_v44 = vpop.f32.mrb[24].mxu1  ;;  %3436 = vst [vmem:[%s3861_s20 + $0x28] sm:$0xff] %v3140_v38   ;;  %v1387_v46 = vadd.f32 %v4292_v61, %v1386_v42  ;;  %v1388_v51 = vpop.f32.mrb[25].mxu0 }
 0x218   : > { %3468 = vst [vmem:[%s3861_s20 + $0x128] sm:$0xff] %v3300_v40   ;;  %v1643_v47 = vadd.f32 %v4292_v61, %v1642_v44  ;;  %v1644_v52 = vpop.f32.mrb[25].mxu1  ;;  %v1389_v59 = vpop.f32.mrb[26].mxu0 }
 0x219   : > { %v1645_v12 = vpop.f32.mrb[26].mxu1  ;;  %v1390_v58 = vadd.f32 %v4292_v61, %v1389_v59  ;;  %v1391_v45 = vpop.f32.mrb[27].mxu0  ;;  %v1861_v54 = vmax.f32 %v1387_v46, 0.0 }
 0x21a   : > { %v1646_v9 = vadd.f32 %v4292_v61, %v1645_v12  ;;  %v1647_v48 = vpop.f32.mrb[27].mxu1  ;;  %v1925_v5 = vmax.f32 %v1643_v47, 0.0 }
 0x21b   : > { %v1862_v25 = vmax.f32 %v1390_v58, 0.0 }
 0x21c   : > { %v1926_v30 = vmax.f32 %v1646_v9, 0.0 }
 0x21d   : > { %v3145_v34 = vpack.c.bf16 %v1862_v25, %v1861_v54 }
 0x21e   : > { %v3305_v35 = vpack.c.bf16 %v1926_v30, %v1925_v5  ;;  %v1394_v36 = vpop.f32.mrb[28].mxu0 }
 0x21f   : > { %v1650_v39 = vpop.f32.mrb[28].mxu1  ;;  %3437 = vst [vmem:[%s3861_s20 + $0x30] sm:$0xff] %v3145_v34   ;;  %v1395_v43 = vadd.f32 %v4292_v61, %v1394_v36  ;;  %v1396_v14 = vpop.f32.mrb[29].mxu0 }
 0x220   : > { %3469 = vst [vmem:[%s3861_s20 + $0x130] sm:$0xff] %v3305_v35   ;;  %v1651_v50 = vadd.f32 %v4292_v61, %v1650_v39  ;;  %v1652_v1 = vpop.f32.mrb[29].mxu1  ;;  %v1397_v63 = vpop.f32.mrb[30].mxu0 }
 0x221   : > { %v1653_v49 = vpop.f32.mrb[30].mxu1  ;;  %v1398_v2 = vadd.f32 %v4292_v61, %v1397_v63  ;;  %v1399_v0 = vpop.f32.mrb[31].mxu0  ;;  %v1863_v18 = vmax.f32 %v1395_v43, 0.0 }
 0x222   : > { %v1654_v6 = vadd.f32 %v4292_v61, %v1653_v49  ;;  %v1655_v15 = vpop.f32.mrb[31].mxu1  ;;  %v1927_v7 = vmax.f32 %v1651_v50, 0.0 }
 0x223   : > { %v1864_v10 = vmax.f32 %v1398_v2, 0.0 }
 0x224   : > { %v1928_v11 = vmax.f32 %v1654_v6, 0.0 }
 0x225   : > { %v3150_v60 = vpack.c.bf16 %v1864_v10, %v1863_v18 }
 0x226   : > { %v3310_v16 = vpack.c.bf16 %v1928_v11, %v1927_v7  ;;  %v1402_v19 = vpop.f32.mrb[32].mxu0 }
 0x227   : > { %v1658_v21 = vpop.f32.mrb[32].mxu1  ;;  %3438 = vst [vmem:[%s3861_s20 + $0x38] sm:$0xff] %v3150_v60   ;;  %v1403_v27 = vadd.f32 %v4292_v61, %v1402_v19  ;;  %v1404_v56 = vpop.f32.mrb[33].mxu0 }
 0x228   : > { %3470 = vst [vmem:[%s3861_s20 + $0x138] sm:$0xff] %v3310_v16   ;;  %v1659_v55 = vadd.f32 %v4292_v61, %v1658_v21  ;;  %v1660_v62 = vpop.f32.mrb[33].mxu1  ;;  %v1405_v17 = vpop.f32.mrb[34].mxu0 }
 0x229   : > { %v1661_v20 = vpop.f32.mrb[34].mxu1  ;;  %v1406_v3 = vadd.f32 %v4292_v61, %v1405_v17  ;;  %v1407_v41 = vpop.f32.mrb[35].mxu0  ;;  %v1865_v22 = vmax.f32 %v1403_v27, 0.0 }
 0x22a   : > { %v1662_v13 = vadd.f32 %v4292_v61, %v1661_v20  ;;  %v1663_v53 = vpop.f32.mrb[35].mxu1  ;;  %v1929_v57 = vmax.f32 %v1659_v55, 0.0 }
 0x22b   : > { %v1866_v4 = vmax.f32 %v1406_v3, 0.0 }
 0x22c   : > { %v1930_v8 = vmax.f32 %v1662_v13, 0.0 }
 0x22d   : > { %v3155_v23 = vpack.c.bf16 %v1866_v4, %v1865_v22 }
 0x22e   : > { %v3315_v24 = vpack.c.bf16 %v1930_v8, %v1929_v57  ;;  %v1410_v26 = vpop.f32.mrb[36].mxu0 }
 0x22f   : > { %v1666_v28 = vpop.f32.mrb[36].mxu1  ;;  %3439 = vst [vmem:[%s3861_s20 + $0x40] sm:$0xff] %v3155_v23   ;;  %v1411_v29 = vadd.f32 %v4292_v61, %v1410_v26  ;;  %v1412_v32 = vpop.f32.mrb[37].mxu0 }
 0x230   : > { %3471 = vst [vmem:[%s3861_s20 + $0x140] sm:$0xff] %v3315_v24   ;;  %v1667_v31 = vadd.f32 %v4292_v61, %v1666_v28  ;;  %v1668_v33 = vpop.f32.mrb[37].mxu1  ;;  %v1413_v37 = vpop.f32.mrb[38].mxu0 }
 0x231   : > { %v1669_v38 = vpop.f32.mrb[38].mxu1  ;;  %v1414_v40 = vadd.f32 %v4292_v61, %v1413_v37  ;;  %v1415_v44 = vpop.f32.mrb[39].mxu0  ;;  %v1867_v47 = vmax.f32 %v1411_v29, 0.0 }
 0x232   : > { %v1670_v42 = vadd.f32 %v4292_v61, %v1669_v38  ;;  %v1671_v46 = vpop.f32.mrb[39].mxu1  ;;  %v1931_v51 = vmax.f32 %v1667_v31, 0.0 }
 0x233   : > { %v1868_v52 = vmax.f32 %v1414_v40, 0.0 }
 0x234   : > { %v1932_v59 = vmax.f32 %v1670_v42, 0.0 }
 0x235   : > { %v3160_v12 = vpack.c.bf16 %v1868_v52, %v1867_v47 }
 0x236   : > { %v3320_v58 = vpack.c.bf16 %v1932_v59, %v1931_v51  ;;  %v1418_v9 = vpop.f32.mrb[40].mxu0 }
 0x237   : > { %v1674_v45 = vpop.f32.mrb[40].mxu1  ;;  %3440 = vst [vmem:[%s3861_s20 + $0x48] sm:$0xff] %v3160_v12   ;;  %v1419_v48 = vadd.f32 %v4292_v61, %v1418_v9  ;;  %v1420_v5 = vpop.f32.mrb[41].mxu0 }
 0x238   : > { %3472 = vst [vmem:[%s3861_s20 + $0x148] sm:$0xff] %v3320_v58   ;;  %v1675_v54 = vadd.f32 %v4292_v61, %v1674_v45  ;;  %v1676_v25 = vpop.f32.mrb[41].mxu1  ;;  %v1421_v30 = vpop.f32.mrb[42].mxu0 }
 0x239   : > { %v1677_v34 = vpop.f32.mrb[42].mxu1  ;;  %v1422_v35 = vadd.f32 %v4292_v61, %v1421_v30  ;;  %v1423_v39 = vpop.f32.mrb[43].mxu0  ;;  %v1869_v50 = vmax.f32 %v1419_v48, 0.0 }
 0x23a   : > { %v1678_v36 = vadd.f32 %v4292_v61, %v1677_v34  ;;  %v1679_v43 = vpop.f32.mrb[43].mxu1  ;;  %v1933_v14 = vmax.f32 %v1675_v54, 0.0 }
 0x23b   : > { %v1870_v1 = vmax.f32 %v1422_v35, 0.0 }
 0x23c   : > { %v1934_v63 = vmax.f32 %v1678_v36, 0.0 }
 0x23d   : > { %v3165_v49 = vpack.c.bf16 %v1870_v1, %v1869_v50 }
 0x23e   : > { %v3325_v2 = vpack.c.bf16 %v1934_v63, %v1933_v14  ;;  %v1426_v6 = vpop.f32.mrb[44].mxu0 }
 0x23f   : > { %v1682_v0 = vpop.f32.mrb[44].mxu1  ;;  %3441 = vst [vmem:[%s3861_s20 + $0x50] sm:$0xff] %v3165_v49   ;;  %v1427_v15 = vadd.f32 %v4292_v61, %v1426_v6  ;;  %v1428_v7 = vpop.f32.mrb[45].mxu0 }
 0x240   : > { %3473 = vst [vmem:[%s3861_s20 + $0x150] sm:$0xff] %v3325_v2   ;;  %v1683_v18 = vadd.f32 %v4292_v61, %v1682_v0  ;;  %v1684_v10 = vpop.f32.mrb[45].mxu1  ;;  %v1429_v11 = vpop.f32.mrb[46].mxu0 }
 0x241   : > { %v1685_v60 = vpop.f32.mrb[46].mxu1  ;;  %v1430_v16 = vadd.f32 %v4292_v61, %v1429_v11  ;;  %v1431_v21 = vpop.f32.mrb[47].mxu0  ;;  %v1871_v55 = vmax.f32 %v1427_v15, 0.0 }
 0x242   : > { %v1686_v19 = vadd.f32 %v4292_v61, %v1685_v60  ;;  %v1687_v27 = vpop.f32.mrb[47].mxu1  ;;  %v1935_v56 = vmax.f32 %v1683_v18, 0.0 }
 0x243   : > { %v1872_v62 = vmax.f32 %v1430_v16, 0.0 }
 0x244   : > { %v1936_v17 = vmax.f32 %v1686_v19, 0.0 }
 0x245   : > { %v3170_v20 = vpack.c.bf16 %v1872_v62, %v1871_v55 }
 0x246   : > { %v3330_v3 = vpack.c.bf16 %v1936_v17, %v1935_v56  ;;  %v1434_v13 = vpop.f32.mrb[48].mxu0 }
 0x247   : > { %v1690_v41 = vpop.f32.mrb[48].mxu1  ;;  %3442 = vst [vmem:[%s3861_s20 + $0x58] sm:$0xff] %v3170_v20   ;;  %v1435_v53 = vadd.f32 %v4292_v61, %v1434_v13  ;;  %v1436_v57 = vpop.f32.mrb[49].mxu0 }
 0x248   : > { %3474 = vst [vmem:[%s3861_s20 + $0x158] sm:$0xff] %v3330_v3   ;;  %v1691_v22 = vadd.f32 %v4292_v61, %v1690_v41  ;;  %v1692_v4 = vpop.f32.mrb[49].mxu1  ;;  %v1437_v8 = vpop.f32.mrb[50].mxu0 }
 0x249   : > { %v1693_v23 = vpop.f32.mrb[50].mxu1  ;;  %v1438_v24 = vadd.f32 %v4292_v61, %v1437_v8  ;;  %v1439_v28 = vpop.f32.mrb[51].mxu0  ;;  %v1873_v31 = vmax.f32 %v1435_v53, 0.0 }
 0x24a   : > { %v1694_v26 = vadd.f32 %v4292_v61, %v1693_v23  ;;  %v1695_v29 = vpop.f32.mrb[51].mxu1  ;;  %v1937_v32 = vmax.f32 %v1691_v22, 0.0 }
 0x24b   : > { %v1874_v33 = vmax.f32 %v1438_v24, 0.0 }
 0x24c   : > { %v1938_v37 = vmax.f32 %v1694_v26, 0.0 }
 0x24d   : > { %v3175_v38 = vpack.c.bf16 %v1874_v33, %v1873_v31 }
 0x24e   : > { %v3335_v40 = vpack.c.bf16 %v1938_v37, %v1937_v32  ;;  %v1442_v42 = vpop.f32.mrb[52].mxu0 }
 0x24f   : > { %v1698_v44 = vpop.f32.mrb[52].mxu1  ;;  %3443 = vst [vmem:[%s3861_s20 + $0x60] sm:$0xff] %v3175_v38   ;;  %v1443_v46 = vadd.f32 %v4292_v61, %v1442_v42  ;;  %v1444_v51 = vpop.f32.mrb[53].mxu0 }
 0x250   : > { %3475 = vst [vmem:[%s3861_s20 + $0x160] sm:$0xff] %v3335_v40   ;;  %v1699_v47 = vadd.f32 %v4292_v61, %v1698_v44  ;;  %v1700_v52 = vpop.f32.mrb[53].mxu1  ;;  %v1445_v59 = vpop.f32.mrb[54].mxu0 }
 0x251   : > { %v1701_v12 = vpop.f32.mrb[54].mxu1  ;;  %v1446_v58 = vadd.f32 %v4292_v61, %v1445_v59  ;;  %v1447_v45 = vpop.f32.mrb[55].mxu0  ;;  %v1875_v54 = vmax.f32 %v1443_v46, 0.0 }
 0x252   : > { %v1702_v9 = vadd.f32 %v4292_v61, %v1701_v12  ;;  %v1703_v48 = vpop.f32.mrb[55].mxu1  ;;  %v1939_v5 = vmax.f32 %v1699_v47, 0.0 }
 0x253   : > { %v1876_v25 = vmax.f32 %v1446_v58, 0.0 }
 0x254   : > { %v1940_v30 = vmax.f32 %v1702_v9, 0.0 }
 0x255   : > { %v3180_v34 = vpack.c.bf16 %v1876_v25, %v1875_v54 }
 0x256   : > { %v3340_v35 = vpack.c.bf16 %v1940_v30, %v1939_v5  ;;  %v1450_v36 = vpop.f32.mrb[56].mxu0 }
 0x257   : > { %v1706_v39 = vpop.f32.mrb[56].mxu1  ;;  %3444 = vst [vmem:[%s3861_s20 + $0x68] sm:$0xff] %v3180_v34   ;;  %v1451_v43 = vadd.f32 %v4292_v61, %v1450_v36  ;;  %v1452_v14 = vpop.f32.mrb[57].mxu0 }
 0x258   : > { %3476 = vst [vmem:[%s3861_s20 + $0x168] sm:$0xff] %v3340_v35   ;;  %v1707_v50 = vadd.f32 %v4292_v61, %v1706_v39  ;;  %v1708_v1 = vpop.f32.mrb[57].mxu1  ;;  %v1453_v63 = vpop.f32.mrb[58].mxu0 }
 0x259   : > { %v1709_v49 = vpop.f32.mrb[58].mxu1  ;;  %v1454_v2 = vadd.f32 %v4292_v61, %v1453_v63  ;;  %v1455_v0 = vpop.f32.mrb[59].mxu0  ;;  %v1877_v18 = vmax.f32 %v1451_v43, 0.0 }
 0x25a   : > { %v1710_v6 = vadd.f32 %v4292_v61, %v1709_v49  ;;  %v1711_v15 = vpop.f32.mrb[59].mxu1  ;;  %v1941_v7 = vmax.f32 %v1707_v50, 0.0 }
 0x25b   : > { %v1878_v10 = vmax.f32 %v1454_v2, 0.0 }
 0x25c   : > { %v1942_v11 = vmax.f32 %v1710_v6, 0.0 }
 0x25d   : > { %v3185_v60 = vpack.c.bf16 %v1878_v10, %v1877_v18 }
 0x25e   : > { %v3345_v16 = vpack.c.bf16 %v1942_v11, %v1941_v7  ;;  %v1458_v19 = vpop.f32.mrb[60].mxu0 }
 0x25f   : > { %v1714_v21 = vpop.f32.mrb[60].mxu1  ;;  %3445 = vst [vmem:[%s3861_s20 + $0x70] sm:$0xff] %v3185_v60   ;;  %v1459_v27 = vadd.f32 %v4292_v61, %v1458_v19  ;;  %v1460_v56 = vpop.f32.mrb[61].mxu0 }
 0x260   : > { %3477 = vst [vmem:[%s3861_s20 + $0x170] sm:$0xff] %v3345_v16   ;;  %v1715_v55 = vadd.f32 %v4292_v61, %v1714_v21  ;;  %v1716_v62 = vpop.f32.mrb[61].mxu1  ;;  %v1461_v17 = vpop.f32.mrb[62].mxu0 }
 0x261   : > { %v1717_v20 = vpop.f32.mrb[62].mxu1  ;;  %v1462_v3 = vadd.f32 %v4292_v61, %v1461_v17  ;;  %v1463_v41 = vpop.f32.mrb[63].mxu0  ;;  %v1879_v22 = vmax.f32 %v1459_v27, 0.0 }
 0x262   : > { %v1718_v13 = vadd.f32 %v4292_v61, %v1717_v20  ;;  %v1719_v53 = vpop.f32.mrb[63].mxu1  ;;  %v1943_v57 = vmax.f32 %v1715_v55, 0.0 }
 0x263   : > { %v1880_v4 = vmax.f32 %v1462_v3, 0.0 }
 0x264   : > { %v1944_v8 = vmax.f32 %v1718_v13, 0.0 }
 0x265   : > { %v3190_v23 = vpack.c.bf16 %v1880_v4, %v1879_v22 }
 0x266   : > { %v3350_v24 = vpack.c.bf16 %v1944_v8, %v1943_v57  ;;  %v1466_v26 = vpop.f32.mrb[64].mxu0 }
 0x267   : > { %v1722_v28 = vpop.f32.mrb[64].mxu1  ;;  %3446 = vst [vmem:[%s3861_s20 + $0x78] sm:$0xff] %v3190_v23   ;;  %v1467_v29 = vadd.f32 %v4292_v61, %v1466_v26  ;;  %v1468_v32 = vpop.f32.mrb[65].mxu0 }
 0x268   : > { %3478 = vst [vmem:[%s3861_s20 + $0x178] sm:$0xff] %v3350_v24   ;;  %v1723_v31 = vadd.f32 %v4292_v61, %v1722_v28  ;;  %v1724_v33 = vpop.f32.mrb[65].mxu1  ;;  %v1469_v37 = vpop.f32.mrb[66].mxu0 }
 0x269   : > { %v1725_v38 = vpop.f32.mrb[66].mxu1  ;;  %v1470_v40 = vadd.f32 %v4292_v61, %v1469_v37  ;;  %v1471_v44 = vpop.f32.mrb[67].mxu0  ;;  %v1881_v47 = vmax.f32 %v1467_v29, 0.0 }
 0x26a   : > { %v1726_v42 = vadd.f32 %v4292_v61, %v1725_v38  ;;  %v1727_v46 = vpop.f32.mrb[67].mxu1  ;;  %v1945_v51 = vmax.f32 %v1723_v31, 0.0 }
 0x26b   : > { %v1882_v52 = vmax.f32 %v1470_v40, 0.0 }
 0x26c   : > { %v1946_v59 = vmax.f32 %v1726_v42, 0.0 }
 0x26d   : > { %v3195_v12 = vpack.c.bf16 %v1882_v52, %v1881_v47 }
 0x26e   : > { %v3355_v58 = vpack.c.bf16 %v1946_v59, %v1945_v51  ;;  %v1474_v9 = vpop.f32.mrb[68].mxu0 }
 0x26f   : > { %v1730_v45 = vpop.f32.mrb[68].mxu1  ;;  %3447 = vst [vmem:[%s3861_s20 + $0x80] sm:$0xff] %v3195_v12   ;;  %v1475_v48 = vadd.f32 %v4292_v61, %v1474_v9  ;;  %v1476_v5 = vpop.f32.mrb[69].mxu0 }
 0x270   : > { %3479 = vst [vmem:[%s3861_s20 + $0x180] sm:$0xff] %v3355_v58   ;;  %v1731_v54 = vadd.f32 %v4292_v61, %v1730_v45  ;;  %v1732_v25 = vpop.f32.mrb[69].mxu1  ;;  %v1477_v30 = vpop.f32.mrb[70].mxu0 }
 0x271   : > { %v1733_v34 = vpop.f32.mrb[70].mxu1  ;;  %v1478_v35 = vadd.f32 %v4292_v61, %v1477_v30  ;;  %v1479_v39 = vpop.f32.mrb[71].mxu0  ;;  %v1883_v50 = vmax.f32 %v1475_v48, 0.0 }
 0x272   : > { %v1734_v36 = vadd.f32 %v4292_v61, %v1733_v34  ;;  %v1735_v43 = vpop.f32.mrb[71].mxu1  ;;  %v1947_v14 = vmax.f32 %v1731_v54, 0.0 }
 0x273   : > { %v1884_v1 = vmax.f32 %v1478_v35, 0.0 }
 0x274   : > { %v1948_v63 = vmax.f32 %v1734_v36, 0.0 }
 0x275   : > { %v3200_v49 = vpack.c.bf16 %v1884_v1, %v1883_v50 }
 0x276   : > { %v3360_v2 = vpack.c.bf16 %v1948_v63, %v1947_v14  ;;  %v1482_v6 = vpop.f32.mrb[72].mxu0 }
 0x277   : > { %v1738_v0 = vpop.f32.mrb[72].mxu1  ;;  %3448 = vst [vmem:[%s3861_s20 + $0x88] sm:$0xff] %v3200_v49   ;;  %v1483_v15 = vadd.f32 %v4292_v61, %v1482_v6  ;;  %v1484_v7 = vpop.f32.mrb[73].mxu0 }
 0x278   : > { %3480 = vst [vmem:[%s3861_s20 + $0x188] sm:$0xff] %v3360_v2   ;;  %v1739_v18 = vadd.f32 %v4292_v61, %v1738_v0  ;;  %v1740_v10 = vpop.f32.mrb[73].mxu1  ;;  %v1485_v11 = vpop.f32.mrb[74].mxu0 }
 0x279   : > { %v1741_v60 = vpop.f32.mrb[74].mxu1  ;;  %v1486_v16 = vadd.f32 %v4292_v61, %v1485_v11  ;;  %v1487_v21 = vpop.f32.mrb[75].mxu0  ;;  %v1885_v55 = vmax.f32 %v1483_v15, 0.0 }
 0x27a   : > { %v1742_v19 = vadd.f32 %v4292_v61, %v1741_v60  ;;  %v1743_v27 = vpop.f32.mrb[75].mxu1  ;;  %v1949_v56 = vmax.f32 %v1739_v18, 0.0 }
 0x27b   : > { %v1886_v62 = vmax.f32 %v1486_v16, 0.0 }
 0x27c   : > { %v1950_v17 = vmax.f32 %v1742_v19, 0.0 }
 0x27d   : > { %v3205_v20 = vpack.c.bf16 %v1886_v62, %v1885_v55 }
 0x27e   : > { %v3365_v3 = vpack.c.bf16 %v1950_v17, %v1949_v56  ;;  %v1490_v13 = vpop.f32.mrb[76].mxu0 }
 0x27f   : > { %v1746_v41 = vpop.f32.mrb[76].mxu1  ;;  %3449 = vst [vmem:[%s3861_s20 + $0x90] sm:$0xff] %v3205_v20   ;;  %v1491_v53 = vadd.f32 %v4292_v61, %v1490_v13  ;;  %v1492_v57 = vpop.f32.mrb[77].mxu0 }
 0x280   : > { %3481 = vst [vmem:[%s3861_s20 + $0x190] sm:$0xff] %v3365_v3   ;;  %v1747_v22 = vadd.f32 %v4292_v61, %v1746_v41  ;;  %v1748_v4 = vpop.f32.mrb[77].mxu1  ;;  %v1493_v8 = vpop.f32.mrb[78].mxu0 }
 0x281   : > { %v1749_v23 = vpop.f32.mrb[78].mxu1  ;;  %v1494_v24 = vadd.f32 %v4292_v61, %v1493_v8  ;;  %v1495_v28 = vpop.f32.mrb[79].mxu0  ;;  %v1887_v31 = vmax.f32 %v1491_v53, 0.0 }
 0x282   : > { %v1750_v26 = vadd.f32 %v4292_v61, %v1749_v23  ;;  %v1751_v29 = vpop.f32.mrb[79].mxu1  ;;  %v1951_v32 = vmax.f32 %v1747_v22, 0.0 }
 0x283   : > { %v1888_v33 = vmax.f32 %v1494_v24, 0.0 }
 0x284   : > { %v1952_v37 = vmax.f32 %v1750_v26, 0.0 }
 0x285   : > { %v3210_v38 = vpack.c.bf16 %v1888_v33, %v1887_v31 }
 0x286   : > { %v3370_v40 = vpack.c.bf16 %v1952_v37, %v1951_v32  ;;  %v1498_v42 = vpop.f32.mrb[80].mxu0 }
 0x287   : > { %v1754_v44 = vpop.f32.mrb[80].mxu1  ;;  %3450 = vst [vmem:[%s3861_s20 + $0x98] sm:$0xff] %v3210_v38   ;;  %v1499_v46 = vadd.f32 %v4292_v61, %v1498_v42  ;;  %v1500_v51 = vpop.f32.mrb[81].mxu0 }
 0x288   : > { %3482 = vst [vmem:[%s3861_s20 + $0x198] sm:$0xff] %v3370_v40   ;;  %v1755_v47 = vadd.f32 %v4292_v61, %v1754_v44  ;;  %v1756_v52 = vpop.f32.mrb[81].mxu1  ;;  %v1501_v59 = vpop.f32.mrb[82].mxu0 }
 0x289   : > { %v1757_v12 = vpop.f32.mrb[82].mxu1  ;;  %v1502_v58 = vadd.f32 %v4292_v61, %v1501_v59  ;;  %v1503_v45 = vpop.f32.mrb[83].mxu0  ;;  %v1889_v54 = vmax.f32 %v1499_v46, 0.0 }
 0x28a   : > { %v1758_v9 = vadd.f32 %v4292_v61, %v1757_v12  ;;  %v1759_v48 = vpop.f32.mrb[83].mxu1  ;;  %v1953_v5 = vmax.f32 %v1755_v47, 0.0 }
 0x28b   : > { %v1890_v25 = vmax.f32 %v1502_v58, 0.0  ;;  %v4441_v48 = vld [vmem:[%s4502_s2] ss:$0 sm:$0xff] }
 0x28c   : > { %v1954_v30 = vmax.f32 %v1758_v9, 0.0 }
 0x28d   : > { %v3215_v34 = vpack.c.bf16 %v1890_v25, %v1889_v54 }
 0x28e   : > { %v3375_v35 = vpack.c.bf16 %v1954_v30, %v1953_v5  ;;  %v1506_v36 = vpop.f32.mrb[84].mxu0 }
 0x28f   : > { %v1762_v39 = vpop.f32.mrb[84].mxu1  ;;  %3451 = vst [vmem:[%s3861_s20 + $0xa0] sm:$0xff] %v3215_v34   ;;  %v1507_v43 = vadd.f32 %v4292_v61, %v1506_v36  ;;  %v1508_v14 = vpop.f32.mrb[85].mxu0 }
 0x290   : > { %3483 = vst [vmem:[%s3861_s20 + $0x1a0] sm:$0xff] %v3375_v35   ;;  %v1763_v50 = vadd.f32 %v4292_v61, %v1762_v39  ;;  %v1764_v1 = vpop.f32.mrb[85].mxu1  ;;  %v1509_v63 = vpop.f32.mrb[86].mxu0 }
 0x291   : > { %v1765_v49 = vpop.f32.mrb[86].mxu1  ;;  %v1510_v2 = vadd.f32 %v4292_v61, %v1509_v63  ;;  %v1511_v0 = vpop.f32.mrb[87].mxu0  ;;  %v1891_v18 = vmax.f32 %v1507_v43, 0.0 }
 0x292   : > { %v1766_v6 = vadd.f32 %v4292_v61, %v1765_v49  ;;  %v1767_v15 = vpop.f32.mrb[87].mxu1  ;;  %v1955_v7 = vmax.f32 %v1763_v50, 0.0 }
 0x293   : > { %v1892_v10 = vmax.f32 %v1510_v2, 0.0 }
 0x294   : > { %v1956_v11 = vmax.f32 %v1766_v6, 0.0 }
 0x295   : > { %v3220_v60 = vpack.c.bf16 %v1892_v10, %v1891_v18 }
 0x296   : > { %v3380_v16 = vpack.c.bf16 %v1956_v11, %v1955_v7  ;;  %v1514_v19 = vpop.f32.mrb[88].mxu0 }
 0x297   : > { %v1770_v21 = vpop.f32.mrb[88].mxu1  ;;  %3452 = vst [vmem:[%s3861_s20 + $0xa8] sm:$0xff] %v3220_v60   ;;  %v1515_v27 = vadd.f32 %v4292_v61, %v1514_v19  ;;  %v1516_v56 = vpop.f32.mrb[89].mxu0 }
 0x298   : > { %3484 = vst [vmem:[%s3861_s20 + $0x1a8] sm:$0xff] %v3380_v16   ;;  %v1771_v55 = vadd.f32 %v4292_v61, %v1770_v21  ;;  %v1772_v62 = vpop.f32.mrb[89].mxu1  ;;  %v1517_v17 = vpop.f32.mrb[90].mxu0 }
 0x299   : > { %v1773_v20 = vpop.f32.mrb[90].mxu1  ;;  %v1518_v3 = vadd.f32 %v4292_v61, %v1517_v17  ;;  %v1519_v41 = vpop.f32.mrb[91].mxu0  ;;  %v1893_v22 = vmax.f32 %v1515_v27, 0.0 }
 0x29a   : > { %v1774_v13 = vadd.f32 %v4292_v61, %v1773_v20  ;;  %v1775_v53 = vpop.f32.mrb[91].mxu1  ;;  %v1957_v57 = vmax.f32 %v1771_v55, 0.0 }
 0x29b   : > { %v1894_v4 = vmax.f32 %v1518_v3, 0.0 }
 0x29c   : > { %v1958_v8 = vmax.f32 %v1774_v13, 0.0 }
 0x29d   : > { %v3225_v23 = vpack.c.bf16 %v1894_v4, %v1893_v22 }
 0x29e   : > { %v3385_v24 = vpack.c.bf16 %v1958_v8, %v1957_v57  ;;  %v1522_v26 = vpop.f32.mrb[92].mxu0 }
 0x29f   : > { %v1778_v28 = vpop.f32.mrb[92].mxu1  ;;  %3453 = vst [vmem:[%s3861_s20 + $0xb0] sm:$0xff] %v3225_v23   ;;  %v1523_v29 = vadd.f32 %v4292_v61, %v1522_v26  ;;  %v1524_v32 = vpop.f32.mrb[93].mxu0 }
 0x2a0   : > { %3485 = vst [vmem:[%s3861_s20 + $0x1b0] sm:$0xff] %v3385_v24   ;;  %v1779_v31 = vadd.f32 %v4292_v61, %v1778_v28  ;;  %v1780_v33 = vpop.f32.mrb[93].mxu1  ;;  %v1525_v37 = vpop.f32.mrb[94].mxu0 }
 0x2a1   : > { %v1781_v38 = vpop.f32.mrb[94].mxu1  ;;  %v1526_v40 = vadd.f32 %v4292_v61, %v1525_v37  ;;  %v1527_v44 = vpop.f32.mrb[95].mxu0  ;;  %v1895_v47 = vmax.f32 %v1523_v29, 0.0 }
 0x2a2   : > { %v1782_v42 = vadd.f32 %v4292_v61, %v1781_v38  ;;  %v1783_v46 = vpop.f32.mrb[95].mxu1  ;;  %v1959_v51 = vmax.f32 %v1779_v31, 0.0 }
 0x2a3   : > { %v1896_v52 = vmax.f32 %v1526_v40, 0.0 }
 0x2a4   : > { %v1960_v59 = vmax.f32 %v1782_v42, 0.0 }
 0x2a5   : > { %v3230_v12 = vpack.c.bf16 %v1896_v52, %v1895_v47 }
 0x2a6   : > { %v3390_v58 = vpack.c.bf16 %v1960_v59, %v1959_v51  ;;  %v1530_v9 = vpop.f32.mrb[96].mxu0 }
 0x2a7   : > { %v1786_v45 = vpop.f32.mrb[96].mxu1  ;;  %3454 = vst [vmem:[%s3861_s20 + $0xb8] sm:$0xff] %v3230_v12   ;;  %v1531_v54 = vadd.f32 %v4441_v48, %v1530_v9  ;;  %v1532_v5 = vpop.f32.mrb[97].mxu0 }
 0x2a8   : > { %3486 = vst [vmem:[%s3861_s20 + $0x1b8] sm:$0xff] %v3390_v58   ;;  %v1787_v61 = vadd.f32 %v4441_v48, %v1786_v45  ;;  %v1788_v25 = vpop.f32.mrb[97].mxu1  ;;  %v1533_v30 = vpop.f32.mrb[98].mxu0 }
 0x2a9   : > { %v1789_v34 = vpop.f32.mrb[98].mxu1  ;;  %v1534_v35 = vadd.f32 %v4441_v48, %v1533_v30  ;;  %v1535_v39 = vpop.f32.mrb[99].mxu0  ;;  %v1897_v50 = vmax.f32 %v1531_v54, 0.0 }
 0x2aa   : > { %v1790_v36 = vadd.f32 %v4441_v48, %v1789_v34  ;;  %v1791_v43 = vpop.f32.mrb[99].mxu1  ;;  %v1961_v14 = vmax.f32 %v1787_v61, 0.0 }
 0x2ab   : > { %v1898_v1 = vmax.f32 %v1534_v35, 0.0 }
 0x2ac   : > { %v1962_v63 = vmax.f32 %v1790_v36, 0.0 }
 0x2ad   : > { %v3235_v49 = vpack.c.bf16 %v1898_v1, %v1897_v50 }
 0x2ae   : > { %v3395_v2 = vpack.c.bf16 %v1962_v63, %v1961_v14  ;;  %v1538_v6 = vpop.f32.mrb[100].mxu0 }
 0x2af   : > { %v1794_v0 = vpop.f32.mrb[100].mxu1  ;;  %3455 = vst [vmem:[%s3861_s20 + $0xc0] sm:$0xff] %v3235_v49   ;;  %v1539_v15 = vadd.f32 %v4441_v48, %v1538_v6  ;;  %v1540_v7 = vpop.f32.mrb[101].mxu0 }
 0x2b0   : > { %3487 = vst [vmem:[%s3861_s20 + $0x1c0] sm:$0xff] %v3395_v2   ;;  %v1795_v18 = vadd.f32 %v4441_v48, %v1794_v0  ;;  %v1796_v10 = vpop.f32.mrb[101].mxu1  ;;  %v1541_v11 = vpop.f32.mrb[102].mxu0 }
 0x2b1   : > { %v1797_v60 = vpop.f32.mrb[102].mxu1  ;;  %v1542_v16 = vadd.f32 %v4441_v48, %v1541_v11  ;;  %v1543_v21 = vpop.f32.mrb[103].mxu0  ;;  %v1899_v55 = vmax.f32 %v1539_v15, 0.0 }
 0x2b2   : > { %v1798_v19 = vadd.f32 %v4441_v48, %v1797_v60  ;;  %v1799_v27 = vpop.f32.mrb[103].mxu1  ;;  %v1963_v56 = vmax.f32 %v1795_v18, 0.0 }
 0x2b3   : > { %v1900_v62 = vmax.f32 %v1542_v16, 0.0 }
 0x2b4   : > { %v1964_v17 = vmax.f32 %v1798_v19, 0.0 }
 0x2b5   : > { %v3240_v20 = vpack.c.bf16 %v1900_v62, %v1899_v55 }
 0x2b6   : > { %v3400_v3 = vpack.c.bf16 %v1964_v17, %v1963_v56  ;;  %v1546_v13 = vpop.f32.mrb[104].mxu0 }
 0x2b7   : > { %v1802_v41 = vpop.f32.mrb[104].mxu1  ;;  %3456 = vst [vmem:[%s3861_s20 + $0xc8] sm:$0xff] %v3240_v20   ;;  %v1547_v53 = vadd.f32 %v4441_v48, %v1546_v13  ;;  %v1548_v57 = vpop.f32.mrb[105].mxu0 }
 0x2b8   : > { %3488 = vst [vmem:[%s3861_s20 + $0x1c8] sm:$0xff] %v3400_v3   ;;  %v1803_v22 = vadd.f32 %v4441_v48, %v1802_v41  ;;  %v1804_v4 = vpop.f32.mrb[105].mxu1  ;;  %v1549_v8 = vpop.f32.mrb[106].mxu0 }
 0x2b9   : > { %v1805_v23 = vpop.f32.mrb[106].mxu1  ;;  %v1550_v24 = vadd.f32 %v4441_v48, %v1549_v8  ;;  %v1551_v28 = vpop.f32.mrb[107].mxu0  ;;  %v1901_v31 = vmax.f32 %v1547_v53, 0.0 }
 0x2ba   : > { %v1806_v26 = vadd.f32 %v4441_v48, %v1805_v23  ;;  %v1807_v29 = vpop.f32.mrb[107].mxu1  ;;  %v1965_v32 = vmax.f32 %v1803_v22, 0.0 }
 0x2bb   : > { %v1902_v33 = vmax.f32 %v1550_v24, 0.0 }
 0x2bc   : > { %v1966_v37 = vmax.f32 %v1806_v26, 0.0 }
 0x2bd   : > { %v3245_v38 = vpack.c.bf16 %v1902_v33, %v1901_v31 }
 0x2be   : > { %v3405_v40 = vpack.c.bf16 %v1966_v37, %v1965_v32  ;;  %v1554_v42 = vpop.f32.mrb[108].mxu0 }
 0x2bf   : > { %v1810_v44 = vpop.f32.mrb[108].mxu1  ;;  %3457 = vst [vmem:[%s3861_s20 + $0xd0] sm:$0xff] %v3245_v38   ;;  %v1555_v46 = vadd.f32 %v4441_v48, %v1554_v42  ;;  %v1556_v51 = vpop.f32.mrb[109].mxu0 }
 0x2c0   : > { %3489 = vst [vmem:[%s3861_s20 + $0x1d0] sm:$0xff] %v3405_v40   ;;  %v1811_v47 = vadd.f32 %v4441_v48, %v1810_v44  ;;  %v1812_v52 = vpop.f32.mrb[109].mxu1  ;;  %v1557_v59 = vpop.f32.mrb[110].mxu0 }
 0x2c1   : > { %v1813_v12 = vpop.f32.mrb[110].mxu1  ;;  %v1558_v58 = vadd.f32 %v4441_v48, %v1557_v59  ;;  %v1559_v45 = vpop.f32.mrb[111].mxu0  ;;  %v1903_v61 = vmax.f32 %v1555_v46, 0.0 }
 0x2c2   : > { %v1814_v9 = vadd.f32 %v4441_v48, %v1813_v12  ;;  %v1815_v54 = vpop.f32.mrb[111].mxu1  ;;  %v1967_v5 = vmax.f32 %v1811_v47, 0.0 }
 0x2c3   : > { %v1904_v25 = vmax.f32 %v1558_v58, 0.0 }
 0x2c4   : > { %v1968_v30 = vmax.f32 %v1814_v9, 0.0 }
 0x2c5   : > { %v3250_v34 = vpack.c.bf16 %v1904_v25, %v1903_v61 }
 0x2c6   : > { %v3410_v35 = vpack.c.bf16 %v1968_v30, %v1967_v5  ;;  %v1562_v36 = vpop.f32.mrb[112].mxu0 }
 0x2c7   : > { %v1818_v39 = vpop.f32.mrb[112].mxu1  ;;  %3458 = vst [vmem:[%s3861_s20 + $0xd8] sm:$0xff] %v3250_v34   ;;  %v1563_v43 = vadd.f32 %v4441_v48, %v1562_v36  ;;  %v1564_v14 = vpop.f32.mrb[113].mxu0 }
 0x2c8   : > { %3490 = vst [vmem:[%s3861_s20 + $0x1d8] sm:$0xff] %v3410_v35   ;;  %v1819_v50 = vadd.f32 %v4441_v48, %v1818_v39  ;;  %v1820_v1 = vpop.f32.mrb[113].mxu1  ;;  %v1565_v63 = vpop.f32.mrb[114].mxu0 }
 0x2c9   : > { %v1821_v49 = vpop.f32.mrb[114].mxu1  ;;  %v1566_v2 = vadd.f32 %v4441_v48, %v1565_v63  ;;  %v1567_v0 = vpop.f32.mrb[115].mxu0  ;;  %v1905_v18 = vmax.f32 %v1563_v43, 0.0 }
 0x2ca   : > { %v1822_v6 = vadd.f32 %v4441_v48, %v1821_v49  ;;  %v1823_v15 = vpop.f32.mrb[115].mxu1  ;;  %v1969_v7 = vmax.f32 %v1819_v50, 0.0 }
 0x2cb   : > { %v1906_v10 = vmax.f32 %v1566_v2, 0.0 }
 0x2cc   : > { %v1970_v11 = vmax.f32 %v1822_v6, 0.0 }
 0x2cd   : > { %v3255_v60 = vpack.c.bf16 %v1906_v10, %v1905_v18 }
 0x2ce   : > { %v3415_v16 = vpack.c.bf16 %v1970_v11, %v1969_v7  ;;  %v1570_v19 = vpop.f32.mrb[116].mxu0 }
 0x2cf   : > { %v1826_v21 = vpop.f32.mrb[116].mxu1  ;;  %3459 = vst [vmem:[%s3861_s20 + $0xe0] sm:$0xff] %v3255_v60   ;;  %v1571_v27 = vadd.f32 %v4441_v48, %v1570_v19  ;;  %v1572_v56 = vpop.f32.mrb[117].mxu0 }
 0x2d0   : > { %3491 = vst [vmem:[%s3861_s20 + $0x1e0] sm:$0xff] %v3415_v16   ;;  %v1827_v55 = vadd.f32 %v4441_v48, %v1826_v21  ;;  %v1828_v62 = vpop.f32.mrb[117].mxu1  ;;  %v1573_v17 = vpop.f32.mrb[118].mxu0 }
 0x2d1   : > { %v1829_v20 = vpop.f32.mrb[118].mxu1  ;;  %v1574_v3 = vadd.f32 %v4441_v48, %v1573_v17  ;;  %v1575_v41 = vpop.f32.mrb[119].mxu0  ;;  %v1907_v22 = vmax.f32 %v1571_v27, 0.0 }
 0x2d2   : > { %v1830_v13 = vadd.f32 %v4441_v48, %v1829_v20  ;;  %v1831_v53 = vpop.f32.mrb[119].mxu1  ;;  %v1971_v57 = vmax.f32 %v1827_v55, 0.0 }
 0x2d3   : > { %v1908_v4 = vmax.f32 %v1574_v3, 0.0 }
 0x2d4   : > { %v1972_v8 = vmax.f32 %v1830_v13, 0.0 }
 0x2d5   : > { %v3260_v23 = vpack.c.bf16 %v1908_v4, %v1907_v22 }
 0x2d6   : > { %v3420_v24 = vpack.c.bf16 %v1972_v8, %v1971_v57  ;;  %v1578_v26 = vpop.f32.mrb[120].mxu0 }
 0x2d7   : > { %v1834_v28 = vpop.f32.mrb[120].mxu1  ;;  %3460 = vst [vmem:[%s3861_s20 + $0xe8] sm:$0xff] %v3260_v23   ;;  %v1579_v29 = vadd.f32 %v4441_v48, %v1578_v26  ;;  %v1580_v32 = vpop.f32.mrb[121].mxu0 }
 0x2d8   : > { %3492 = vst [vmem:[%s3861_s20 + $0x1e8] sm:$0xff] %v3420_v24   ;;  %v1835_v31 = vadd.f32 %v4441_v48, %v1834_v28  ;;  %v1836_v33 = vpop.f32.mrb[121].mxu1  ;;  %v1581_v37 = vpop.f32.mrb[122].mxu0 }
 0x2d9   : > { %v1837_v38 = vpop.f32.mrb[122].mxu1  ;;  %v1582_v40 = vadd.f32 %v4441_v48, %v1581_v37  ;;  %v1583_v44 = vpop.f32.mrb[123].mxu0  ;;  %v1909_v47 = vmax.f32 %v1579_v29, 0.0 }
 0x2da   : > { %v1838_v42 = vadd.f32 %v4441_v48, %v1837_v38  ;;  %v1839_v46 = vpop.f32.mrb[123].mxu1  ;;  %v1973_v51 = vmax.f32 %v1835_v31, 0.0 }
 0x2db   : > { %v1910_v52 = vmax.f32 %v1582_v40, 0.0 }
 0x2dc   : > { %v1974_v59 = vmax.f32 %v1838_v42, 0.0 }
 0x2dd   : > { %v3265_v12 = vpack.c.bf16 %v1910_v52, %v1909_v47 }
 0x2de   : > { %v3425_v58 = vpack.c.bf16 %v1974_v59, %v1973_v51  ;;  %v1586_v9 = vpop.f32.mrb[124].mxu0 }
 0x2df   : > { %v1842_v45 = vpop.f32.mrb[124].mxu1  ;;  %3461 = vst [vmem:[%s3861_s20 + $0xf0] sm:$0xff] %v3265_v12   ;;  %v1587_v54 = vadd.f32 %v4441_v48, %v1586_v9  ;;  %v1588_v5 = vpop.f32.mrb[125].mxu0 }
 0x2e0   : > { %3493 = vst [vmem:[%s3861_s20 + $0x1f0] sm:$0xff] %v3425_v58   ;;  %v1843_v61 = vadd.f32 %v4441_v48, %v1842_v45  ;;  %v1844_v25 = vpop.f32.mrb[125].mxu1  ;;  %v1589_v30 = vpop.f32.mrb[126].mxu0 }
 0x2e1   : > { %v1845_v34 = vpop.f32.mrb[126].mxu1  ;;  %v1590_v35 = vadd.f32 %v4441_v48, %v1589_v30  ;;  %v1591_v39 = vpop.f32.mrb[127].mxu0  ;;  %v1911_v50 = vmax.f32 %v1587_v54, 0.0 }
 0x2e2   : > { %v1846_v36 = vadd.f32 %v4441_v48, %v1845_v34  ;;  %v1847_v43 = vpop.f32.mrb[127].mxu1  ;;  %v1975_v14 = vmax.f32 %v1843_v61, 0.0 }
 0x2e3   : > { %v1912_v1 = vmax.f32 %v1590_v35, 0.0 }
 0x2e4   : > { %v1976_v63 = vmax.f32 %v1846_v36, 0.0 }
 0x2e5   : > { %v3270_v49 = vpack.c.bf16 %v1912_v1, %v1911_v50 }
 0x2e6   : > { %v3430_v2 = vpack.c.bf16 %v1976_v63, %v1975_v14 }
 0x2e7   : > { %3462 = vst [vmem:[%s3861_s20 + $0xf8] sm:$0xff] %v3270_v49  }
 0x2e8   : > { %3494 = vst [vmem:[%s3861_s20 + $0x1f8] sm:$0xff] %v3430_v2  }
 0x2e9 PF: > { %s13_s14 = sadd.s32 1, %s3652_s14   ;;  %s4504_s12 = smov %s3648_s13 }
 0x2ea   : > { %p10_p6 = scmp.ge.s32.totalorder %s13_s14, 4   ;;  %s4505_s13 = smov %s4507_s15 }
 0x2ec   :  { %12 = sbr.rel (!%p10_p6) target bundleno = 2 (0x2), region = 98 }

// kernel: cnn_encoder_forward.9
= control target key start
LH: loop header
LB: loop body
LE: loop exit
PB: predicated region body
PF: predicated region fallthrough
CT: control target
= control target key end

     0   :  { %s1797_s12 = smov 0   ;;  %s1799_s13 = smov 0   ;;  %s2225_s0 = inlined_call_operand.vmem [shape: bf16[2,18,9,256], index: 0, kind: input, shape index: {}]   ;;  %s2226_s1 = inlined_call_operand.vmem [shape: bf16[384,128], index: 1, kind: input, shape index: {}]   ;;  %s2227_s2 = inlined_call_operand.vmem [shape: f32[1,128], index: 2, kind: input, shape index: {}]   ;;  %s2228_s3 = inlined_call_operand.vmem [shape: bf16[2,64,128], index: 3, kind: output, shape index: {}]  }
   0x1   :  { %s1801_s14 = smov 0  }
   0x2 LB: > { %s25_s15 = sadd.s32 1, %s1767_s13  ;;  %p1408_p0 = scmp.ge.s32.totalorder %s1771_s14, 1  ;;  %s1771_s14 = sphi %s1801_s14, %s13_s14   ;;  %s1767_s13 = sphi %s1799_s13, %s2230_s13   ;;  %s1763_s12 = sphi %s1797_s12, %s2229_s12  }
   0x3   : > { %p27_p1 = scmp.ge.s32.totalorder %s25_s15, 2  ;;  %p168_p2 = scmp.lt.s32.totalorder %s1771_s14, 3 }
   0x5   : > { %s2232_s15 = smov (%p27_p1, %s25_s15), 0  ;;  %p169_p3 = pnand %p1408_p0, %p168_p2 }
   0x6   : > { %p202_p4 = scmp.lt.s32.totalorder (!%p169_p3), %s1763_s12, 1  ;;  %vm227_vm0 = vcmask (!%p169_p3), 1047808   ;;  %v1773_v0 = vmov (!%p169_p3), 0   ;;  %v1725_v1 = vld [vmem:[%s2226_s1 + $0x40] sm:$0xff] (!%p169_p3)   ;;  %vm234_vm1 = vcmask (!%p169_p3), 257024   ;;  %v1727_v3 = vld [vmem:[%s2226_s1 + $0x48] sm:$0xff] (!%p169_p3)  }
   0x7   : > { %172 = sbr.rel (%p169_p3) target bundleno = 466 (0x1d2), region = 32  ;;  %228 = vst.msk [vmem:[#allocation2 + $0x10] sm:$0xff] (!%p169_p3), %vm227_vm0, %v1773_v0  ;;  %229 = vst.msk [vmem:[#allocation2 + $0x28] sm:$0xff] (!%p169_p3), %vm227_vm0, %v1773_v0  ;;  %v1726_v2 = vld [vmem:[%s2226_s1] sm:$0xff] (!%p169_p3)   ;;  %1593 = vmatprep.subr.bf16.mxu0 (!%p169_p3), %v1725_v1  ;;  %v1729_v5 = vld [vmem:[%s2226_s1 + $0x8] sm:$0xff] (!%p169_p3)   ;;  %vm323_vm2 = vcmask (!%p169_p3), 261124  }
   0x8   : > { %230 = vst.msk [vmem:[#allocation2 + $0x40] sm:$0xff] (!%p169_p3), %vm227_vm0, %v1773_v0  ;;  %231 = vst.msk [vmem:[#allocation2 + $0x58] sm:$0xff] (!%p169_p3), %vm227_vm0, %v1773_v0  ;;  %v1728_v4 = vld [vmem:[%s2226_s1 + $0x80] sm:$0xff] (!%p169_p3)   ;;  %1594 = vmatpush3.bf16.msra.mxu0 (!%p169_p3), %v1726_v2  ;;  %s1774_s30 = smov (!%p169_p3), 32   ;;  %s1775_s4 = smov (!%p169_p3), 64   ;;  %vm242_vm3 = vcmask (!%p169_p3), 519424  }
   0x9   : > { %1595 = vmatprep.subr.bf16.mxu0 (!%p169_p3), %v1727_v3  ;;  %1645 = vmatprep.subr.bf16.mxu1 (!%p169_p3), %v1728_v4  ;;  %s1776_s5 = smov (!%p169_p3), 96   ;;  %vm330_vm4 = vcmask (!%p169_p3), 523524   ;;  %vm258_vm5 = vcmask (!%p169_p3), 781824   ;;  %vm269_vm6 = vcmask (!%p169_p3), 1044224   ;;  %vm346_vm7 = vcmask (!%p169_p3), 785924  }
   0xa   : > { %1646 = vmatpush3.bf16.msra.mxu1 (!%p169_p3), %v1728_v4  ;;  %vm357_vm8 = vcmask (!%p169_p3), 1048324  }
   0xc   : > { %1596 = vmatpush3.bf16.msra.mxu0 (!%p169_p3), %v1729_v5 }
   0xe   : > { %s2234_s12 = smov (!%p202_p4, %s1763_s12), 1 }
   0xf   : > { %s1669_s22 = smul.u32 288, %s2234_s12 }
  0x11   : > { %s1833_s27 = scalar_lea.vmem %s2225_s0, %s1669_s22 }
  0x12   : > { %v232_v6 = vld [vmem:[%s1833_s27] sm:$0xff]  ;;  %v233_v7 = vld [vmem:[%s1833_s27 + $0x8] sm:$0x11]  ;;  %v1847_v14 = vld [vmem:[%s1833_s27 + $0x10] sm:$0xff] }
  0x13   : > { %v1424_v8 = vld [vmem:[%s1833_s27 + $0x20] sm:$0xff]  ;;  %v1412_v9 = vcombine.high %v232_v6, %v232_v6  ;;  %v1425_v10 = vld [vmem:[%s1833_s27 + $0x28] sm:$0x11]  ;;  %235 = vst.msk [vmem:[#allocation2] sm:$0xf] %vm234_vm1, %v232_v6  ;;  %v1849_v15 = vcombine.low %v232_v6, %v233_v7  ;;  %v1417_v20 = vcombine.high %v1847_v14, %v1847_v14  ;;  %v1864_v23 = vld [vmem:[%s1833_s27 + $0x30] sm:$0xff] }
  0x14   : > { %v1842_v11 = vcombine.high %v1424_v8, %v1424_v8  ;;  %v1420_v12 = vld [vmem:[%s1833_s27 + $0x28] sm:$0x11]  ;;  %v1421_v13 = vcombine.low %v1424_v8, %v1424_v8  ;;  %v1415_v17 = vld [vmem:[%s1833_s27 + $0x18] sm:$0x11]  ;;  %v1853_v18 = vld [vmem:[%s1833_s27 + $0x40] sm:$0xff]  ;;  %v1428_v25 = vcombine.low %v1424_v8, %v1425_v10 }
  0x15   : > { %v1423_v16 = vcombine.low %v1424_v8, %v1420_v12  ;;  %v1435_v19 = vld [vmem:[%s1833_s27 + $0x48] sm:$0x11]  ;;  %239 = vrot.lane.b32.xlu1 %v1412_v9, %s1774_s30  ;;  %v1418_v21 = vcombine.low %v1847_v14, %v1415_v17  ;;  %v1430_v24 = vld [vmem:[%s1833_s27 + $0x38] sm:$0x11]  ;;  %409 = vst.msk [vmem:[#allocation2 + $0x18] sm:$0xf] %vm234_vm1, %v1853_v18  ;;  %v1436_v38 = vcombine.low %v1853_v18, %v1853_v18 }
  0x16   : > { %327 = vrot.lane.b32.xlu0 %v1842_v11, %s1774_s30  ;;  %v1438_v22 = vcombine.low %v1853_v18, %v1435_v19  ;;  %324 = vst.msk [vmem:[#allocation2] sm:$0xf0] %vm323_vm2, %v1421_v13  ;;  %v1433_v28 = vcombine.low %v1864_v23, %v1430_v24  ;;  %v251_v36 = vshll.u32 %v1849_v15, 16  ;;  %v1459_v41 = vld [vmem:[%s1833_s27 + $0x78] sm:$0x11]  ;;  %v1878_v42 = vld [vmem:[%s1833_s27 + $0x80] sm:$0xff]  ;;  %v1912_v63 = vcombine.high %v1853_v18, %v1853_v18 }
  0x17   : > { %v309_v26 = vshrl.u32 %v1423_v16, 16  ;;  %v311_v27 = vshll.u32 %v1423_v16, 16  ;;  %274 = vst.msk [vmem:[#allocation2 + $0x8] sm:$0xf] %vm234_vm1, %v1417_v20  ;;  %v279_v29 = vshrl.u32 %v1418_v21, 16  ;;  %v281_v30 = vshll.u32 %v1418_v21, 16 }
  0x18   : > { %v398_v31 = vshrl.u32 %v1438_v22, 16  ;;  %v401_v32 = vshll.u32 %v1438_v22, 16  ;;  %v367_v34 = vshrl.u32 %v1433_v28, 16  ;;  %v370_v35 = vshll.u32 %v1433_v28, 16  ;;  %v1881_v46 = vld [vmem:[%s1833_s27 + $0x70] sm:$0xff]  ;;  %v1884_v47 = vld [vmem:[%s1833_s27 + $0x60] sm:$0xff] }
  0x19   : > { %v313_v33 = vrot.slane %v311_v27, 1  ;;  %295 = vrot.lane.b32.xlu1 %v1421_v13, %s1775_s4  ;;  %v283_v37 = vrot.slane %v281_v30, 1  ;;  %v1449_v48 = vld [vmem:[%s1833_s27 + $0x68] sm:$0x11]  ;;  %576 = vst.msk [vmem:[#allocation2 + $0x30] sm:$0xf] %vm234_vm1, %v1878_v42  ;;  %v1462_v58 = vcombine.low %v1881_v46, %v1459_v41  ;;  %v1901_v59 = vcombine.low %v1884_v47, %v1884_v47 }
  0x1a   : > { %v400_v39 = vrot.slane %v398_v31, 4  ;;  %v403_v40 = vrot.slane %v401_v32, 5  ;;  %v369_v44 = vrot.slane %v367_v34, 4  ;;  %v372_v45 = vrot.slane %v370_v35, 5  ;;  %v1892_v55 = vld [vmem:[%s1833_s27 + $0x50] sm:$0xff]  ;;  %v1906_v62 = vld [vmem:[%s1833_s27 + $0xc0] sm:$0xff] }
  0x1b   : > { %v314_v43 = vor.u32 %v313_v33, %v309_v26  ;;  %v284_v49 = vor.u32 %v283_v37, %v279_v29  ;;  %v249_v52 = vshrl.u32 %v1849_v15, 16  ;;  %v253_v53 = vrot.slane %v251_v36, 1  ;;  %v1444_v56 = vld [vmem:[%s1833_s27 + $0x58] sm:$0x11]  ;;  %v1464_v61 = vld [vmem:[%s1833_s27 + $0x88] sm:$0x11] }
  0x1c   : > { %v404_v50 = vor.u32 %v403_v40, %v400_v39  ;;  %v373_v51 = vor.u32 %v372_v45, %v369_v44  ;;  %v336_v54 = vshrl.u32 %v1428_v25, 16  ;;  %v339_v57 = vshll.u32 %v1428_v25, 16  ;;  %743 = vst.msk [vmem:[#allocation2 + $0x48] sm:$0xf] %vm234_vm1, %v1906_v62  ;;  %v1924_v15 = vld [vmem:[%s1833_s27 + $0xa0] sm:$0xff]  ;;  %v1730_v21 = vld [vmem:[%s2226_s1 + $0x50] sm:$0xff]  }
  0x1d   : > { %316 = vst.msk [vmem:[#allocation2 + $0x10] sm:$0xf] %vm234_vm1, %v314_v43  ;;  %285 = vrot.lane.b32.xlu0 %v284_v49, %s1774_s30  ;;  %384 = vrot.lane.b32.xlu1 %v1436_v38, %s1775_s4  ;;  %v1452_v60 = vcombine.low %v1884_v47, %v1449_v48  ;;  %v254_v2 = vor.u32 %v253_v53, %v249_v52  ;;  %v534_v7 = vshrl.u32 %v1462_v58, 16  ;;  %v537_v8 = vshll.u32 %v1462_v58, 16  ;;  %v1478_v16 = vld [vmem:[%s1833_s27 + $0xa8] sm:$0x11] }
  0x1e   : > { %406 = vst.msk [vmem:[#allocation2 + $0x10] sm:$0xf0] %vm323_vm2, %v404_v50  ;;  %494 = vst.msk [vmem:[#allocation2 + $0x18] sm:$0xf0] %vm323_vm2, %v1901_v59  ;;  %v338_v3 = vrot.slane %v336_v54, 4  ;;  %v1917_v4 = vcombine.low %v1892_v55, %v1444_v56  ;;  %v1467_v5 = vcombine.low %v1878_v42, %v1464_v61  ;;  %v341_v6 = vrot.slane %v339_v57, 5  ;;  %1597 = vmatprep.subr.bf16.mxu0 %v1730_v21 }
  0x1f   : > { %v480_v0 = vshrl.u32 %v1452_v60, 16  ;;  %v482_v1 = vshll.u32 %v1452_v60, 16  ;;  %v1431_v24 = vcombine.low %v1864_v23, %v1864_v23  ;;  %v536_v25 = vrot.slane %v534_v7, 4  ;;  %v1732_v27 = vld [vmem:[%s2226_s1 + $0x10] sm:$0xff]   ;;  %v1493_v31 = vld [vmem:[%s1833_s27 + $0xc8] sm:$0x11] }
  0x20   : > { %v565_v10 = vshrl.u32 %v1467_v5, 16  ;;  %v568_v12 = vshll.u32 %v1467_v5, 16  ;;  %v452_v17 = vshll.u32 %v1917_v4, 16  ;;  %v342_v22 = vor.u32 %v341_v6, %v338_v3  ;;  %1598 = vmatpush3.bf16.msra.mxu0 %v1732_v27  ;;  %v1733_v32 = vld [vmem:[%s2226_s1 + $0x58] sm:$0xff]   ;;  %v1440_v35 = vld [vmem:[%s1833_s27 + $0x48] sm:$0x11] }
  0x21   : > { %374 = vrot.lane.b32.xlu0 %v373_v51, %s1774_s30  ;;  %301 = vrot.lane.b32.xlu1 %v1842_v11, %s1776_s5  ;;  %v484_v9 = vrot.slane %v482_v1, 1  ;;  %v1731_v11 = vld [vmem:[%s2226_s1 + $0x88] sm:$0xff]   ;;  %v539_v26 = vrot.slane %v537_v8, 5  ;;  %v1945_v29 = vcombine.low %v1924_v15, %v1924_v15  ;;  %v1481_v30 = vcombine.low %v1924_v15, %v1478_v16  ;;  %v1734_v43 = vld [vmem:[%s2226_s1 + $0x90] sm:$0xff]  }
  0x22   : > { %v567_v19 = vrot.slane %v565_v10, 4  ;;  %v570_v20 = vrot.slane %v568_v12, 5  ;;  %1647 = vmatprep.subr.bf16.mxu1 %v1731_v11  ;;  %v450_v33 = vshrl.u32 %v1917_v4, 16  ;;  %v454_v34 = vrot.slane %v452_v17, 1  ;;  %v1454_v40 = vld [vmem:[%s1833_s27 + $0x68] sm:$0x11]  ;;  %1599 = vmatprep.subr.bf16.mxu0 %v1733_v32 }
  0x23   : > { %v485_v13 = vor.u32 %v484_v9, %v480_v0  ;;  %1648 = vmatpush3.bf16.msra.mxu1 %v1731_v11  ;;  %661 = vst.msk [vmem:[#allocation2 + $0x30] sm:$0xf0] %vm323_vm2, %v1945_v29  ;;  %v1416_v36 = vcombine.low %v1847_v14, %v1847_v14  ;;  %v540_v37 = vor.u32 %v539_v26, %v536_v25  ;;  %v647_v38 = vshrl.u32 %v1481_v30, 16  ;;  %v1735_v44 = vld [vmem:[%s2226_s1 + $0x18] sm:$0xff]   ;;  %v1970_v48 = vld [vmem:[%s1833_s27 + $0xe0] sm:$0xff]  ;;  %v1739_v6 = vld [vmem:[%s2226_s1 + $0x68] sm:$0xff]  }
  0x24   : > { %v571_v28 = vor.u32 %v570_v20, %v567_v19  ;;  %v649_v39 = vshll.u32 %v1481_v30, 16  ;;  %v1496_v41 = vcombine.low %v1906_v62, %v1493_v31  ;;  %v1736_v14 = vld [vmem:[%s2226_s1 + $0x60] sm:$0xff]   ;;  %v1976_v49 = vcombine.low %v1853_v18, %v1440_v35  ;;  %v1507_v52 = vld [vmem:[%s1833_s27 + $0xe8] sm:$0x11]  ;;  %1649 = vmatprep.subr.bf16.mxu1 %v1734_v43  ;;  %1600 = vmatpush3.bf16.msra.mxu0 %v1735_v44  ;;  %v1737_v18 = vld [vmem:[%s2226_s1 + $0x98] sm:$0xff]  }
  0x25   : > { %255 = vrot.lane.b32.xlu0 %v254_v2, %s1775_s4  ;;  %390 = vrot.lane.b32.xlu1 %v1912_v63, %s1776_s5  ;;  %487 = vst.msk [vmem:[#allocation2 + $0x28] sm:$0xf] %vm234_vm1, %v485_v13  ;;  %v455_v53 = vor.u32 %v454_v34, %v450_v33  ;;  %v1738_v58 = vld [vmem:[%s2226_s1 + $0x20] sm:$0xff]   ;;  %v1457_v60 = vcombine.low %v1884_v47, %v1454_v40  ;;  %v1522_v61 = vld [vmem:[%s1833_s27 + $0x108] sm:$0x11]  ;;  %v910_v10 = vld [vmem:[#allocation2 + $0x10] sm:$0xff] }
  0x26   : > { %573 = vst.msk [vmem:[#allocation2 + $0x28] sm:$0xf0] %vm323_vm2, %v571_v28  ;;  %v651_v45 = vrot.slane %v649_v39, 1  ;;  %v732_v50 = vshrl.u32 %v1496_v41, 16  ;;  %v735_v51 = vshll.u32 %v1496_v41, 16  ;;  %1601 = vmatprep.subr.bf16.mxu0 %v1736_v14  ;;  %v424_v1 = vshll.u32 %v1976_v49, 16  ;;  %1661 = vmatprep.mubr.bf16.mxu1 %v910_v10 }
  0x27   : > { %1650 = vmatpush3.bf16.msra.mxu1 %v1734_v43  ;;  %v1498_v0 = vld [vmem:[%s1833_s27 + $0xc8] sm:$0x11]  ;;  %v1993_v2 = vld [vmem:[%s1833_s27 + $0xb0] sm:$0xff]  ;;  %v1488_v3 = vld [vmem:[%s1833_s27 + $0xb8] sm:$0x11]  ;;  %v1998_v5 = vcombine.low %v1970_v48, %v1970_v48  ;;  %v1465_v7 = vcombine.low %v1878_v42, %v1878_v42  ;;  %v1510_v8 = vcombine.low %v1970_v48, %v1507_v52  ;;  %v505_v13 = vshrl.u32 %v1457_v60, 16 }
  0x28   : > { %v652_v54 = vor.u32 %v651_v45, %v647_v38  ;;  %v734_v56 = vrot.slane %v732_v50, 4  ;;  %v737_v57 = vrot.slane %v735_v51, 5  ;;  %1651 = vmatprep.subr.bf16.mxu1 %v1737_v18  ;;  %1602 = vmatpush3.bf16.msra.mxu0 %v1738_v58  ;;  %v1740_v9 = vld [vmem:[%s2226_s1 + $0xa0] sm:$0xff]   ;;  %v2020_v16 = vld [vmem:[%s1833_s27 + $0x90] sm:$0xff]  ;;  %v1473_v17 = vld [vmem:[%s1833_s27 + $0x98] sm:$0x11]  ;;  %v2031_v25 = vcombine.low %v1906_v62, %v1498_v0 }
  0x29   : > { %343 = vrot.lane.b32.xlu0 %v342_v22, %s1775_s4  ;;  %354 = vrot.lane.b32.xlu1 %v1431_v24, %s1776_s5  ;;  %v2014_v12 = vld [vmem:[%s1833_s27 + $0x100] sm:$0xff]  ;;  %828 = vst.msk [vmem:[#allocation2 + $0x48] sm:$0xf0] %vm323_vm2, %v1998_v5  ;;  %v814_v19 = vshrl.u32 %v1510_v8, 16  ;;  %v816_v20 = vshll.u32 %v1510_v8, 16  ;;  %v1741_v21 = vld [vmem:[%s2226_s1 + $0x28] sm:$0xff]   ;;  %v1456_v27 = vcombine.high %v1884_v47, %v1884_v47  ;;  %v1491_v30 = vcombine.low %v1993_v2, %v1488_v3 }
  0x2a   : > { %654 = vst.msk [vmem:[#allocation2 + $0x40] sm:$0xf] %vm234_vm1, %v652_v54  ;;  %v738_v4 = vor.u32 %v737_v57, %v734_v56  ;;  %1603 = vmatprep.subr.bf16.mxu0 %v1739_v6  ;;  %v1742_v11 = vld [vmem:[%s2226_s1 + $0x70] sm:$0xff]   ;;  %v426_v22 = vrot.slane %v424_v1, 1  ;;  %v1525_v24 = vcombine.low %v2014_v12, %v1522_v61  ;;  %v1743_v26 = vld [vmem:[%s2226_s1 + $0xa8] sm:$0xff]   ;;  %v508_v28 = vshll.u32 %v1457_v60, 16 }
  0x2b   : > { %1652 = vmatpush3.bf16.msra.mxu1 %v1737_v18  ;;  %v818_v31 = vrot.slane %v816_v20, 1  ;;  %v1744_v34 = vld [vmem:[%s2226_s1 + $0x30] sm:$0xff]   ;;  %v507_v35 = vrot.slane %v505_v13, 4  ;;  %v1745_v47 = vld [vmem:[%s2226_s1 + $0x78] sm:$0xff]   ;;  %v1476_v38 = vcombine.low %v2020_v16, %v1473_v17  ;;  %v701_v43 = vshrl.u32 %v1491_v30, 16 }
  0x2c   : > { %740 = vst.msk [vmem:[#allocation2 + $0x40] sm:$0xf0] %vm323_vm2, %v738_v4  ;;  %1653 = vmatprep.subr.bf16.mxu1 %v1740_v9  ;;  %v899_v32 = vshrl.u32 %v1525_v24, 16  ;;  %v902_v33 = vshll.u32 %v1525_v24, 16  ;;  %1604 = vmatpush3.bf16.msra.mxu0 %v1741_v21  ;;  %v510_v41 = vrot.slane %v508_v28, 5  ;;  %v704_v44 = vshll.u32 %v1491_v30, 16 }
  0x2d   : > { %266 = vrot.lane.b32.xlu0 %v1416_v36, %s1776_s5  ;;  %541 = vrot.lane.b32.xlu1 %v540_v37, %s1774_s30  ;;  %v819_v36 = vor.u32 %v818_v31, %v814_v19  ;;  %v1432_v45 = vcombine.high %v1864_v23, %v1864_v23  ;;  %v1746_v14 = vld [vmem:[%s2226_s1 + $0xb0] sm:$0xff]   ;;  %v1747_v50 = vld [vmem:[%s2226_s1 + $0x38] sm:$0xff]   ;;  %v1461_v51 = vcombine.high %v1881_v46, %v1881_v46  ;;  %v619_v58 = vshll.u32 %v1476_v38, 16  ;;  %v913_v4 = vld [vmem:[#allocation2 + $0x28] sm:$0xff] }
  0x2e   : > { %1605 = vmatprep.subr.bf16.mxu0 %v1742_v11  ;;  %v901_v39 = vrot.slane %v899_v32, 4  ;;  %v904_v40 = vrot.slane %v902_v33, 5  ;;  %v1446_v52 = vcombine.high %v1892_v55, %v1892_v55  ;;  %v1460_v23 = vcombine.low %v1881_v46, %v1881_v46  ;;  %v1469_v3 = vld [vmem:[%s1833_s27 + $0x88] sm:$0x11]  ;;  %v1517_v13 = vld [vmem:[%s1833_s27 + $0xf8] sm:$0x11] }
  0x2f   : > { %1654 = vmatpush3.bf16.msra.mxu1 %v1740_v9  ;;  %821 = vst.msk [vmem:[#allocation2 + $0x58] sm:$0xf] %vm234_vm1, %v819_v36  ;;  %v1490_v54 = vcombine.high %v1993_v2, %v1993_v2  ;;  %v1475_v18 = vcombine.high %v2020_v16, %v2020_v16  ;;  %v511_v56 = vor.u32 %v510_v41, %v507_v35  ;;  %v703_v46 = vrot.slane %v701_v43, 4  ;;  %v1483_v8 = vld [vmem:[%s1833_s27 + $0xa8] sm:$0x11]  ;;  %v1501_v11 = vld [vmem:[%s1833_s27 + $0xd0] sm:$0xff] }
  0x30   : > { %1655 = vmatprep.subr.bf16.mxu1 %v1743_v26  ;;  %1606 = vmatpush3.bf16.msra.mxu0 %v1744_v34  ;;  %362 = vst.msk [vmem:[#allocation2 + $0x8] sm:$0xf0] %vm323_vm2, %v1432_v45  ;;  %v706_v57 = vrot.slane %v704_v44, 5  ;;  %529 = vst.msk [vmem:[#allocation2 + $0x20] sm:$0xf0] %vm323_vm2, %v1461_v51  ;;  %v1445_v60 = vcombine.low %v1892_v55, %v1892_v55  ;;  %v617_v0 = vshrl.u32 %v1476_v38, 16 }
  0x31   : > { %456 = vrot.lane.b32.xlu0 %v455_v53, %s1774_s30  ;;  %466 = vrot.lane.b32.xlu1 %v1901_v59, %s1775_s4  ;;  %v422_v59 = vshrl.u32 %v1976_v49, 16  ;;  %v905_v49 = vor.u32 %v904_v40, %v901_v39  ;;  %v1748_v53 = vld [vmem:[%s2226_s1 + $0xb8] sm:$0xff]   ;;  %445 = vst.msk [vmem:[#allocation2 + $0x20] sm:$0xf] %vm234_vm1, %v1446_v52  ;;  %612 = vst.msk [vmem:[#allocation2 + $0x38] sm:$0xf] %vm234_vm1, %v1475_v18  ;;  %v1486_v55 = vcombine.low %v1924_v15, %v1483_v8 }
  0x32   : > { %1607 = vmatprep.subr.bf16.mxu0 %v1745_v47  ;;  %696 = vst.msk [vmem:[#allocation2 + $0x38] sm:$0xf0] %vm323_vm2, %v1490_v54  ;;  %v707_v61 = vor.u32 %v706_v57, %v703_v46  ;;  %v621_v1 = vrot.slane %v619_v58, 1  ;;  %v1494_v9 = vcombine.low %v1906_v62, %v1906_v62  ;;  %v1485_v19 = vcombine.high %v1924_v15, %v1924_v15  ;;  %v1512_v43 = vld [vmem:[%s1833_s27 + $0xe8] sm:$0x11] }
  0x33   : > { %v427_v37 = vor.u32 %v426_v22, %v422_v59  ;;  %1656 = vmatpush3.bf16.msra.mxu1 %v1743_v26  ;;  %907 = vst.msk [vmem:[#allocation2 + $0x58] sm:$0xf0] %vm323_vm2, %v905_v49  ;;  %v2102_v59 = vld [vmem:[%s1833_s27 + $0xf0] sm:$0xff]  ;;  %v672_v17 = vshrl.u32 %v1486_v55, 16  ;;  %v1502_v22 = vld [vmem:[%s1833_s27 + $0xd8] sm:$0x11]  ;;  %v1495_v24 = vcombine.high %v1906_v62, %v1906_v62  ;;  %v1504_v30 = vcombine.high %v1501_v11, %v1501_v11 }
  0x34   : > { %1657 = vmatprep.subr.bf16.mxu1 %v1746_v14  ;;  %1608 = vmatpush3.bf16.msra.mxu0 %v1747_v50  ;;  %v622_v6 = vor.u32 %v621_v1, %v617_v0  ;;  %v1519_v28 = vcombine.high %v2102_v59, %v2102_v59  ;;  %v1505_v33 = vcombine.low %v1501_v11, %v1502_v22  ;;  %v916_v47 = vld [vmem:[#allocation2 + $0x40] sm:$0xff]  ;;  %v758_v44 = vshll.u32 %v2031_v25, 16 }
  0x35   : > { %413 = vrot.lane.b32.xlu0 %v1912_v63, %s1774_s30  ;;  %551 = vrot.lane.b32.xlu1 %v1465_v7, %s1775_s4  ;;  %v2047_v63 = vcombine.high %v1878_v42, %v1878_v42  ;;  %v1471_v7 = vcombine.low %v1878_v42, %v1469_v3  ;;  %v675_v42 = vshll.u32 %v1486_v55, 16  ;;  %v674_v26 = vrot.slane %v672_v17, 4  ;;  %779 = vst.msk [vmem:[#allocation2 + $0x50] sm:$0xf] %vm234_vm1, %v1504_v30 }
  0x36   : > { %863 = vst.msk [vmem:[#allocation2 + $0x50] sm:$0xf0] %vm323_vm2, %v1519_v28  ;;  %v1489_v62 = vcombine.low %v1993_v2, %v1993_v2  ;;  %v786_v36 = vshll.u32 %v1505_v33, 16  ;;  %v784_v39 = vshrl.u32 %v1505_v33, 16  ;;  %v1515_v45 = vcombine.low %v1970_v48, %v1512_v43 }
  0x37   : > { %1658 = vmatpush3.bf16.msra.mxu1 %v1746_v14  ;;  %v591_v10 = vshll.u32 %v1471_v7, 16  ;;  %v589_v20 = vshrl.u32 %v1471_v7, 16  ;;  %v1514_v14 = vcombine.high %v1970_v48, %v1970_v48  ;;  %v756_v49 = vshrl.u32 %v2031_v25, 16 }
  0x38   : > { %1659 = vmatprep.subr.bf16.mxu1 %v1748_v53  ;;  %v788_v2 = vrot.slane %v786_v36, 1  ;;  %v760_v50 = vrot.slane %v758_v44, 1  ;;  %v839_v51 = vshrl.u32 %v1515_v45, 16  ;;  %v842_v52 = vshll.u32 %v1515_v45, 16 }
  0x39   : > { %497 = vrot.lane.b32.xlu0 %v1456_v27, %s1774_s30  ;;  %472 = vrot.lane.b32.xlu1 %v1456_v27, %s1776_s5  ;;  %v593_v21 = vrot.slane %v591_v10, 1  ;;  %v677_v27 = vrot.slane %v675_v42, 5  ;;  %v1518_v25 = vcombine.low %v2102_v59, %v2102_v59  ;;  %v1503_v18 = vcombine.low %v1501_v11, %v1501_v11 }
  0x3a   : > { %v919_v40 = vld [vmem:[#allocation2 + $0x58] sm:$0xff]  ;;  %v789_v41 = vor.u32 %v788_v2, %v784_v39  ;;  %v844_v54 = vrot.slane %v842_v52, 5 }
  0x3b   : > { %1660 = vmatpush3.bf16.msra.mxu1 %v1748_v53  ;;  %v594_v15 = vor.u32 %v593_v21, %v589_v20  ;;  %v678_v34 = vor.u32 %v677_v27, %v674_v26  ;;  %v841_v53 = vrot.slane %v839_v51, 4 }
  0x3d   : > { %428 = vrot.lane.b32.xlu0 %v427_v37, %s1775_s4  ;;  %557 = vrot.lane.b32.xlu1 %v2047_v63, %s1776_s5  ;;  %v1474_v37 = vcombine.low %v2020_v16, %v2020_v16  ;;  %v1523_v16 = vcombine.low %v2014_v12, %v2014_v12  ;;  %v845_v48 = vor.u32 %v844_v54, %v841_v53 }
  0x3e   : > { %1662 = vmatmul.mubr.bf16.vlgmr.msra.gmra.mrb[0].mxu1 %v913_v4 }
  0x3f   : > { %1665 = vmatprep.mubr.bf16.mxu1 %v916_v47 }
  0x41   : > { %512 = vrot.lane.b32.xlu0 %v511_v56, %s1775_s4  ;;  %522 = vrot.lane.b32.xlu1 %v1460_v23, %s1776_s5  ;;  %v1524_v23 = vcombine.high %v2014_v12, %v2014_v12 }
  0x45   : > { %438 = vrot.lane.b32.xlu0 %v1445_v60, %s1776_s5  ;;  %708 = vrot.lane.b32.xlu1 %v707_v61, %s1774_s30 }
  0x46   : > { %1666 = vmatmul.mubr.bf16.gmra.mrb[4].mxu1 %v919_v40 }
  0x49   : > { %623 = vrot.lane.b32.xlu0 %v622_v6, %s1774_s30  ;;  %633 = vrot.lane.b32.xlu1 %v1945_v29, %s1775_s4  ;;  %v1520_v29 = vcombine.low %v2102_v59, %v1517_v13 }
  0x4b   : > { %v868_v31 = vshrl.u32 %v1520_v29, 16  ;;  %v871_v32 = vshll.u32 %v1520_v29, 16 }
  0x4d   : > { %580 = vrot.lane.b32.xlu0 %v2047_v63, %s1774_s30  ;;  %718 = vrot.lane.b32.xlu1 %v1494_v9, %s1775_s4  ;;  %v870_v63 = vrot.slane %v868_v31, 4  ;;  %v873_v35 = vrot.slane %v871_v32, 5 }
  0x4f   : > { %v874_v38 = vor.u32 %v873_v35, %v870_v63 }
  0x51   : > { %664 = vrot.lane.b32.xlu0 %v1485_v19, %s1774_s30  ;;  %639 = vrot.lane.b32.xlu1 %v1485_v19, %s1776_s5 }
  0x55   : > { %595 = vrot.lane.b32.xlu0 %v594_v15, %s1775_s4  ;;  %724 = vrot.lane.b32.xlu1 %v1495_v24, %s1776_s5 }
  0x59   : > { %679 = vrot.lane.b32.xlu0 %v678_v34, %s1775_s4  ;;  %689 = vrot.lane.b32.xlu1 %v1489_v62, %s1776_s5 }
  0x5d   : > { %605 = vrot.lane.b32.xlu0 %v1474_v37, %s1776_s5  ;;  %875 = vrot.lane.b32.xlu1 %v874_v38, %s1774_s30 }
  0x61   : > { %790 = vrot.lane.b32.xlu0 %v789_v41, %s1774_s30  ;;  %800 = vrot.lane.b32.xlu1 %v1998_v5, %s1775_s4  ;;  %v761_v5 = vor.u32 %v760_v50, %v756_v49 }
  0x65   : > { %747 = vrot.lane.b32.xlu0 %v1495_v24, %s1774_s30  ;;  %885 = vrot.lane.b32.xlu1 %v1523_v16, %s1775_s4 }
  0x69   : > { %831 = vrot.lane.b32.xlu0 %v1514_v14, %s1774_s30  ;;  %806 = vrot.lane.b32.xlu1 %v1514_v14, %s1776_s5 }
  0x6d   : > { %762 = vrot.lane.b32.xlu0 %v761_v5, %s1775_s4  ;;  %891 = vrot.lane.b32.xlu1 %v1524_v23, %s1776_s5 }
  0x71   : > { %846 = vrot.lane.b32.xlu0 %v845_v48, %s1775_s4  ;;  %856 = vrot.lane.b32.xlu1 %v1518_v25, %s1776_s5  ;;  %s1561_s4 = sshll.u32 %s2234_s12, 5 }
  0x72   : > { %s2210_s7 = scalar_lea.vmem %s2228_s3, %s1561_s4 }
  0x75   : > { %772 = vrot.lane.b32.xlu0 %v1503_v18, %s1776_s5 }
  0x87   : > { %v240_v12 = vpop.permute.xlu1 %239 }
  0x88   : > { %v328_v56 = vpop.permute.xlu0 %327  ;;  %243 = vst.msk [vmem:[#allocation2] sm:$0xf] %vm242_vm3, %v240_v12 }
  0x89   : > { %331 = vst.msk [vmem:[#allocation2] sm:$0xf0] %vm330_vm4, %v328_v56 }
  0x8b   : > { %v296_v46 = vpop.permute.xlu1 %295 }
  0x8f   : > { %v286_v57 = vpop.permute.xlu0 %285  ;;  %v385_v58 = vpop.permute.xlu1 %384 }
  0x90   : > { %288 = vst.msk [vmem:[#allocation2 + $0x8] sm:$0xf] %vm242_vm3, %v286_v57 }
  0x91   : > { %298 = vst.msk [vmem:[#allocation2 + $0x8] sm:$0xf] %vm258_vm5, %v296_v46  ;;  %v1526_v46 = vld [vmem:[%s2227_s2] ss:$0 sm:$0xff] }
  0x93   : > { %v375_v60 = vpop.permute.xlu0 %374  ;;  %v302_v61 = vpop.permute.xlu1 %301 }
  0x94   : > { %377 = vst.msk [vmem:[#allocation2 + $0x8] sm:$0xf0] %vm330_vm4, %v375_v60 }
  0x95   : > { %304 = vst.msk [vmem:[#allocation2 + $0x8] sm:$0xf] %vm269_vm6, %v302_v61 }
  0x96   : > { %387 = vst.msk [vmem:[#allocation2 + $0x8] sm:$0xf0] %vm346_vm7, %v385_v58 }
  0x97   : > { %v256_v0 = vpop.permute.xlu0 %255  ;;  %v391_v1 = vpop.permute.xlu1 %390 }
  0x98   : > { %259 = vst.msk [vmem:[#allocation2] sm:$0xf] %vm258_vm5, %v256_v0 }
  0x99   : > { %393 = vst.msk [vmem:[#allocation2 + $0x8] sm:$0xf0] %vm357_vm8, %v391_v1 }
  0x9b   : > { %v344_v3 = vpop.permute.xlu0 %343  ;;  %v355_v4 = vpop.permute.xlu1 %354 }
  0x9c   : > { %347 = vst.msk [vmem:[#allocation2] sm:$0xf0] %vm346_vm7, %v344_v3 }
  0x9d   : > { %358 = vst.msk [vmem:[#allocation2] sm:$0xf0] %vm357_vm8, %v355_v4 }
  0x9f   : > { %v267_v6 = vpop.permute.xlu0 %266  ;;  %v542_v7 = vpop.permute.xlu1 %541 }
  0xa0   : > { %v909_v8 = vld [vmem:[#allocation2 + $0x8] sm:$0xff]  ;;  %270 = vst.msk [vmem:[#allocation2] sm:$0xf] %vm269_vm6, %v267_v6 }
  0xa1   : > { %544 = vst.msk [vmem:[#allocation2 + $0x20] sm:$0xf0] %vm330_vm4, %v542_v7  ;;  %1151 = vmatprep.mubr.bf16.mxu0 %v909_v8 }
  0xa3   : > { %v457_v55 = vpop.permute.xlu0 %456  ;;  %v467_v9 = vpop.permute.xlu1 %466 }
  0xa4   : > { %459 = vst.msk [vmem:[#allocation2 + $0x20] sm:$0xf] %vm242_vm3, %v457_v55 }
  0xa5   : > { %469 = vst.msk [vmem:[#allocation2 + $0x20] sm:$0xf] %vm258_vm5, %v467_v9 }
  0xa7   : > { %v414_v10 = vpop.permute.xlu0 %413  ;;  %v908_v59 = vld [vmem:[#allocation2] sm:$0xff]  ;;  %v552_v13 = vpop.permute.xlu1 %551 }
  0xa8   : > { %416 = vst.msk [vmem:[#allocation2 + $0x18] sm:$0xf] %vm242_vm3, %v414_v10  ;;  %1152 = vmatmul.mubr.bf16.vlgmr.msra.gmra.mrb[0].mxu0 %v908_v59 }
  0xa9   : > { %554 = vst.msk [vmem:[#allocation2 + $0x20] sm:$0xf0] %vm346_vm7, %v552_v13 }
  0xab   : > { %v498_v17 = vpop.permute.xlu0 %497  ;;  %v473_v42 = vpop.permute.xlu1 %472 }
  0xac   : > { %500 = vst.msk [vmem:[#allocation2 + $0x18] sm:$0xf0] %vm330_vm4, %v498_v17 }
  0xad   : > { %475 = vst.msk [vmem:[#allocation2 + $0x20] sm:$0xf] %vm269_vm6, %v473_v42 }
  0xaf   : > { %v429_v19 = vpop.permute.xlu0 %428  ;;  %v558_v20 = vpop.permute.xlu1 %557 }
  0xb0   : > { %431 = vst.msk [vmem:[#allocation2 + $0x18] sm:$0xf] %vm258_vm5, %v429_v19 }
  0xb1   : > { %560 = vst.msk [vmem:[#allocation2 + $0x20] sm:$0xf0] %vm357_vm8, %v558_v20 }
  0xb3   : > { %v513_v21 = vpop.permute.xlu0 %512  ;;  %v523_v29 = vpop.permute.xlu1 %522 }
  0xb4   : > { %515 = vst.msk [vmem:[#allocation2 + $0x18] sm:$0xf0] %vm346_vm7, %v513_v21 }
  0xb5   : > { %525 = vst.msk [vmem:[#allocation2 + $0x18] sm:$0xf0] %vm357_vm8, %v523_v29 }
  0xb7   : > { %v439_v11 = vpop.permute.xlu0 %438  ;;  %v709_v22 = vpop.permute.xlu1 %708 }
  0xb8   : > { %v912_v24 = vld [vmem:[#allocation2 + $0x20] sm:$0xff]  ;;  %441 = vst.msk [vmem:[#allocation2 + $0x18] sm:$0xf] %vm269_vm6, %v439_v11 }
  0xb9   : > { %711 = vst.msk [vmem:[#allocation2 + $0x38] sm:$0xf0] %vm330_vm4, %v709_v22  ;;  %1159 = vmatprep.mubr.bf16.mxu0 %v912_v24 }
  0xbb   : > { %v624_v26 = vpop.permute.xlu0 %623  ;;  %v634_v27 = vpop.permute.xlu1 %633 }
  0xbc   : > { %626 = vst.msk [vmem:[#allocation2 + $0x38] sm:$0xf] %vm242_vm3, %v624_v26 }
  0xbd   : > { %636 = vst.msk [vmem:[#allocation2 + $0x38] sm:$0xf] %vm258_vm5, %v634_v27 }
  0xbf   : > { %v581_v28 = vpop.permute.xlu0 %580  ;;  %v911_v30 = vld [vmem:[#allocation2 + $0x18] sm:$0xff]  ;;  %v719_v15 = vpop.permute.xlu1 %718 }
  0xc0   : > { %583 = vst.msk [vmem:[#allocation2 + $0x30] sm:$0xf] %vm242_vm3, %v581_v28  ;;  %1160 = vmatmul.mubr.bf16.gmra.mrb[4].mxu0 %v911_v30 }
  0xc1   : > { %721 = vst.msk [vmem:[#allocation2 + $0x38] sm:$0xf0] %vm346_vm7, %v719_v15 }
  0xc3   : > { %v665_v31 = vpop.permute.xlu0 %664  ;;  %v640_v32 = vpop.permute.xlu1 %639 }
  0xc4   : > { %667 = vst.msk [vmem:[#allocation2 + $0x30] sm:$0xf0] %vm330_vm4, %v665_v31 }
  0xc5   : > { %642 = vst.msk [vmem:[#allocation2 + $0x38] sm:$0xf] %vm269_vm6, %v640_v32 }
  0xc7   : > { %v596_v33 = vpop.permute.xlu0 %595  ;;  %v725_v62 = vpop.permute.xlu1 %724 }
  0xc8   : > { %598 = vst.msk [vmem:[#allocation2 + $0x30] sm:$0xf] %vm258_vm5, %v596_v33 }
  0xc9   : > { %727 = vst.msk [vmem:[#allocation2 + $0x38] sm:$0xf0] %vm357_vm8, %v725_v62 }
  0xcb   : > { %v680_v34 = vpop.permute.xlu0 %679  ;;  %v690_v63 = vpop.permute.xlu1 %689 }
  0xcc   : > { %682 = vst.msk [vmem:[#allocation2 + $0x30] sm:$0xf0] %vm346_vm7, %v680_v34 }
  0xcd   : > { %692 = vst.msk [vmem:[#allocation2 + $0x30] sm:$0xf0] %vm357_vm8, %v690_v63 }
  0xcf   : > { %v606_v35 = vpop.permute.xlu0 %605  ;;  %v876_v36 = vpop.permute.xlu1 %875 }
  0xd0   : > { %v915_v47 = vld [vmem:[#allocation2 + $0x38] sm:$0xff]  ;;  %608 = vst.msk [vmem:[#allocation2 + $0x30] sm:$0xf] %vm269_vm6, %v606_v35 }
  0xd1   : > { %878 = vst.msk [vmem:[#allocation2 + $0x50] sm:$0xf0] %vm330_vm4, %v876_v36  ;;  %1167 = vmatprep.mubr.bf16.mxu0 %v915_v47 }
  0xd3   : > { %v791_v37 = vpop.permute.xlu0 %790  ;;  %v801_v38 = vpop.permute.xlu1 %800 }
  0xd4   : > { %793 = vst.msk [vmem:[#allocation2 + $0x50] sm:$0xf] %vm242_vm3, %v791_v37 }
  0xd5   : > { %803 = vst.msk [vmem:[#allocation2 + $0x50] sm:$0xf] %vm258_vm5, %v801_v38 }
  0xd7   : > { %v748_v39 = vpop.permute.xlu0 %747  ;;  %v914_v2 = vld [vmem:[#allocation2 + $0x30] sm:$0xff]  ;;  %v886_v40 = vpop.permute.xlu1 %885 }
  0xd8   : > { %750 = vst.msk [vmem:[#allocation2 + $0x48] sm:$0xf] %vm242_vm3, %v748_v39  ;;  %1168 = vmatmul.mubr.bf16.gmra.mrb[8].mxu0 %v914_v2 }
  0xd9   : > { %888 = vst.msk [vmem:[#allocation2 + $0x50] sm:$0xf0] %vm346_vm7, %v886_v40 }
  0xdb   : > { %v832_v41 = vpop.permute.xlu0 %831  ;;  %v807_v43 = vpop.permute.xlu1 %806 }
  0xdc   : > { %834 = vst.msk [vmem:[#allocation2 + $0x48] sm:$0xf0] %vm330_vm4, %v832_v41 }
  0xdd   : > { %809 = vst.msk [vmem:[#allocation2 + $0x50] sm:$0xf] %vm269_vm6, %v807_v43 }
  0xdf   : > { %v763_v16 = vpop.permute.xlu0 %762  ;;  %v892_v44 = vpop.permute.xlu1 %891 }
  0xe0   : > { %765 = vst.msk [vmem:[#allocation2 + $0x48] sm:$0xf] %vm258_vm5, %v763_v16 }
  0xe1   : > { %894 = vst.msk [vmem:[#allocation2 + $0x50] sm:$0xf0] %vm357_vm8, %v892_v44 }
  0xe3   : > { %v847_v45 = vpop.permute.xlu0 %846  ;;  %v857_v14 = vpop.permute.xlu1 %856 }
  0xe4   : > { %849 = vst.msk [vmem:[#allocation2 + $0x48] sm:$0xf0] %vm346_vm7, %v847_v45 }
  0xe5   : > { %859 = vst.msk [vmem:[#allocation2 + $0x48] sm:$0xf0] %vm357_vm8, %v857_v14 }
  0xe7   : > { %v773_v49 = vpop.permute.xlu0 %772 }
  0xe8   : > { %v918_v50 = vld [vmem:[#allocation2 + $0x50] sm:$0xff]  ;;  %775 = vst.msk [vmem:[#allocation2 + $0x48] sm:$0xf] %vm269_vm6, %v773_v49 }
  0xe9   : > { %1175 = vmatprep.mubr.bf16.mxu0 %v918_v50 }
  0xef   : > { %v917_v51 = vld [vmem:[#allocation2 + $0x48] sm:$0xff] }
  0xf0   : > { %1176 = vmatmul.mubr.bf16.gmra.mrb[12].mxu0 %v917_v51 }
 0x111   : > { %v1663_v52 = vpop.f32.mrb[0].mxu1 }
 0x112   : > { %v1218_v5 = vpop.f32.mrb[1].mxu1 }
 0x113   : > { %v1664_v23 = vpop.f32.mrb[2].mxu1 }
 0x114   : > { %v1221_v53 = vpop.f32.mrb[3].mxu1 }
 0x119   : > { %v1667_v54 = vpop.f32.mrb[4].mxu1 }
 0x11a   : > { %v1234_v48 = vpop.f32.mrb[5].mxu1 }
 0x11b   : > { %v1668_v25 = vpop.f32.mrb[6].mxu1 }
 0x11c   : > { %v1237_v18 = vpop.f32.mrb[7].mxu1 }
 0x17b   : > { %v1609_v12 = vpop.f32.mrb[0].mxu0 }
 0x17c   : > { %v1610_v56 = vpop.f32.mrb[1].mxu0 }
 0x17d   : > { %v1611_v57 = vadd.f32 %v1610_v56, %v1609_v12  ;;  %v1612_v58 = vpop.f32.mrb[2].mxu0 }
 0x17e   : > { %v1613_v60 = vpop.f32.mrb[3].mxu0 }
 0x17f   : > { %v1614_v61 = vadd.f32 %v1613_v60, %v1612_v58  ;;  %v1154_v0 = vadd.f32 %v1611_v57, %v1526_v46 }
 0x181   : > { %v1219_v1 = vadd.f32 %v1218_v5, %v1154_v0  ;;  %v1157_v3 = vadd.f32 %v1614_v61, %v1526_v46 }
 0x183   : > { %v1222_v4 = vadd.f32 %v1221_v53, %v1157_v3  ;;  %v1249_v6 = vmax.f32 %v1219_v1, 0.0 }
 0x185   : > { %v1250_v7 = vmax.f32 %v1222_v4, 0.0 }
 0x187   : > { %v1573_v8 = vpack.c.bf16 %v1250_v7, %v1249_v6 }
 0x189   : > { %1574 = vst [vmem:[%s2210_s7] sm:$0xff] %v1573_v8  }
 0x193   : > { %v1615_v55 = vpop.f32.mrb[4].mxu0 }
 0x194   : > { %v1616_v9 = vpop.f32.mrb[5].mxu0 }
 0x195   : > { %v1617_v10 = vadd.f32 %v1616_v9, %v1615_v55  ;;  %v1618_v59 = vpop.f32.mrb[6].mxu0 }
 0x196   : > { %v1619_v13 = vpop.f32.mrb[7].mxu0 }
 0x197   : > { %v1162_v17 = vadd.f32 %v1617_v10, %v1526_v46  ;;  %v1620_v42 = vadd.f32 %v1619_v13, %v1618_v59 }
 0x199   : > { %v1227_v19 = vadd.f32 %v1663_v52, %v1162_v17  ;;  %v1165_v20 = vadd.f32 %v1620_v42, %v1526_v46 }
 0x19b   : > { %v1230_v21 = vadd.f32 %v1664_v23, %v1165_v20  ;;  %v1251_v29 = vmax.f32 %v1227_v19, 0.0 }
 0x19d   : > { %v1252_v11 = vmax.f32 %v1230_v21, 0.0 }
 0x19f   : > { %v1578_v22 = vpack.c.bf16 %v1252_v11, %v1251_v29 }
 0x1a1   : > { %1590 = vst [vmem:[%s2210_s7 + $0x8] sm:$0xff] %v1578_v22  }
 0x1ab   : > { %v1621_v24 = vpop.f32.mrb[8].mxu0 }
 0x1ac   : > { %v1622_v26 = vpop.f32.mrb[9].mxu0 }
 0x1ad   : > { %v1623_v27 = vadd.f32 %v1622_v26, %v1621_v24  ;;  %v1624_v28 = vpop.f32.mrb[10].mxu0 }
 0x1ae   : > { %v1625_v30 = vpop.f32.mrb[11].mxu0 }
 0x1af   : > { %v1626_v15 = vadd.f32 %v1625_v30, %v1624_v28  ;;  %v1170_v31 = vadd.f32 %v1623_v27, %v1526_v46 }
 0x1b1   : > { %v1235_v32 = vadd.f32 %v1234_v48, %v1170_v31  ;;  %v1173_v33 = vadd.f32 %v1626_v15, %v1526_v46 }
 0x1b3   : > { %v1238_v62 = vadd.f32 %v1237_v18, %v1173_v33  ;;  %v1253_v34 = vmax.f32 %v1235_v32, 0.0 }
 0x1b5   : > { %v1254_v63 = vmax.f32 %v1238_v62, 0.0 }
 0x1b7   : > { %v1583_v35 = vpack.c.bf16 %v1254_v63, %v1253_v34 }
 0x1b9   : > { %1591 = vst [vmem:[%s2210_s7 + $0x10] sm:$0xff] %v1583_v35  }
 0x1c3   : > { %v1627_v36 = vpop.f32.mrb[12].mxu0 }
 0x1c4   : > { %v1628_v47 = vpop.f32.mrb[13].mxu0 }
 0x1c5   : > { %v1629_v37 = vadd.f32 %v1628_v47, %v1627_v36  ;;  %v1630_v38 = vpop.f32.mrb[14].mxu0 }
 0x1c6   : > { %v1631_v39 = vpop.f32.mrb[15].mxu0 }
 0x1c7   : > { %v1178_v2 = vadd.f32 %v1629_v37, %v1526_v46  ;;  %v1632_v40 = vadd.f32 %v1631_v39, %v1630_v38 }
 0x1c9   : > { %v1243_v41 = vadd.f32 %v1667_v54, %v1178_v2  ;;  %v1181_v43 = vadd.f32 %v1632_v40, %v1526_v46 }
 0x1cb   : > { %v1246_v16 = vadd.f32 %v1668_v25, %v1181_v43  ;;  %v1255_v44 = vmax.f32 %v1243_v41, 0.0 }
 0x1cd   : > { %v1256_v45 = vmax.f32 %v1246_v16, 0.0 }
 0x1cf   : > { %v1588_v14 = vpack.c.bf16 %v1256_v45, %v1255_v44 }
 0x1d1   : > { %1592 = vst [vmem:[%s2210_s7 + $0x18] sm:$0xff] %v1588_v14  }
 0x1d2 PF: > { %s13_s14 = sadd.s32 1, %s1771_s14   ;;  %s2229_s12 = smov %s1767_s13 }
 0x1d3   : > { %p10_p5 = scmp.ge.s32.totalorder %s13_s14, 4   ;;  %s2230_s13 = smov %s2232_s15 }
 0x1d5   :  { %12 = sbr.rel (!%p10_p5) target bundleno = 2 (0x2), region = 88 }

// kernel: cnn_encoder_forward.10
= control target key start
LH: loop header
LB: loop body
LE: loop exit
PB: predicated region body
PF: predicated region fallthrough
CT: control target
= control target key end

     0   :  { %s1404_s12 = smov 0   ;;  %s1406_s13 = smov 0   ;;  %s1763_s0 = inlined_call_operand.vmem [shape: bf16[2,10,5,256], index: 0, kind: input, shape index: {}]   ;;  %s1764_s1 = inlined_call_operand.vmem [shape: bf16[640,128], index: 1, kind: input, shape index: {}]   ;;  %s1765_s2 = inlined_call_operand.vmem [shape: f32[1,128], index: 2, kind: input, shape index: {}]   ;;  %s1766_s3 = inlined_call_operand.vmem [shape: bf16[2,16,128], index: 3, kind: output, shape index: {}]  }
   0x1   :  { %s1408_s14 = smov 0  }
   0x2 LB: > { %s25_s15 = sadd.s32 1, %s1374_s13  ;;  %p1102_p0 = scmp.ge.s32.totalorder %s1378_s14, 1  ;;  %s1378_s14 = sphi %s1408_s14, %s13_s14   ;;  %s1374_s13 = sphi %s1406_s13, %s1768_s13   ;;  %s1370_s12 = sphi %s1404_s12, %s1767_s12  }
   0x3   : > { %p27_p1 = scmp.ge.s32.totalorder %s25_s15, 2  ;;  %p168_p2 = scmp.lt.s32.totalorder %s1378_s14, 3 }
   0x5   : > { %s1770_s15 = smov (%p27_p1, %s25_s15), 0  ;;  %p169_p3 = pnand %p1102_p0, %p168_p2 }
   0x6   : > { %p202_p4 = scmp.lt.s32.totalorder (!%p169_p3), %s1370_s12, 1  ;;  %v1316_v0 = vld [vmem:[%s1764_s1 + $0x40] sm:$0xff] (!%p169_p3)   ;;  %vm227_vm0 = vcmask (!%p169_p3), 1048064   ;;  %v1318_v2 = vld [vmem:[%s1764_s1 + $0x48] sm:$0xff] (!%p169_p3)   ;;  %v1380_v4 = vmov (!%p169_p3), 0   ;;  %v1320_v5 = vld [vmem:[%s1764_s1 + $0x50] sm:$0xff] (!%p169_p3)  }
   0x7   : > { %172 = sbr.rel (%p169_p3) target bundleno = 410 (0x19a), region = 32  ;;  %v1317_v1 = vld [vmem:[%s1764_s1] sm:$0xff] (!%p169_p3)   ;;  %1194 = vmatprep.subr.bf16.mxu0 (!%p169_p3), %v1316_v0  ;;  %v1319_v3 = vld [vmem:[%s1764_s1 + $0x8] sm:$0xff] (!%p169_p3)   ;;  %228 = vst.msk [vmem:[#allocation2 + $0x20] sm:$0xff] (!%p169_p3), %vm227_vm0, %v1380_v4  ;;  %v1321_v6 = vld [vmem:[%s1764_s1 + $0x10] sm:$0xff] (!%p169_p3)   ;;  %vm379_vm1 = vcmask (!%p169_p3), 521220  }
   0x8   : > { %1195 = vmatpush3.bf16.msra.mxu0 (!%p169_p3), %v1317_v1  ;;  %s1381_s5 = smov (!%p169_p3), 64   ;;  %v1322_v29 = vld [vmem:[%s1764_s1 + $0x58] sm:$0xff] (!%p169_p3)   ;;  %v1324_v39 = vld [vmem:[%s1764_s1 + $0x60] sm:$0xff] (!%p169_p3)   ;;  %vm230_vm2 = vcmask (!%p169_p3), 517120   ;;  %vm452_vm3 = vcmask (!%p169_p3), 523270   ;;  %vm302_vm4 = vcmask (!%p169_p3), 519170  }
   0x9   : > { %1196 = vmatprep.subr.bf16.mxu0 (!%p169_p3), %v1318_v2  ;;  %v1323_v34 = vld [vmem:[%s1764_s1 + $0x18] sm:$0xff] (!%p169_p3)   ;;  %v1326_v48 = vld [vmem:[%s1764_s1 + $0xc0] sm:$0xff] (!%p169_p3)   ;;  %vm386_vm5 = vcmask (!%p169_p3), 1046020   ;;  %vm238_vm6 = vcmask (!%p169_p3), 1041920   ;;  %vm460_vm7 = vcmask (!%p169_p3), 1048070   ;;  %vm310_vm8 = vcmask (!%p169_p3), 1043970  }
   0xa   : > { %v1325_v53 = vld [vmem:[%s1764_s1 + $0x20] sm:$0xff] (!%p169_p3)   ;;  %1216 = vmatprep.subr.bf16.mxu1 (!%p169_p3), %v1326_v48  ;;  %vm1383_vm9 = vmmov (!%p169_p3), 0  }
   0xb   : > { %v1327_v58 = vld [vmem:[%s1764_s1 + $0x80] sm:$0xff] (!%p169_p3)  }
   0xc   : > { %1197 = vmatpush3.bf16.msra.mxu0 (!%p169_p3), %v1319_v3  ;;  %1217 = vmatpush3.bf16.msra.mxu1 (!%p169_p3), %v1327_v58  ;;  %v1328_v3 = vld [vmem:[%s1764_s1 + $0x68] sm:$0xff] (!%p169_p3)  }
   0xd   : > { %1198 = vmatprep.subr.bf16.mxu0 (!%p169_p3), %v1320_v5 }
   0xe   : > { %s1772_s12 = smov (!%p202_p4, %s1370_s12), 1 }
   0xf   : > { %s1267_s22 = smul.u32 80, %s1772_s12  ;;  %s1186_s8 = sshll.u32 %s1772_s12, 3 }
  0x10   : > { %1199 = vmatpush3.bf16.msra.mxu0 %v1321_v6  ;;  %s221_s11 = scalar_lea.vmem %s1766_s3, %s1186_s8 }
  0x11   : > { %s1443_s29 = scalar_lea.vmem %s1763_s0, %s1267_s22  ;;  %1200 = vmatprep.subr.bf16.mxu0 %v1322_v29 }
  0x12   : > { %v1449_v7 = vld [vmem:[%s1443_s29 + $0x28] sm:$0x77]  ;;  %v1455_v9 = vld [vmem:[%s1443_s29 + $0x38] sm:$0x77]  ;;  %v1470_v13 = vld [vmem:[%s1443_s29] sm:$0x77] }
  0x13   : > { %v1452_v8 = vld [vmem:[%s1443_s29 + $0x8] sm:$0x77]  ;;  %v1459_v10 = vcombine.low %v1449_v7, %v1449_v7  ;;  %v1467_v12 = vcombine.low %v1455_v9, %v1455_v9  ;;  %v1114_v14 = vld [vmem:[%s1443_s29 + $0x10] sm:$0x77]  ;;  %v1474_v15 = vld [vmem:[%s1443_s29 + $0x18] sm:$0x77]  ;;  %v1106_v20 = vcombine.high %v1470_v13, %v1470_v13  ;;  %v1507_v30 = vcombine.low %v1470_v13, %v1470_v13 }
  0x14   : > { %v1463_v11 = vcombine.low %v1452_v8, %v1452_v8  ;;  %v1116_v16 = vcombine.high %v1114_v14, %v1114_v14  ;;  %v1132_v17 = vld [vmem:[%s1443_s29 + $0x30] sm:$0x77]  ;;  %v1120_v18 = vld [vmem:[%s1443_s29 + $0x20] sm:$0x77]  ;;  %v1118_v21 = vcombine.low %v1474_v15, %v1474_v15  ;;  %v1515_v35 = vcombine.low %v1114_v14, %v1114_v14  ;;  %1201 = vmatpush3.bf16.msra.mxu0 %v1323_v34 }
  0x15   : > { %403 = vrot.lane.b32.xlu1 %v1459_v10, %s1381_s5  ;;  %v477_v19 = vrot.slane %v1467_v12, 2  ;;  %v1134_v22 = vcombine.high %v1132_v17, %v1132_v17  ;;  %v1488_v23 = vld [vmem:[%s1443_s29 + $0x20] sm:$0x77]  ;;  %v1491_v24 = vld [vmem:[%s1443_s29 + $0x10] sm:$0x77]  ;;  %v1497_v27 = vcombine.low %v1120_v18, %v1120_v18  ;;  %v1122_v32 = vcombine.high %v1120_v18, %v1120_v18  ;;  %1202 = vmatprep.subr.bf16.mxu0 %v1324_v39 }
  0x16   : > { %256 = vrot.lane.b32.xlu0 %v1463_v11, %s1381_s5  ;;  %v306_v25 = vrot.slane %v1116_v16, 6  ;;  %v1495_v26 = vcombine.low %v1488_v23, %v1488_v23  ;;  %v1500_v28 = vld [vmem:[%s1443_s29 + $0x40] sm:$0x77]  ;;  %v327_v31 = vrot.slane %v1118_v21, 6  ;;  %v1510_v33 = vld [vmem:[%s1443_s29 + $0x30] sm:$0x77]  ;;  %v1517_v36 = vcombine.low %v1132_v17, %v1132_v17 }
  0x17   : > { %v365_v37 = vshrl.u32 %v1497_v27, 16  ;;  %v1113_v38 = vcombine.low %v1491_v24, %v1491_v24  ;;  %v456_v40 = vrot.slane %v1134_v22, 2  ;;  %v368_v41 = vshll.u32 %v1497_v27, 16  ;;  %v1329_v16 = vld [vmem:[%s1764_s1 + $0x28] sm:$0xff]   ;;  %231 = vst.msk [vmem:[#allocation2] sm:$0x3] %vm230_vm2, %v1470_v13 }
  0x18   : > { %380 = vst.msk [vmem:[#allocation2] sm:$0x30] %vm379_vm1, %v1495_v26  ;;  %v1532_v42 = vcombine.low %v1500_v28, %v1500_v28  ;;  %v1130_v43 = vcombine.low %v1510_v33, %v1510_v33  ;;  %v1536_v44 = vrot.slane %v1122_v32, 6  ;;  %v1125_v49 = vcombine.high %v1488_v23, %v1488_v23  ;;  %1203 = vmatpush3.bf16.msra.mxu0 %v1325_v53  ;;  %v1333_v13 = vld [vmem:[%s1764_s1 + $0x30] sm:$0xff]  }
  0x19   : > { %478 = vrot.lane.b32.xlu1 %v477_v19, %s1381_s5  ;;  %v1538_v45 = vrot.slane %v365_v37, 6  ;;  %v288_v46 = vshrl.u32 %v1113_v38, 16  ;;  %v290_v47 = vshll.u32 %v1113_v38, 16  ;;  %v1140_v55 = vcombine.high %v1500_v28, %v1500_v28  ;;  %1204 = vmatprep.subr.bf16.mxu0 %v1328_v3  ;;  %v1332_v38 = vld [vmem:[%s1764_s1 + $0x70] sm:$0xff]   ;;  %277 = vst.msk [vmem:[#allocation2 + $0x18] sm:$0x3] %vm230_vm2, %v1491_v24 }
  0x1a   : > { %235 = vrot.lane.b32.xlu0 %v1106_v20, %s1381_s5  ;;  %v515_v50 = vshrl.u32 %v1532_v42, 16  ;;  %v518_v51 = vshll.u32 %v1532_v42, 16  ;;  %v437_v52 = vshrl.u32 %v1130_v43, 16  ;;  %429 = vst.msk [vmem:[#allocation2 + $0x18] sm:$0x30] %vm379_vm1, %v1130_v43  ;;  %v440_v56 = vshll.u32 %v1130_v43, 16 }
  0x1b   : > { %v292_v54 = vrot.slane %v290_v47, 1  ;;  %v338_v57 = vshrl.u32 %v1118_v21, 16  ;;  %v341_v62 = vshll.u32 %v1118_v21, 16  ;;  %v370_v63 = vrot.slane %v368_v41, 7  ;;  %v1330_v21 = vld [vmem:[%s1764_s1 + $0xc8] sm:$0xff]   ;;  %v1334_v53 = vld [vmem:[%s1764_s1 + $0xd0] sm:$0xff]  }
  0x1c   : > { %v517_v59 = vrot.slane %v515_v50, 2  ;;  %v520_v60 = vrot.slane %v518_v51, 3  ;;  %v439_v61 = vrot.slane %v437_v52, 4  ;;  %v1112_v0 = vcombine.high %v1491_v24, %v1491_v24  ;;  %1218 = vmatprep.subr.bf16.mxu1 %v1330_v21  ;;  %1205 = vmatpush3.bf16.msra.mxu0 %v1329_v16  ;;  %v1340_v3 = vld [vmem:[%s1764_s1 + $0xe0] sm:$0xff]   ;;  %v1348_v16 = vld [vmem:[%s1764_s1 + $0xb0] sm:$0xff]  }
  0x1d   : > { %307 = vrot.lane.b32.xlu1 %v306_v25, %s1381_s5  ;;  %v442_v1 = vrot.slane %v440_v56, 5  ;;  %v1560_v2 = vrot.slane %v338_v57, 6  ;;  %v293_v4 = vor.u32 %v292_v54, %v288_v46  ;;  %v1565_v5 = vrot.slane %v341_v62, 7  ;;  %1206 = vmatprep.subr.bf16.mxu0 %v1332_v38  ;;  %v1344_v38 = vld [vmem:[%s1764_s1 + $0x108] sm:$0xff]  }
  0x1e   : > { %328 = vrot.lane.b32.xlu0 %v327_v31, %s1381_s5  ;;  %v267_v6 = vshll.u32 %v1463_v11, 16  ;;  %v488_v14 = vshrl.u32 %v1467_v12, 16  ;;  %v491_v18 = vshll.u32 %v1467_v12, 16  ;;  %v412_v19 = vshrl.u32 %v1459_v10, 16  ;;  %v1331_v12 = vld [vmem:[%s1764_s1 + $0x88] sm:$0xff]  }
  0x1f   : > { %v443_v17 = vor.u32 %v442_v1, %v439_v61  ;;  %v415_v20 = vshll.u32 %v1459_v10, 16  ;;  %v509_v22 = vrot.slane %v1140_v55, 2  ;;  %v521_v23 = vor.u32 %v520_v60, %v517_v59  ;;  %1219 = vmatpush3.bf16.msra.mxu1 %v1331_v12  ;;  %295 = vst.msk [vmem:[#allocation2 + $0x20] sm:$0x3] %vm230_vm2, %v293_v4  ;;  %v1337_v61 = vld [vmem:[%s1764_s1 + $0x38] sm:$0xff]   ;;  %v1342_v4 = vld [vmem:[%s1764_s1 + $0xa0] sm:$0xff]  }
  0x20   : > { %v265_v25 = vshrl.u32 %v1463_v11, 16  ;;  %v389_v28 = vshrl.u32 %v1495_v26, 16  ;;  %v269_v10 = vrot.slane %v267_v6, 1  ;;  %v1585_v29 = vrot.slane %v488_v14, 2  ;;  %1207 = vmatpush3.bf16.msra.mxu0 %v1333_v13  ;;  %1220 = vmatprep.subr.bf16.mxu1 %v1334_v53  ;;  %v1338_v1 = vld [vmem:[%s1764_s1 + $0xd8] sm:$0xff]   ;;  %v1345_v6 = vld [vmem:[%s1764_s1 + $0xa8] sm:$0xff]  }
  0x21   : > { %457 = vrot.lane.b32.xlu1 %v456_v40, %s1381_s5  ;;  %v1587_v31 = vrot.slane %v491_v18, 3  ;;  %445 = vst.msk [vmem:[#allocation2 + $0x20] sm:$0x30] %vm379_vm1, %v443_v17  ;;  %v392_v32 = vshll.u32 %v1495_v26, 16  ;;  %v371_v34 = vor.u32 %v370_v63, %v1538_v45  ;;  %v1592_v37 = vrot.slane %v412_v19, 4  ;;  %v1346_v14 = vld [vmem:[%s1764_s1 + $0xf0] sm:$0xff]  }
  0x22   : > { %383 = vrot.lane.b32.xlu0 %v1125_v49, %s1381_s5  ;;  %v391_v11 = vrot.slane %v389_v28, 4  ;;  %v1131_v39 = vcombine.high %v1510_v33, %v1510_v33  ;;  %v344_v40 = vor.u32 %v1565_v5, %v1560_v2  ;;  %v1601_v26 = vrot.slane %v415_v20, 5  ;;  %523 = vst.msk [vmem:[#allocation2 + $0x20] sm:$0xc0] %vm452_vm3, %v521_v23  ;;  %v1339_v2 = vld [vmem:[%s1764_s1 + $0x98] sm:$0xff]   ;;  %v1343_v5 = vld [vmem:[%s1764_s1 + $0xe8] sm:$0xff]  }
  0x23   : > { %v394_v41 = vrot.slane %v392_v32, 5  ;;  %v243_v33 = vshrl.u32 %v1507_v30, 16  ;;  %v245_v43 = vshll.u32 %v1507_v30, 16  ;;  %v463_v45 = vshrl.u32 %v1517_v36, 16  ;;  %373 = vst.msk [vmem:[#allocation2 + $0x20] sm:$0xc] %vm302_vm4, %v371_v34 }
  0x24   : > { %v270_v46 = vor.u32 %v269_v10, %v265_v25  ;;  %v466_v48 = vshll.u32 %v1517_v36, 16  ;;  %v300_v30 = vrot.slane %v1515_v35, 6  ;;  %v313_v49 = vshrl.u32 %v1515_v35, 16  ;;  %v1349_v17 = vld [vmem:[%s1764_s1 + $0xf8] sm:$0xff]   ;;  %v1341_v32 = vld [vmem:[%s1764_s1 + $0x100] sm:$0xff]   ;;  %v1354_v13 = vld [vmem:[%s1764_s1 + $0x130] sm:$0xff]  }
  0x25   : > { %360 = vrot.lane.b32.xlu1 %v1536_v44, %s1381_s5  ;;  %v395_v47 = vor.u32 %v394_v41, %v391_v11  ;;  %v247_v24 = vrot.slane %v245_v43, 1  ;;  %v465_v44 = vrot.slane %v463_v45, 2  ;;  %v316_v51 = vshll.u32 %v1515_v35, 16  ;;  %v1351_v18 = vld [vmem:[%s1764_s1 + $0xb8] sm:$0xff]  }
  0x26   : > { %281 = vrot.lane.b32.xlu0 %v1112_v0, %s1381_s5  ;;  %v468_v50 = vrot.slane %v466_v48, 3  ;;  %v450_v52 = vrot.slane %v1517_v36, 2  ;;  %v1119_v54 = vcombine.high %v1474_v15, %v1474_v15  ;;  %303 = vst.msk [vmem:[#allocation2] sm:$0xc] %vm302_vm4, %v300_v30  ;;  %v315_v56 = vrot.slane %v313_v49, 6  ;;  %v1335_v15 = vld [vmem:[%s1764_s1 + $0x90] sm:$0xff]  }
  0x27   : > { %397 = vst.msk [vmem:[#allocation2 + $0x8] sm:$0x30] %vm379_vm1, %v395_v47  ;;  %v248_v55 = vor.u32 %v247_v24, %v243_v33  ;;  %v354_v35 = vrot.slane %v1497_v27, 6  ;;  %v1110_v36 = vcombine.high %v1452_v8, %v1452_v8  ;;  %v318_v58 = vrot.slane %v316_v51, 7  ;;  %1221 = vmatpush3.bf16.msra.mxu1 %v1335_v15  ;;  %v1350_v45 = vld [vmem:[%s1764_s1 + $0x118] sm:$0xff]   ;;  %v1353_v48 = vld [vmem:[%s1764_s1 + $0x128] sm:$0xff]  }
  0x28   : > { %v469_v57 = vor.u32 %v468_v50, %v465_v44  ;;  %453 = vst.msk [vmem:[#allocation2] sm:$0xc0] %vm452_vm3, %v450_v52  ;;  %v1137_v59 = vcombine.high %v1455_v9, %v1455_v9  ;;  %v1128_v60 = vcombine.high %v1449_v7, %v1449_v7  ;;  %v494_v8 = vor.u32 %v1587_v31, %v1585_v29  ;;  %v1336_v9 = vld [vmem:[%s1764_s1 + $0x78] sm:$0xff]  }
  0x29   : > { %510 = vrot.lane.b32.xlu1 %v509_v22, %s1381_s5  ;;  %250 = vst.msk [vmem:[#allocation2 + $0x8] sm:$0x3] %vm230_vm2, %v248_v55  ;;  %263 = vst.msk [vmem:[#allocation2 + $0x10] sm:$0x3] %vm230_vm2, %v1110_v36  ;;  %v319_v27 = vor.u32 %v318_v58, %v315_v56  ;;  %v418_v7 = vor.u32 %v1601_v26, %v1592_v37  ;;  %v504_v62 = vrot.slane %v1532_v42, 2  ;;  %v334_v63 = vrot.slane %v1119_v54, 6 }
  0x2a   : > { %432 = vrot.lane.b32.xlu0 %v1131_v39, %s1381_s5  ;;  %356 = vst.msk [vmem:[#allocation2 + $0x18] sm:$0xc] %vm302_vm4, %v354_v35  ;;  %v484_v0 = vrot.slane %v1137_v59, 2  ;;  %1208 = vmatprep.subr.bf16.mxu0 %v1336_v9  ;;  %v1382_v42 = vmov 0.0   ;;  %v1347_v26 = vld [vmem:[%s1764_s1 + $0x110] sm:$0xff]   ;;  %v1355_v24 = vld [vmem:[%s1764_s1 + $0x138] sm:$0xff]  }
  0x2b   : > { %471 = vst.msk [vmem:[#allocation2 + $0x8] sm:$0xc0] %vm452_vm3, %v469_v57  ;;  %1209 = vmatpush3.bf16.msra.mxu0 %v1337_v61  ;;  %506 = vst.msk [vmem:[#allocation2 + $0x18] sm:$0xc0] %vm452_vm3, %v504_v62  ;;  %1222 = vmatprep.subr.bf16.mxu1 %v1338_v1  ;;  %v528_v44 = vld [vmem:[#allocation2 + $0x20] sm:$0xff] }
  0x2c   : > { %410 = vst.msk [vmem:[#allocation2 + $0x10] sm:$0x30] %vm379_vm1, %v1128_v60  ;;  %1247 = vmatprep.subr.bf16.mxu0 %v1382_v42  ;;  %1223 = vmatpush3.bf16.msra.mxu1 %v1339_v2  ;;  %v1141_v54 = vld [vmem:[%s1765_s2] ss:$0 sm:$0xff] }
  0x2d   : > { %345 = vrot.lane.b32.xlu1 %v344_v40, %s1381_s5  ;;  %321 = vst.msk [vmem:[#allocation2 + $0x8] sm:$0xc] %vm302_vm4, %v319_v27  ;;  %336 = vst.msk [vmem:[#allocation2 + $0x10] sm:$0xc] %vm302_vm4, %v334_v63  ;;  %1224 = vmatprep.subr.bf16.mxu1 %v1340_v3 }
  0x2e   : > { %271 = vrot.lane.b32.xlu0 %v270_v46, %s1381_s5  ;;  %486 = vst.msk [vmem:[#allocation2 + $0x10] sm:$0xc0] %vm452_vm3, %v484_v0  ;;  %v1352_v46 = vld [vmem:[%s1764_s1 + $0x120] sm:$0xff]  }
  0x30   : > { %1225 = vmatpush3.bf16.msra.mxu1 %v1342_v4 }
  0x31   : > { %495 = vrot.lane.b32.xlu1 %v494_v8, %s1381_s5  ;;  %1226 = vmatprep.subr.bf16.mxu1 %v1343_v5 }
  0x32   : > { %419 = vrot.lane.b32.xlu0 %v418_v7, %s1381_s5 }
  0x34   : > { %1227 = vmatpush3.bf16.msra.mxu1 %v1345_v6 }
  0x35   : > { %1228 = vmatprep.subr.bf16.mxu1 %v1346_v14 }
  0x38   : > { %1229 = vmatpush3.bf16.msra.mxu1 %v1348_v16 }
  0x39   : > { %1230 = vmatprep.subr.bf16.mxu1 %v1349_v17 }
  0x3c   : > { %1231 = vmatpush3.bf16.msra.mxu1 %v1351_v18 }
  0x87   : > { %v404_v19 = vpop.permute.xlu1 %403 }
  0x88   : > { %v257_v20 = vpop.permute.xlu0 %256  ;;  %406 = vst.msk [vmem:[#allocation2 + $0x8] sm:$0x30] %vm386_vm5, %v404_v19 }
  0x89   : > { %259 = vst.msk [vmem:[#allocation2 + $0x8] sm:$0x3] %vm238_vm6, %v257_v20 }
  0x8b   : > { %v479_v21 = vpop.permute.xlu1 %478 }
  0x8c   : > { %v236_v22 = vpop.permute.xlu0 %235  ;;  %481 = vst.msk [vmem:[#allocation2 + $0x8] sm:$0xc0] %vm460_vm7, %v479_v21 }
  0x8d   : > { %239 = vst.msk [vmem:[#allocation2] sm:$0x3] %vm238_vm6, %v236_v22 }
  0x8f   : > { %v308_v23 = vpop.permute.xlu1 %307 }
  0x90   : > { %v329_v25 = vpop.permute.xlu0 %328  ;;  %311 = vst.msk [vmem:[#allocation2] sm:$0xc] %vm310_vm8, %v308_v23 }
  0x91   : > { %331 = vst.msk [vmem:[#allocation2 + $0x8] sm:$0xc] %vm310_vm8, %v329_v25 }
  0x93   : > { %v458_v28 = vpop.permute.xlu1 %457 }
  0x94   : > { %v384_v12 = vpop.permute.xlu0 %383  ;;  %461 = vst.msk [vmem:[#allocation2] sm:$0xc0] %vm460_vm7, %v458_v28 }
  0x95   : > { %387 = vst.msk [vmem:[#allocation2] sm:$0x30] %vm386_vm5, %v384_v12 }
  0x97   : > { %v361_v10 = vpop.permute.xlu1 %360 }
  0x98   : > { %v282_v29 = vpop.permute.xlu0 %281  ;;  %v525_v31 = vld [vmem:[#allocation2 + $0x8] sm:$0xff]  ;;  %363 = vst.msk [vmem:[#allocation2 + $0x18] sm:$0xc] %vm310_vm8, %v361_v10 }
  0x99   : > { %284 = vst.msk [vmem:[#allocation2 + $0x18] sm:$0x3] %vm238_vm6, %v282_v29  ;;  %888 = vmatprep.mubr.bf16.mxu0 %v525_v31 }
  0x9b   : > { %v511_v34 = vpop.permute.xlu1 %510 }
  0x9c   : > { %v433_v37 = vpop.permute.xlu0 %432  ;;  %v524_v11 = vld [vmem:[#allocation2] sm:$0xff]  ;;  %513 = vst.msk [vmem:[#allocation2 + $0x18] sm:$0xc0] %vm460_vm7, %v511_v34 }
  0x9d   : > { %435 = vst.msk [vmem:[#allocation2 + $0x18] sm:$0x30] %vm386_vm5, %v433_v37  ;;  %889 = vmatmul.mubr.bf16.vlgmr.msra.gmra.mrb[0].mxu0 %v524_v11 }
  0x9e   : > { %1248 = vmatpush3.bf16.msra.mxu0 %v1341_v32  ;;  %1263 = vmatprep.mubr.msk.bf16.mxu0 %vm1383_vm9, %v1382_v42 }
  0x9f   : > { %1249 = vmatprep.subr.bf16.mxu0 %v1382_v42  ;;  %v346_v39 = vpop.permute.xlu1 %345 }
  0xa0   : > { %v272_v40 = vpop.permute.xlu0 %271  ;;  %348 = vst.msk [vmem:[#allocation2 + $0x10] sm:$0xc] %vm310_vm8, %v346_v39 }
  0xa1   : > { %274 = vst.msk [vmem:[#allocation2 + $0x10] sm:$0x3] %vm238_vm6, %v272_v40 }
  0xa2   : > { %1250 = vmatpush3.bf16.msra.mxu0 %v1344_v38 }
  0xa3   : > { %1251 = vmatprep.subr.bf16.mxu0 %v1382_v42  ;;  %v496_v41 = vpop.permute.xlu1 %495 }
  0xa4   : > { %v420_v33 = vpop.permute.xlu0 %419  ;;  %v527_v43 = vld [vmem:[#allocation2 + $0x18] sm:$0xff]  ;;  %498 = vst.msk [vmem:[#allocation2 + $0x10] sm:$0xc0] %vm460_vm7, %v496_v41 }
  0xa5   : > { %422 = vst.msk [vmem:[#allocation2 + $0x10] sm:$0x30] %vm386_vm5, %v420_v33  ;;  %929 = vmatprep.mubr.bf16.mxu1 %v527_v43 }
  0xa6   : > { %1252 = vmatpush3.bf16.msra.mxu0 %v1347_v26 }
  0xa7   : > { %1253 = vmatprep.subr.bf16.mxu0 %v1382_v42 }
  0xaa   : > { %1254 = vmatpush3.bf16.msra.mxu0 %v1350_v45 }
  0xab   : > { %1255 = vmatprep.subr.bf16.mxu0 %v1382_v42 }
  0xac   : > { %v526_v47 = vld [vmem:[#allocation2 + $0x10] sm:$0xff] }
  0xad   : > { %930 = vmatmul.mubr.bf16.vlgmr.msra.gmra.mrb[0].mxu1 %v526_v47 }
  0xae   : > { %1256 = vmatpush3.bf16.msra.mxu0 %v1352_v46 }
  0xaf   : > { %1257 = vmatprep.subr.bf16.mxu0 %v1382_v42 }
  0xb2   : > { %1258 = vmatpush3.bf16.msra.mxu0 %v1353_v48 }
  0xb3   : > { %1259 = vmatprep.subr.bf16.mxu0 %v1382_v42 }
  0xb6   : > { %1260 = vmatpush3.bf16.msra.mxu0 %v1354_v13 }
  0xb7   : > { %1261 = vmatprep.subr.bf16.mxu0 %v1382_v42 }
  0xba   : > { %1262 = vmatpush3.bf16.msra.mxu0 %v1355_v24 }
  0xbd   : > { %1264 = vmatmul.mubr.bf16.vlgmr.msra.gmra.mrb[4].mxu0 %v528_v44 }
 0x170   : > { %v1210_v30 = vpop.f32.mrb[0].mxu0 }
 0x171   : > { %v1211_v49 = vpop.f32.mrb[1].mxu0 }
 0x172   : > { %v1212_v50 = vadd.f32 %v1211_v49, %v1210_v30  ;;  %v1213_v51 = vpop.f32.mrb[2].mxu0 }
 0x173   : > { %v1214_v52 = vpop.f32.mrb[3].mxu0 }
 0x174   : > { %v1215_v53 = vadd.f32 %v1214_v52, %v1213_v51  ;;  %v891_v35 = vadd.f32 %v1212_v50, %v1141_v54 }
 0x176   : > { %v894_v15 = vadd.f32 %v1215_v53, %v1141_v54 }
 0x180   : > { %v1232_v55 = vpop.f32.mrb[0].mxu1 }
 0x181   : > { %v1233_v56 = vpop.f32.mrb[1].mxu1 }
 0x182   : > { %v1234_v36 = vadd.f32 %v1233_v56, %v1232_v55  ;;  %v1235_v57 = vpop.f32.mrb[2].mxu1 }
 0x183   : > { %v1236_v58 = vpop.f32.mrb[3].mxu1 }
 0x184   : > { %v1237_v59 = vadd.f32 %v1236_v58, %v1235_v57  ;;  %v932_v60 = vadd.f32 %v1234_v36, %v891_v35 }
 0x186   : > { %v935_v8 = vadd.f32 %v1237_v59, %v894_v15 }
 0x190   : > { %v972_v27 = vpop.f32.mrb[4].mxu0 }
 0x191   : > { %v973_v9 = vadd.f32 %v972_v27, %v932_v60  ;;  %v1265_v7 = vpop.f32.mrb[5].mxu0 }
 0x192   : > { %v975_v61 = vpop.f32.mrb[6].mxu0 }
 0x193   : > { %v976_v62 = vadd.f32 %v975_v61, %v935_v8  ;;  %v1266_v63 = vpop.f32.mrb[7].mxu0  ;;  %v979_v0 = vmax.f32 %v973_v9, 0.0 }
 0x195   : > { %v980_v1 = vmax.f32 %v976_v62, 0.0 }
 0x197   : > { %v1192_v2 = vpack.c.bf16 %v980_v1, %v979_v0 }
 0x199   : > { %1193 = vst [vmem:[%s221_s11] sm:$0xff] %v1192_v2  }
 0x19a PF: > { %s13_s14 = sadd.s32 1, %s1378_s14   ;;  %s1767_s12 = smov %s1374_s13 }
 0x19b   : > { %p10_p5 = scmp.ge.s32.totalorder %s13_s14, 4   ;;  %s1768_s13 = smov %s1770_s15 }
 0x19d   :  { %12 = sbr.rel (!%p10_p5) target bundleno = 2 (0x2), region = 80 }

// kernel: cnn_encoder_forward.12
= control target key start
LH: loop header
LB: loop body
LE: loop exit
PB: predicated region body
PF: predicated region fallthrough
CT: control target
= control target key end

     0   :  { %s646_s12 = smov 0   ;;  %s648_s13 = smov 0   ;;  %s734_s0 = inlined_call_operand.vmem [shape: bf16[2,4,256], index: 0, kind: input, shape index: {}]   ;;  %s735_s1 = inlined_call_operand.vmem [shape: bf16[256,128], index: 1, kind: input, shape index: {}]   ;;  %s736_s2 = inlined_call_operand.vmem [shape: f32[1,128], index: 2, kind: input, shape index: {}]   ;;  %s737_s3 = inlined_call_operand.vmem [shape: bf16[2,4,128], index: 3, kind: output, shape index: {}]  }
   0x1   :  { %s650_s14 = smov 0  }
   0x2 LB: > { %s25_s15 = sadd.s32 1, %s620_s13  ;;  %p515_p0 = scmp.ge.s32.totalorder %s624_s14, 1  ;;  %s624_s14 = sphi %s650_s14, %s13_s14   ;;  %s620_s13 = sphi %s648_s13, %s739_s13   ;;  %s616_s12 = sphi %s646_s12, %s738_s12  }
   0x3   : > { %p27_p1 = scmp.ge.s32.totalorder %s25_s15, 2  ;;  %p168_p2 = scmp.lt.s32.totalorder %s624_s14, 3 }
   0x5   : > { %s741_s15 = smov (%p27_p1, %s25_s15), 0  ;;  %p169_p3 = pnand %p515_p0, %p168_p2 }
   0x6   : > { %v586_v0 = vld [vmem:[%s735_s1 + $0x40] sm:$0xff] (!%p169_p3)   ;;  %v588_v2 = vld [vmem:[%s735_s1 + $0x48] sm:$0xff] (!%p169_p3)   ;;  %p201_p4 = scmp.lt.s32.totalorder (!%p169_p3), %s616_s12, 1  ;;  %v590_v4 = vld [vmem:[%s735_s1 + $0x50] sm:$0xff] (!%p169_p3)  }
   0x7   : > { %172 = sbr.rel (%p169_p3) target bundleno = 259 (0x103), region = 32  ;;  %v587_v1 = vld [vmem:[%s735_s1] sm:$0xff] (!%p169_p3)   ;;  %540 = vmatprep.subr.bf16.mxu0 (!%p169_p3), %v586_v0  ;;  %v589_v3 = vld [vmem:[%s735_s1 + $0x8] sm:$0xff] (!%p169_p3)   ;;  %v591_v5 = vld [vmem:[%s735_s1 + $0x10] sm:$0xff] (!%p169_p3)  }
   0x8   : > { %541 = vmatpush3.bf16.msra.mxu0 (!%p169_p3), %v587_v1  ;;  %v592_v6 = vld [vmem:[%s735_s1 + $0x58] sm:$0xff] (!%p169_p3)   ;;  %v594_v8 = vld [vmem:[%s735_s1 + $0x60] sm:$0xff] (!%p169_p3)   ;;  %v596_v10 = vld [vmem:[%s735_s1 + $0x68] sm:$0xff] (!%p169_p3)  }
   0x9   : > { %542 = vmatprep.subr.bf16.mxu0 (!%p169_p3), %v588_v2  ;;  %v593_v7 = vld [vmem:[%s735_s1 + $0x18] sm:$0xff] (!%p169_p3)   ;;  %v595_v9 = vld [vmem:[%s735_s1 + $0x20] sm:$0xff] (!%p169_p3)   ;;  %v597_v13 = vld [vmem:[%s735_s1 + $0x28] sm:$0xff] (!%p169_p3)  }
   0xa   : > { %v598_v14 = vld [vmem:[%s735_s1 + $0x70] sm:$0xff] (!%p169_p3)   ;;  %v600_v16 = vld [vmem:[%s735_s1 + $0x78] sm:$0xff] (!%p169_p3)   ;;  %v519_v19 = vld [vmem:[%s736_s2] ss:$0 sm:$0xff] (!%p169_p3) }
   0xb   : > { %v599_v15 = vld [vmem:[%s735_s1 + $0x30] sm:$0xff] (!%p169_p3)   ;;  %v601_v17 = vld [vmem:[%s735_s1 + $0x38] sm:$0xff] (!%p169_p3)  }
   0xc   : > { %543 = vmatpush3.bf16.msra.mxu0 (!%p169_p3), %v589_v3 }
   0xd   : > { %544 = vmatprep.subr.bf16.mxu0 (!%p169_p3), %v590_v4 }
   0xe   : > { %s743_s12 = smov (!%p201_p4, %s616_s12), 1 }
   0xf   : > { %s539_s30 = sshll.u32 %s743_s12, 2  ;;  %s518_s4 = sshll.u32 %s743_s12, 1 }
  0x10   : > { %545 = vmatpush3.bf16.msra.mxu0 %v591_v5  ;;  %s205_s10 = scalar_lea.vmem %s734_s0, %s539_s30  ;;  %s219_s7 = scalar_lea.vmem %s737_s3, %s518_s4 }
  0x11   : > { %546 = vmatprep.subr.bf16.mxu0 %v592_v6  ;;  %v520_v11 = vld.sshfl [vmem:[%s205_s10] sm:$0x33 pattern:$0x76325410] }
  0x12   : > { %v269_v12 = vcombine.high %v520_v11, %v520_v11 }
  0x14   : > { %547 = vmatpush3.bf16.msra.mxu0 %v593_v7  ;;  %400 = vmatprep.mubr.bf16.mxu0 %v269_v12 }
  0x15   : > { %548 = vmatprep.subr.bf16.mxu0 %v594_v8 }
  0x18   : > { %549 = vmatpush3.bf16.msra.mxu0 %v595_v9 }
  0x19   : > { %550 = vmatprep.subr.bf16.mxu0 %v596_v10 }
  0x1c   : > { %551 = vmatpush3.bf16.msra.mxu0 %v597_v13 }
  0x1d   : > { %552 = vmatprep.subr.bf16.mxu0 %v598_v14 }
  0x20   : > { %553 = vmatpush3.bf16.msra.mxu0 %v599_v15 }
  0x21   : > { %554 = vmatprep.subr.bf16.mxu0 %v600_v16 }
  0x24   : > { %555 = vmatpush3.bf16.msra.mxu0 %v601_v17 }
  0x27   : > { %401 = vmatmul.mubr.bf16.vlgmr.msra.gmra.mrb[0].mxu0 %v520_v11 }
  0xfa   : > { %v556_v18 = vpop.f32.mrb[0].mxu0 }
  0xfb   : > { %v557_v20 = vpop.f32.mrb[1].mxu0 }
  0xfc   : > { %v558_v21 = vadd.f32 %v557_v20, %v556_v18  ;;  %v559_v22 = vpop.f32.mrb[2].mxu0 }
  0xfd   : > { %v560_v23 = vpop.f32.mrb[3].mxu0 }
  0xfe   : > { %v403_v24 = vadd.f32 %v558_v21, %v519_v19 }
 0x100   : > { %v408_v25 = vpack.c.bf16 %v403_v24, %v403_v24 }
 0x102   : > { %409 = vst [vmem:[%s219_s7] sm:$0x3] %v408_v25 }
 0x103 PF: > { %s13_s14 = sadd.s32 1, %s624_s14   ;;  %s738_s12 = smov %s620_s13 }
 0x104   : > { %p10_p5 = scmp.ge.s32.totalorder %s13_s14, 4   ;;  %s739_s13 = smov %s741_s15 }
 0x106   :  { %12 = sbr.rel (!%p10_p5) target bundleno = 2 (0x2), region = 68 }

// kernel: cnn_encoder_forward.13
= control target key start
LH: loop header
LB: loop body
LE: loop exit
PB: predicated region body
PF: predicated region fallthrough
CT: control target
= control target key end

     0   :  { %s602_s12 = smov 0   ;;  %s604_s13 = smov 0   ;;  %s665_s0 = inlined_call_operand.vmem [shape: bf16[2,16,128], index: 0, kind: input, shape index: {}]   ;;  %s666_s1 = inlined_call_operand.vmem [shape: bf16[128,128], index: 1, kind: input, shape index: {}]   ;;  %s667_s2 = inlined_call_operand.vmem [shape: f32[1,128], index: 2, kind: input, shape index: {}]   ;;  %s668_s3 = inlined_call_operand.vmem [shape: bf16[2,16,128], index: 3, kind: output, shape index: {}]  }
   0x1   :  { %s606_s14 = smov 0  }
   0x2 LB: > { %s25_s15 = sadd.s32 1, %s574_s13  ;;  %p464_p0 = scmp.ge.s32.totalorder %s578_s14, 1  ;;  %s578_s14 = sphi %s606_s14, %s13_s14   ;;  %s574_s13 = sphi %s604_s13, %s670_s13   ;;  %s570_s12 = sphi %s602_s12, %s669_s12  }
   0x3   : > { %p27_p1 = scmp.ge.s32.totalorder %s25_s15, 2  ;;  %p168_p2 = scmp.lt.s32.totalorder %s578_s14, 3 }
   0x5   : > { %s672_s15 = smov (%p27_p1, %s25_s15), 0  ;;  %p169_p3 = pnand %p464_p0, %p168_p2 }
   0x6   : > { %v547_v0 = vld [vmem:[%s666_s1] sm:$0xff] (!%p169_p3)   ;;  %v580_v1 = vmov (!%p169_p3), 0.0   ;;  %v548_v2 = vld [vmem:[%s666_s1 + $0x8] sm:$0xff] (!%p169_p3)   ;;  %vm581_vm0 = vmmov (!%p169_p3), 0   ;;  %p202_p4 = scmp.lt.s32.totalorder (!%p169_p3), %s570_s12, 1  ;;  %v549_v3 = vld [vmem:[%s666_s1 + $0x10] sm:$0xff] (!%p169_p3)  }
   0x7   : > { %172 = sbr.rel (%p169_p3) target bundleno = 258 (0x102), region = 32  ;;  %501 = vmatprep.subr.bf16.mxu0 (!%p169_p3), %v580_v1  ;;  %517 = vmatprep.mubr.msk.bf16.mxu0 (!%p169_p3), %vm581_vm0, %v580_v1  ;;  %v550_v4 = vld [vmem:[%s666_s1 + $0x18] sm:$0xff] (!%p169_p3)   ;;  %v551_v5 = vld [vmem:[%s666_s1 + $0x20] sm:$0xff] (!%p169_p3)   ;;  %v552_v6 = vld [vmem:[%s666_s1 + $0x28] sm:$0xff] (!%p169_p3)  }
   0x8   : > { %502 = vmatpush3.bf16.msra.mxu0 (!%p169_p3), %v547_v0  ;;  %v553_v7 = vld [vmem:[%s666_s1 + $0x30] sm:$0xff] (!%p169_p3)   ;;  %v554_v8 = vld [vmem:[%s666_s1 + $0x38] sm:$0xff] (!%p169_p3)   ;;  %v469_v10 = vld [vmem:[%s667_s2] ss:$0 sm:$0xff] (!%p169_p3) }
   0x9   : > { %503 = vmatprep.subr.bf16.mxu0 (!%p169_p3), %v580_v1 }
   0xc   : > { %504 = vmatpush3.bf16.msra.mxu0 (!%p169_p3), %v548_v2 }
   0xd   : > { %505 = vmatprep.subr.bf16.mxu0 (!%p169_p3), %v580_v1 }
   0xe   : > { %s674_s12 = smov (!%p202_p4, %s570_s12), 1 }
   0xf   : > { %s483_s22 = sshll.u32 %s674_s12, 3 }
  0x10   : > { %s206_s25 = scalar_lea.vmem %s665_s0, %s483_s22  ;;  %506 = vmatpush3.bf16.msra.mxu0 %v549_v3  ;;  %s221_s16 = scalar_lea.vmem %s668_s3, %s483_s22 }
  0x11   : > { %507 = vmatprep.subr.bf16.mxu0 %v580_v1  ;;  %v555_v9 = vld [vmem:[%s206_s25] sm:$0xff]  }
  0x14   : > { %508 = vmatpush3.bf16.msra.mxu0 %v550_v4 }
  0x15   : > { %509 = vmatprep.subr.bf16.mxu0 %v580_v1 }
  0x18   : > { %510 = vmatpush3.bf16.msra.mxu0 %v551_v5 }
  0x19   : > { %511 = vmatprep.subr.bf16.mxu0 %v580_v1 }
  0x1c   : > { %512 = vmatpush3.bf16.msra.mxu0 %v552_v6 }
  0x1d   : > { %513 = vmatprep.subr.bf16.mxu0 %v580_v1 }
  0x20   : > { %514 = vmatpush3.bf16.msra.mxu0 %v553_v7 }
  0x21   : > { %515 = vmatprep.subr.bf16.mxu0 %v580_v1 }
  0x24   : > { %516 = vmatpush3.bf16.msra.mxu0 %v554_v8 }
  0x27   : > { %518 = vmatmul.mubr.bf16.vlgmr.msra.gmra.mrb[0].mxu0 %v555_v9 }
  0xfa   : > { %v336_v11 = vpop.f32.mrb[0].mxu0 }
  0xfb   : > { %v519_v12 = vpop.f32.mrb[1].mxu0  ;;  %v337_v14 = vadd.f32 %v469_v10, %v336_v11 }
  0xfc   : > { %v339_v13 = vpop.f32.mrb[2].mxu0 }
  0xfd   : > { %v340_v15 = vadd.f32 %v469_v10, %v339_v13  ;;  %v520_v16 = vpop.f32.mrb[3].mxu0 }
  0xff   : > { %v490_v17 = vpack.c.bf16 %v340_v15, %v337_v14 }
 0x101   : > { %491 = vst [vmem:[%s221_s16] sm:$0xff] %v490_v17  }
 0x102 PF: > { %s13_s14 = sadd.s32 1, %s578_s14   ;;  %s669_s12 = smov %s574_s13 }
 0x103   : > { %p10_p5 = scmp.ge.s32.totalorder %s13_s14, 4   ;;  %s670_s13 = smov %s672_s15 }
 0x105   :  { %12 = sbr.rel (!%p10_p5) target bundleno = 2 (0x2), region = 68 }

// kernel: cnn_encoder_forward.11
= control target key start
LH: loop header
LB: loop body
LE: loop exit
PB: predicated region body
PF: predicated region fallthrough
CT: control target
= control target key end

     0   :  { %s2079_s12 = smov 0   ;;  %s2081_s13 = smov 0   ;;  %s2581_s0 = inlined_call_operand.vmem [shape: bf16[2,6,3,256], index: 0, kind: input, shape index: {}]   ;;  %s2582_s1 = inlined_call_operand.vmem [shape: bf16[1152,256], index: 1, kind: input, shape index: {}]   ;;  %s2583_s2 = inlined_call_operand.vmem [shape: f32[1,256], index: 2, kind: input, shape index: {}]   ;;  %s2584_s3 = inlined_call_operand.vmem [shape: bf16[2,4,256], index: 3, kind: output, shape index: {}]  }
   0x1   :  { %s2083_s14 = smov 0  }
   0x2 LB: > { %s25_s15 = sadd.s32 1, %s2051_s13  ;;  %p1613_p0 = scmp.ge.s32.totalorder %s2055_s14, 1  ;;  %s2055_s14 = sphi %s2083_s14, %s13_s14   ;;  %s2051_s13 = sphi %s2081_s13, %s2586_s13   ;;  %s2047_s12 = sphi %s2079_s12, %s2585_s12  }
   0x3   : > { %p27_p1 = scmp.ge.s32.totalorder %s25_s15, 2  ;;  %p172_p2 = scmp.lt.s32.totalorder %s2055_s14, 3 }
   0x5   : > { %s2588_s15 = smov (%p27_p1, %s25_s15), 0  ;;  %p173_p3 = pnand %p1613_p0, %p172_p2 }
   0x6   : > { %v1815_v0 = vld [vmem:[%s2582_s1 + $0x4] ss:$8 sps:$4 sm:$0xff] (!%p173_p3)   ;;  %v1819_v2 = vld [vmem:[%s2582_s1] ss:$8 sps:$4 sm:$0xff] (!%p173_p3)   ;;  %v1821_v4 = vld [vmem:[%s2582_s1 + $0x14] ss:$8 sps:$4 sm:$0xff] (!%p173_p3)   ;;  %v495_v56 = vlaneseq (!%p173_p3) }
   0x7   : > { %176 = sbr.rel (%p173_p3) target bundleno = 388 (0x184), region = 32  ;;  %v1817_v1 = vld [vmem:[%s2582_s1 + $0x204] ss:$8 sps:$4 sm:$0xff] (!%p173_p3)   ;;  %1278 = vmatprep.subr.bf16.mxu1 (!%p173_p3), %v1815_v0  ;;  %v1820_v3 = vld [vmem:[%s2582_s1 + $0x200] ss:$8 sps:$4 sm:$0xff] (!%p173_p3)   ;;  %p209_p4 = scmp.lt.s32.totalorder (!%p173_p3), %s2047_s12, 1 }
   0x8   : > { %1360 = vmatprep.subr.bf16.mxu0 (!%p173_p3), %v1817_v1  ;;  %1279 = vmatpush1.bf16.msra.mxu1 (!%p173_p3), %v1819_v2  ;;  %v1823_v5 = vld [vmem:[%s2582_s1 + $0x214] ss:$8 sps:$4 sm:$0xff] (!%p173_p3)   ;;  %v1825_v6 = vld [vmem:[%s2582_s1 + $0x10] ss:$8 sps:$4 sm:$0xff] (!%p173_p3)   ;;  %v1827_v8 = vld [vmem:[%s2582_s1 + $0x24] ss:$8 sps:$4 sm:$0xff] (!%p173_p3)  }
   0x9   : > { %1361 = vmatpush1.bf16.msra.mxu0 (!%p173_p3), %v1820_v3  ;;  %1280 = vmatprep.subr.bf16.mxu1 (!%p173_p3), %v1821_v4  ;;  %v1826_v7 = vld [vmem:[%s2582_s1 + $0x210] ss:$8 sps:$4 sm:$0xff] (!%p173_p3)   ;;  %v1829_v9 = vld [vmem:[%s2582_s1 + $0x224] ss:$8 sps:$4 sm:$0xff] (!%p173_p3)   ;;  %v1831_v10 = vld [vmem:[%s2582_s1 + $0x20] ss:$8 sps:$4 sm:$0xff] (!%p173_p3)  }
   0xa   : > { %1362 = vmatprep.subr.bf16.mxu0 (!%p173_p3), %v1823_v5  ;;  %v1832_v11 = vld [vmem:[%s2582_s1 + $0x220] ss:$8 sps:$4 sm:$0xff] (!%p173_p3)   ;;  %v1833_v12 = vld [vmem:[%s2582_s1 + $0x34] ss:$8 sps:$4 sm:$0xff] (!%p173_p3)   ;;  %v1837_v14 = vld [vmem:[%s2582_s1 + $0x30] ss:$8 sps:$4 sm:$0xff] (!%p173_p3)  }
   0xb   : > { %v1835_v13 = vld [vmem:[%s2582_s1 + $0x234] ss:$8 sps:$4 sm:$0xff] (!%p173_p3)   ;;  %v1838_v15 = vld [vmem:[%s2582_s1 + $0x230] ss:$8 sps:$4 sm:$0xff] (!%p173_p3)   ;;  %v1839_v16 = vld [vmem:[%s2582_s1 + $0x44] ss:$8 sps:$4 sm:$0xff] (!%p173_p3)  }
   0xc   : > { %1281 = vmatpush1.bf16.msra.mxu1 (!%p173_p3), %v1825_v6  ;;  %v1841_v17 = vld [vmem:[%s2582_s1 + $0x244] ss:$8 sps:$4 sm:$0xff] (!%p173_p3)   ;;  %v1843_v18 = vld [vmem:[%s2582_s1 + $0x40] ss:$8 sps:$4 sm:$0xff] (!%p173_p3)   ;;  %v1845_v20 = vld [vmem:[%s2582_s1 + $0x54] ss:$8 sps:$4 sm:$0xff] (!%p173_p3)  }
   0xd   : > { %1363 = vmatpush1.bf16.msra.mxu0 (!%p173_p3), %v1826_v7  ;;  %1282 = vmatprep.subr.bf16.mxu1 (!%p173_p3), %v1827_v8  ;;  %v1844_v19 = vld [vmem:[%s2582_s1 + $0x240] ss:$8 sps:$4 sm:$0xff] (!%p173_p3)   ;;  %v1847_v21 = vld [vmem:[%s2582_s1 + $0x254] ss:$8 sps:$4 sm:$0xff] (!%p173_p3)   ;;  %v1849_v22 = vld [vmem:[%s2582_s1 + $0x50] ss:$8 sps:$4 sm:$0xff] (!%p173_p3)  }
   0xe   : > { %1364 = vmatprep.subr.bf16.mxu0 %v1829_v9  ;;  %v1850_v23 = vld [vmem:[%s2582_s1 + $0x250] ss:$8 sps:$4 sm:$0xff]   ;;  %v1851_v24 = vld [vmem:[%s2582_s1 + $0x64] ss:$8 sps:$4 sm:$0xff]   ;;  %v1855_v26 = vld [vmem:[%s2582_s1 + $0x60] ss:$8 sps:$4 sm:$0xff]  }
   0xf   : > { %v1853_v25 = vld [vmem:[%s2582_s1 + $0x264] ss:$8 sps:$4 sm:$0xff]   ;;  %v1856_v27 = vld [vmem:[%s2582_s1 + $0x260] ss:$8 sps:$4 sm:$0xff]   ;;  %v1857_v28 = vld [vmem:[%s2582_s1 + $0x74] ss:$8 sps:$4 sm:$0xff]  }
  0x10   : > { %1283 = vmatpush1.bf16.msra.mxu1 %v1831_v10  ;;  %v1859_v29 = vld [vmem:[%s2582_s1 + $0x274] ss:$8 sps:$4 sm:$0xff]   ;;  %v1861_v30 = vld [vmem:[%s2582_s1 + $0x70] ss:$8 sps:$4 sm:$0xff]   ;;  %v1863_v32 = vld [vmem:[%s2582_s1 + $0x84] ss:$8 sps:$4 sm:$0xff]  }
  0x11   : > { %1365 = vmatpush1.bf16.msra.mxu0 %v1832_v11  ;;  %1284 = vmatprep.subr.bf16.mxu1 %v1833_v12  ;;  %v1862_v31 = vld [vmem:[%s2582_s1 + $0x270] ss:$8 sps:$4 sm:$0xff]   ;;  %v1865_v33 = vld [vmem:[%s2582_s1 + $0x284] ss:$8 sps:$4 sm:$0xff]   ;;  %v1867_v34 = vld [vmem:[%s2582_s1 + $0x80] ss:$8 sps:$4 sm:$0xff]  }
  0x12   : > { %1366 = vmatprep.subr.bf16.mxu0 %v1835_v13  ;;  %v1868_v35 = vld [vmem:[%s2582_s1 + $0x280] ss:$8 sps:$4 sm:$0xff]   ;;  %s2590_s12 = smov (!%p209_p4, %s2047_s12), 1  ;;  %v1869_v36 = vld [vmem:[%s2582_s1 + $0x94] ss:$8 sps:$4 sm:$0xff]  }
  0x13   : > { %v1871_v37 = vld [vmem:[%s2582_s1 + $0x294] ss:$8 sps:$4 sm:$0xff]   ;;  %v1873_v38 = vld [vmem:[%s2582_s1 + $0x90] ss:$8 sps:$4 sm:$0xff]   ;;  %s1788_s25 = smul.u32 24, %s2590_s12  ;;  %s1771_s7 = sshll.u32 %s2590_s12, 2 }
  0x14   : > { %1285 = vmatpush1.bf16.msra.mxu1 %v1837_v14  ;;  %v1874_v39 = vld [vmem:[%s2582_s1 + $0x290] ss:$8 sps:$4 sm:$0xff]   ;;  %v1875_v40 = vld [vmem:[%s2582_s1 + $0xa4] ss:$8 sps:$4 sm:$0xff]   ;;  %v1879_v42 = vld [vmem:[%s2582_s1 + $0xa0] ss:$8 sps:$4 sm:$0xff]   ;;  %s233_s10 = scalar_lea.vmem %s2584_s3, %s1771_s7 }
  0x15   : > { %1367 = vmatpush1.bf16.msra.mxu0 %v1838_v15  ;;  %1286 = vmatprep.subr.bf16.mxu1 %v1839_v16  ;;  %v1877_v41 = vld [vmem:[%s2582_s1 + $0x2a4] ss:$8 sps:$4 sm:$0xff]   ;;  %v1880_v43 = vld [vmem:[%s2582_s1 + $0x2a0] ss:$8 sps:$4 sm:$0xff]   ;;  %s2239_s11 = scalar_lea.vmem %s2581_s0, %s1788_s25  ;;  %v1881_v44 = vld [vmem:[%s2582_s1 + $0xb4] ss:$8 sps:$4 sm:$0xff]  }
  0x16   : > { %1368 = vmatprep.subr.bf16.mxu0 %v1841_v17  ;;  %v1883_v45 = vld [vmem:[%s2582_s1 + $0x2b4] ss:$8 sps:$4 sm:$0xff]   ;;  %v1885_v46 = vld [vmem:[%s2582_s1 + $0xb0] ss:$8 sps:$4 sm:$0xff]   ;;  %v240_v48 = vld [vmem:[%s2239_s11] sm:$0xf] }
  0x17   : > { %v1886_v47 = vld [vmem:[%s2582_s1 + $0x2b0] ss:$8 sps:$4 sm:$0xff]   ;;  %v1887_v49 = vld [vmem:[%s2582_s1 + $0xc4] ss:$8 sps:$4 sm:$0xff]   ;;  %241 = vst [vmem:[#allocation2] sm:$0x1] %v240_v48 }
  0x18   : > { %1287 = vmatpush1.bf16.msra.mxu1 %v1843_v18  ;;  %v243_v50 = vrot.slane %v240_v48, 2  ;;  %v247_v51 = vshrl.u32 %v240_v48, 16  ;;  %v250_v52 = vshll.u32 %v240_v48, 16  ;;  %v1617_v53 = vld [vmem:[%s2239_s11 + $0x4] sm:$0xf] }
  0x19   : > { %1369 = vmatpush1.bf16.msra.mxu0 %v1844_v19  ;;  %1288 = vmatprep.subr.bf16.mxu1 %v1845_v20  ;;  %259 = vst [vmem:[#allocation2 + $0x6] sm:$0x1] %v1617_v53  ;;  %v1619_v54 = vld [vmem:[%s2239_s11 + $0x8] sm:$0xf]  ;;  %v1620_v55 = vld [vmem:[%s2239_s11 + $0xc] sm:$0xf] }
  0x1a   : > { %1370 = vmatprep.subr.bf16.mxu0 %v1847_v21  ;;  %v2057_v57 = vmov 1983009808   ;;  %v261_v59 = vrot.slane %v1617_v53, 2  ;;  %v1889_v60 = vld [vmem:[%s2582_s1 + $0x2c4] ss:$8 sps:$4 sm:$0xff]   ;;  %v249_v61 = vrot.slane %v247_v51, 6 }
  0x1b   : > { %v2260_v58 = vunpack.c.l.s4 %v2057_v57  ;;  %245 = vst [vmem:[#allocation2 + $0x2] sm:$0x1] %v243_v50  ;;  %v252_v62 = vrot.slane %v250_v52, 7  ;;  %v295_v63 = vrot.slane %v1619_v54, 7  ;;  %v302_v0 = vshrl.u32 %v1619_v54, 16 }
  0x1c   : > { %1289 = vmatpush1.bf16.msra.mxu1 %v1849_v22  ;;  %v1891_v1 = vld [vmem:[%s2582_s1 + $0xc0] ss:$8 sps:$4 sm:$0xff]   ;;  %v305_v3 = vshll.u32 %v1619_v54, 16  ;;  %v313_v4 = vrot.slane %v1620_v55, 7  ;;  %263 = vst [vmem:[#allocation2 + $0x8] sm:$0x1] %v261_v59 }
  0x1d   : > { %1371 = vmatpush1.bf16.msra.mxu0 %v1850_v23  ;;  %1290 = vmatprep.subr.bf16.mxu1 %v1851_v24  ;;  %v1892_v2 = vld [vmem:[%s2582_s1 + $0x2c0] ss:$8 sps:$4 sm:$0xff]   ;;  %v265_v5 = vshrl.u32 %v1617_v53, 16  ;;  %v268_v6 = vshll.u32 %v1617_v53, 16  ;;  %v1893_v7 = vld [vmem:[%s2582_s1 + $0xd4] ss:$8 sps:$4 sm:$0xff]   ;;  %v253_v8 = vor.u32 %v252_v62, %v249_v61 }
  0x1e   : > { %1372 = vmatprep.subr.bf16.mxu0 %v1853_v25  ;;  %297 = vst [vmem:[#allocation2] sm:$0x2] %v295_v63  ;;  %v298_v9 = vrot.slane %v295_v63, 2  ;;  %v304_v10 = vrot.slane %v302_v0, 7  ;;  %v1618_v11 = vld [vmem:[%s2239_s11 + $0x8] sm:$0xf] }
  0x1f   : > { %v320_v12 = vshrl.u32 %v1620_v55, 16  ;;  %315 = vst [vmem:[#allocation2 + $0x6] sm:$0x2] %v313_v4  ;;  %v267_v13 = vrot.slane %v265_v5, 6  ;;  %v270_v14 = vrot.slane %v268_v6, 7  ;;  %v279_v15 = vrot.slane %v1618_v11, 2 }
  0x20   : > { %1291 = vmatpush1.bf16.msra.mxu1 %v1855_v26  ;;  %277 = vst [vmem:[#allocation2 + $0xc] sm:$0x1] %v1618_v11  ;;  %v316_v16 = vrot.slane %v313_v4, 2  ;;  %v1621_v17 = vld [vmem:[%s2239_s11 + $0x10] sm:$0xf]  ;;  %v254_v19 = vrot.slane %v253_v8, 2  ;;  %v307_v20 = vor.u32 %v305_v3, %v304_v10 }
  0x21   : > { %1373 = vmatpush1.bf16.msra.mxu0 %v1856_v27  ;;  %1292 = vmatprep.subr.bf16.mxu1 %v1857_v28  ;;  %v1895_v18 = vld [vmem:[%s2582_s1 + $0x2d4] ss:$8 sps:$4 sm:$0xff]   ;;  %300 = vst [vmem:[#allocation2 + $0x2] sm:$0x2] %v298_v9  ;;  %v322_v21 = vrot.slane %v320_v12, 7  ;;  %v323_v22 = vshll.u32 %v1620_v55, 16  ;;  %v271_v23 = vor.u32 %v270_v14, %v267_v13  ;;  %v511_v28 = vunpack.c.0.s8 %v2260_v58 }
  0x22   : > { %1374 = vmatprep.subr.bf16.mxu0 %v1859_v29  ;;  %281 = vst [vmem:[#allocation2 + $0xe] sm:$0x1] %v279_v15  ;;  %318 = vst [vmem:[#allocation2 + $0x8] sm:$0x2] %v316_v16  ;;  %v331_v24 = vrot.slane %v1621_v17, 7  ;;  %v283_v25 = vshrl.u32 %v1618_v11, 16 }
  0x23   : > { %v1897_v26 = vld [vmem:[%s2582_s1 + $0xd0] ss:$8 sps:$4 sm:$0xff]   ;;  %256 = vst [vmem:[#allocation2 + $0x4] sm:$0x1] %v254_v19  ;;  %309 = vst [vmem:[#allocation2 + $0x4] sm:$0x2] %v307_v20  ;;  %v325_v29 = vor.u32 %v323_v22, %v322_v21 }
  0x24   : > { %1293 = vmatpush1.bf16.msra.mxu1 %v1861_v30  ;;  %v2282_v27 = vshrl.u32 %v495_v56, 7  ;;  %v286_v30 = vshll.u32 %v1618_v11, 16  ;;  %333 = vst [vmem:[#allocation2 + $0xc] sm:$0x2] %v331_v24  ;;  %v1909_v50 = vld [vmem:[%s2582_s1 + $0xf0] ss:$8 sps:$4 sm:$0xff]  }
  0x25   : > { %1375 = vmatpush1.bf16.msra.mxu0 %v1862_v31  ;;  %1294 = vmatprep.subr.bf16.mxu1 %v1863_v32  ;;  %v1898_v31 = vld [vmem:[%s2582_s1 + $0x2d0] ss:$8 sps:$4 sm:$0xff]   ;;  %v272_v32 = vrot.slane %v271_v23, 2  ;;  %327 = vst [vmem:[#allocation2 + $0xa] sm:$0x2] %v325_v29 }
  0x26   : > { %1376 = vmatprep.subr.bf16.mxu0 %v1865_v33  ;;  %v334_v33 = vrot.slane %v331_v24, 2  ;;  %v1910_v51 = vld [vmem:[%s2582_s1 + $0x2f0] ss:$8 sps:$4 sm:$0xff]   ;;  %v1914_v54 = vld [vmem:[%s2582_s1 + $0x104] ss:$8 sps:$4 sm:$0xff]  }
  0x27   : > { %274 = vst [vmem:[#allocation2 + $0xa] sm:$0x1] %v272_v32  ;;  %v1918_v57 = vld [vmem:[%s2582_s1 + $0x304] ss:$8 sps:$4 sm:$0xff]   ;;  %v1912_v61 = vld [vmem:[%s2582_s1 + $0x100] ss:$8 sps:$4 sm:$0xff]  }
  0x28   : > { %1295 = vmatpush1.bf16.msra.mxu1 %v1867_v34  ;;  %v1899_v34 = vld [vmem:[%s2582_s1 + $0xe4] ss:$8 sps:$4 sm:$0xff]   ;;  %336 = vst [vmem:[#allocation2 + $0xe] sm:$0x2] %v334_v33  ;;  %v1916_v63 = vld [vmem:[%s2582_s1 + $0x300] ss:$8 sps:$4 sm:$0xff]  }
  0x29   : > { %1377 = vmatpush1.bf16.msra.mxu0 %v1868_v35  ;;  %1296 = vmatprep.subr.bf16.mxu1 %v1869_v36  ;;  %v1901_v35 = vld [vmem:[%s2582_s1 + $0x2e4] ss:$8 sps:$4 sm:$0xff]   ;;  %v285_v36 = vrot.slane %v283_v25, 6  ;;  %v1919_v5 = vld [vmem:[%s2582_s1 + $0x110] ss:$8 sps:$4 sm:$0xff]  }
  0x2a   : > { %1378 = vmatprep.subr.bf16.mxu0 %v1871_v37  ;;  %v288_v37 = vrot.slane %v286_v30, 7  ;;  %v1922_v6 = vld [vmem:[%s2582_s1 + $0x310] ss:$8 sps:$4 sm:$0xff]   ;;  %v1930_v8 = vld [vmem:[%s2582_s1 + $0x324] ss:$8 sps:$4 sm:$0xff]  }
  0x2b   : > { %v1925_v9 = vld [vmem:[%s2582_s1 + $0x120] ss:$8 sps:$4 sm:$0xff]   ;;  %v1933_v11 = vld [vmem:[%s2582_s1 + $0x134] ss:$8 sps:$4 sm:$0xff]   ;;  %v1931_v13 = vld [vmem:[%s2582_s1 + $0x130] ss:$8 sps:$4 sm:$0xff]  }
  0x2c   : > { %1297 = vmatpush1.bf16.msra.mxu1 %v1873_v38  ;;  %v338_v38 = vshrl.u32 %v1621_v17, 16  ;;  %v1928_v10 = vld [vmem:[%s2582_s1 + $0x320] ss:$8 sps:$4 sm:$0xff]   ;;  %v1936_v12 = vld [vmem:[%s2582_s1 + $0x334] ss:$8 sps:$4 sm:$0xff]  }
  0x2d   : > { %1379 = vmatpush1.bf16.msra.mxu0 %v1874_v39  ;;  %1298 = vmatprep.subr.bf16.mxu1 %v1875_v40  ;;  %v1903_v39 = vld [vmem:[%s2582_s1 + $0xe0] ss:$8 sps:$4 sm:$0xff]   ;;  %v514_v40 = vsub.s32 %v511_v28, %v2282_v27  ;;  %v1934_v14 = vld [vmem:[%s2582_s1 + $0x330] ss:$8 sps:$4 sm:$0xff]   ;;  %v1939_v15 = vld [vmem:[%s2582_s1 + $0x144] ss:$8 sps:$4 sm:$0xff]  }
  0x2e   : > { %1380 = vmatprep.subr.bf16.mxu0 %v1877_v41  ;;  %v341_v41 = vshll.u32 %v1621_v17, 16  ;;  %v1942_v16 = vld [vmem:[%s2582_s1 + $0x344] ss:$8 sps:$4 sm:$0xff]   ;;  %v1937_v17 = vld [vmem:[%s2582_s1 + $0x140] ss:$8 sps:$4 sm:$0xff]  }
  0x2f   : > { %v347_v56 = vld [vmem:[#allocation2 + $0x8] sm:$0xff]  ;;  %v1945_v19 = vld [vmem:[%s2582_s1 + $0x154] ss:$8 sps:$4 sm:$0xff]   ;;  %v1943_v21 = vld [vmem:[%s2582_s1 + $0x150] ss:$8 sps:$4 sm:$0xff]  }
  0x30   : > { %1299 = vmatpush1.bf16.msra.mxu1 %v1879_v42  ;;  %v1904_v42 = vld [vmem:[%s2582_s1 + $0x2e0] ss:$8 sps:$4 sm:$0xff]   ;;  %v525_v58 = vcombine.high %v347_v56, %v347_v56  ;;  %v532_v59 = vrot.slane %v347_v56, %v514_v40  ;;  %v1948_v20 = vld [vmem:[%s2582_s1 + $0x354] ss:$8 sps:$4 sm:$0xff]   ;;  %v1946_v22 = vld [vmem:[%s2582_s1 + $0x350] ss:$8 sps:$4 sm:$0xff]  }
  0x31   : > { %1381 = vmatpush1.bf16.msra.mxu0 %v1880_v43  ;;  %1300 = vmatprep.subr.bf16.mxu1 %v1881_v44  ;;  %v1905_v43 = vld [vmem:[%s2582_s1 + $0xf4] ss:$8 sps:$4 sm:$0xff]   ;;  %v289_v44 = vor.u32 %v288_v37, %v285_v36  ;;  %v1951_v23 = vld [vmem:[%s2582_s1 + $0x164] ss:$8 sps:$4 sm:$0xff]   ;;  %v1949_v25 = vld [vmem:[%s2582_s1 + $0x160] ss:$8 sps:$4 sm:$0xff]  }
  0x32   : > { %1382 = vmatprep.subr.bf16.mxu0 %v1883_v45  ;;  %v340_v45 = vrot.slane %v338_v38, 7  ;;  %v540_v62 = vcombine.high %v532_v59, %v532_v59  ;;  %v2327_v0 = vrot.slane %v525_v58, %v514_v40  ;;  %v1954_v24 = vld [vmem:[%s2582_s1 + $0x364] ss:$8 sps:$4 sm:$0xff]   ;;  %v1957_v28 = vld [vmem:[%s2582_s1 + $0x174] ss:$8 sps:$4 sm:$0xff]  }
  0x33   : > { %v290_v48 = vrot.slane %v289_v44, 2  ;;  %v1960_v29 = vld [vmem:[%s2582_s1 + $0x374] ss:$8 sps:$4 sm:$0xff]   ;;  %v1955_v30 = vld [vmem:[%s2582_s1 + $0x170] ss:$8 sps:$4 sm:$0xff]  }
  0x34   : > { %1301 = vmatpush1.bf16.msra.mxu1 %v1885_v46  ;;  %v1907_v46 = vld [vmem:[%s2582_s1 + $0x2f4] ss:$8 sps:$4 sm:$0xff]   ;;  %1392 = vmatprep.mubr.bf16.mxu0 %v540_v62  ;;  %v541_v4 = vcombine.high %v2327_v0, %v2327_v0  ;;  %v1963_v32 = vld [vmem:[%s2582_s1 + $0x184] ss:$8 sps:$4 sm:$0xff]   ;;  %v1967_v38 = vld [vmem:[%s2582_s1 + $0x190] ss:$8 sps:$4 sm:$0xff]  }
  0x35   : > { %1383 = vmatpush1.bf16.msra.mxu0 %v1886_v47  ;;  %1302 = vmatprep.subr.bf16.mxu1 %v1887_v49  ;;  %v346_v47 = vld [vmem:[#allocation2] sm:$0xff]  ;;  %v343_v49 = vor.u32 %v341_v41, %v340_v45  ;;  %292 = vst [vmem:[#allocation2 + $0x10] sm:$0x1] %v290_v48  ;;  %v1969_v36 = vld [vmem:[%s2582_s1 + $0x194] ss:$8 sps:$4 sm:$0xff]  }
  0x36   : > { %1384 = vmatprep.subr.bf16.mxu0 %v1889_v60  ;;  %v508_v52 = vcombine.high %v346_v47, %v346_v47  ;;  %v515_v53 = vrot.slane %v346_v47, %v514_v40  ;;  %v1966_v33 = vld [vmem:[%s2582_s1 + $0x384] ss:$8 sps:$4 sm:$0xff]   ;;  %v1972_v37 = vld [vmem:[%s2582_s1 + $0x394] ss:$8 sps:$4 sm:$0xff]   ;;  %v1982_v47 = vld [vmem:[%s2582_s1 + $0x3b0] ss:$8 sps:$4 sm:$0xff]  }
  0x37   : > { %345 = vst [vmem:[#allocation2 + $0x10] sm:$0x2] %v343_v49  ;;  %v1978_v41 = vld [vmem:[%s2582_s1 + $0x3a4] ss:$8 sps:$4 sm:$0xff]   ;;  %v1981_v44 = vld [vmem:[%s2582_s1 + $0x1b4] ss:$8 sps:$4 sm:$0xff]  }
  0x38   : > { %1303 = vmatpush1.bf16.msra.mxu1 %v1891_v1  ;;  %v523_v55 = vcombine.high %v515_v53, %v515_v53  ;;  %v2319_v60 = vrot.slane %v508_v52, %v514_v40  ;;  %v1921_v1 = vld [vmem:[%s2582_s1 + $0x114] ss:$8 sps:$4 sm:$0xff]   ;;  %v1975_v40 = vld [vmem:[%s2582_s1 + $0x1a4] ss:$8 sps:$4 sm:$0xff]   ;;  %v1997_v58 = vld [vmem:[%s2582_s1 + $0x1e0] ss:$8 sps:$4 sm:$0xff]  }
  0x39   : > { %1385 = vmatpush1.bf16.msra.mxu0 %v1892_v2  ;;  %1304 = vmatprep.subr.bf16.mxu1 %v1893_v7  ;;  %v1924_v2 = vld [vmem:[%s2582_s1 + $0x314] ss:$8 sps:$4 sm:$0xff]   ;;  %v1927_v7 = vld [vmem:[%s2582_s1 + $0x124] ss:$8 sps:$4 sm:$0xff]  }
  0x3a   : > { %1386 = vmatprep.subr.bf16.mxu0 %v1895_v18  ;;  %1310 = vmatprep.mubr.bf16.mxu1 %v523_v55  ;;  %v524_v3 = vcombine.high %v2319_v60, %v2319_v60  ;;  %v1940_v18 = vld [vmem:[%s2582_s1 + $0x340] ss:$8 sps:$4 sm:$0xff]   ;;  %v1984_v45 = vld [vmem:[%s2582_s1 + $0x3b4] ss:$8 sps:$4 sm:$0xff]   ;;  %v1987_v48 = vld [vmem:[%s2582_s1 + $0x1c4] ss:$8 sps:$4 sm:$0xff]  }
  0x3b   : > { %v1990_v49 = vld [vmem:[%s2582_s1 + $0x3c4] ss:$8 sps:$4 sm:$0xff]   ;;  %v1993_v52 = vld [vmem:[%s2582_s1 + $0x1d4] ss:$8 sps:$4 sm:$0xff]   ;;  %v1994_v55 = vld [vmem:[%s2582_s1 + $0x3d0] ss:$8 sps:$4 sm:$0xff]  }
  0x3c   : > { %1305 = vmatpush1.bf16.msra.mxu1 %v1897_v26  ;;  %v1952_v26 = vld [vmem:[%s2582_s1 + $0x360] ss:$8 sps:$4 sm:$0xff]   ;;  %v1999_v56 = vld [vmem:[%s2582_s1 + $0x1e4] ss:$8 sps:$4 sm:$0xff]   ;;  %v2008_v62 = vld [vmem:[%s2582_s1 + $0x3f4] ss:$8 sps:$4 sm:$0xff]  }
  0x3d   : > { %1387 = vmatpush1.bf16.msra.mxu0 %v1898_v31  ;;  %1306 = vmatprep.subr.bf16.mxu1 %v1899_v34  ;;  %v1958_v31 = vld [vmem:[%s2582_s1 + $0x370] ss:$8 sps:$4 sm:$0xff]   ;;  %v1961_v34 = vld [vmem:[%s2582_s1 + $0x180] ss:$8 sps:$4 sm:$0xff]  }
  0x3e   : > { %1388 = vmatprep.subr.bf16.mxu0 %v1901_v35  ;;  %v1964_v35 = vld [vmem:[%s2582_s1 + $0x380] ss:$8 sps:$4 sm:$0xff]  }
  0x40   : > { %1307 = vmatpush1.bf16.msra.mxu1 %v1903_v39  ;;  %v1970_v39 = vld [vmem:[%s2582_s1 + $0x390] ss:$8 sps:$4 sm:$0xff]  }
  0x41   : > { %1389 = vmatpush1.bf16.msra.mxu0 %v1904_v42  ;;  %1308 = vmatprep.subr.bf16.mxu1 %v1905_v43  ;;  %v1973_v42 = vld [vmem:[%s2582_s1 + $0x1a0] ss:$8 sps:$4 sm:$0xff]  }
  0x42   : > { %1390 = vmatprep.subr.bf16.mxu0 %v1907_v46  ;;  %v1976_v43 = vld [vmem:[%s2582_s1 + $0x3a0] ss:$8 sps:$4 sm:$0xff]   ;;  %v1979_v46 = vld [vmem:[%s2582_s1 + $0x1b0] ss:$8 sps:$4 sm:$0xff]  }
  0x44   : > { %1309 = vmatpush1.bf16.msra.mxu1 %v1909_v50  ;;  %v1985_v50 = vld [vmem:[%s2582_s1 + $0x1c0] ss:$8 sps:$4 sm:$0xff]  }
  0x45   : > { %1391 = vmatpush1.bf16.msra.mxu0 %v1910_v51  ;;  %1319 = vmatprep.subr.bf16.mxu1 %v1914_v54  ;;  %v1988_v51 = vld [vmem:[%s2582_s1 + $0x3c0] ss:$8 sps:$4 sm:$0xff]   ;;  %v1991_v54 = vld [vmem:[%s2582_s1 + $0x1d0] ss:$8 sps:$4 sm:$0xff]  }
  0x46   : > { %1401 = vmatprep.subr.bf16.mxu0 %v1918_v57  ;;  %v2002_v57 = vld [vmem:[%s2582_s1 + $0x3e4] ss:$8 sps:$4 sm:$0xff]  }
  0x47   : > { %1311 = vmatmul.mubr.bf16.vlgmr.msra.gmra.mrb[0].mxu1 %v515_v53  ;;  %v1996_v53 = vld [vmem:[%s2582_s1 + $0x3d4] ss:$8 sps:$4 sm:$0xff]  }
  0x48   : > { %1393 = vmatmul.mubr.bf16.vlgmr.msra.gmra.mrb[0].mxu0 %v532_v59  ;;  %1320 = vmatpush1.bf16.msra.mxu1 %v1912_v61  ;;  %v2000_v59 = vld [vmem:[%s2582_s1 + $0x3e0] ss:$8 sps:$4 sm:$0xff]   ;;  %v2005_v61 = vld [vmem:[%s2582_s1 + $0x1f4] ss:$8 sps:$4 sm:$0xff]  }
  0x49   : > { %1402 = vmatpush1.bf16.msra.mxu0 %v1916_v63  ;;  %1321 = vmatprep.subr.bf16.mxu1 %v1921_v1  ;;  %v2003_v63 = vld [vmem:[%s2582_s1 + $0x1f0] ss:$8 sps:$4 sm:$0xff]  }
  0x4a   : > { %1403 = vmatprep.subr.bf16.mxu0 %v1924_v2  ;;  %1351 = vmatprep.mubr.bf16.mxu1 %v524_v3  ;;  %v2006_v1 = vld [vmem:[%s2582_s1 + $0x3f0] ss:$8 sps:$4 sm:$0xff]   ;;  %v2011_v2 = vld [vmem:[%s2582_s1 + $0x404] ss:$8 sps:$4 sm:$0xff]   ;;  %v2009_v3 = vld [vmem:[%s2582_s1 + $0x400] ss:$8 sps:$4 sm:$0xff]  }
  0x4b   : > { %1433 = vmatprep.mubr.bf16.mxu0 %v541_v4  ;;  %v2014_v4 = vld [vmem:[%s2582_s1 + $0x414] ss:$8 sps:$4 sm:$0xff]  }
  0x4c   : > { %1322 = vmatpush1.bf16.msra.mxu1 %v1919_v5  ;;  %v2012_v5 = vld [vmem:[%s2582_s1 + $0x410] ss:$8 sps:$4 sm:$0xff]  }
  0x4d   : > { %1404 = vmatpush1.bf16.msra.mxu0 %v1922_v6  ;;  %1323 = vmatprep.subr.bf16.mxu1 %v1927_v7  ;;  %v2058_v6 = vmov 0   ;;  %v2017_v7 = vld [vmem:[%s2582_s1 + $0x424] ss:$8 sps:$4 sm:$0xff]  }
  0x4e   : > { %1405 = vmatprep.subr.bf16.mxu0 %v1930_v8  ;;  %v2015_v8 = vld [vmem:[%s2582_s1 + $0x420] ss:$8 sps:$4 sm:$0xff]  }
  0x50   : > { %1324 = vmatpush1.bf16.msra.mxu1 %v1925_v9  ;;  %v2023_v9 = vld [vmem:[%s2582_s1 + $0x444] ss:$8 sps:$4 sm:$0xff]  }
  0x51   : > { %1406 = vmatpush1.bf16.msra.mxu0 %v1928_v10  ;;  %1325 = vmatprep.subr.bf16.mxu1 %v1933_v11  ;;  %v2021_v10 = vld [vmem:[%s2582_s1 + $0x440] ss:$8 sps:$4 sm:$0xff]   ;;  %v2026_v11 = vld [vmem:[%s2582_s1 + $0x454] ss:$8 sps:$4 sm:$0xff]  }
  0x52   : > { %1407 = vmatprep.subr.bf16.mxu0 %v1936_v12  ;;  %v2024_v12 = vld [vmem:[%s2582_s1 + $0x450] ss:$8 sps:$4 sm:$0xff]  }
  0x54   : > { %1326 = vmatpush1.bf16.msra.mxu1 %v1931_v13  ;;  %v2029_v13 = vld [vmem:[%s2582_s1 + $0x464] ss:$8 sps:$4 sm:$0xff]  }
  0x55   : > { %1408 = vmatpush1.bf16.msra.mxu0 %v1934_v14  ;;  %1327 = vmatprep.subr.bf16.mxu1 %v1939_v15  ;;  %v2027_v14 = vld [vmem:[%s2582_s1 + $0x460] ss:$8 sps:$4 sm:$0xff]   ;;  %v2032_v15 = vld [vmem:[%s2582_s1 + $0x474] ss:$8 sps:$4 sm:$0xff]  }
  0x56   : > { %1409 = vmatprep.subr.bf16.mxu0 %v1942_v16  ;;  %v2030_v16 = vld [vmem:[%s2582_s1 + $0x470] ss:$8 sps:$4 sm:$0xff]  }
  0x58   : > { %1328 = vmatpush1.bf16.msra.mxu1 %v1937_v17  ;;  %v1622_v17 = vld.sshfl [vmem:[#allocation2 + $0x10] sm:$0x3 pattern:$0x76325410] }
  0x59   : > { %1410 = vmatpush1.bf16.msra.mxu0 %v1940_v18  ;;  %1329 = vmatprep.subr.bf16.mxu1 %v1945_v19 }
  0x5a   : > { %1411 = vmatprep.subr.bf16.mxu0 %v1948_v20 }
  0x5c   : > { %1330 = vmatpush1.bf16.msra.mxu1 %v1943_v21 }
  0x5d   : > { %1412 = vmatpush1.bf16.msra.mxu0 %v1946_v22  ;;  %1331 = vmatprep.subr.bf16.mxu1 %v1951_v23  ;;  %v497_v22 = vsub.s32 0, %v2282_v27  ;;  %v493_v23 = vld [vmem:[%s2583_s2] sm:$0x3] }
  0x5e   : > { %1413 = vmatprep.subr.bf16.mxu0 %v1954_v24  ;;  %v501_v24 = vsub.s32 1, %v2282_v27 }
  0x60   : > { %1332 = vmatpush1.bf16.msra.mxu1 %v1949_v25  ;;  %v498_v25 = vrot.slane %v493_v23, %v497_v22 }
  0x61   : > { %1414 = vmatpush1.bf16.msra.mxu0 %v1952_v26  ;;  %1333 = vmatprep.subr.bf16.mxu1 %v1957_v28  ;;  %v502_v26 = vrot.slane %v493_v23, %v501_v24 }
  0x62   : > { %1415 = vmatprep.subr.bf16.mxu0 %v1960_v29 }
  0x64   : > { %1334 = vmatpush1.bf16.msra.mxu1 %v1955_v30 }
  0x65   : > { %1416 = vmatpush1.bf16.msra.mxu0 %v1958_v31  ;;  %1335 = vmatprep.subr.bf16.mxu1 %v1963_v32 }
  0x66   : > { %1417 = vmatprep.subr.bf16.mxu0 %v1966_v33 }
  0x68   : > { %1336 = vmatpush1.bf16.msra.mxu1 %v1961_v34 }
  0x69   : > { %1418 = vmatpush1.bf16.msra.mxu0 %v1964_v35  ;;  %1337 = vmatprep.subr.bf16.mxu1 %v1969_v36 }
  0x6a   : > { %1419 = vmatprep.subr.bf16.mxu0 %v1972_v37 }
  0x6c   : > { %1338 = vmatpush1.bf16.msra.mxu1 %v1967_v38 }
  0x6d   : > { %1420 = vmatpush1.bf16.msra.mxu0 %v1970_v39  ;;  %1339 = vmatprep.subr.bf16.mxu1 %v1975_v40 }
  0x6e   : > { %1421 = vmatprep.subr.bf16.mxu0 %v1978_v41 }
  0x70   : > { %1340 = vmatpush1.bf16.msra.mxu1 %v1973_v42 }
  0x71   : > { %1422 = vmatpush1.bf16.msra.mxu0 %v1976_v43  ;;  %1341 = vmatprep.subr.bf16.mxu1 %v1981_v44 }
  0x72   : > { %1423 = vmatprep.subr.bf16.mxu0 %v1984_v45 }
  0x74   : > { %1342 = vmatpush1.bf16.msra.mxu1 %v1979_v46 }
  0x75   : > { %1424 = vmatpush1.bf16.msra.mxu0 %v1982_v47  ;;  %1343 = vmatprep.subr.bf16.mxu1 %v1987_v48 }
  0x76   : > { %1425 = vmatprep.subr.bf16.mxu0 %v1990_v49 }
  0x78   : > { %1344 = vmatpush1.bf16.msra.mxu1 %v1985_v50 }
  0x79   : > { %1426 = vmatpush1.bf16.msra.mxu0 %v1988_v51  ;;  %1345 = vmatprep.subr.bf16.mxu1 %v1993_v52 }
  0x7a   : > { %1427 = vmatprep.subr.bf16.mxu0 %v1996_v53 }
  0x7c   : > { %1346 = vmatpush1.bf16.msra.mxu1 %v1991_v54 }
  0x7d   : > { %1428 = vmatpush1.bf16.msra.mxu0 %v1994_v55  ;;  %1347 = vmatprep.subr.bf16.mxu1 %v1999_v56 }
  0x7e   : > { %1429 = vmatprep.subr.bf16.mxu0 %v2002_v57 }
  0x80   : > { %1348 = vmatpush1.bf16.msra.mxu1 %v1997_v58 }
  0x81   : > { %1430 = vmatpush1.bf16.msra.mxu0 %v2000_v59  ;;  %1349 = vmatprep.subr.bf16.mxu1 %v2005_v61 }
  0x82   : > { %1431 = vmatprep.subr.bf16.mxu0 %v2008_v62 }
  0x84   : > { %1350 = vmatpush1.bf16.msra.mxu1 %v2003_v63 }
  0x85   : > { %1432 = vmatpush1.bf16.msra.mxu0 %v2006_v1 }
  0x86   : > { %1442 = vmatprep.subr.bf16.mxu0 %v2011_v2 }
  0x87   : > { %1352 = vmatmul.mubr.bf16.vlgmr.msra.gmra.mrb[0].mxu1 %v2319_v60  ;;  %v2020_v60 = vld [vmem:[%s2582_s1 + $0x434] ss:$8 sps:$4 sm:$0xff]  }
  0x88   : > { %1434 = vmatmul.mubr.bf16.vlgmr.msra.gmra.mrb[0].mxu0 %v2327_v0  ;;  %v2018_v0 = vld [vmem:[%s2582_s1 + $0x430] ss:$8 sps:$4 sm:$0xff]  }
  0x89   : > { %1443 = vmatpush1.bf16.msra.mxu0 %v2009_v3  ;;  %1474 = vmatprep.mubr.bf16.mxu0 %v2058_v6 }
  0x8a   : > { %1444 = vmatprep.subr.bf16.mxu0 %v2014_v4 }
  0x8d   : > { %1445 = vmatpush1.bf16.msra.mxu0 %v2012_v5 }
  0x8e   : > { %1446 = vmatprep.subr.bf16.mxu0 %v2017_v7 }
  0x91   : > { %1447 = vmatpush1.bf16.msra.mxu0 %v2015_v8 }
  0x92   : > { %1448 = vmatprep.subr.bf16.mxu0 %v2020_v60 }
  0x95   : > { %1449 = vmatpush1.bf16.msra.mxu0 %v2018_v0 }
  0x96   : > { %1450 = vmatprep.subr.bf16.mxu0 %v2023_v9 }
  0x99   : > { %1451 = vmatpush1.bf16.msra.mxu0 %v2021_v10 }
  0x9a   : > { %1452 = vmatprep.subr.bf16.mxu0 %v2026_v11 }
  0x9d   : > { %1453 = vmatpush1.bf16.msra.mxu0 %v2024_v12 }
  0x9e   : > { %1454 = vmatprep.subr.bf16.mxu0 %v2029_v13 }
  0xa1   : > { %1455 = vmatpush1.bf16.msra.mxu0 %v2027_v14 }
  0xa2   : > { %1456 = vmatprep.subr.bf16.mxu0 %v2032_v15 }
  0xa5   : > { %1457 = vmatpush1.bf16.msra.mxu0 %v2030_v16 }
  0xa8   : > { %1475 = vmatmul.mubr.bf16.vlgmr.msra.gmra.mrb[0].mxu0 %v1622_v17 }
 0x15a   : > { %v1353_v18 = vpop.f32.mrb[0].mxu1 }
 0x15b   : > { %v1355_v19 = vpop.f32.mrb[1].mxu1  ;;  %v1772_v28 = vadd.f32 %v1353_v18, %v498_v25 }
 0x15c   : > { %v1357_v20 = vpop.f32.mrb[2].mxu1  ;;  %v1774_v29 = vadd.f32 %v1355_v19, %v502_v26 }
 0x15d   : > { %v1358_v21 = vpop.f32.mrb[3].mxu1 }
 0x17b   : > { %v1476_v30 = vpop.f32.mrb[0].mxu0 }
 0x17c   : > { %v1773_v31 = vadd.f32 %v1772_v28, %v1476_v30  ;;  %v1478_v32 = vpop.f32.mrb[1].mxu0 }
 0x17d   : > { %v1775_v33 = vadd.f32 %v1774_v29, %v1478_v32  ;;  %v1480_v34 = vpop.f32.mrb[2].mxu0 }
 0x17e   : > { %v1483_v35 = vmax.f32 %v1773_v31, 0.0  ;;  %v1481_v36 = vpop.f32.mrb[3].mxu0 }
 0x17f   : > { %v1484_v37 = vmax.f32 %v1775_v33, 0.0 }
 0x181   : > { %v1767_v38 = vpack.c.bf16 %v1484_v37, %v1483_v35 }
 0x183   : > { %1768 = vst.sshfl [vmem:[%s233_s10] sm:$0x33 pattern:$0x76325410] %v1767_v38 }
 0x184 PF: > { %s13_s14 = sadd.s32 1, %s2055_s14   ;;  %s2585_s12 = smov %s2051_s13 }
 0x185   : > { %p10_p5 = scmp.ge.s32.totalorder %s13_s14, 4   ;;  %s2586_s13 = smov %s2588_s15 }
 0x187   :  { %12 = sbr.rel (!%p10_p5) target bundleno = 2 (0x2), region = 76 }

// kernel: cnn_encoder_forward.15
= control target key start
LH: loop header
LB: loop body
LE: loop exit
PB: predicated region body
PF: predicated region fallthrough
CT: control target
= control target key end

     0   :  { %vm48_vm0 = vcmask 1043456   ;;  %vm194_vm1 = vcmask 1041409   ;;  %vm196_vm2 = vcmask 1042434   ;;  %vm198_vm3 = vcmask 1043459   ;;  %s330_s0 = inlined_call_operand.vmem [shape: bf16[8,4,256], index: 0, kind: input, shape index: {}]   ;;  %s331_s1 = inlined_call_operand.vmem [shape: f32[8,256], index: 1, kind: output, shape index: {}]  }
   0x1   :  { %v224_v0 = vld [vmem:[%s330_s0] sm:$0xff]   ;;  %v239_v1 = vld [vmem:[%s330_s0 + $0x8] sm:$0xff]   ;;  %v240_v2 = vld [vmem:[%s330_s0 + $0x10] sm:$0xff]   ;;  %vm200_vm4 = vcmask 1044484   ;;  %vm202_vm5 = vcmask 1045509   ;;  %vm204_vm6 = vcmask 1046534  }
   0x2   :  { %v225_v3 = vunpack.c.l.bf16 %v224_v0  ;;  %v226_v4 = vunpack.c.h.bf16 %v224_v0  ;;  %v229_v5 = vunpack.c.l.bf16 %v239_v1  ;;  %v230_v6 = vunpack.c.h.bf16 %v239_v1  ;;  %v241_v7 = vld [vmem:[%s330_s0 + $0x18] sm:$0xff]  }
   0x3   :  { %v264_v8 = vunpack.c.l.bf16 %v240_v2  ;;  %v266_v9 = vunpack.c.h.bf16 %v240_v2  ;;  %v268_v14 = vunpack.c.l.bf16 %v241_v7  ;;  %v270_v15 = vunpack.c.h.bf16 %v241_v7 }
   0x4   :  { %v32_v10 = vcombine.high %v225_v3, %v225_v3  ;;  %v33_v11 = vcombine.high %v226_v4, %v226_v4  ;;  %v34_v12 = vcombine.high %v229_v5, %v229_v5  ;;  %v35_v13 = vcombine.high %v230_v6, %v230_v6 }
   0x5   :  { %v36_v16 = vcombine.high %v264_v8, %v264_v8  ;;  %v37_v17 = vcombine.high %v266_v9, %v266_v9  ;;  %v49_v18 = vsel %vm48_vm0, %v225_v3, 0.0  ;;  %v63_v20 = vsel %vm48_vm0, %v226_v4, 0.0 }
   0x6   :  { %v56_v19 = vsel %vm48_vm0, %v32_v10, 0.0  ;;  %v70_v21 = vsel %vm48_vm0, %v33_v11, 0.0  ;;  %v50_v22 = vrot.slane %v49_v18, 4  ;;  %v64_v24 = vrot.slane %v63_v20, 4 }
   0x7   :  { %v57_v23 = vrot.slane %v56_v19, 4  ;;  %v71_v25 = vrot.slane %v70_v21, 4  ;;  %v77_v26 = vsel %vm48_vm0, %v229_v5, 0.0  ;;  %v84_v27 = vsel %vm48_vm0, %v34_v12, 0.0 }
   0x8   :  { %v91_v28 = vsel %vm48_vm0, %v230_v6, 0.0  ;;  %v98_v29 = vsel %vm48_vm0, %v35_v13, 0.0  ;;  %v51_v30 = vadd.f32 %v50_v22, %v49_v18  ;;  %v65_v32 = vadd.f32 %v64_v24, %v63_v20 }
   0x9   :  { %v58_v31 = vadd.f32 %v57_v23, %v56_v19  ;;  %v72_v33 = vadd.f32 %v71_v25, %v70_v21  ;;  %v78_v34 = vrot.slane %v77_v26, 4  ;;  %v85_v35 = vrot.slane %v84_v27, 4 }
   0xa   :  { %v92_v36 = vrot.slane %v91_v28, 4  ;;  %v99_v37 = vrot.slane %v98_v29, 4  ;;  %v52_v38 = vrot.slane %v51_v30, 2  ;;  %v66_v40 = vrot.slane %v65_v32, 2 }
   0xb   :  { %v59_v39 = vrot.slane %v58_v31, 2  ;;  %v73_v41 = vrot.slane %v72_v33, 2  ;;  %v79_v42 = vadd.f32 %v78_v34, %v77_v26  ;;  %v86_v43 = vadd.f32 %v85_v35, %v84_v27 }
   0xc   :  { %v93_v44 = vadd.f32 %v92_v36, %v91_v28  ;;  %v100_v45 = vadd.f32 %v99_v37, %v98_v29  ;;  %v53_v46 = vadd.f32 %v52_v38, %v51_v30  ;;  %v67_v48 = vadd.f32 %v66_v40, %v65_v32 }
   0xd   :  { %v60_v47 = vadd.f32 %v59_v39, %v58_v31  ;;  %v74_v49 = vadd.f32 %v73_v41, %v72_v33  ;;  %v80_v50 = vrot.slane %v79_v42, 2  ;;  %v87_v51 = vrot.slane %v86_v43, 2 }
   0xe   :  { %v94_v52 = vrot.slane %v93_v44, 2  ;;  %v101_v53 = vrot.slane %v100_v45, 2  ;;  %v54_v54 = vrot.slane %v53_v46, 1  ;;  %v68_v56 = vrot.slane %v67_v48, 1 }
   0xf   :  { %v61_v55 = vrot.slane %v60_v47, 1  ;;  %v75_v57 = vrot.slane %v74_v49, 1  ;;  %v81_v58 = vadd.f32 %v80_v50, %v79_v42  ;;  %v88_v59 = vadd.f32 %v87_v51, %v86_v43 }
  0x10   :  { %v95_v60 = vadd.f32 %v94_v52, %v93_v44  ;;  %v102_v61 = vadd.f32 %v101_v53, %v100_v45  ;;  %v38_v62 = vcombine.high %v268_v14, %v268_v14  ;;  %v39_v63 = vcombine.high %v270_v15, %v270_v15 }
  0x11   :  { %v288_v0 = vadd.f32 %v54_v54, %v53_v46  ;;  %v290_v1 = vadd.f32 %v61_v55, %v60_v47  ;;  %v292_v2 = vadd.f32 %v68_v56, %v67_v48  ;;  %v294_v3 = vadd.f32 %v75_v57, %v74_v49 }
  0x12   :  { %v105_v4 = vsel %vm48_vm0, %v264_v8, 0.0  ;;  %v112_v5 = vsel %vm48_vm0, %v36_v16, 0.0  ;;  %v119_v6 = vsel %vm48_vm0, %v266_v9, 0.0  ;;  %v126_v7 = vsel %vm48_vm0, %v37_v17, 0.0 }
  0x13   :  { %v82_v10 = vrot.slane %v81_v58, 1  ;;  %v89_v11 = vrot.slane %v88_v59, 1  ;;  %v96_v12 = vrot.slane %v95_v60, 1  ;;  %v103_v13 = vrot.slane %v102_v61, 1 }
  0x14   :  { %v106_v18 = vrot.slane %v105_v4, 4  ;;  %v113_v19 = vrot.slane %v112_v5, 4  ;;  %v120_v20 = vrot.slane %v119_v6, 4  ;;  %v127_v21 = vrot.slane %v126_v7, 4 }
  0x15   :  { %v133_v22 = vsel %vm48_vm0, %v268_v14, 0.0  ;;  %v140_v8 = vsel %vm48_vm0, %v38_v62, 0.0  ;;  %v147_v16 = vsel %vm48_vm0, %v270_v15, 0.0  ;;  %v154_v9 = vsel %vm48_vm0, %v39_v63, 0.0 }
  0x16   :  { %v107_v23 = vadd.f32 %v106_v18, %v105_v4  ;;  %v114_v17 = vadd.f32 %v113_v19, %v112_v5  ;;  %v121_v24 = vadd.f32 %v120_v20, %v119_v6  ;;  %v128_v25 = vadd.f32 %v127_v21, %v126_v7 }
  0x17   :  { %v134_v26 = vrot.slane %v133_v22, 4  ;;  %v141_v27 = vrot.slane %v140_v8, 4  ;;  %v148_v28 = vrot.slane %v147_v16, 4  ;;  %v155_v29 = vrot.slane %v154_v9, 4 }
  0x18   :  { %v108_v30 = vrot.slane %v107_v23, 2  ;;  %v115_v31 = vrot.slane %v114_v17, 2  ;;  %v122_v32 = vrot.slane %v121_v24, 2  ;;  %v129_v33 = vrot.slane %v128_v25, 2 }
  0x19   :  { %v135_v14 = vadd.f32 %v134_v26, %v133_v22  ;;  %v142_v34 = vadd.f32 %v141_v27, %v140_v8  ;;  %v149_v35 = vadd.f32 %v148_v28, %v147_v16  ;;  %v156_v36 = vadd.f32 %v155_v29, %v154_v9 }
  0x1a   :  { %v109_v37 = vadd.f32 %v108_v30, %v107_v23  ;;  %v116_v15 = vadd.f32 %v115_v31, %v114_v17  ;;  %v123_v38 = vadd.f32 %v122_v32, %v121_v24  ;;  %v130_v39 = vadd.f32 %v129_v33, %v128_v25 }
  0x1b   :  { %v136_v40 = vrot.slane %v135_v14, 2  ;;  %v143_v41 = vrot.slane %v142_v34, 2  ;;  %v150_v42 = vrot.slane %v149_v35, 2  ;;  %v157_v43 = vrot.slane %v156_v36, 2 }
  0x1c   :  { %v110_v44 = vrot.slane %v109_v37, 1  ;;  %v117_v45 = vrot.slane %v116_v15, 1  ;;  %v124_v46 = vrot.slane %v123_v38, 1  ;;  %v131_v47 = vrot.slane %v130_v39, 1 }
  0x1d   :  { %v137_v48 = vadd.f32 %v136_v40, %v135_v14  ;;  %v144_v49 = vadd.f32 %v143_v41, %v142_v34  ;;  %v151_v50 = vadd.f32 %v150_v42, %v149_v35  ;;  %v158_v51 = vadd.f32 %v157_v43, %v156_v36 }
  0x1e   :  { %v83_v52 = vadd.f32 %v82_v10, %v81_v58  ;;  %v90_v53 = vadd.f32 %v89_v11, %v88_v59  ;;  %v97_v54 = vadd.f32 %v96_v12, %v95_v60  ;;  %v104_v55 = vadd.f32 %v103_v13, %v102_v61 }
  0x1f   :  { %v138_v56 = vrot.slane %v137_v48, 1  ;;  %v145_v57 = vrot.slane %v144_v49, 1  ;;  %v152_v62 = vrot.slane %v151_v50, 1  ;;  %v159_v63 = vrot.slane %v158_v51, 1 }
  0x20   :  { %v111_v4 = vadd.f32 %v110_v44, %v109_v37  ;;  %v118_v5 = vadd.f32 %v117_v45, %v116_v15  ;;  %v125_v6 = vadd.f32 %v124_v46, %v123_v38  ;;  %v132_v7 = vadd.f32 %v131_v47, %v130_v39 }
  0x21   :  { %v162_v18 = vmul.f32 0.25, %v288_v0  ;;  %v163_v19 = vmul.f32 0.25, %v290_v1  ;;  %v164_v20 = vmul.f32 0.25, %v292_v2  ;;  %v165_v21 = vmul.f32 0.25, %v294_v3 }
  0x22   :  { %v139_v58 = vadd.f32 %v138_v56, %v137_v48  ;;  %v146_v59 = vadd.f32 %v145_v57, %v144_v49  ;;  %v166_v60 = vmul.f32 0.25, %v83_v52  ;;  %v167_v61 = vmul.f32 0.25, %v90_v53 }
  0x23   :  { %v153_v10 = vadd.f32 %v152_v62, %v151_v50  ;;  %v160_v11 = vadd.f32 %v159_v63, %v158_v51  ;;  %v168_v12 = vmul.f32 0.25, %v97_v54  ;;  %v169_v13 = vmul.f32 0.25, %v104_v55 }
  0x24   :  { %v170_v22 = vmul.f32 0.25, %v111_v4  ;;  %v171_v8 = vmul.f32 0.25, %v118_v5  ;;  %v172_v16 = vmul.f32 0.25, %v125_v6  ;;  %v173_v0 = vmul.f32 0.25, %v132_v7 }
  0x25   :  { %v195_v1 = vsel %vm194_vm1, %v164_v20, %v162_v18  ;;  %v208_v2 = vsel %vm194_vm1, %v165_v21, %v163_v19  ;;  %v174_v9 = vmul.f32 0.25, %v139_v58  ;;  %v175_v3 = vmul.f32 0.25, %v146_v59 }
  0x26   :  { %v197_v23 = vsel %vm196_vm2, %v166_v60, %v195_v1  ;;  %v209_v17 = vsel %vm196_vm2, %v167_v61, %v208_v2  ;;  %v176_v24 = vmul.f32 0.25, %v153_v10  ;;  %v177_v25 = vmul.f32 0.25, %v160_v11 }
  0x27   :  { %v199_v26 = vsel %vm198_vm3, %v168_v12, %v197_v23  ;;  %v210_v27 = vsel %vm198_vm3, %v169_v13, %v209_v17  ;;  %vm206_vm7 = vcmask 1047559  }
  0x28   :  { %v201_v28 = vsel %vm200_vm4, %v170_v22, %v199_v26  ;;  %v211_v29 = vsel %vm200_vm4, %v171_v8, %v210_v27 }
  0x29   :  { %v203_v30 = vsel %vm202_vm5, %v172_v16, %v201_v28  ;;  %v212_v31 = vsel %vm202_vm5, %v173_v0, %v211_v29 }
  0x2a   :  { %v205_v32 = vsel %vm204_vm6, %v174_v9, %v203_v30  ;;  %v213_v33 = vsel %vm204_vm6, %v175_v3, %v212_v31 }
  0x2b   :  { %v207_v14 = vsel %vm206_vm7, %v176_v24, %v205_v32  ;;  %v214_v34 = vsel %vm206_vm7, %v177_v25, %v213_v33 }
  0x2c   :  { %217 = vst [vmem:[%s331_s1] sm:$0xff] %v207_v14  ;;  %218 = vst [vmem:[%s331_s1 + $0x8] sm:$0xff] %v214_v34 }

</bundles_post_ra>
